<compile_context>
chip_gen: v5e
topology: v5e:2x2
jax: 0.10.0
libtpu: 0.0.40
codegen_flags: <defaults>
</compile_context>

<pallas_src>
import numpy as np
import jax
import jax.numpy as jnp
from jax import lax
from jax.experimental import pallas as pl
from jax.experimental.pallas import tpu as pltpu


# ----------------------------------------------------------------------------
# Host-side folding helpers (numpy, run once at setup)
# ----------------------------------------------------------------------------
def upsample_matrix(n_in, factor):
    """Interpolation matrix of nn.UpsamplingBilinear2d (align_corners=True)."""
    n_out = n_in * factor
    M = np.zeros((n_out, n_in), np.float32)
    if n_in == 1:
        M[:, 0] = 1.0
        return M
    pos = np.arange(n_out) * (n_in - 1) / (n_out - 1)
    lo = np.minimum(np.floor(pos).astype(np.int64), n_in - 2)
    frac = (pos - lo).astype(np.float32)
    M[np.arange(n_out), lo] = 1.0 - frac
    M[np.arange(n_out), lo + 1] = frac
    return M


def fold_conv3x3(K, Win, Cin, Cout, Wout, stride):
    """Fold a 3x3 conv (pad=1, stride 1 or 2 along W) into 3 matrices G[ky]
    of shape (Win*Cin, Wout*Cout) acting on (H, W*C)-layout activations."""
    K = np.asarray(K, np.float32)                      # (Cout, Cin, 3, 3)
    G = np.zeros((3, Win * Cin, Wout * Cout), np.float32)
    for ky in range(3):
        for wo in range(Wout):
            for kx in range(3):
                wi = stride * wo + kx - 1
                if 0 <= wi < Win:
                    G[ky, wi * Cin:(wi + 1) * Cin,
                      wo * Cout:(wo + 1) * Cout] = K[:, :, ky, kx].T
    return G


def fold_conv1x1(K, W, Cin, Cout):
    K = np.asarray(K, np.float32).reshape(Cout, Cin)
    return np.kron(np.eye(W, dtype=np.float32), K.T)   # (W*Cin, W*Cout)


def tile_bn(v, W):
    return np.tile(np.asarray(v, np.float32).reshape(-1), W)[None, :]  # (1, W*C)


def even_row_selector(Ho, Hin):
    S = np.zeros((Ho, Hin), np.float32)
    S[np.arange(Ho), 2 * np.arange(Ho)] = 1.0
    return S


# ----------------------------------------------------------------------------
# Parameter folding for the kernel
# ----------------------------------------------------------------------------
def fold_params(params, n_channels, spatial):
    nb = len(n_channels)
    branches = []
    for i in range(nb):
        C = n_channels[i]
        H, W = spatial[i]
        g_l, s_l, b_l = [], [], []
        for blk in params["branches"][i]:
            for (w, s, b) in ((blk["w1"], blk["s1"], blk["b1"]),
                              (blk["w2"], blk["s2"], blk["b2"])):
                g_l.append(fold_conv3x3(w, W, C, C, W, 1))
                s_l.append(tile_bn(s, W)[0])
                b_l.append(tile_bn(b, W)[0])
        branches.append({
            "g": jnp.asarray(np.stack(g_l)),               # (8, 3, WC, WC)
            "s": jnp.asarray(np.stack(s_l)[:, None, :]),   # (8, 1, WC)
            "b": jnp.asarray(np.stack(b_l)[:, None, :]),   # (8, 1, WC)
        })

    fuse = {}
    for i in range(nb):
        for j in range(nb):
            if i == j:
                continue
            fp = params["fuse"][i][j]
            if i < j:
                Ci, Cj = n_channels[i], n_channels[j]
                Hj, Wj = spatial[j]
                Mh = np.asarray(fp["Mh"], np.float32)      # (Hi, Hj)
                Mw = np.asarray(fp["Mw"], np.float32)      # (Wi, Wj)
                fuse[(i, j)] = {
                    "g1": jnp.asarray(fold_conv1x1(fp["w"], Wj, Cj, Ci)),
                    "s": jnp.asarray(tile_bn(fp["scale"], Wj)),
                    "b": jnp.asarray(tile_bn(fp["bias"], Wj)),
                    "gw": jnp.asarray(np.kron(Mw.T, np.eye(Ci, dtype=np.float32))),
                    "mh": jnp.asarray(Mh),
                }
            else:
                stages = []
                Hc, Wc = spatial[j]
                Cin = n_channels[j]
                ns = i - j
                for s_idx in range(ns):
                    st = fp["stages"][s_idx]
                    last = (s_idx == ns - 1)
                    Cout = n_channels[i] if last else n_channels[j]
                    Ho, Wo = Hc // 2, Wc // 2
                    stages.append({
                        "g": jnp.asarray(fold_conv3x3(st["w"], Wc, Cin, Cout, Wo, 2)),
                        "s": jnp.asarray(tile_bn(st["scale"], Wo)),
                        "b": jnp.asarray(tile_bn(st["bias"], Wo)),
                        "sel": jnp.asarray(even_row_selector(Ho, Hc)),
                    })
                    Hc, Wc = Ho, Wo
                fuse[(i, j)] = {"stages": stages}
    return {"branches": branches, "fuse": fuse}


def compute_pad_keys(n_channels, spatial):
    """Distinct (rows, lanes) sizes of the H-padding VMEM scratches."""
    nb = len(n_channels)
    keys = []

    def add(k):
        if k not in keys:
            keys.append(k)

    for i in range(nb):
        H, W = spatial[i]
        add((H + 2, W * n_channels[i]))
    for i in range(nb):
        for j in range(nb):
            if i > j:
                Hc, Wc = spatial[j]
                for _ in range(i - j):
                    add((Hc + 2, Wc * n_channels[j]))
                    Hc, Wc = Hc // 2, Wc // 2
    return keys


# ----------------------------------------------------------------------------
# The fused Pallas kernel
# ----------------------------------------------------------------------------
def make_kernel(n_branches, n_channels, spatial, treedef, n_leaves, pad_keys):
    pad_index = {k: idx for idx, k in enumerate(pad_keys)}

    def kernel(*refs):
        x_refs = refs[:n_branches]
        w_refs = refs[n_branches:n_branches + n_leaves]
        out_refs = refs[n_branches + n_leaves:n_branches + n_leaves + n_branches]
        pad_refs = refs[n_branches + n_leaves + n_branches:]
        P = jax.tree_util.tree_unflatten(treedef, list(w_refs))

        # Zero the H-padding scratches once; interiors are overwritten per conv
        # and the border rows are never written, so they stay zero.
        for pr in pad_refs:
            pr[...] = jnp.zeros(pr.shape, pr.dtype)

        def conv3x3(a, gmats, svec, bvec, pad, *, relu, residual=None, sel=None):
            """a: (Hin, Win*Cin) value; gmats: 3 x (Win*Cin, Wout*Cout)."""
            Hin = a.shape[0]
            pad[1:Hin + 1, :] = a
            acc = jnp.dot(pad[0:Hin, :], gmats[0],
                          preferred_element_type=jnp.float32)
            acc = acc + jnp.dot(pad[1:Hin + 1, :], gmats[1],
                                preferred_element_type=jnp.float32)
            acc = acc + jnp.dot(pad[2:Hin + 2, :], gmats[2],
                                preferred_element_type=jnp.float32)
            if sel is not None:                 # stride-2: keep even output rows
                acc = jnp.dot(sel, acc, preferred_element_type=jnp.float32)
            acc = acc * svec + bvec             # folded BatchNorm
            if residual is not None:
                acc = acc + residual
            if relu:
                acc = jnp.maximum(acc, 0.0)
            return acc

        # ----------------------- branches: 4 BasicBlocks each ----------------
        ys = []
        for i in range(n_branches):
            H, W = spatial[i]
            WC = W * n_channels[i]
            bp = P["branches"][i]
            pad = pad_refs[pad_index[(H + 2, WC)]]
            a = x_refs[i][0]
            for blk in range(4):
                res = a
                k = 2 * blk
                a = conv3x3(a, [bp["g"][k, ky] for ky in range(3)],
                            bp["s"][k], bp["b"][k], pad, relu=True)
                k = 2 * blk + 1
                a = conv3x3(a, [bp["g"][k, ky] for ky in range(3)],
                            bp["s"][k], bp["b"][k], pad, relu=True, residual=res)
            ys.append(a)

        # ----------------------- fuse layers + summation ---------------------
        for i in range(n_branches):
            acc = ys[i]                          # i == j path (identity)
            for j in range(n_branches):
                if j == i:
                    continue
                fp = P["fuse"][(i, j)]
                if i < j:
                    # 1x1 conv + BN, then separable bilinear upsample.
                    t = jnp.dot(ys[j], fp["g1"][...],
                                preferred_element_type=jnp.float32)
                    t = t * fp["s"][...] + fp["b"][...]
                    t = jnp.dot(t, fp["gw"][...],
                                preferred_element_type=jnp.float32)   # W upsample
                    t = jnp.dot(fp["mh"][...], t,
                                preferred_element_type=jnp.float32)   # H upsample
                else:
                    # (i - j) stride-2 conv3x3 + BN (+ReLU except last).
                    t = ys[j]
                    Hc = spatial[j][0]
                    ns = i - j
                    for s_idx in range(ns):
                        st = fp["stages"][s_idx]
                        pad = pad_refs[pad_index[(Hc + 2, t.shape[1])]]
                        t = conv3x3(t, [st["g"][ky] for ky in range(3)],
                                    st["s"][...], st["b"][...], pad,
                                    relu=(s_idx != ns - 1), sel=st["sel"][...])
                        Hc //= 2
                acc = acc + t
            out_refs[i][0] = acc

    return kernel


def hr_module_forward(xs_nhwc, params, n_channels, spatial):
    nb = len(xs_nhwc)
    N = xs_nhwc[0].shape[0]
    folded = fold_params(params, n_channels, spatial)
    leaves, treedef = jax.tree_util.tree_flatten(folded)
    pad_keys = compute_pad_keys(n_channels, spatial)

    # NHWC -> (N, H, W*C) slabs (free bitcast reshapes at the XLA level).
    xs2d = [x.reshape(N, spatial[i][0], spatial[i][1] * n_channels[i])
            for i, x in enumerate(xs_nhwc)]

    def zero_map(r):
        return lambda n: (0,) * r

    in_specs = ([pl.BlockSpec((1,) + x.shape[1:], lambda n: (n, 0, 0))
                 for x in xs2d]
                + [pl.BlockSpec(tuple(l.shape), zero_map(l.ndim)) for l in leaves])
    out_specs = [pl.BlockSpec((1, spatial[i][0], spatial[i][1] * n_channels[i]),
                              lambda n: (n, 0, 0)) for i in range(nb)]
    out_shape = [jax.ShapeDtypeStruct(
        (N, spatial[i][0], spatial[i][1] * n_channels[i]), jnp.float32)
        for i in range(nb)]
    scratch_shapes = [pltpu.VMEM(k, jnp.float32) for k in pad_keys]

    kernel = make_kernel(nb, n_channels, spatial, treedef, len(leaves), pad_keys)

    outs2d = pl.pallas_call(
        kernel,
        out_shape=out_shape,
        grid=(N,),
        in_specs=in_specs,
        out_specs=out_specs,
        scratch_shapes=scratch_shapes,
        compiler_params=pltpu.CompilerParams(
            dimension_semantics=("parallel",)),
    )(*xs2d, *leaves)

    return [outs2d[i].reshape(N, spatial[i][0], spatial[i][1], n_channels[i])
            for i in range(nb)]


# ----------------------------------------------------------------------------
# Deterministic parameter construction
# ----------------------------------------------------------------------------
class KeyGen:
    def __init__(self, key):
        self.key = key

    def __call__(self):
        self.key, k = jax.random.split(self.key)
        return k


def make_conv(kg, cout, cin, k):
    fan_in = cin * k * k
    return jax.random.normal(kg(), (cout, cin, k, k), jnp.float32) / np.sqrt(fan_in)


def make_bn(kg, c):
    gamma = 1.0 + 0.1 * jax.random.normal(kg(), (c,), jnp.float32)
    beta = 0.1 * jax.random.normal(kg(), (c,), jnp.float32)
    mean = 0.1 * jax.random.normal(kg(), (c,), jnp.float32)
    var = jnp.abs(1.0 + 0.1 * jax.random.normal(kg(), (c,), jnp.float32))
    scale = gamma * lax.rsqrt(var + 1e-5)
    bias = beta - mean * scale
    return scale, bias


def make_params(kg, n_branches, n_channels, spatial):
    branches = []
    for i in range(n_branches):
        c = n_channels[i]
        blocks = []
        for _ in range(4):               # 4 BasicBlocks per branch
            s1, b1 = make_bn(kg, c)
            s2, b2 = make_bn(kg, c)
            blocks.append(dict(w1=make_conv(kg, c, c, 3), s1=s1, b1=b1,
                               w2=make_conv(kg, c, c, 3), s2=s2, b2=b2))
        branches.append(blocks)

    fuse = []
    for i in range(n_branches):
        row = []
        for j in range(n_branches):
            if i == j:
                row.append(None)
            elif i < j:
                factor = 2 ** (j - i)
                Hj, Wj = spatial[j]
                s, b = make_bn(kg, n_channels[i])
                row.append(dict(
                    w=make_conv(kg, n_channels[i], n_channels[j], 1),
                    scale=s, bias=b,
                    Mh=jnp.asarray(upsample_matrix(Hj, factor)),
                    Mw=jnp.asarray(upsample_matrix(Wj, factor))))
            else:
                stages = []
                for t in range(i - j):
                    last = (t == i - j - 1)
                    cin = n_channels[j]
                    cout = n_channels[i] if last else n_channels[j]
                    s, b = make_bn(kg, cout)
                    stages.append(dict(w=make_conv(kg, cout, cin, 3),
                                       scale=s, bias=b, relu=not last))
                row.append(dict(stages=stages))
        fuse.append(row)
    return dict(branches=branches, fuse=fuse)


# ----------------------------------------------------------------------------
# Pure-JAX reference (numerical self-check)
# ----------------------------------------------------------------------------
def ref_conv_bn(x, w, scale, bias, stride, pad, relu, residual=None):
    y = lax.conv_general_dilated(
        x, w, (stride, stride), [(pad, pad), (pad, pad)],
        dimension_numbers=("NHWC", "OIHW", "NHWC"),
        precision=lax.Precision.HIGHEST)
    y = y * scale.reshape(1, 1, 1, -1) + bias.reshape(1, 1, 1, -1)
    if residual is not None:
        y = y + residual
    if relu:
        y = jnp.maximum(y, 0.0)
    return y


def ref_basic_block(x, p):
    out = ref_conv_bn(x, p["w1"], p["s1"], p["b1"], 1, 1, True)
    out = ref_conv_bn(out, p["w2"], p["s2"], p["b2"], 1, 1, True, residual=x)
    return out


def ref_hr_module_forward(xs, params):
    n = len(xs)
    ys = []
    for i in range(n):
        x = xs[i]
        for blk in params["branches"][i]:
            x = ref_basic_block(x, blk)
        ys.append(x)
    outs = []
    for i in range(n):
        acc = None
        for j in range(n):
            if i == j:
                t = ys[j]
            elif i < j:
                fp = params["fuse"][i][j]
                t = ref_conv_bn(ys[j], fp["w"], fp["scale"], fp["bias"], 1, 0, False)
                t = jnp.einsum("oi,pw,niwc->nopc", fp["Mh"], fp["Mw"], t)
            else:
                t = ys[j]
                for st in params["fuse"][i][j]["stages"]:
                    t = ref_conv_bn(t, st["w"], st["scale"], st["bias"], 2, 1,
                                    st["relu"])
            acc = t if acc is None else acc + t
        outs.append(acc)
    return outs


# ----------------------------------------------------------------------------
if __name__ == "__main__":
    n_branches = 3
    n_channels = [4, 8, 16]
    N = 2
    spatial = [(16, 16), (8, 8), (4, 4)]

    kg = KeyGen(jax.random.PRNGKey(0))
    params = make_params(kg, n_branches, n_channels, spatial)

    # PyTorch-style NCHW inputs, transposed to NHWC at the boundary.
    xs_nchw = [jax.random.normal(kg(), (N, c, h, w), jnp.float32)
               for c, (h, w) in zip(n_channels, spatial)]
    xs = [jnp.transpose(x, (0, 2, 3, 1)) for x in xs_nchw]

    outs = hr_module_forward(xs, params, n_channels, spatial)
    outs = jax.block_until_ready(outs)

    refs = ref_hr_module_forward(list(xs), params)
    refs = jax.block_until_ready(refs)
    for o, r in zip(outs, refs):
        np.testing.assert_allclose(np.asarray(o), np.asarray(r),
                                   rtol=1e-2, atol=1e-2)

    print("KERNEL_OK")
</pallas_src>

<mosaic_0001>
module attributes {stable_mosaic.version = 11 : i64} {
  func.func @kernel(%arg0: i32, %arg1: memref<1x16x64xf32, #tpu.memory_space<vmem>>, %arg2: memref<1x8x64xf32, #tpu.memory_space<vmem>>, %arg3: memref<1x4x64xf32, #tpu.memory_space<vmem>>, %arg4: memref<8x1x64xf32, #tpu.memory_space<vmem>>, %arg5: memref<8x3x64x64xf32, #tpu.memory_space<vmem>>, %arg6: memref<8x1x64xf32, #tpu.memory_space<vmem>>, %arg7: memref<8x1x64xf32, #tpu.memory_space<vmem>>, %arg8: memref<8x3x64x64xf32, #tpu.memory_space<vmem>>, %arg9: memref<8x1x64xf32, #tpu.memory_space<vmem>>, %arg10: memref<8x1x64xf32, #tpu.memory_space<vmem>>, %arg11: memref<8x3x64x64xf32, #tpu.memory_space<vmem>>, %arg12: memref<8x1x64xf32, #tpu.memory_space<vmem>>, %arg13: memref<1x32xf32, #tpu.memory_space<vmem>>, %arg14: memref<64x32xf32, #tpu.memory_space<vmem>>, %arg15: memref<32x64xf32, #tpu.memory_space<vmem>>, %arg16: memref<16x8xf32, #tpu.memory_space<vmem>>, %arg17: memref<1x32xf32, #tpu.memory_space<vmem>>, %arg18: memref<1x16xf32, #tpu.memory_space<vmem>>, %arg19: memref<64x16xf32, #tpu.memory_space<vmem>>, %arg20: memref<16x64xf32, #tpu.memory_space<vmem>>, %arg21: memref<16x4xf32, #tpu.memory_space<vmem>>, %arg22: memref<1x16xf32, #tpu.memory_space<vmem>>, %arg23: memref<1x64xf32, #tpu.memory_space<vmem>>, %arg24: memref<3x64x64xf32, #tpu.memory_space<vmem>>, %arg25: memref<1x64xf32, #tpu.memory_space<vmem>>, %arg26: memref<8x16xf32, #tpu.memory_space<vmem>>, %arg27: memref<1x32xf32, #tpu.memory_space<vmem>>, %arg28: memref<64x32xf32, #tpu.memory_space<vmem>>, %arg29: memref<32x64xf32, #tpu.memory_space<vmem>>, %arg30: memref<8x4xf32, #tpu.memory_space<vmem>>, %arg31: memref<1x32xf32, #tpu.memory_space<vmem>>, %arg32: memref<1x32xf32, #tpu.memory_space<vmem>>, %arg33: memref<3x64x32xf32, #tpu.memory_space<vmem>>, %arg34: memref<1x32xf32, #tpu.memory_space<vmem>>, %arg35: memref<8x16xf32, #tpu.memory_space<vmem>>, %arg36: memref<1x64xf32, #tpu.memory_space<vmem>>, %arg37: memref<3x32x64xf32, #tpu.memory_space<vmem>>, %arg38: memref<1x64xf32, #tpu.memory_space<vmem>>, %arg39: memref<4x8xf32, #tpu.memory_space<vmem>>, %arg40: memref<1x64xf32, #tpu.memory_space<vmem>>, %arg41: memref<3x64x64xf32, #tpu.memory_space<vmem>>, %arg42: memref<1x64xf32, #tpu.memory_space<vmem>>, %arg43: memref<4x8xf32, #tpu.memory_space<vmem>>, %arg44: memref<1x16x64xf32, #tpu.memory_space<vmem>>, %arg45: memref<1x8x64xf32, #tpu.memory_space<vmem>>, %arg46: memref<1x4x64xf32, #tpu.memory_space<vmem>>, %arg47: memref<18x64xf32, #tpu.memory_space<vmem>>, %arg48: memref<10x64xf32, #tpu.memory_space<vmem>>, %arg49: memref<6x64xf32, #tpu.memory_space<vmem>>, %arg50: memref<10x32xf32, #tpu.memory_space<vmem>>) attributes {dimension_semantics = [#tpu.dimension_semantics<parallel>], iteration_bounds = array<i64: 2>, scalar_prefetch = 0 : i64, scratch_operands = 4 : i64, tpu.core_type = #tpu.core_type<tc>, window_params = [{transform_indices = @transform_0, window_bounds = array<i64: 1, 16, 64>}, {transform_indices = @transform_1, window_bounds = array<i64: 1, 8, 64>}, {transform_indices = @transform_2, window_bounds = array<i64: 1, 4, 64>}, {pipeline_mode = #tpu.pipeline_mode<synchronous>, transform_indices = @transform_3, window_bounds = array<i64: 8, 1, 64>}, {pipeline_mode = #tpu.pipeline_mode<synchronous>, transform_indices = @transform_4, window_bounds = array<i64: 8, 3, 64, 64>}, {pipeline_mode = #tpu.pipeline_mode<synchronous>, transform_indices = @transform_5, window_bounds = array<i64: 8, 1, 64>}, {pipeline_mode = #tpu.pipeline_mode<synchronous>, transform_indices = @transform_6, window_bounds = array<i64: 8, 1, 64>}, {pipeline_mode = #tpu.pipeline_mode<synchronous>, transform_indices = @transform_7, window_bounds = array<i64: 8, 3, 64, 64>}, {pipeline_mode = #tpu.pipeline_mode<synchronous>, transform_indices = @transform_8, window_bounds = array<i64: 8, 1, 64>}, {pipeline_mode = #tpu.pipeline_mode<synchronous>, transform_indices = @transform_9, window_bounds = array<i64: 8, 1, 64>}, {pipeline_mode = #tpu.pipeline_mode<synchronous>, transform_indices = @transform_10, window_bounds = array<i64: 8, 3, 64, 64>}, {pipeline_mode = #tpu.pipeline_mode<synchronous>, transform_indices = @transform_11, window_bounds = array<i64: 8, 1, 64>}, {pipeline_mode = #tpu.pipeline_mode<synchronous>, transform_indices = @transform_12, window_bounds = array<i64: 1, 32>}, {pipeline_mode = #tpu.pipeline_mode<synchronous>, transform_indices = @transform_13, window_bounds = array<i64: 64, 32>}, {pipeline_mode = #tpu.pipeline_mode<synchronous>, transform_indices = @transform_14, window_bounds = array<i64: 32, 64>}, {pipeline_mode = #tpu.pipeline_mode<synchronous>, transform_indices = @transform_15, window_bounds = array<i64: 16, 8>}, {pipeline_mode = #tpu.pipeline_mode<synchronous>, transform_indices = @transform_16, window_bounds = array<i64: 1, 32>}, {pipeline_mode = #tpu.pipeline_mode<synchronous>, transform_indices = @transform_17, window_bounds = array<i64: 1, 16>}, {pipeline_mode = #tpu.pipeline_mode<synchronous>, transform_indices = @transform_18, window_bounds = array<i64: 64, 16>}, {pipeline_mode = #tpu.pipeline_mode<synchronous>, transform_indices = @transform_19, window_bounds = array<i64: 16, 64>}, {pipeline_mode = #tpu.pipeline_mode<synchronous>, transform_indices = @transform_20, window_bounds = array<i64: 16, 4>}, {pipeline_mode = #tpu.pipeline_mode<synchronous>, transform_indices = @transform_21, window_bounds = array<i64: 1, 16>}, {pipeline_mode = #tpu.pipeline_mode<synchronous>, transform_indices = @transform_22, window_bounds = array<i64: 1, 64>}, {pipeline_mode = #tpu.pipeline_mode<synchronous>, transform_indices = @transform_23, window_bounds = array<i64: 3, 64, 64>}, {pipeline_mode = #tpu.pipeline_mode<synchronous>, transform_indices = @transform_24, window_bounds = array<i64: 1, 64>}, {pipeline_mode = #tpu.pipeline_mode<synchronous>, transform_indices = @transform_25, window_bounds = array<i64: 8, 16>}, {pipeline_mode = #tpu.pipeline_mode<synchronous>, transform_indices = @transform_26, window_bounds = array<i64: 1, 32>}, {pipeline_mode = #tpu.pipeline_mode<synchronous>, transform_indices = @transform_27, window_bounds = array<i64: 64, 32>}, {pipeline_mode = #tpu.pipeline_mode<synchronous>, transform_indices = @transform_28, window_bounds = array<i64: 32, 64>}, {pipeline_mode = #tpu.pipeline_mode<synchronous>, transform_indices = @transform_29, window_bounds = array<i64: 8, 4>}, {pipeline_mode = #tpu.pipeline_mode<synchronous>, transform_indices = @transform_30, window_bounds = array<i64: 1, 32>}, {pipeline_mode = #tpu.pipeline_mode<synchronous>, transform_indices = @transform_31, window_bounds = array<i64: 1, 32>}, {pipeline_mode = #tpu.pipeline_mode<synchronous>, transform_indices = @transform_32, window_bounds = array<i64: 3, 64, 32>}, {pipeline_mode = #tpu.pipeline_mode<synchronous>, transform_indices = @transform_33, window_bounds = array<i64: 1, 32>}, {pipeline_mode = #tpu.pipeline_mode<synchronous>, transform_indices = @transform_34, window_bounds = array<i64: 8, 16>}, {pipeline_mode = #tpu.pipeline_mode<synchronous>, transform_indices = @transform_35, window_bounds = array<i64: 1, 64>}, {pipeline_mode = #tpu.pipeline_mode<synchronous>, transform_indices = @transform_36, window_bounds = array<i64: 3, 32, 64>}, {pipeline_mode = #tpu.pipeline_mode<synchronous>, transform_indices = @transform_37, window_bounds = array<i64: 1, 64>}, {pipeline_mode = #tpu.pipeline_mode<synchronous>, transform_indices = @transform_38, window_bounds = array<i64: 4, 8>}, {pipeline_mode = #tpu.pipeline_mode<synchronous>, transform_indices = @transform_39, window_bounds = array<i64: 1, 64>}, {pipeline_mode = #tpu.pipeline_mode<synchronous>, transform_indices = @transform_40, window_bounds = array<i64: 3, 64, 64>}, {pipeline_mode = #tpu.pipeline_mode<synchronous>, transform_indices = @transform_41, window_bounds = array<i64: 1, 64>}, {pipeline_mode = #tpu.pipeline_mode<synchronous>, transform_indices = @transform_42, window_bounds = array<i64: 4, 8>}, {transform_indices = @transform_43, window_bounds = array<i64: 1, 16, 64>}, {transform_indices = @transform_44, window_bounds = array<i64: 1, 8, 64>}, {transform_indices = @transform_45, window_bounds = array<i64: 1, 4, 64>}]} {
    %cst = arith.constant 0.000000e+00 : f32
    %0 = vector.broadcast %cst : f32 to vector<18x64xf32>
    %c0 = arith.constant 0 : index
    %c0_0 = arith.constant 0 : index
    %1 = vector.load %arg47[%c0, %c0_0] : memref<18x64xf32, #tpu.memory_space<vmem>>, vector<18x64xf32>
    tpu.vector_store %arg47[%c0, %c0_0], %0 {strides = array<i32>} : memref<18x64xf32, #tpu.memory_space<vmem>>, vector<18x64xf32>,
    %cst_1 = arith.constant 0.000000e+00 : f32
    %2 = vector.broadcast %cst_1 : f32 to vector<10x64xf32>
    %c0_2 = arith.constant 0 : index
    %c0_3 = arith.constant 0 : index
    %3 = vector.load %arg48[%c0_2, %c0_3] : memref<10x64xf32, #tpu.memory_space<vmem>>, vector<10x64xf32>
    tpu.vector_store %arg48[%c0_2, %c0_3], %2 {strides = array<i32>} : memref<10x64xf32, #tpu.memory_space<vmem>>, vector<10x64xf32>,
    %cst_4 = arith.constant 0.000000e+00 : f32
    %4 = vector.broadcast %cst_4 : f32 to vector<6x64xf32>
    %c0_5 = arith.constant 0 : index
    %c0_6 = arith.constant 0 : index
    %5 = vector.load %arg49[%c0_5, %c0_6] : memref<6x64xf32, #tpu.memory_space<vmem>>, vector<6x64xf32>
    tpu.vector_store %arg49[%c0_5, %c0_6], %4 {strides = array<i32>} : memref<6x64xf32, #tpu.memory_space<vmem>>, vector<6x64xf32>,
    %cst_7 = arith.constant 0.000000e+00 : f32
    %6 = vector.broadcast %cst_7 : f32 to vector<10x32xf32>
    %c0_8 = arith.constant 0 : index
    %c0_9 = arith.constant 0 : index
    %7 = vector.load %arg50[%c0_8, %c0_9] : memref<10x32xf32, #tpu.memory_space<vmem>>, vector<10x32xf32>
    tpu.vector_store %arg50[%c0_8, %c0_9], %6 {strides = array<i32>} : memref<10x32xf32, #tpu.memory_space<vmem>>, vector<10x32xf32>,
    %c0_10 = arith.constant 0 : index
    %c0_11 = arith.constant 0 : index
    %c0_12 = arith.constant 0 : index
    %8 = vector.load %arg1[%c0_10, %c0_11, %c0_12] : memref<1x16x64xf32, #tpu.memory_space<vmem>>, vector<1x16x64xf32>
    %9 = vector.shape_cast %8 : vector<1x16x64xf32> to vector<16x64xf32>
    %c0_13 = arith.constant 0 : index
    %c0_14 = arith.constant 0 : index
    %c0_15 = arith.constant 0 : index
    %c0_16 = arith.constant 0 : index
    %10 = vector.load %arg5[%c0_13, %c0_14, %c0_15, %c0_16] : memref<8x3x64x64xf32, #tpu.memory_space<vmem>>, vector<1x1x64x64xf32>
    %11 = vector.shape_cast %10 : vector<1x1x64x64xf32> to vector<64x64xf32>
    %c0_17 = arith.constant 0 : index
    %c1 = arith.constant 1 : index
    %c0_18 = arith.constant 0 : index
    %c0_19 = arith.constant 0 : index
    %12 = vector.load %arg5[%c0_17, %c1, %c0_18, %c0_19] : memref<8x3x64x64xf32, #tpu.memory_space<vmem>>, vector<1x1x64x64xf32>
    %13 = vector.shape_cast %12 : vector<1x1x64x64xf32> to vector<64x64xf32>
    %c0_20 = arith.constant 0 : index
    %c2 = arith.constant 2 : index
    %c0_21 = arith.constant 0 : index
    %c0_22 = arith.constant 0 : index
    %14 = vector.load %arg5[%c0_20, %c2, %c0_21, %c0_22] : memref<8x3x64x64xf32, #tpu.memory_space<vmem>>, vector<1x1x64x64xf32>
    %15 = vector.shape_cast %14 : vector<1x1x64x64xf32> to vector<64x64xf32>
    %c0_23 = arith.constant 0 : index
    %c0_24 = arith.constant 0 : index
    %c0_25 = arith.constant 0 : index
    %16 = vector.load %arg6[%c0_23, %c0_24, %c0_25] : memref<8x1x64xf32, #tpu.memory_space<vmem>>, vector<1x1x64xf32>
    %17 = vector.shape_cast %16 : vector<1x1x64xf32> to vector<1x64xf32>
    %c0_26 = arith.constant 0 : index
    %c0_27 = arith.constant 0 : index
    %c0_28 = arith.constant 0 : index
    %18 = vector.load %arg4[%c0_26, %c0_27, %c0_28] : memref<8x1x64xf32, #tpu.memory_space<vmem>>, vector<1x1x64xf32>
    %19 = vector.shape_cast %18 : vector<1x1x64xf32> to vector<1x64xf32>
    %c1_29 = arith.constant 1 : index
    %c0_30 = arith.constant 0 : index
    %20 = vector.load %arg47[%c1_29, %c0_30] : memref<18x64xf32, #tpu.memory_space<vmem>>, vector<16x64xf32>
    tpu.vector_store %arg47[%c1_29, %c0_30], %9 {strides = array<i32>} : memref<18x64xf32, #tpu.memory_space<vmem>>, vector<16x64xf32>,
    %c0_31 = arith.constant 0 : index
    %c0_32 = arith.constant 0 : index
    %21 = vector.load %arg47[%c0_31, %c0_32] : memref<18x64xf32, #tpu.memory_space<vmem>>, vector<16x64xf32>
    %cst_33 = arith.constant dense<0.000000e+00> : vector<16x64xf32>
    %22 = tpu.matmul %21, %11, %cst_33 {dimension_numbers = #tpu.dot_dimension_numbers<[1], [0], [0], [1], [0, 0, 1, 1], [], []>} : vector<16x64xf32>, vector<64x64xf32>, vector<16x64xf32> -> vector<16x64xf32>
    %c1_34 = arith.constant 1 : index
    %c0_35 = arith.constant 0 : index
    %23 = vector.load %arg47[%c1_34, %c0_35] : memref<18x64xf32, #tpu.memory_space<vmem>>, vector<16x64xf32>
    %cst_36 = arith.constant dense<0.000000e+00> : vector<16x64xf32>
    %24 = tpu.matmul %23, %13, %cst_36 {dimension_numbers = #tpu.dot_dimension_numbers<[1], [0], [0], [1], [0, 0, 1, 1], [], []>} : vector<16x64xf32>, vector<64x64xf32>, vector<16x64xf32> -> vector<16x64xf32>
    %25 = arith.addf %22, %24 : vector<16x64xf32>
    %c2_37 = arith.constant 2 : index
    %c0_38 = arith.constant 0 : index
    %26 = vector.load %arg47[%c2_37, %c0_38] : memref<18x64xf32, #tpu.memory_space<vmem>>, vector<16x64xf32>
    %cst_39 = arith.constant dense<0.000000e+00> : vector<16x64xf32>
    %27 = tpu.matmul %26, %15, %cst_39 {dimension_numbers = #tpu.dot_dimension_numbers<[1], [0], [0], [1], [0, 0, 1, 1], [], []>} : vector<16x64xf32>, vector<64x64xf32>, vector<16x64xf32> -> vector<16x64xf32>
    %28 = arith.addf %25, %27 : vector<16x64xf32>
    %29 = vector.broadcast %17 : vector<1x64xf32> to vector<16x64xf32>
    %30 = arith.mulf %28, %29 : vector<16x64xf32>
    %31 = vector.broadcast %19 : vector<1x64xf32> to vector<16x64xf32>
    %32 = arith.addf %30, %31 : vector<16x64xf32>
    %cst_40 = arith.constant 0.000000e+00 : f32
    %33 = vector.broadcast %cst_40 : f32 to vector<16x64xf32>
    %34 = arith.maximumf %32, %33 : vector<16x64xf32>
    %c1_41 = arith.constant 1 : index
    %c0_42 = arith.constant 0 : index
    %c0_43 = arith.constant 0 : index
    %c0_44 = arith.constant 0 : index
    %35 = vector.load %arg5[%c1_41, %c0_42, %c0_43, %c0_44] : memref<8x3x64x64xf32, #tpu.memory_space<vmem>>, vector<1x1x64x64xf32>
    %36 = vector.shape_cast %35 : vector<1x1x64x64xf32> to vector<64x64xf32>
    %c1_45 = arith.constant 1 : index
    %c1_46 = arith.constant 1 : index
    %c0_47 = arith.constant 0 : index
    %c0_48 = arith.constant 0 : index
    %37 = vector.load %arg5[%c1_45, %c1_46, %c0_47, %c0_48] : memref<8x3x64x64xf32, #tpu.memory_space<vmem>>, vector<1x1x64x64xf32>
    %38 = vector.shape_cast %37 : vector<1x1x64x64xf32> to vector<64x64xf32>
    %c1_49 = arith.constant 1 : index
    %c2_50 = arith.constant 2 : index
    %c0_51 = arith.constant 0 : index
    %c0_52 = arith.constant 0 : index
    %39 = vector.load %arg5[%c1_49, %c2_50, %c0_51, %c0_52] : memref<8x3x64x64xf32, #tpu.memory_space<vmem>>, vector<1x1x64x64xf32>
    %40 = vector.shape_cast %39 : vector<1x1x64x64xf32> to vector<64x64xf32>
    %c1_53 = arith.constant 1 : index
    %c0_54 = arith.constant 0 : index
    %c0_55 = arith.constant 0 : index
    %41 = vector.load %arg6[%c1_53, %c0_54, %c0_55] : memref<8x1x64xf32, #tpu.memory_space<vmem>>, vector<1x1x64xf32>
    %42 = vector.shape_cast %41 : vector<1x1x64xf32> to vector<1x64xf32>
    %c1_56 = arith.constant 1 : index
    %c0_57 = arith.constant 0 : index
    %c0_58 = arith.constant 0 : index
    %43 = vector.load %arg4[%c1_56, %c0_57, %c0_58] : memref<8x1x64xf32, #tpu.memory_space<vmem>>, vector<1x1x64xf32>
    %44 = vector.shape_cast %43 : vector<1x1x64xf32> to vector<1x64xf32>
    %c1_59 = arith.constant 1 : index
    %c0_60 = arith.constant 0 : index
    %45 = vector.load %arg47[%c1_59, %c0_60] : memref<18x64xf32, #tpu.memory_space<vmem>>, vector<16x64xf32>
    tpu.vector_store %arg47[%c1_59, %c0_60], %34 {strides = array<i32>} : memref<18x64xf32, #tpu.memory_space<vmem>>, vector<16x64xf32>,
    %c0_61 = arith.constant 0 : index
    %c0_62 = arith.constant 0 : index
    %46 = vector.load %arg47[%c0_61, %c0_62] : memref<18x64xf32, #tpu.memory_space<vmem>>, vector<16x64xf32>
    %cst_63 = arith.constant dense<0.000000e+00> : vector<16x64xf32>
    %47 = tpu.matmul %46, %36, %cst_63 {dimension_numbers = #tpu.dot_dimension_numbers<[1], [0], [0], [1], [0, 0, 1, 1], [], []>} : vector<16x64xf32>, vector<64x64xf32>, vector<16x64xf32> -> vector<16x64xf32>
    %c1_64 = arith.constant 1 : index
    %c0_65 = arith.constant 0 : index
    %48 = vector.load %arg47[%c1_64, %c0_65] : memref<18x64xf32, #tpu.memory_space<vmem>>, vector<16x64xf32>
    %cst_66 = arith.constant dense<0.000000e+00> : vector<16x64xf32>
    %49 = tpu.matmul %48, %38, %cst_66 {dimension_numbers = #tpu.dot_dimension_numbers<[1], [0], [0], [1], [0, 0, 1, 1], [], []>} : vector<16x64xf32>, vector<64x64xf32>, vector<16x64xf32> -> vector<16x64xf32>
    %50 = arith.addf %47, %49 : vector<16x64xf32>
    %c2_67 = arith.constant 2 : index
    %c0_68 = arith.constant 0 : index
    %51 = vector.load %arg47[%c2_67, %c0_68] : memref<18x64xf32, #tpu.memory_space<vmem>>, vector<16x64xf32>
    %cst_69 = arith.constant dense<0.000000e+00> : vector<16x64xf32>
    %52 = tpu.matmul %51, %40, %cst_69 {dimension_numbers = #tpu.dot_dimension_numbers<[1], [0], [0], [1], [0, 0, 1, 1], [], []>} : vector<16x64xf32>, vector<64x64xf32>, vector<16x64xf32> -> vector<16x64xf32>
    %53 = arith.addf %50, %52 : vector<16x64xf32>
    %54 = vector.broadcast %42 : vector<1x64xf32> to vector<16x64xf32>
    %55 = arith.mulf %53, %54 : vector<16x64xf32>
    %56 = vector.broadcast %44 : vector<1x64xf32> to vector<16x64xf32>
    %57 = arith.addf %55, %56 : vector<16x64xf32>
    %58 = arith.addf %57, %9 : vector<16x64xf32>
    %cst_70 = arith.constant 0.000000e+00 : f32
    %59 = vector.broadcast %cst_70 : f32 to vector<16x64xf32>
    %60 = arith.maximumf %58, %59 : vector<16x64xf32>
    %c2_71 = arith.constant 2 : index
    %c0_72 = arith.constant 0 : index
    %c0_73 = arith.constant 0 : index
    %c0_74 = arith.constant 0 : index
    %61 = vector.load %arg5[%c2_71, %c0_72, %c0_73, %c0_74] : memref<8x3x64x64xf32, #tpu.memory_space<vmem>>, vector<1x1x64x64xf32>
    %62 = vector.shape_cast %61 : vector<1x1x64x64xf32> to vector<64x64xf32>
    %c2_75 = arith.constant 2 : index
    %c1_76 = arith.constant 1 : index
    %c0_77 = arith.constant 0 : index
    %c0_78 = arith.constant 0 : index
    %63 = vector.load %arg5[%c2_75, %c1_76, %c0_77, %c0_78] : memref<8x3x64x64xf32, #tpu.memory_space<vmem>>, vector<1x1x64x64xf32>
    %64 = vector.shape_cast %63 : vector<1x1x64x64xf32> to vector<64x64xf32>
    %c2_79 = arith.constant 2 : index
    %c2_80 = arith.constant 2 : index
    %c0_81 = arith.constant 0 : index
    %c0_82 = arith.constant 0 : index
    %65 = vector.load %arg5[%c2_79, %c2_80, %c0_81, %c0_82] : memref<8x3x64x64xf32, #tpu.memory_space<vmem>>, vector<1x1x64x64xf32>
    %66 = vector.shape_cast %65 : vector<1x1x64x64xf32> to vector<64x64xf32>
    %c2_83 = arith.constant 2 : index
    %c0_84 = arith.constant 0 : index
    %c0_85 = arith.constant 0 : index
    %67 = vector.load %arg6[%c2_83, %c0_84, %c0_85] : memref<8x1x64xf32, #tpu.memory_space<vmem>>, vector<1x1x64xf32>
    %68 = vector.shape_cast %67 : vector<1x1x64xf32> to vector<1x64xf32>
    %c2_86 = arith.constant 2 : index
    %c0_87 = arith.constant 0 : index
    %c0_88 = arith.constant 0 : index
    %69 = vector.load %arg4[%c2_86, %c0_87, %c0_88] : memref<8x1x64xf32, #tpu.memory_space<vmem>>, vector<1x1x64xf32>
    %70 = vector.shape_cast %69 : vector<1x1x64xf32> to vector<1x64xf32>
    %c1_89 = arith.constant 1 : index
    %c0_90 = arith.constant 0 : index
    %71 = vector.load %arg47[%c1_89, %c0_90] : memref<18x64xf32, #tpu.memory_space<vmem>>, vector<16x64xf32>
    tpu.vector_store %arg47[%c1_89, %c0_90], %60 {strides = array<i32>} : memref<18x64xf32, #tpu.memory_space<vmem>>, vector<16x64xf32>,
    %c0_91 = arith.constant 0 : index
    %c0_92 = arith.constant 0 : index
    %72 = vector.load %arg47[%c0_91, %c0_92] : memref<18x64xf32, #tpu.memory_space<vmem>>, vector<16x64xf32>
    %cst_93 = arith.constant dense<0.000000e+00> : vector<16x64xf32>
    %73 = tpu.matmul %72, %62, %cst_93 {dimension_numbers = #tpu.dot_dimension_numbers<[1], [0], [0], [1], [0, 0, 1, 1], [], []>} : vector<16x64xf32>, vector<64x64xf32>, vector<16x64xf32> -> vector<16x64xf32>
    %c1_94 = arith.constant 1 : index
    %c0_95 = arith.constant 0 : index
    %74 = vector.load %arg47[%c1_94, %c0_95] : memref<18x64xf32, #tpu.memory_space<vmem>>, vector<16x64xf32>
    %cst_96 = arith.constant dense<0.000000e+00> : vector<16x64xf32>
    %75 = tpu.matmul %74, %64, %cst_96 {dimension_numbers = #tpu.dot_dimension_numbers<[1], [0], [0], [1], [0, 0, 1, 1], [], []>} : vector<16x64xf32>, vector<64x64xf32>, vector<16x64xf32> -> vector<16x64xf32>
    %76 = arith.addf %73, %75 : vector<16x64xf32>
    %c2_97 = arith.constant 2 : index
    %c0_98 = arith.constant 0 : index
    %77 = vector.load %arg47[%c2_97, %c0_98] : memref<18x64xf32, #tpu.memory_space<vmem>>, vector<16x64xf32>
    %cst_99 = arith.constant dense<0.000000e+00> : vector<16x64xf32>
    %78 = tpu.matmul %77, %66, %cst_99 {dimension_numbers = #tpu.dot_dimension_numbers<[1], [0], [0], [1], [0, 0, 1, 1], [], []>} : vector<16x64xf32>, vector<64x64xf32>, vector<16x64xf32> -> vector<16x64xf32>
    %79 = arith.addf %76, %78 : vector<16x64xf32>
    %80 = vector.broadcast %68 : vector<1x64xf32> to vector<16x64xf32>
    %81 = arith.mulf %79, %80 : vector<16x64xf32>
    %82 = vector.broadcast %70 : vector<1x64xf32> to vector<16x64xf32>
    %83 = arith.addf %81, %82 : vector<16x64xf32>
    %cst_100 = arith.constant 0.000000e+00 : f32
    %84 = vector.broadcast %cst_100 : f32 to vector<16x64xf32>
    %85 = arith.maximumf %83, %84 : vector<16x64xf32>
    %c3 = arith.constant 3 : index
    %c0_101 = arith.constant 0 : index
    %c0_102 = arith.constant 0 : index
    %c0_103 = arith.constant 0 : index
    %86 = vector.load %arg5[%c3, %c0_101, %c0_102, %c0_103] : memref<8x3x64x64xf32, #tpu.memory_space<vmem>>, vector<1x1x64x64xf32>
    %87 = vector.shape_cast %86 : vector<1x1x64x64xf32> to vector<64x64xf32>
    %c3_104 = arith.constant 3 : index
    %c1_105 = arith.constant 1 : index
    %c0_106 = arith.constant 0 : index
    %c0_107 = arith.constant 0 : index
    %88 = vector.load %arg5[%c3_104, %c1_105, %c0_106, %c0_107] : memref<8x3x64x64xf32, #tpu.memory_space<vmem>>, vector<1x1x64x64xf32>
    %89 = vector.shape_cast %88 : vector<1x1x64x64xf32> to vector<64x64xf32>
    %c3_108 = arith.constant 3 : index
    %c2_109 = arith.constant 2 : index
    %c0_110 = arith.constant 0 : index
    %c0_111 = arith.constant 0 : index
    %90 = vector.load %arg5[%c3_108, %c2_109, %c0_110, %c0_111] : memref<8x3x64x64xf32, #tpu.memory_space<vmem>>, vector<1x1x64x64xf32>
    %91 = vector.shape_cast %90 : vector<1x1x64x64xf32> to vector<64x64xf32>
    %c3_112 = arith.constant 3 : index
    %c0_113 = arith.constant 0 : index
    %c0_114 = arith.constant 0 : index
    %92 = vector.load %arg6[%c3_112, %c0_113, %c0_114] : memref<8x1x64xf32, #tpu.memory_space<vmem>>, vector<1x1x64xf32>
    %93 = vector.shape_cast %92 : vector<1x1x64xf32> to vector<1x64xf32>
    %c3_115 = arith.constant 3 : index
    %c0_116 = arith.constant 0 : index
    %c0_117 = arith.constant 0 : index
    %94 = vector.load %arg4[%c3_115, %c0_116, %c0_117] : memref<8x1x64xf32, #tpu.memory_space<vmem>>, vector<1x1x64xf32>
    %95 = vector.shape_cast %94 : vector<1x1x64xf32> to vector<1x64xf32>
    %c1_118 = arith.constant 1 : index
    %c0_119 = arith.constant 0 : index
    %96 = vector.load %arg47[%c1_118, %c0_119] : memref<18x64xf32, #tpu.memory_space<vmem>>, vector<16x64xf32>
    tpu.vector_store %arg47[%c1_118, %c0_119], %85 {strides = array<i32>} : memref<18x64xf32, #tpu.memory_space<vmem>>, vector<16x64xf32>,
    %c0_120 = arith.constant 0 : index
    %c0_121 = arith.constant 0 : index
    %97 = vector.load %arg47[%c0_120, %c0_121] : memref<18x64xf32, #tpu.memory_space<vmem>>, vector<16x64xf32>
    %cst_122 = arith.constant dense<0.000000e+00> : vector<16x64xf32>
    %98 = tpu.matmul %97, %87, %cst_122 {dimension_numbers = #tpu.dot_dimension_numbers<[1], [0], [0], [1], [0, 0, 1, 1], [], []>} : vector<16x64xf32>, vector<64x64xf32>, vector<16x64xf32> -> vector<16x64xf32>
    %c1_123 = arith.constant 1 : index
    %c0_124 = arith.constant 0 : index
    %99 = vector.load %arg47[%c1_123, %c0_124] : memref<18x64xf32, #tpu.memory_space<vmem>>, vector<16x64xf32>
    %cst_125 = arith.constant dense<0.000000e+00> : vector<16x64xf32>
    %100 = tpu.matmul %99, %89, %cst_125 {dimension_numbers = #tpu.dot_dimension_numbers<[1], [0], [0], [1], [0, 0, 1, 1], [], []>} : vector<16x64xf32>, vector<64x64xf32>, vector<16x64xf32> -> vector<16x64xf32>
    %101 = arith.addf %98, %100 : vector<16x64xf32>
    %c2_126 = arith.constant 2 : index
    %c0_127 = arith.constant 0 : index
    %102 = vector.load %arg47[%c2_126, %c0_127] : memref<18x64xf32, #tpu.memory_space<vmem>>, vector<16x64xf32>
    %cst_128 = arith.constant dense<0.000000e+00> : vector<16x64xf32>
    %103 = tpu.matmul %102, %91, %cst_128 {dimension_numbers = #tpu.dot_dimension_numbers<[1], [0], [0], [1], [0, 0, 1, 1], [], []>} : vector<16x64xf32>, vector<64x64xf32>, vector<16x64xf32> -> vector<16x64xf32>
    %104 = arith.addf %101, %103 : vector<16x64xf32>
    %105 = vector.broadcast %93 : vector<1x64xf32> to vector<16x64xf32>
    %106 = arith.mulf %104, %105 : vector<16x64xf32>
    %107 = vector.broadcast %95 : vector<1x64xf32> to vector<16x64xf32>
    %108 = arith.addf %106, %107 : vector<16x64xf32>
    %109 = arith.addf %108, %60 : vector<16x64xf32>
    %cst_129 = arith.constant 0.000000e+00 : f32
    %110 = vector.broadcast %cst_129 : f32 to vector<16x64xf32>
    %111 = arith.maximumf %109, %110 : vector<16x64xf32>
    %c4 = arith.constant 4 : index
    %c0_130 = arith.constant 0 : index
    %c0_131 = arith.constant 0 : index
    %c0_132 = arith.constant 0 : index
    %112 = vector.load %arg5[%c4, %c0_130, %c0_131, %c0_132] : memref<8x3x64x64xf32, #tpu.memory_space<vmem>>, vector<1x1x64x64xf32>
    %113 = vector.shape_cast %112 : vector<1x1x64x64xf32> to vector<64x64xf32>
    %c4_133 = arith.constant 4 : index
    %c1_134 = arith.constant 1 : index
    %c0_135 = arith.constant 0 : index
    %c0_136 = arith.constant 0 : index
    %114 = vector.load %arg5[%c4_133, %c1_134, %c0_135, %c0_136] : memref<8x3x64x64xf32, #tpu.memory_space<vmem>>, vector<1x1x64x64xf32>
    %115 = vector.shape_cast %114 : vector<1x1x64x64xf32> to vector<64x64xf32>
    %c4_137 = arith.constant 4 : index
    %c2_138 = arith.constant 2 : index
    %c0_139 = arith.constant 0 : index
    %c0_140 = arith.constant 0 : index
    %116 = vector.load %arg5[%c4_137, %c2_138, %c0_139, %c0_140] : memref<8x3x64x64xf32, #tpu.memory_space<vmem>>, vector<1x1x64x64xf32>
    %117 = vector.shape_cast %116 : vector<1x1x64x64xf32> to vector<64x64xf32>
    %c4_141 = arith.constant 4 : index
    %c0_142 = arith.constant 0 : index
    %c0_143 = arith.constant 0 : index
    %118 = vector.load %arg6[%c4_141, %c0_142, %c0_143] : memref<8x1x64xf32, #tpu.memory_space<vmem>>, vector<1x1x64xf32>
    %119 = vector.shape_cast %118 : vector<1x1x64xf32> to vector<1x64xf32>
    %c4_144 = arith.constant 4 : index
    %c0_145 = arith.constant 0 : index
    %c0_146 = arith.constant 0 : index
    %120 = vector.load %arg4[%c4_144, %c0_145, %c0_146] : memref<8x1x64xf32, #tpu.memory_space<vmem>>, vector<1x1x64xf32>
    %121 = vector.shape_cast %120 : vector<1x1x64xf32> to vector<1x64xf32>
    %c1_147 = arith.constant 1 : index
    %c0_148 = arith.constant 0 : index
    %122 = vector.load %arg47[%c1_147, %c0_148] : memref<18x64xf32, #tpu.memory_space<vmem>>, vector<16x64xf32>
    tpu.vector_store %arg47[%c1_147, %c0_148], %111 {strides = array<i32>} : memref<18x64xf32, #tpu.memory_space<vmem>>, vector<16x64xf32>,
    %c0_149 = arith.constant 0 : index
    %c0_150 = arith.constant 0 : index
    %123 = vector.load %arg47[%c0_149, %c0_150] : memref<18x64xf32, #tpu.memory_space<vmem>>, vector<16x64xf32>
    %cst_151 = arith.constant dense<0.000000e+00> : vector<16x64xf32>
    %124 = tpu.matmul %123, %113, %cst_151 {dimension_numbers = #tpu.dot_dimension_numbers<[1], [0], [0], [1], [0, 0, 1, 1], [], []>} : vector<16x64xf32>, vector<64x64xf32>, vector<16x64xf32> -> vector<16x64xf32>
    %c1_152 = arith.constant 1 : index
    %c0_153 = arith.constant 0 : index
    %125 = vector.load %arg47[%c1_152, %c0_153] : memref<18x64xf32, #tpu.memory_space<vmem>>, vector<16x64xf32>
    %cst_154 = arith.constant dense<0.000000e+00> : vector<16x64xf32>
    %126 = tpu.matmul %125, %115, %cst_154 {dimension_numbers = #tpu.dot_dimension_numbers<[1], [0], [0], [1], [0, 0, 1, 1], [], []>} : vector<16x64xf32>, vector<64x64xf32>, vector<16x64xf32> -> vector<16x64xf32>
    %127 = arith.addf %124, %126 : vector<16x64xf32>
    %c2_155 = arith.constant 2 : index
    %c0_156 = arith.constant 0 : index
    %128 = vector.load %arg47[%c2_155, %c0_156] : memref<18x64xf32, #tpu.memory_space<vmem>>, vector<16x64xf32>
    %cst_157 = arith.constant dense<0.000000e+00> : vector<16x64xf32>
    %129 = tpu.matmul %128, %117, %cst_157 {dimension_numbers = #tpu.dot_dimension_numbers<[1], [0], [0], [1], [0, 0, 1, 1], [], []>} : vector<16x64xf32>, vector<64x64xf32>, vector<16x64xf32> -> vector<16x64xf32>
    %130 = arith.addf %127, %129 : vector<16x64xf32>
    %131 = vector.broadcast %119 : vector<1x64xf32> to vector<16x64xf32>
    %132 = arith.mulf %130, %131 : vector<16x64xf32>
    %133 = vector.broadcast %121 : vector<1x64xf32> to vector<16x64xf32>
    %134 = arith.addf %132, %133 : vector<16x64xf32>
    %cst_158 = arith.constant 0.000000e+00 : f32
    %135 = vector.broadcast %cst_158 : f32 to vector<16x64xf32>
    %136 = arith.maximumf %134, %135 : vector<16x64xf32>
    %c5 = arith.constant 5 : index
    %c0_159 = arith.constant 0 : index
    %c0_160 = arith.constant 0 : index
    %c0_161 = arith.constant 0 : index
    %137 = vector.load %arg5[%c5, %c0_159, %c0_160, %c0_161] : memref<8x3x64x64xf32, #tpu.memory_space<vmem>>, vector<1x1x64x64xf32>
    %138 = vector.shape_cast %137 : vector<1x1x64x64xf32> to vector<64x64xf32>
    %c5_162 = arith.constant 5 : index
    %c1_163 = arith.constant 1 : index
    %c0_164 = arith.constant 0 : index
    %c0_165 = arith.constant 0 : index
    %139 = vector.load %arg5[%c5_162, %c1_163, %c0_164, %c0_165] : memref<8x3x64x64xf32, #tpu.memory_space<vmem>>, vector<1x1x64x64xf32>
    %140 = vector.shape_cast %139 : vector<1x1x64x64xf32> to vector<64x64xf32>
    %c5_166 = arith.constant 5 : index
    %c2_167 = arith.constant 2 : index
    %c0_168 = arith.constant 0 : index
    %c0_169 = arith.constant 0 : index
    %141 = vector.load %arg5[%c5_166, %c2_167, %c0_168, %c0_169] : memref<8x3x64x64xf32, #tpu.memory_space<vmem>>, vector<1x1x64x64xf32>
    %142 = vector.shape_cast %141 : vector<1x1x64x64xf32> to vector<64x64xf32>
    %c5_170 = arith.constant 5 : index
    %c0_171 = arith.constant 0 : index
    %c0_172 = arith.constant 0 : index
    %143 = vector.load %arg6[%c5_170, %c0_171, %c0_172] : memref<8x1x64xf32, #tpu.memory_space<vmem>>, vector<1x1x64xf32>
    %144 = vector.shape_cast %143 : vector<1x1x64xf32> to vector<1x64xf32>
    %c5_173 = arith.constant 5 : index
    %c0_174 = arith.constant 0 : index
    %c0_175 = arith.constant 0 : index
    %145 = vector.load %arg4[%c5_173, %c0_174, %c0_175] : memref<8x1x64xf32, #tpu.memory_space<vmem>>, vector<1x1x64xf32>
    %146 = vector.shape_cast %145 : vector<1x1x64xf32> to vector<1x64xf32>
    %c1_176 = arith.constant 1 : index
    %c0_177 = arith.constant 0 : index
    %147 = vector.load %arg47[%c1_176, %c0_177] : memref<18x64xf32, #tpu.memory_space<vmem>>, vector<16x64xf32>
    tpu.vector_store %arg47[%c1_176, %c0_177], %136 {strides = array<i32>} : memref<18x64xf32, #tpu.memory_space<vmem>>, vector<16x64xf32>,
    %c0_178 = arith.constant 0 : index
    %c0_179 = arith.constant 0 : index
    %148 = vector.load %arg47[%c0_178, %c0_179] : memref<18x64xf32, #tpu.memory_space<vmem>>, vector<16x64xf32>
    %cst_180 = arith.constant dense<0.000000e+00> : vector<16x64xf32>
    %149 = tpu.matmul %148, %138, %cst_180 {dimension_numbers = #tpu.dot_dimension_numbers<[1], [0], [0], [1], [0, 0, 1, 1], [], []>} : vector<16x64xf32>, vector<64x64xf32>, vector<16x64xf32> -> vector<16x64xf32>
    %c1_181 = arith.constant 1 : index
    %c0_182 = arith.constant 0 : index
    %150 = vector.load %arg47[%c1_181, %c0_182] : memref<18x64xf32, #tpu.memory_space<vmem>>, vector<16x64xf32>
    %cst_183 = arith.constant dense<0.000000e+00> : vector<16x64xf32>
    %151 = tpu.matmul %150, %140, %cst_183 {dimension_numbers = #tpu.dot_dimension_numbers<[1], [0], [0], [1], [0, 0, 1, 1], [], []>} : vector<16x64xf32>, vector<64x64xf32>, vector<16x64xf32> -> vector<16x64xf32>
    %152 = arith.addf %149, %151 : vector<16x64xf32>
    %c2_184 = arith.constant 2 : index
    %c0_185 = arith.constant 0 : index
    %153 = vector.load %arg47[%c2_184, %c0_185] : memref<18x64xf32, #tpu.memory_space<vmem>>, vector<16x64xf32>
    %cst_186 = arith.constant dense<0.000000e+00> : vector<16x64xf32>
    %154 = tpu.matmul %153, %142, %cst_186 {dimension_numbers = #tpu.dot_dimension_numbers<[1], [0], [0], [1], [0, 0, 1, 1], [], []>} : vector<16x64xf32>, vector<64x64xf32>, vector<16x64xf32> -> vector<16x64xf32>
    %155 = arith.addf %152, %154 : vector<16x64xf32>
    %156 = vector.broadcast %144 : vector<1x64xf32> to vector<16x64xf32>
    %157 = arith.mulf %155, %156 : vector<16x64xf32>
    %158 = vector.broadcast %146 : vector<1x64xf32> to vector<16x64xf32>
    %159 = arith.addf %157, %158 : vector<16x64xf32>
    %160 = arith.addf %159, %111 : vector<16x64xf32>
    %cst_187 = arith.constant 0.000000e+00 : f32
    %161 = vector.broadcast %cst_187 : f32 to vector<16x64xf32>
    %162 = arith.maximumf %160, %161 : vector<16x64xf32>
    %c6 = arith.constant 6 : index
    %c0_188 = arith.constant 0 : index
    %c0_189 = arith.constant 0 : index
    %c0_190 = arith.constant 0 : index
    %163 = vector.load %arg5[%c6, %c0_188, %c0_189, %c0_190] : memref<8x3x64x64xf32, #tpu.memory_space<vmem>>, vector<1x1x64x64xf32>
    %164 = vector.shape_cast %163 : vector<1x1x64x64xf32> to vector<64x64xf32>
    %c6_191 = arith.constant 6 : index
    %c1_192 = arith.constant 1 : index
    %c0_193 = arith.constant 0 : index
    %c0_194 = arith.constant 0 : index
    %165 = vector.load %arg5[%c6_191, %c1_192, %c0_193, %c0_194] : memref<8x3x64x64xf32, #tpu.memory_space<vmem>>, vector<1x1x64x64xf32>
    %166 = vector.shape_cast %165 : vector<1x1x64x64xf32> to vector<64x64xf32>
    %c6_195 = arith.constant 6 : index
    %c2_196 = arith.constant 2 : index
    %c0_197 = arith.constant 0 : index
    %c0_198 = arith.constant 0 : index
    %167 = vector.load %arg5[%c6_195, %c2_196, %c0_197, %c0_198] : memref<8x3x64x64xf32, #tpu.memory_space<vmem>>, vector<1x1x64x64xf32>
    %168 = vector.shape_cast %167 : vector<1x1x64x64xf32> to vector<64x64xf32>
    %c6_199 = arith.constant 6 : index
    %c0_200 = arith.constant 0 : index
    %c0_201 = arith.constant 0 : index
    %169 = vector.load %arg6[%c6_199, %c0_200, %c0_201] : memref<8x1x64xf32, #tpu.memory_space<vmem>>, vector<1x1x64xf32>
    %170 = vector.shape_cast %169 : vector<1x1x64xf32> to vector<1x64xf32>
    %c6_202 = arith.constant 6 : index
    %c0_203 = arith.constant 0 : index
    %c0_204 = arith.constant 0 : index
    %171 = vector.load %arg4[%c6_202, %c0_203, %c0_204] : memref<8x1x64xf32, #tpu.memory_space<vmem>>, vector<1x1x64xf32>
    %172 = vector.shape_cast %171 : vector<1x1x64xf32> to vector<1x64xf32>
    %c1_205 = arith.constant 1 : index
    %c0_206 = arith.constant 0 : index
    %173 = vector.load %arg47[%c1_205, %c0_206] : memref<18x64xf32, #tpu.memory_space<vmem>>, vector<16x64xf32>
    tpu.vector_store %arg47[%c1_205, %c0_206], %162 {strides = array<i32>} : memref<18x64xf32, #tpu.memory_space<vmem>>, vector<16x64xf32>,
    %c0_207 = arith.constant 0 : index
    %c0_208 = arith.constant 0 : index
    %174 = vector.load %arg47[%c0_207, %c0_208] : memref<18x64xf32, #tpu.memory_space<vmem>>, vector<16x64xf32>
    %cst_209 = arith.constant dense<0.000000e+00> : vector<16x64xf32>
    %175 = tpu.matmul %174, %164, %cst_209 {dimension_numbers = #tpu.dot_dimension_numbers<[1], [0], [0], [1], [0, 0, 1, 1], [], []>} : vector<16x64xf32>, vector<64x64xf32>, vector<16x64xf32> -> vector<16x64xf32>
    %c1_210 = arith.constant 1 : index
    %c0_211 = arith.constant 0 : index
    %176 = vector.load %arg47[%c1_210, %c0_211] : memref<18x64xf32, #tpu.memory_space<vmem>>, vector<16x64xf32>
    %cst_212 = arith.constant dense<0.000000e+00> : vector<16x64xf32>
    %177 = tpu.matmul %176, %166, %cst_212 {dimension_numbers = #tpu.dot_dimension_numbers<[1], [0], [0], [1], [0, 0, 1, 1], [], []>} : vector<16x64xf32>, vector<64x64xf32>, vector<16x64xf32> -> vector<16x64xf32>
    %178 = arith.addf %175, %177 : vector<16x64xf32>
    %c2_213 = arith.constant 2 : index
    %c0_214 = arith.constant 0 : index
    %179 = vector.load %arg47[%c2_213, %c0_214] : memref<18x64xf32, #tpu.memory_space<vmem>>, vector<16x64xf32>
    %cst_215 = arith.constant dense<0.000000e+00> : vector<16x64xf32>
    %180 = tpu.matmul %179, %168, %cst_215 {dimension_numbers = #tpu.dot_dimension_numbers<[1], [0], [0], [1], [0, 0, 1, 1], [], []>} : vector<16x64xf32>, vector<64x64xf32>, vector<16x64xf32> -> vector<16x64xf32>
    %181 = arith.addf %178, %180 : vector<16x64xf32>
    %182 = vector.broadcast %170 : vector<1x64xf32> to vector<16x64xf32>
    %183 = arith.mulf %181, %182 : vector<16x64xf32>
    %184 = vector.broadcast %172 : vector<1x64xf32> to vector<16x64xf32>
    %185 = arith.addf %183, %184 : vector<16x64xf32>
    %cst_216 = arith.constant 0.000000e+00 : f32
    %186 = vector.broadcast %cst_216 : f32 to vector<16x64xf32>
    %187 = arith.maximumf %185, %186 : vector<16x64xf32>
    %c7 = arith.constant 7 : index
    %c0_217 = arith.constant 0 : index
    %c0_218 = arith.constant 0 : index
    %c0_219 = arith.constant 0 : index
    %188 = vector.load %arg5[%c7, %c0_217, %c0_218, %c0_219] : memref<8x3x64x64xf32, #tpu.memory_space<vmem>>, vector<1x1x64x64xf32>
    %189 = vector.shape_cast %188 : vector<1x1x64x64xf32> to vector<64x64xf32>
    %c7_220 = arith.constant 7 : index
    %c1_221 = arith.constant 1 : index
    %c0_222 = arith.constant 0 : index
    %c0_223 = arith.constant 0 : index
    %190 = vector.load %arg5[%c7_220, %c1_221, %c0_222, %c0_223] : memref<8x3x64x64xf32, #tpu.memory_space<vmem>>, vector<1x1x64x64xf32>
    %191 = vector.shape_cast %190 : vector<1x1x64x64xf32> to vector<64x64xf32>
    %c7_224 = arith.constant 7 : index
    %c2_225 = arith.constant 2 : index
    %c0_226 = arith.constant 0 : index
    %c0_227 = arith.constant 0 : index
    %192 = vector.load %arg5[%c7_224, %c2_225, %c0_226, %c0_227] : memref<8x3x64x64xf32, #tpu.memory_space<vmem>>, vector<1x1x64x64xf32>
    %193 = vector.shape_cast %192 : vector<1x1x64x64xf32> to vector<64x64xf32>
    %c7_228 = arith.constant 7 : index
    %c0_229 = arith.constant 0 : index
    %c0_230 = arith.constant 0 : index
    %194 = vector.load %arg6[%c7_228, %c0_229, %c0_230] : memref<8x1x64xf32, #tpu.memory_space<vmem>>, vector<1x1x64xf32>
    %195 = vector.shape_cast %194 : vector<1x1x64xf32> to vector<1x64xf32>
    %c7_231 = arith.constant 7 : index
    %c0_232 = arith.constant 0 : index
    %c0_233 = arith.constant 0 : index
    %196 = vector.load %arg4[%c7_231, %c0_232, %c0_233] : memref<8x1x64xf32, #tpu.memory_space<vmem>>, vector<1x1x64xf32>
    %197 = vector.shape_cast %196 : vector<1x1x64xf32> to vector<1x64xf32>
    %c1_234 = arith.constant 1 : index
    %c0_235 = arith.constant 0 : index
    %198 = vector.load %arg47[%c1_234, %c0_235] : memref<18x64xf32, #tpu.memory_space<vmem>>, vector<16x64xf32>
    tpu.vector_store %arg47[%c1_234, %c0_235], %187 {strides = array<i32>} : memref<18x64xf32, #tpu.memory_space<vmem>>, vector<16x64xf32>,
    %c0_236 = arith.constant 0 : index
    %c0_237 = arith.constant 0 : index
    %199 = vector.load %arg47[%c0_236, %c0_237] : memref<18x64xf32, #tpu.memory_space<vmem>>, vector<16x64xf32>
    %cst_238 = arith.constant dense<0.000000e+00> : vector<16x64xf32>
    %200 = tpu.matmul %199, %189, %cst_238 {dimension_numbers = #tpu.dot_dimension_numbers<[1], [0], [0], [1], [0, 0, 1, 1], [], []>} : vector<16x64xf32>, vector<64x64xf32>, vector<16x64xf32> -> vector<16x64xf32>
    %c1_239 = arith.constant 1 : index
    %c0_240 = arith.constant 0 : index
    %201 = vector.load %arg47[%c1_239, %c0_240] : memref<18x64xf32, #tpu.memory_space<vmem>>, vector<16x64xf32>
    %cst_241 = arith.constant dense<0.000000e+00> : vector<16x64xf32>
    %202 = tpu.matmul %201, %191, %cst_241 {dimension_numbers = #tpu.dot_dimension_numbers<[1], [0], [0], [1], [0, 0, 1, 1], [], []>} : vector<16x64xf32>, vector<64x64xf32>, vector<16x64xf32> -> vector<16x64xf32>
    %203 = arith.addf %200, %202 : vector<16x64xf32>
    %c2_242 = arith.constant 2 : index
    %c0_243 = arith.constant 0 : index
    %204 = vector.load %arg47[%c2_242, %c0_243] : memref<18x64xf32, #tpu.memory_space<vmem>>, vector<16x64xf32>
    %cst_244 = arith.constant dense<0.000000e+00> : vector<16x64xf32>
    %205 = tpu.matmul %204, %193, %cst_244 {dimension_numbers = #tpu.dot_dimension_numbers<[1], [0], [0], [1], [0, 0, 1, 1], [], []>} : vector<16x64xf32>, vector<64x64xf32>, vector<16x64xf32> -> vector<16x64xf32>
    %206 = arith.addf %203, %205 : vector<16x64xf32>
    %207 = vector.broadcast %195 : vector<1x64xf32> to vector<16x64xf32>
    %208 = arith.mulf %206, %207 : vector<16x64xf32>
    %209 = vector.broadcast %197 : vector<1x64xf32> to vector<16x64xf32>
    %210 = arith.addf %208, %209 : vector<16x64xf32>
    %211 = arith.addf %210, %162 : vector<16x64xf32>
    %cst_245 = arith.constant 0.000000e+00 : f32
    %212 = vector.broadcast %cst_245 : f32 to vector<16x64xf32>
    %213 = arith.maximumf %211, %212 : vector<16x64xf32>
    %c0_246 = arith.constant 0 : index
    %c0_247 = arith.constant 0 : index
    %c0_248 = arith.constant 0 : index
    %214 = vector.load %arg2[%c0_246, %c0_247, %c0_248] : memref<1x8x64xf32, #tpu.memory_space<vmem>>, vector<1x8x64xf32>
    %215 = vector.shape_cast %214 : vector<1x8x64xf32> to vector<8x64xf32>
    %c0_249 = arith.constant 0 : index
    %c0_250 = arith.constant 0 : index
    %c0_251 = arith.constant 0 : index
    %c0_252 = arith.constant 0 : index
    %216 = vector.load %arg8[%c0_249, %c0_250, %c0_251, %c0_252] : memref<8x3x64x64xf32, #tpu.memory_space<vmem>>, vector<1x1x64x64xf32>
    %217 = vector.shape_cast %216 : vector<1x1x64x64xf32> to vector<64x64xf32>
    %c0_253 = arith.constant 0 : index
    %c1_254 = arith.constant 1 : index
    %c0_255 = arith.constant 0 : index
    %c0_256 = arith.constant 0 : index
    %218 = vector.load %arg8[%c0_253, %c1_254, %c0_255, %c0_256] : memref<8x3x64x64xf32, #tpu.memory_space<vmem>>, vector<1x1x64x64xf32>
    %219 = vector.shape_cast %218 : vector<1x1x64x64xf32> to vector<64x64xf32>
    %c0_257 = arith.constant 0 : index
    %c2_258 = arith.constant 2 : index
    %c0_259 = arith.constant 0 : index
    %c0_260 = arith.constant 0 : index
    %220 = vector.load %arg8[%c0_257, %c2_258, %c0_259, %c0_260] : memref<8x3x64x64xf32, #tpu.memory_space<vmem>>, vector<1x1x64x64xf32>
    %221 = vector.shape_cast %220 : vector<1x1x64x64xf32> to vector<64x64xf32>
    %c0_261 = arith.constant 0 : index
    %c0_262 = arith.constant 0 : index
    %c0_263 = arith.constant 0 : index
    %222 = vector.load %arg9[%c0_261, %c0_262, %c0_263] : memref<8x1x64xf32, #tpu.memory_space<vmem>>, vector<1x1x64xf32>
    %223 = vector.shape_cast %222 : vector<1x1x64xf32> to vector<1x64xf32>
    %c0_264 = arith.constant 0 : index
    %c0_265 = arith.constant 0 : index
    %c0_266 = arith.constant 0 : index
    %224 = vector.load %arg7[%c0_264, %c0_265, %c0_266] : memref<8x1x64xf32, #tpu.memory_space<vmem>>, vector<1x1x64xf32>
    %225 = vector.shape_cast %224 : vector<1x1x64xf32> to vector<1x64xf32>
    %c1_267 = arith.constant 1 : index
    %c0_268 = arith.constant 0 : index
    %226 = vector.load %arg48[%c1_267, %c0_268] : memref<10x64xf32, #tpu.memory_space<vmem>>, vector<8x64xf32>
    tpu.vector_store %arg48[%c1_267, %c0_268], %215 {strides = array<i32>} : memref<10x64xf32, #tpu.memory_space<vmem>>, vector<8x64xf32>,
    %c0_269 = arith.constant 0 : index
    %c0_270 = arith.constant 0 : index
    %227 = vector.load %arg48[%c0_269, %c0_270] : memref<10x64xf32, #tpu.memory_space<vmem>>, vector<8x64xf32>
    %cst_271 = arith.constant dense<0.000000e+00> : vector<8x64xf32>
    %228 = tpu.matmul %227, %217, %cst_271 {dimension_numbers = #tpu.dot_dimension_numbers<[1], [0], [0], [1], [0, 0, 1, 1], [], []>} : vector<8x64xf32>, vector<64x64xf32>, vector<8x64xf32> -> vector<8x64xf32>
    %c1_272 = arith.constant 1 : index
    %c0_273 = arith.constant 0 : index
    %229 = vector.load %arg48[%c1_272, %c0_273] : memref<10x64xf32, #tpu.memory_space<vmem>>, vector<8x64xf32>
    %cst_274 = arith.constant dense<0.000000e+00> : vector<8x64xf32>
    %230 = tpu.matmul %229, %219, %cst_274 {dimension_numbers = #tpu.dot_dimension_numbers<[1], [0], [0], [1], [0, 0, 1, 1], [], []>} : vector<8x64xf32>, vector<64x64xf32>, vector<8x64xf32> -> vector<8x64xf32>
    %231 = arith.addf %228, %230 : vector<8x64xf32>
    %c2_275 = arith.constant 2 : index
    %c0_276 = arith.constant 0 : index
    %232 = vector.load %arg48[%c2_275, %c0_276] : memref<10x64xf32, #tpu.memory_space<vmem>>, vector<8x64xf32>
    %cst_277 = arith.constant dense<0.000000e+00> : vector<8x64xf32>
    %233 = tpu.matmul %232, %221, %cst_277 {dimension_numbers = #tpu.dot_dimension_numbers<[1], [0], [0], [1], [0, 0, 1, 1], [], []>} : vector<8x64xf32>, vector<64x64xf32>, vector<8x64xf32> -> vector<8x64xf32>
    %234 = arith.addf %231, %233 : vector<8x64xf32>
    %235 = vector.broadcast %223 : vector<1x64xf32> to vector<8x64xf32>
    %236 = arith.mulf %234, %235 : vector<8x64xf32>
    %237 = vector.broadcast %225 : vector<1x64xf32> to vector<8x64xf32>
    %238 = arith.addf %236, %237 : vector<8x64xf32>
    %cst_278 = arith.constant 0.000000e+00 : f32
    %239 = vector.broadcast %cst_278 : f32 to vector<8x64xf32>
    %240 = arith.maximumf %238, %239 : vector<8x64xf32>
    %c1_279 = arith.constant 1 : index
    %c0_280 = arith.constant 0 : index
    %c0_281 = arith.constant 0 : index
    %c0_282 = arith.constant 0 : index
    %241 = vector.load %arg8[%c1_279, %c0_280, %c0_281, %c0_282] : memref<8x3x64x64xf32, #tpu.memory_space<vmem>>, vector<1x1x64x64xf32>
    %242 = vector.shape_cast %241 : vector<1x1x64x64xf32> to vector<64x64xf32>
    %c1_283 = arith.constant 1 : index
    %c1_284 = arith.constant 1 : index
    %c0_285 = arith.constant 0 : index
    %c0_286 = arith.constant 0 : index
    %243 = vector.load %arg8[%c1_283, %c1_284, %c0_285, %c0_286] : memref<8x3x64x64xf32, #tpu.memory_space<vmem>>, vector<1x1x64x64xf32>
    %244 = vector.shape_cast %243 : vector<1x1x64x64xf32> to vector<64x64xf32>
    %c1_287 = arith.constant 1 : index
    %c2_288 = arith.constant 2 : index
    %c0_289 = arith.constant 0 : index
    %c0_290 = arith.constant 0 : index
    %245 = vector.load %arg8[%c1_287, %c2_288, %c0_289, %c0_290] : memref<8x3x64x64xf32, #tpu.memory_space<vmem>>, vector<1x1x64x64xf32>
    %246 = vector.shape_cast %245 : vector<1x1x64x64xf32> to vector<64x64xf32>
    %c1_291 = arith.constant 1 : index
    %c0_292 = arith.constant 0 : index
    %c0_293 = arith.constant 0 : index
    %247 = vector.load %arg9[%c1_291, %c0_292, %c0_293] : memref<8x1x64xf32, #tpu.memory_space<vmem>>, vector<1x1x64xf32>
    %248 = vector.shape_cast %247 : vector<1x1x64xf32> to vector<1x64xf32>
    %c1_294 = arith.constant 1 : index
    %c0_295 = arith.constant 0 : index
    %c0_296 = arith.constant 0 : index
    %249 = vector.load %arg7[%c1_294, %c0_295, %c0_296] : memref<8x1x64xf32, #tpu.memory_space<vmem>>, vector<1x1x64xf32>
    %250 = vector.shape_cast %249 : vector<1x1x64xf32> to vector<1x64xf32>
    %c1_297 = arith.constant 1 : index
    %c0_298 = arith.constant 0 : index
    %251 = vector.load %arg48[%c1_297, %c0_298] : memref<10x64xf32, #tpu.memory_space<vmem>>, vector<8x64xf32>
    tpu.vector_store %arg48[%c1_297, %c0_298], %240 {strides = array<i32>} : memref<10x64xf32, #tpu.memory_space<vmem>>, vector<8x64xf32>,
    %c0_299 = arith.constant 0 : index
    %c0_300 = arith.constant 0 : index
    %252 = vector.load %arg48[%c0_299, %c0_300] : memref<10x64xf32, #tpu.memory_space<vmem>>, vector<8x64xf32>
    %cst_301 = arith.constant dense<0.000000e+00> : vector<8x64xf32>
    %253 = tpu.matmul %252, %242, %cst_301 {dimension_numbers = #tpu.dot_dimension_numbers<[1], [0], [0], [1], [0, 0, 1, 1], [], []>} : vector<8x64xf32>, vector<64x64xf32>, vector<8x64xf32> -> vector<8x64xf32>
    %c1_302 = arith.constant 1 : index
    %c0_303 = arith.constant 0 : index
    %254 = vector.load %arg48[%c1_302, %c0_303] : memref<10x64xf32, #tpu.memory_space<vmem>>, vector<8x64xf32>
    %cst_304 = arith.constant dense<0.000000e+00> : vector<8x64xf32>
    %255 = tpu.matmul %254, %244, %cst_304 {dimension_numbers = #tpu.dot_dimension_numbers<[1], [0], [0], [1], [0, 0, 1, 1], [], []>} : vector<8x64xf32>, vector<64x64xf32>, vector<8x64xf32> -> vector<8x64xf32>
    %256 = arith.addf %253, %255 : vector<8x64xf32>
    %c2_305 = arith.constant 2 : index
    %c0_306 = arith.constant 0 : index
    %257 = vector.load %arg48[%c2_305, %c0_306] : memref<10x64xf32, #tpu.memory_space<vmem>>, vector<8x64xf32>
    %cst_307 = arith.constant dense<0.000000e+00> : vector<8x64xf32>
    %258 = tpu.matmul %257, %246, %cst_307 {dimension_numbers = #tpu.dot_dimension_numbers<[1], [0], [0], [1], [0, 0, 1, 1], [], []>} : vector<8x64xf32>, vector<64x64xf32>, vector<8x64xf32> -> vector<8x64xf32>
    %259 = arith.addf %256, %258 : vector<8x64xf32>
    %260 = vector.broadcast %248 : vector<1x64xf32> to vector<8x64xf32>
    %261 = arith.mulf %259, %260 : vector<8x64xf32>
    %262 = vector.broadcast %250 : vector<1x64xf32> to vector<8x64xf32>
    %263 = arith.addf %261, %262 : vector<8x64xf32>
    %264 = arith.addf %263, %215 : vector<8x64xf32>
    %cst_308 = arith.constant 0.000000e+00 : f32
    %265 = vector.broadcast %cst_308 : f32 to vector<8x64xf32>
    %266 = arith.maximumf %264, %265 : vector<8x64xf32>
    %c2_309 = arith.constant 2 : index
    %c0_310 = arith.constant 0 : index
    %c0_311 = arith.constant 0 : index
    %c0_312 = arith.constant 0 : index
    %267 = vector.load %arg8[%c2_309, %c0_310, %c0_311, %c0_312] : memref<8x3x64x64xf32, #tpu.memory_space<vmem>>, vector<1x1x64x64xf32>
    %268 = vector.shape_cast %267 : vector<1x1x64x64xf32> to vector<64x64xf32>
    %c2_313 = arith.constant 2 : index
    %c1_314 = arith.constant 1 : index
    %c0_315 = arith.constant 0 : index
    %c0_316 = arith.constant 0 : index
    %269 = vector.load %arg8[%c2_313, %c1_314, %c0_315, %c0_316] : memref<8x3x64x64xf32, #tpu.memory_space<vmem>>, vector<1x1x64x64xf32>
    %270 = vector.shape_cast %269 : vector<1x1x64x64xf32> to vector<64x64xf32>
    %c2_317 = arith.constant 2 : index
    %c2_318 = arith.constant 2 : index
    %c0_319 = arith.constant 0 : index
    %c0_320 = arith.constant 0 : index
    %271 = vector.load %arg8[%c2_317, %c2_318, %c0_319, %c0_320] : memref<8x3x64x64xf32, #tpu.memory_space<vmem>>, vector<1x1x64x64xf32>
    %272 = vector.shape_cast %271 : vector<1x1x64x64xf32> to vector<64x64xf32>
    %c2_321 = arith.constant 2 : index
    %c0_322 = arith.constant 0 : index
    %c0_323 = arith.constant 0 : index
    %273 = vector.load %arg9[%c2_321, %c0_322, %c0_323] : memref<8x1x64xf32, #tpu.memory_space<vmem>>, vector<1x1x64xf32>
    %274 = vector.shape_cast %273 : vector<1x1x64xf32> to vector<1x64xf32>
    %c2_324 = arith.constant 2 : index
    %c0_325 = arith.constant 0 : index
    %c0_326 = arith.constant 0 : index
    %275 = vector.load %arg7[%c2_324, %c0_325, %c0_326] : memref<8x1x64xf32, #tpu.memory_space<vmem>>, vector<1x1x64xf32>
    %276 = vector.shape_cast %275 : vector<1x1x64xf32> to vector<1x64xf32>
    %c1_327 = arith.constant 1 : index
    %c0_328 = arith.constant 0 : index
    %277 = vector.load %arg48[%c1_327, %c0_328] : memref<10x64xf32, #tpu.memory_space<vmem>>, vector<8x64xf32>
    tpu.vector_store %arg48[%c1_327, %c0_328], %266 {strides = array<i32>} : memref<10x64xf32, #tpu.memory_space<vmem>>, vector<8x64xf32>,
    %c0_329 = arith.constant 0 : index
    %c0_330 = arith.constant 0 : index
    %278 = vector.load %arg48[%c0_329, %c0_330] : memref<10x64xf32, #tpu.memory_space<vmem>>, vector<8x64xf32>
    %cst_331 = arith.constant dense<0.000000e+00> : vector<8x64xf32>
    %279 = tpu.matmul %278, %268, %cst_331 {dimension_numbers = #tpu.dot_dimension_numbers<[1], [0], [0], [1], [0, 0, 1, 1], [], []>} : vector<8x64xf32>, vector<64x64xf32>, vector<8x64xf32> -> vector<8x64xf32>
    %c1_332 = arith.constant 1 : index
    %c0_333 = arith.constant 0 : index
    %280 = vector.load %arg48[%c1_332, %c0_333] : memref<10x64xf32, #tpu.memory_space<vmem>>, vector<8x64xf32>
    %cst_334 = arith.constant dense<0.000000e+00> : vector<8x64xf32>
    %281 = tpu.matmul %280, %270, %cst_334 {dimension_numbers = #tpu.dot_dimension_numbers<[1], [0], [0], [1], [0, 0, 1, 1], [], []>} : vector<8x64xf32>, vector<64x64xf32>, vector<8x64xf32> -> vector<8x64xf32>
    %282 = arith.addf %279, %281 : vector<8x64xf32>
    %c2_335 = arith.constant 2 : index
    %c0_336 = arith.constant 0 : index
    %283 = vector.load %arg48[%c2_335, %c0_336] : memref<10x64xf32, #tpu.memory_space<vmem>>, vector<8x64xf32>
    %cst_337 = arith.constant dense<0.000000e+00> : vector<8x64xf32>
    %284 = tpu.matmul %283, %272, %cst_337 {dimension_numbers = #tpu.dot_dimension_numbers<[1], [0], [0], [1], [0, 0, 1, 1], [], []>} : vector<8x64xf32>, vector<64x64xf32>, vector<8x64xf32> -> vector<8x64xf32>
    %285 = arith.addf %282, %284 : vector<8x64xf32>
    %286 = vector.broadcast %274 : vector<1x64xf32> to vector<8x64xf32>
    %287 = arith.mulf %285, %286 : vector<8x64xf32>
    %288 = vector.broadcast %276 : vector<1x64xf32> to vector<8x64xf32>
    %289 = arith.addf %287, %288 : vector<8x64xf32>
    %cst_338 = arith.constant 0.000000e+00 : f32
    %290 = vector.broadcast %cst_338 : f32 to vector<8x64xf32>
    %291 = arith.maximumf %289, %290 : vector<8x64xf32>
    %c3_339 = arith.constant 3 : index
    %c0_340 = arith.constant 0 : index
    %c0_341 = arith.constant 0 : index
    %c0_342 = arith.constant 0 : index
    %292 = vector.load %arg8[%c3_339, %c0_340, %c0_341, %c0_342] : memref<8x3x64x64xf32, #tpu.memory_space<vmem>>, vector<1x1x64x64xf32>
    %293 = vector.shape_cast %292 : vector<1x1x64x64xf32> to vector<64x64xf32>
    %c3_343 = arith.constant 3 : index
    %c1_344 = arith.constant 1 : index
    %c0_345 = arith.constant 0 : index
    %c0_346 = arith.constant 0 : index
    %294 = vector.load %arg8[%c3_343, %c1_344, %c0_345, %c0_346] : memref<8x3x64x64xf32, #tpu.memory_space<vmem>>, vector<1x1x64x64xf32>
    %295 = vector.shape_cast %294 : vector<1x1x64x64xf32> to vector<64x64xf32>
    %c3_347 = arith.constant 3 : index
    %c2_348 = arith.constant 2 : index
    %c0_349 = arith.constant 0 : index
    %c0_350 = arith.constant 0 : index
    %296 = vector.load %arg8[%c3_347, %c2_348, %c0_349, %c0_350] : memref<8x3x64x64xf32, #tpu.memory_space<vmem>>, vector<1x1x64x64xf32>
    %297 = vector.shape_cast %296 : vector<1x1x64x64xf32> to vector<64x64xf32>
    %c3_351 = arith.constant 3 : index
    %c0_352 = arith.constant 0 : index
    %c0_353 = arith.constant 0 : index
    %298 = vector.load %arg9[%c3_351, %c0_352, %c0_353] : memref<8x1x64xf32, #tpu.memory_space<vmem>>, vector<1x1x64xf32>
    %299 = vector.shape_cast %298 : vector<1x1x64xf32> to vector<1x64xf32>
    %c3_354 = arith.constant 3 : index
    %c0_355 = arith.constant 0 : index
    %c0_356 = arith.constant 0 : index
    %300 = vector.load %arg7[%c3_354, %c0_355, %c0_356] : memref<8x1x64xf32, #tpu.memory_space<vmem>>, vector<1x1x64xf32>
    %301 = vector.shape_cast %300 : vector<1x1x64xf32> to vector<1x64xf32>
    %c1_357 = arith.constant 1 : index
    %c0_358 = arith.constant 0 : index
    %302 = vector.load %arg48[%c1_357, %c0_358] : memref<10x64xf32, #tpu.memory_space<vmem>>, vector<8x64xf32>
    tpu.vector_store %arg48[%c1_357, %c0_358], %291 {strides = array<i32>} : memref<10x64xf32, #tpu.memory_space<vmem>>, vector<8x64xf32>,
    %c0_359 = arith.constant 0 : index
    %c0_360 = arith.constant 0 : index
    %303 = vector.load %arg48[%c0_359, %c0_360] : memref<10x64xf32, #tpu.memory_space<vmem>>, vector<8x64xf32>
    %cst_361 = arith.constant dense<0.000000e+00> : vector<8x64xf32>
    %304 = tpu.matmul %303, %293, %cst_361 {dimension_numbers = #tpu.dot_dimension_numbers<[1], [0], [0], [1], [0, 0, 1, 1], [], []>} : vector<8x64xf32>, vector<64x64xf32>, vector<8x64xf32> -> vector<8x64xf32>
    %c1_362 = arith.constant 1 : index
    %c0_363 = arith.constant 0 : index
    %305 = vector.load %arg48[%c1_362, %c0_363] : memref<10x64xf32, #tpu.memory_space<vmem>>, vector<8x64xf32>
    %cst_364 = arith.constant dense<0.000000e+00> : vector<8x64xf32>
    %306 = tpu.matmul %305, %295, %cst_364 {dimension_numbers = #tpu.dot_dimension_numbers<[1], [0], [0], [1], [0, 0, 1, 1], [], []>} : vector<8x64xf32>, vector<64x64xf32>, vector<8x64xf32> -> vector<8x64xf32>
    %307 = arith.addf %304, %306 : vector<8x64xf32>
    %c2_365 = arith.constant 2 : index
    %c0_366 = arith.constant 0 : index
    %308 = vector.load %arg48[%c2_365, %c0_366] : memref<10x64xf32, #tpu.memory_space<vmem>>, vector<8x64xf32>
    %cst_367 = arith.constant dense<0.000000e+00> : vector<8x64xf32>
    %309 = tpu.matmul %308, %297, %cst_367 {dimension_numbers = #tpu.dot_dimension_numbers<[1], [0], [0], [1], [0, 0, 1, 1], [], []>} : vector<8x64xf32>, vector<64x64xf32>, vector<8x64xf32> -> vector<8x64xf32>
    %310 = arith.addf %307, %309 : vector<8x64xf32>
    %311 = vector.broadcast %299 : vector<1x64xf32> to vector<8x64xf32>
    %312 = arith.mulf %310, %311 : vector<8x64xf32>
    %313 = vector.broadcast %301 : vector<1x64xf32> to vector<8x64xf32>
    %314 = arith.addf %312, %313 : vector<8x64xf32>
    %315 = arith.addf %314, %266 : vector<8x64xf32>
    %cst_368 = arith.constant 0.000000e+00 : f32
    %316 = vector.broadcast %cst_368 : f32 to vector<8x64xf32>
    %317 = arith.maximumf %315, %316 : vector<8x64xf32>
    %c4_369 = arith.constant 4 : index
    %c0_370 = arith.constant 0 : index
    %c0_371 = arith.constant 0 : index
    %c0_372 = arith.constant 0 : index
    %318 = vector.load %arg8[%c4_369, %c0_370, %c0_371, %c0_372] : memref<8x3x64x64xf32, #tpu.memory_space<vmem>>, vector<1x1x64x64xf32>
    %319 = vector.shape_cast %318 : vector<1x1x64x64xf32> to vector<64x64xf32>
    %c4_373 = arith.constant 4 : index
    %c1_374 = arith.constant 1 : index
    %c0_375 = arith.constant 0 : index
    %c0_376 = arith.constant 0 : index
    %320 = vector.load %arg8[%c4_373, %c1_374, %c0_375, %c0_376] : memref<8x3x64x64xf32, #tpu.memory_space<vmem>>, vector<1x1x64x64xf32>
    %321 = vector.shape_cast %320 : vector<1x1x64x64xf32> to vector<64x64xf32>
    %c4_377 = arith.constant 4 : index
    %c2_378 = arith.constant 2 : index
    %c0_379 = arith.constant 0 : index
    %c0_380 = arith.constant 0 : index
    %322 = vector.load %arg8[%c4_377, %c2_378, %c0_379, %c0_380] : memref<8x3x64x64xf32, #tpu.memory_space<vmem>>, vector<1x1x64x64xf32>
    %323 = vector.shape_cast %322 : vector<1x1x64x64xf32> to vector<64x64xf32>
    %c4_381 = arith.constant 4 : index
    %c0_382 = arith.constant 0 : index
    %c0_383 = arith.constant 0 : index
    %324 = vector.load %arg9[%c4_381, %c0_382, %c0_383] : memref<8x1x64xf32, #tpu.memory_space<vmem>>, vector<1x1x64xf32>
    %325 = vector.shape_cast %324 : vector<1x1x64xf32> to vector<1x64xf32>
    %c4_384 = arith.constant 4 : index
    %c0_385 = arith.constant 0 : index
    %c0_386 = arith.constant 0 : index
    %326 = vector.load %arg7[%c4_384, %c0_385, %c0_386] : memref<8x1x64xf32, #tpu.memory_space<vmem>>, vector<1x1x64xf32>
    %327 = vector.shape_cast %326 : vector<1x1x64xf32> to vector<1x64xf32>
    %c1_387 = arith.constant 1 : index
    %c0_388 = arith.constant 0 : index
    %328 = vector.load %arg48[%c1_387, %c0_388] : memref<10x64xf32, #tpu.memory_space<vmem>>, vector<8x64xf32>
    tpu.vector_store %arg48[%c1_387, %c0_388], %317 {strides = array<i32>} : memref<10x64xf32, #tpu.memory_space<vmem>>, vector<8x64xf32>,
    %c0_389 = arith.constant 0 : index
    %c0_390 = arith.constant 0 : index
    %329 = vector.load %arg48[%c0_389, %c0_390] : memref<10x64xf32, #tpu.memory_space<vmem>>, vector<8x64xf32>
    %cst_391 = arith.constant dense<0.000000e+00> : vector<8x64xf32>
    %330 = tpu.matmul %329, %319, %cst_391 {dimension_numbers = #tpu.dot_dimension_numbers<[1], [0], [0], [1], [0, 0, 1, 1], [], []>} : vector<8x64xf32>, vector<64x64xf32>, vector<8x64xf32> -> vector<8x64xf32>
    %c1_392 = arith.constant 1 : index
    %c0_393 = arith.constant 0 : index
    %331 = vector.load %arg48[%c1_392, %c0_393] : memref<10x64xf32, #tpu.memory_space<vmem>>, vector<8x64xf32>
    %cst_394 = arith.constant dense<0.000000e+00> : vector<8x64xf32>
    %332 = tpu.matmul %331, %321, %cst_394 {dimension_numbers = #tpu.dot_dimension_numbers<[1], [0], [0], [1], [0, 0, 1, 1], [], []>} : vector<8x64xf32>, vector<64x64xf32>, vector<8x64xf32> -> vector<8x64xf32>
    %333 = arith.addf %330, %332 : vector<8x64xf32>
    %c2_395 = arith.constant 2 : index
    %c0_396 = arith.constant 0 : index
    %334 = vector.load %arg48[%c2_395, %c0_396] : memref<10x64xf32, #tpu.memory_space<vmem>>, vector<8x64xf32>
    %cst_397 = arith.constant dense<0.000000e+00> : vector<8x64xf32>
    %335 = tpu.matmul %334, %323, %cst_397 {dimension_numbers = #tpu.dot_dimension_numbers<[1], [0], [0], [1], [0, 0, 1, 1], [], []>} : vector<8x64xf32>, vector<64x64xf32>, vector<8x64xf32> -> vector<8x64xf32>
    %336 = arith.addf %333, %335 : vector<8x64xf32>
    %337 = vector.broadcast %325 : vector<1x64xf32> to vector<8x64xf32>
    %338 = arith.mulf %336, %337 : vector<8x64xf32>
    %339 = vector.broadcast %327 : vector<1x64xf32> to vector<8x64xf32>
    %340 = arith.addf %338, %339 : vector<8x64xf32>
    %cst_398 = arith.constant 0.000000e+00 : f32
    %341 = vector.broadcast %cst_398 : f32 to vector<8x64xf32>
    %342 = arith.maximumf %340, %341 : vector<8x64xf32>
    %c5_399 = arith.constant 5 : index
    %c0_400 = arith.constant 0 : index
    %c0_401 = arith.constant 0 : index
    %c0_402 = arith.constant 0 : index
    %343 = vector.load %arg8[%c5_399, %c0_400, %c0_401, %c0_402] : memref<8x3x64x64xf32, #tpu.memory_space<vmem>>, vector<1x1x64x64xf32>
    %344 = vector.shape_cast %343 : vector<1x1x64x64xf32> to vector<64x64xf32>
    %c5_403 = arith.constant 5 : index
    %c1_404 = arith.constant 1 : index
    %c0_405 = arith.constant 0 : index
    %c0_406 = arith.constant 0 : index
    %345 = vector.load %arg8[%c5_403, %c1_404, %c0_405, %c0_406] : memref<8x3x64x64xf32, #tpu.memory_space<vmem>>, vector<1x1x64x64xf32>
    %346 = vector.shape_cast %345 : vector<1x1x64x64xf32> to vector<64x64xf32>
    %c5_407 = arith.constant 5 : index
    %c2_408 = arith.constant 2 : index
    %c0_409 = arith.constant 0 : index
    %c0_410 = arith.constant 0 : index
    %347 = vector.load %arg8[%c5_407, %c2_408, %c0_409, %c0_410] : memref<8x3x64x64xf32, #tpu.memory_space<vmem>>, vector<1x1x64x64xf32>
    %348 = vector.shape_cast %347 : vector<1x1x64x64xf32> to vector<64x64xf32>
    %c5_411 = arith.constant 5 : index
    %c0_412 = arith.constant 0 : index
    %c0_413 = arith.constant 0 : index
    %349 = vector.load %arg9[%c5_411, %c0_412, %c0_413] : memref<8x1x64xf32, #tpu.memory_space<vmem>>, vector<1x1x64xf32>
    %350 = vector.shape_cast %349 : vector<1x1x64xf32> to vector<1x64xf32>
    %c5_414 = arith.constant 5 : index
    %c0_415 = arith.constant 0 : index
    %c0_416 = arith.constant 0 : index
    %351 = vector.load %arg7[%c5_414, %c0_415, %c0_416] : memref<8x1x64xf32, #tpu.memory_space<vmem>>, vector<1x1x64xf32>
    %352 = vector.shape_cast %351 : vector<1x1x64xf32> to vector<1x64xf32>
    %c1_417 = arith.constant 1 : index
    %c0_418 = arith.constant 0 : index
    %353 = vector.load %arg48[%c1_417, %c0_418] : memref<10x64xf32, #tpu.memory_space<vmem>>, vector<8x64xf32>
    tpu.vector_store %arg48[%c1_417, %c0_418], %342 {strides = array<i32>} : memref<10x64xf32, #tpu.memory_space<vmem>>, vector<8x64xf32>,
    %c0_419 = arith.constant 0 : index
    %c0_420 = arith.constant 0 : index
    %354 = vector.load %arg48[%c0_419, %c0_420] : memref<10x64xf32, #tpu.memory_space<vmem>>, vector<8x64xf32>
    %cst_421 = arith.constant dense<0.000000e+00> : vector<8x64xf32>
    %355 = tpu.matmul %354, %344, %cst_421 {dimension_numbers = #tpu.dot_dimension_numbers<[1], [0], [0], [1], [0, 0, 1, 1], [], []>} : vector<8x64xf32>, vector<64x64xf32>, vector<8x64xf32> -> vector<8x64xf32>
    %c1_422 = arith.constant 1 : index
    %c0_423 = arith.constant 0 : index
    %356 = vector.load %arg48[%c1_422, %c0_423] : memref<10x64xf32, #tpu.memory_space<vmem>>, vector<8x64xf32>
    %cst_424 = arith.constant dense<0.000000e+00> : vector<8x64xf32>
    %357 = tpu.matmul %356, %346, %cst_424 {dimension_numbers = #tpu.dot_dimension_numbers<[1], [0], [0], [1], [0, 0, 1, 1], [], []>} : vector<8x64xf32>, vector<64x64xf32>, vector<8x64xf32> -> vector<8x64xf32>
    %358 = arith.addf %355, %357 : vector<8x64xf32>
    %c2_425 = arith.constant 2 : index
    %c0_426 = arith.constant 0 : index
    %359 = vector.load %arg48[%c2_425, %c0_426] : memref<10x64xf32, #tpu.memory_space<vmem>>, vector<8x64xf32>
    %cst_427 = arith.constant dense<0.000000e+00> : vector<8x64xf32>
    %360 = tpu.matmul %359, %348, %cst_427 {dimension_numbers = #tpu.dot_dimension_numbers<[1], [0], [0], [1], [0, 0, 1, 1], [], []>} : vector<8x64xf32>, vector<64x64xf32>, vector<8x64xf32> -> vector<8x64xf32>
    %361 = arith.addf %358, %360 : vector<8x64xf32>
    %362 = vector.broadcast %350 : vector<1x64xf32> to vector<8x64xf32>
    %363 = arith.mulf %361, %362 : vector<8x64xf32>
    %364 = vector.broadcast %352 : vector<1x64xf32> to vector<8x64xf32>
    %365 = arith.addf %363, %364 : vector<8x64xf32>
    %366 = arith.addf %365, %317 : vector<8x64xf32>
    %cst_428 = arith.constant 0.000000e+00 : f32
    %367 = vector.broadcast %cst_428 : f32 to vector<8x64xf32>
    %368 = arith.maximumf %366, %367 : vector<8x64xf32>
    %c6_429 = arith.constant 6 : index
    %c0_430 = arith.constant 0 : index
    %c0_431 = arith.constant 0 : index
    %c0_432 = arith.constant 0 : index
    %369 = vector.load %arg8[%c6_429, %c0_430, %c0_431, %c0_432] : memref<8x3x64x64xf32, #tpu.memory_space<vmem>>, vector<1x1x64x64xf32>
    %370 = vector.shape_cast %369 : vector<1x1x64x64xf32> to vector<64x64xf32>
    %c6_433 = arith.constant 6 : index
    %c1_434 = arith.constant 1 : index
    %c0_435 = arith.constant 0 : index
    %c0_436 = arith.constant 0 : index
    %371 = vector.load %arg8[%c6_433, %c1_434, %c0_435, %c0_436] : memref<8x3x64x64xf32, #tpu.memory_space<vmem>>, vector<1x1x64x64xf32>
    %372 = vector.shape_cast %371 : vector<1x1x64x64xf32> to vector<64x64xf32>
    %c6_437 = arith.constant 6 : index
    %c2_438 = arith.constant 2 : index
    %c0_439 = arith.constant 0 : index
    %c0_440 = arith.constant 0 : index
    %373 = vector.load %arg8[%c6_437, %c2_438, %c0_439, %c0_440] : memref<8x3x64x64xf32, #tpu.memory_space<vmem>>, vector<1x1x64x64xf32>
    %374 = vector.shape_cast %373 : vector<1x1x64x64xf32> to vector<64x64xf32>
    %c6_441 = arith.constant 6 : index
    %c0_442 = arith.constant 0 : index
    %c0_443 = arith.constant 0 : index
    %375 = vector.load %arg9[%c6_441, %c0_442, %c0_443] : memref<8x1x64xf32, #tpu.memory_space<vmem>>, vector<1x1x64xf32>
    %376 = vector.shape_cast %375 : vector<1x1x64xf32> to vector<1x64xf32>
    %c6_444 = arith.constant 6 : index
    %c0_445 = arith.constant 0 : index
    %c0_446 = arith.constant 0 : index
    %377 = vector.load %arg7[%c6_444, %c0_445, %c0_446] : memref<8x1x64xf32, #tpu.memory_space<vmem>>, vector<1x1x64xf32>
    %378 = vector.shape_cast %377 : vector<1x1x64xf32> to vector<1x64xf32>
    %c1_447 = arith.constant 1 : index
    %c0_448 = arith.constant 0 : index
    %379 = vector.load %arg48[%c1_447, %c0_448] : memref<10x64xf32, #tpu.memory_space<vmem>>, vector<8x64xf32>
    tpu.vector_store %arg48[%c1_447, %c0_448], %368 {strides = array<i32>} : memref<10x64xf32, #tpu.memory_space<vmem>>, vector<8x64xf32>,
    %c0_449 = arith.constant 0 : index
    %c0_450 = arith.constant 0 : index
    %380 = vector.load %arg48[%c0_449, %c0_450] : memref<10x64xf32, #tpu.memory_space<vmem>>, vector<8x64xf32>
    %cst_451 = arith.constant dense<0.000000e+00> : vector<8x64xf32>
    %381 = tpu.matmul %380, %370, %cst_451 {dimension_numbers = #tpu.dot_dimension_numbers<[1], [0], [0], [1], [0, 0, 1, 1], [], []>} : vector<8x64xf32>, vector<64x64xf32>, vector<8x64xf32> -> vector<8x64xf32>
    %c1_452 = arith.constant 1 : index
    %c0_453 = arith.constant 0 : index
    %382 = vector.load %arg48[%c1_452, %c0_453] : memref<10x64xf32, #tpu.memory_space<vmem>>, vector<8x64xf32>
    %cst_454 = arith.constant dense<0.000000e+00> : vector<8x64xf32>
    %383 = tpu.matmul %382, %372, %cst_454 {dimension_numbers = #tpu.dot_dimension_numbers<[1], [0], [0], [1], [0, 0, 1, 1], [], []>} : vector<8x64xf32>, vector<64x64xf32>, vector<8x64xf32> -> vector<8x64xf32>
    %384 = arith.addf %381, %383 : vector<8x64xf32>
    %c2_455 = arith.constant 2 : index
    %c0_456 = arith.constant 0 : index
    %385 = vector.load %arg48[%c2_455, %c0_456] : memref<10x64xf32, #tpu.memory_space<vmem>>, vector<8x64xf32>
    %cst_457 = arith.constant dense<0.000000e+00> : vector<8x64xf32>
    %386 = tpu.matmul %385, %374, %cst_457 {dimension_numbers = #tpu.dot_dimension_numbers<[1], [0], [0], [1], [0, 0, 1, 1], [], []>} : vector<8x64xf32>, vector<64x64xf32>, vector<8x64xf32> -> vector<8x64xf32>
    %387 = arith.addf %384, %386 : vector<8x64xf32>
    %388 = vector.broadcast %376 : vector<1x64xf32> to vector<8x64xf32>
    %389 = arith.mulf %387, %388 : vector<8x64xf32>
    %390 = vector.broadcast %378 : vector<1x64xf32> to vector<8x64xf32>
    %391 = arith.addf %389, %390 : vector<8x64xf32>
    %cst_458 = arith.constant 0.000000e+00 : f32
    %392 = vector.broadcast %cst_458 : f32 to vector<8x64xf32>
    %393 = arith.maximumf %391, %392 : vector<8x64xf32>
    %c7_459 = arith.constant 7 : index
    %c0_460 = arith.constant 0 : index
    %c0_461 = arith.constant 0 : index
    %c0_462 = arith.constant 0 : index
    %394 = vector.load %arg8[%c7_459, %c0_460, %c0_461, %c0_462] : memref<8x3x64x64xf32, #tpu.memory_space<vmem>>, vector<1x1x64x64xf32>
    %395 = vector.shape_cast %394 : vector<1x1x64x64xf32> to vector<64x64xf32>
    %c7_463 = arith.constant 7 : index
    %c1_464 = arith.constant 1 : index
    %c0_465 = arith.constant 0 : index
    %c0_466 = arith.constant 0 : index
    %396 = vector.load %arg8[%c7_463, %c1_464, %c0_465, %c0_466] : memref<8x3x64x64xf32, #tpu.memory_space<vmem>>, vector<1x1x64x64xf32>
    %397 = vector.shape_cast %396 : vector<1x1x64x64xf32> to vector<64x64xf32>
    %c7_467 = arith.constant 7 : index
    %c2_468 = arith.constant 2 : index
    %c0_469 = arith.constant 0 : index
    %c0_470 = arith.constant 0 : index
    %398 = vector.load %arg8[%c7_467, %c2_468, %c0_469, %c0_470] : memref<8x3x64x64xf32, #tpu.memory_space<vmem>>, vector<1x1x64x64xf32>
    %399 = vector.shape_cast %398 : vector<1x1x64x64xf32> to vector<64x64xf32>
    %c7_471 = arith.constant 7 : index
    %c0_472 = arith.constant 0 : index
    %c0_473 = arith.constant 0 : index
    %400 = vector.load %arg9[%c7_471, %c0_472, %c0_473] : memref<8x1x64xf32, #tpu.memory_space<vmem>>, vector<1x1x64xf32>
    %401 = vector.shape_cast %400 : vector<1x1x64xf32> to vector<1x64xf32>
    %c7_474 = arith.constant 7 : index
    %c0_475 = arith.constant 0 : index
    %c0_476 = arith.constant 0 : index
    %402 = vector.load %arg7[%c7_474, %c0_475, %c0_476] : memref<8x1x64xf32, #tpu.memory_space<vmem>>, vector<1x1x64xf32>
    %403 = vector.shape_cast %402 : vector<1x1x64xf32> to vector<1x64xf32>
    %c1_477 = arith.constant 1 : index
    %c0_478 = arith.constant 0 : index
    %404 = vector.load %arg48[%c1_477, %c0_478] : memref<10x64xf32, #tpu.memory_space<vmem>>, vector<8x64xf32>
    tpu.vector_store %arg48[%c1_477, %c0_478], %393 {strides = array<i32>} : memref<10x64xf32, #tpu.memory_space<vmem>>, vector<8x64xf32>,
    %c0_479 = arith.constant 0 : index
    %c0_480 = arith.constant 0 : index
    %405 = vector.load %arg48[%c0_479, %c0_480] : memref<10x64xf32, #tpu.memory_space<vmem>>, vector<8x64xf32>
    %cst_481 = arith.constant dense<0.000000e+00> : vector<8x64xf32>
    %406 = tpu.matmul %405, %395, %cst_481 {dimension_numbers = #tpu.dot_dimension_numbers<[1], [0], [0], [1], [0, 0, 1, 1], [], []>} : vector<8x64xf32>, vector<64x64xf32>, vector<8x64xf32> -> vector<8x64xf32>
    %c1_482 = arith.constant 1 : index
    %c0_483 = arith.constant 0 : index
    %407 = vector.load %arg48[%c1_482, %c0_483] : memref<10x64xf32, #tpu.memory_space<vmem>>, vector<8x64xf32>
    %cst_484 = arith.constant dense<0.000000e+00> : vector<8x64xf32>
    %408 = tpu.matmul %407, %397, %cst_484 {dimension_numbers = #tpu.dot_dimension_numbers<[1], [0], [0], [1], [0, 0, 1, 1], [], []>} : vector<8x64xf32>, vector<64x64xf32>, vector<8x64xf32> -> vector<8x64xf32>
    %409 = arith.addf %406, %408 : vector<8x64xf32>
    %c2_485 = arith.constant 2 : index
    %c0_486 = arith.constant 0 : index
    %410 = vector.load %arg48[%c2_485, %c0_486] : memref<10x64xf32, #tpu.memory_space<vmem>>, vector<8x64xf32>
    %cst_487 = arith.constant dense<0.000000e+00> : vector<8x64xf32>
    %411 = tpu.matmul %410, %399, %cst_487 {dimension_numbers = #tpu.dot_dimension_numbers<[1], [0], [0], [1], [0, 0, 1, 1], [], []>} : vector<8x64xf32>, vector<64x64xf32>, vector<8x64xf32> -> vector<8x64xf32>
    %412 = arith.addf %409, %411 : vector<8x64xf32>
    %413 = vector.broadcast %401 : vector<1x64xf32> to vector<8x64xf32>
    %414 = arith.mulf %412, %413 : vector<8x64xf32>
    %415 = vector.broadcast %403 : vector<1x64xf32> to vector<8x64xf32>
    %416 = arith.addf %414, %415 : vector<8x64xf32>
    %417 = arith.addf %416, %368 : vector<8x64xf32>
    %cst_488 = arith.constant 0.000000e+00 : f32
    %418 = vector.broadcast %cst_488 : f32 to vector<8x64xf32>
    %419 = arith.maximumf %417, %418 : vector<8x64xf32>
    %c0_489 = arith.constant 0 : index
    %c0_490 = arith.constant 0 : index
    %c0_491 = arith.constant 0 : index
    %420 = vector.load %arg3[%c0_489, %c0_490, %c0_491] : memref<1x4x64xf32, #tpu.memory_space<vmem>>, vector<1x4x64xf32>
    %421 = vector.shape_cast %420 : vector<1x4x64xf32> to vector<4x64xf32>
    %c0_492 = arith.constant 0 : index
    %c0_493 = arith.constant 0 : index
    %c0_494 = arith.constant 0 : index
    %c0_495 = arith.constant 0 : index
    %422 = vector.load %arg11[%c0_492, %c0_493, %c0_494, %c0_495] : memref<8x3x64x64xf32, #tpu.memory_space<vmem>>, vector<1x1x64x64xf32>
    %423 = vector.shape_cast %422 : vector<1x1x64x64xf32> to vector<64x64xf32>
    %c0_496 = arith.constant 0 : index
    %c1_497 = arith.constant 1 : index
    %c0_498 = arith.constant 0 : index
    %c0_499 = arith.constant 0 : index
    %424 = vector.load %arg11[%c0_496, %c1_497, %c0_498, %c0_499] : memref<8x3x64x64xf32, #tpu.memory_space<vmem>>, vector<1x1x64x64xf32>
    %425 = vector.shape_cast %424 : vector<1x1x64x64xf32> to vector<64x64xf32>
    %c0_500 = arith.constant 0 : index
    %c2_501 = arith.constant 2 : index
    %c0_502 = arith.constant 0 : index
    %c0_503 = arith.constant 0 : index
    %426 = vector.load %arg11[%c0_500, %c2_501, %c0_502, %c0_503] : memref<8x3x64x64xf32, #tpu.memory_space<vmem>>, vector<1x1x64x64xf32>
    %427 = vector.shape_cast %426 : vector<1x1x64x64xf32> to vector<64x64xf32>
    %c0_504 = arith.constant 0 : index
    %c0_505 = arith.constant 0 : index
    %c0_506 = arith.constant 0 : index
    %428 = vector.load %arg12[%c0_504, %c0_505, %c0_506] : memref<8x1x64xf32, #tpu.memory_space<vmem>>, vector<1x1x64xf32>
    %429 = vector.shape_cast %428 : vector<1x1x64xf32> to vector<1x64xf32>
    %c0_507 = arith.constant 0 : index
    %c0_508 = arith.constant 0 : index
    %c0_509 = arith.constant 0 : index
    %430 = vector.load %arg10[%c0_507, %c0_508, %c0_509] : memref<8x1x64xf32, #tpu.memory_space<vmem>>, vector<1x1x64xf32>
    %431 = vector.shape_cast %430 : vector<1x1x64xf32> to vector<1x64xf32>
    %c1_510 = arith.constant 1 : index
    %c0_511 = arith.constant 0 : index
    %432 = vector.load %arg49[%c1_510, %c0_511] : memref<6x64xf32, #tpu.memory_space<vmem>>, vector<4x64xf32>
    tpu.vector_store %arg49[%c1_510, %c0_511], %421 {strides = array<i32>} : memref<6x64xf32, #tpu.memory_space<vmem>>, vector<4x64xf32>,
    %c0_512 = arith.constant 0 : index
    %c0_513 = arith.constant 0 : index
    %433 = vector.load %arg49[%c0_512, %c0_513] : memref<6x64xf32, #tpu.memory_space<vmem>>, vector<4x64xf32>
    %cst_514 = arith.constant dense<0.000000e+00> : vector<4x64xf32>
    %434 = tpu.matmul %433, %423, %cst_514 {dimension_numbers = #tpu.dot_dimension_numbers<[1], [0], [0], [1], [0, 0, 1, 1], [], []>} : vector<4x64xf32>, vector<64x64xf32>, vector<4x64xf32> -> vector<4x64xf32>
    %c1_515 = arith.constant 1 : index
    %c0_516 = arith.constant 0 : index
    %435 = vector.load %arg49[%c1_515, %c0_516] : memref<6x64xf32, #tpu.memory_space<vmem>>, vector<4x64xf32>
    %cst_517 = arith.constant dense<0.000000e+00> : vector<4x64xf32>
    %436 = tpu.matmul %435, %425, %cst_517 {dimension_numbers = #tpu.dot_dimension_numbers<[1], [0], [0], [1], [0, 0, 1, 1], [], []>} : vector<4x64xf32>, vector<64x64xf32>, vector<4x64xf32> -> vector<4x64xf32>
    %437 = arith.addf %434, %436 : vector<4x64xf32>
    %c2_518 = arith.constant 2 : index
    %c0_519 = arith.constant 0 : index
    %438 = vector.load %arg49[%c2_518, %c0_519] : memref<6x64xf32, #tpu.memory_space<vmem>>, vector<4x64xf32>
    %cst_520 = arith.constant dense<0.000000e+00> : vector<4x64xf32>
    %439 = tpu.matmul %438, %427, %cst_520 {dimension_numbers = #tpu.dot_dimension_numbers<[1], [0], [0], [1], [0, 0, 1, 1], [], []>} : vector<4x64xf32>, vector<64x64xf32>, vector<4x64xf32> -> vector<4x64xf32>
    %440 = arith.addf %437, %439 : vector<4x64xf32>
    %441 = vector.broadcast %429 : vector<1x64xf32> to vector<4x64xf32>
    %442 = arith.mulf %440, %441 : vector<4x64xf32>
    %443 = vector.broadcast %431 : vector<1x64xf32> to vector<4x64xf32>
    %444 = arith.addf %442, %443 : vector<4x64xf32>
    %cst_521 = arith.constant 0.000000e+00 : f32
    %445 = vector.broadcast %cst_521 : f32 to vector<4x64xf32>
    %446 = arith.maximumf %444, %445 : vector<4x64xf32>
    %c1_522 = arith.constant 1 : index
    %c0_523 = arith.constant 0 : index
    %c0_524 = arith.constant 0 : index
    %c0_525 = arith.constant 0 : index
    %447 = vector.load %arg11[%c1_522, %c0_523, %c0_524, %c0_525] : memref<8x3x64x64xf32, #tpu.memory_space<vmem>>, vector<1x1x64x64xf32>
    %448 = vector.shape_cast %447 : vector<1x1x64x64xf32> to vector<64x64xf32>
    %c1_526 = arith.constant 1 : index
    %c1_527 = arith.constant 1 : index
    %c0_528 = arith.constant 0 : index
    %c0_529 = arith.constant 0 : index
    %449 = vector.load %arg11[%c1_526, %c1_527, %c0_528, %c0_529] : memref<8x3x64x64xf32, #tpu.memory_space<vmem>>, vector<1x1x64x64xf32>
    %450 = vector.shape_cast %449 : vector<1x1x64x64xf32> to vector<64x64xf32>
    %c1_530 = arith.constant 1 : index
    %c2_531 = arith.constant 2 : index
    %c0_532 = arith.constant 0 : index
    %c0_533 = arith.constant 0 : index
    %451 = vector.load %arg11[%c1_530, %c2_531, %c0_532, %c0_533] : memref<8x3x64x64xf32, #tpu.memory_space<vmem>>, vector<1x1x64x64xf32>
    %452 = vector.shape_cast %451 : vector<1x1x64x64xf32> to vector<64x64xf32>
    %c1_534 = arith.constant 1 : index
    %c0_535 = arith.constant 0 : index
    %c0_536 = arith.constant 0 : index
    %453 = vector.load %arg12[%c1_534, %c0_535, %c0_536] : memref<8x1x64xf32, #tpu.memory_space<vmem>>, vector<1x1x64xf32>
    %454 = vector.shape_cast %453 : vector<1x1x64xf32> to vector<1x64xf32>
    %c1_537 = arith.constant 1 : index
    %c0_538 = arith.constant 0 : index
    %c0_539 = arith.constant 0 : index
    %455 = vector.load %arg10[%c1_537, %c0_538, %c0_539] : memref<8x1x64xf32, #tpu.memory_space<vmem>>, vector<1x1x64xf32>
    %456 = vector.shape_cast %455 : vector<1x1x64xf32> to vector<1x64xf32>
    %c1_540 = arith.constant 1 : index
    %c0_541 = arith.constant 0 : index
    %457 = vector.load %arg49[%c1_540, %c0_541] : memref<6x64xf32, #tpu.memory_space<vmem>>, vector<4x64xf32>
    tpu.vector_store %arg49[%c1_540, %c0_541], %446 {strides = array<i32>} : memref<6x64xf32, #tpu.memory_space<vmem>>, vector<4x64xf32>,
    %c0_542 = arith.constant 0 : index
    %c0_543 = arith.constant 0 : index
    %458 = vector.load %arg49[%c0_542, %c0_543] : memref<6x64xf32, #tpu.memory_space<vmem>>, vector<4x64xf32>
    %cst_544 = arith.constant dense<0.000000e+00> : vector<4x64xf32>
    %459 = tpu.matmul %458, %448, %cst_544 {dimension_numbers = #tpu.dot_dimension_numbers<[1], [0], [0], [1], [0, 0, 1, 1], [], []>} : vector<4x64xf32>, vector<64x64xf32>, vector<4x64xf32> -> vector<4x64xf32>
    %c1_545 = arith.constant 1 : index
    %c0_546 = arith.constant 0 : index
    %460 = vector.load %arg49[%c1_545, %c0_546] : memref<6x64xf32, #tpu.memory_space<vmem>>, vector<4x64xf32>
    %cst_547 = arith.constant dense<0.000000e+00> : vector<4x64xf32>
    %461 = tpu.matmul %460, %450, %cst_547 {dimension_numbers = #tpu.dot_dimension_numbers<[1], [0], [0], [1], [0, 0, 1, 1], [], []>} : vector<4x64xf32>, vector<64x64xf32>, vector<4x64xf32> -> vector<4x64xf32>
    %462 = arith.addf %459, %461 : vector<4x64xf32>
    %c2_548 = arith.constant 2 : index
    %c0_549 = arith.constant 0 : index
    %463 = vector.load %arg49[%c2_548, %c0_549] : memref<6x64xf32, #tpu.memory_space<vmem>>, vector<4x64xf32>
    %cst_550 = arith.constant dense<0.000000e+00> : vector<4x64xf32>
    %464 = tpu.matmul %463, %452, %cst_550 {dimension_numbers = #tpu.dot_dimension_numbers<[1], [0], [0], [1], [0, 0, 1, 1], [], []>} : vector<4x64xf32>, vector<64x64xf32>, vector<4x64xf32> -> vector<4x64xf32>
    %465 = arith.addf %462, %464 : vector<4x64xf32>
    %466 = vector.broadcast %454 : vector<1x64xf32> to vector<4x64xf32>
    %467 = arith.mulf %465, %466 : vector<4x64xf32>
    %468 = vector.broadcast %456 : vector<1x64xf32> to vector<4x64xf32>
    %469 = arith.addf %467, %468 : vector<4x64xf32>
    %470 = arith.addf %469, %421 : vector<4x64xf32>
    %cst_551 = arith.constant 0.000000e+00 : f32
    %471 = vector.broadcast %cst_551 : f32 to vector<4x64xf32>
    %472 = arith.maximumf %470, %471 : vector<4x64xf32>
    %c2_552 = arith.constant 2 : index
    %c0_553 = arith.constant 0 : index
    %c0_554 = arith.constant 0 : index
    %c0_555 = arith.constant 0 : index
    %473 = vector.load %arg11[%c2_552, %c0_553, %c0_554, %c0_555] : memref<8x3x64x64xf32, #tpu.memory_space<vmem>>, vector<1x1x64x64xf32>
    %474 = vector.shape_cast %473 : vector<1x1x64x64xf32> to vector<64x64xf32>
    %c2_556 = arith.constant 2 : index
    %c1_557 = arith.constant 1 : index
    %c0_558 = arith.constant 0 : index
    %c0_559 = arith.constant 0 : index
    %475 = vector.load %arg11[%c2_556, %c1_557, %c0_558, %c0_559] : memref<8x3x64x64xf32, #tpu.memory_space<vmem>>, vector<1x1x64x64xf32>
    %476 = vector.shape_cast %475 : vector<1x1x64x64xf32> to vector<64x64xf32>
    %c2_560 = arith.constant 2 : index
    %c2_561 = arith.constant 2 : index
    %c0_562 = arith.constant 0 : index
    %c0_563 = arith.constant 0 : index
    %477 = vector.load %arg11[%c2_560, %c2_561, %c0_562, %c0_563] : memref<8x3x64x64xf32, #tpu.memory_space<vmem>>, vector<1x1x64x64xf32>
    %478 = vector.shape_cast %477 : vector<1x1x64x64xf32> to vector<64x64xf32>
    %c2_564 = arith.constant 2 : index
    %c0_565 = arith.constant 0 : index
    %c0_566 = arith.constant 0 : index
    %479 = vector.load %arg12[%c2_564, %c0_565, %c0_566] : memref<8x1x64xf32, #tpu.memory_space<vmem>>, vector<1x1x64xf32>
    %480 = vector.shape_cast %479 : vector<1x1x64xf32> to vector<1x64xf32>
    %c2_567 = arith.constant 2 : index
    %c0_568 = arith.constant 0 : index
    %c0_569 = arith.constant 0 : index
    %481 = vector.load %arg10[%c2_567, %c0_568, %c0_569] : memref<8x1x64xf32, #tpu.memory_space<vmem>>, vector<1x1x64xf32>
    %482 = vector.shape_cast %481 : vector<1x1x64xf32> to vector<1x64xf32>
    %c1_570 = arith.constant 1 : index
    %c0_571 = arith.constant 0 : index
    %483 = vector.load %arg49[%c1_570, %c0_571] : memref<6x64xf32, #tpu.memory_space<vmem>>, vector<4x64xf32>
    tpu.vector_store %arg49[%c1_570, %c0_571], %472 {strides = array<i32>} : memref<6x64xf32, #tpu.memory_space<vmem>>, vector<4x64xf32>,
    %c0_572 = arith.constant 0 : index
    %c0_573 = arith.constant 0 : index
    %484 = vector.load %arg49[%c0_572, %c0_573] : memref<6x64xf32, #tpu.memory_space<vmem>>, vector<4x64xf32>
    %cst_574 = arith.constant dense<0.000000e+00> : vector<4x64xf32>
    %485 = tpu.matmul %484, %474, %cst_574 {dimension_numbers = #tpu.dot_dimension_numbers<[1], [0], [0], [1], [0, 0, 1, 1], [], []>} : vector<4x64xf32>, vector<64x64xf32>, vector<4x64xf32> -> vector<4x64xf32>
    %c1_575 = arith.constant 1 : index
    %c0_576 = arith.constant 0 : index
    %486 = vector.load %arg49[%c1_575, %c0_576] : memref<6x64xf32, #tpu.memory_space<vmem>>, vector<4x64xf32>
    %cst_577 = arith.constant dense<0.000000e+00> : vector<4x64xf32>
    %487 = tpu.matmul %486, %476, %cst_577 {dimension_numbers = #tpu.dot_dimension_numbers<[1], [0], [0], [1], [0, 0, 1, 1], [], []>} : vector<4x64xf32>, vector<64x64xf32>, vector<4x64xf32> -> vector<4x64xf32>
    %488 = arith.addf %485, %487 : vector<4x64xf32>
    %c2_578 = arith.constant 2 : index
    %c0_579 = arith.constant 0 : index
    %489 = vector.load %arg49[%c2_578, %c0_579] : memref<6x64xf32, #tpu.memory_space<vmem>>, vector<4x64xf32>
    %cst_580 = arith.constant dense<0.000000e+00> : vector<4x64xf32>
    %490 = tpu.matmul %489, %478, %cst_580 {dimension_numbers = #tpu.dot_dimension_numbers<[1], [0], [0], [1], [0, 0, 1, 1], [], []>} : vector<4x64xf32>, vector<64x64xf32>, vector<4x64xf32> -> vector<4x64xf32>
    %491 = arith.addf %488, %490 : vector<4x64xf32>
    %492 = vector.broadcast %480 : vector<1x64xf32> to vector<4x64xf32>
    %493 = arith.mulf %491, %492 : vector<4x64xf32>
    %494 = vector.broadcast %482 : vector<1x64xf32> to vector<4x64xf32>
    %495 = arith.addf %493, %494 : vector<4x64xf32>
    %cst_581 = arith.constant 0.000000e+00 : f32
    %496 = vector.broadcast %cst_581 : f32 to vector<4x64xf32>
    %497 = arith.maximumf %495, %496 : vector<4x64xf32>
    %c3_582 = arith.constant 3 : index
    %c0_583 = arith.constant 0 : index
    %c0_584 = arith.constant 0 : index
    %c0_585 = arith.constant 0 : index
    %498 = vector.load %arg11[%c3_582, %c0_583, %c0_584, %c0_585] : memref<8x3x64x64xf32, #tpu.memory_space<vmem>>, vector<1x1x64x64xf32>
    %499 = vector.shape_cast %498 : vector<1x1x64x64xf32> to vector<64x64xf32>
    %c3_586 = arith.constant 3 : index
    %c1_587 = arith.constant 1 : index
    %c0_588 = arith.constant 0 : index
    %c0_589 = arith.constant 0 : index
    %500 = vector.load %arg11[%c3_586, %c1_587, %c0_588, %c0_589] : memref<8x3x64x64xf32, #tpu.memory_space<vmem>>, vector<1x1x64x64xf32>
    %501 = vector.shape_cast %500 : vector<1x1x64x64xf32> to vector<64x64xf32>
    %c3_590 = arith.constant 3 : index
    %c2_591 = arith.constant 2 : index
    %c0_592 = arith.constant 0 : index
    %c0_593 = arith.constant 0 : index
    %502 = vector.load %arg11[%c3_590, %c2_591, %c0_592, %c0_593] : memref<8x3x64x64xf32, #tpu.memory_space<vmem>>, vector<1x1x64x64xf32>
    %503 = vector.shape_cast %502 : vector<1x1x64x64xf32> to vector<64x64xf32>
    %c3_594 = arith.constant 3 : index
    %c0_595 = arith.constant 0 : index
    %c0_596 = arith.constant 0 : index
    %504 = vector.load %arg12[%c3_594, %c0_595, %c0_596] : memref<8x1x64xf32, #tpu.memory_space<vmem>>, vector<1x1x64xf32>
    %505 = vector.shape_cast %504 : vector<1x1x64xf32> to vector<1x64xf32>
    %c3_597 = arith.constant 3 : index
    %c0_598 = arith.constant 0 : index
    %c0_599 = arith.constant 0 : index
    %506 = vector.load %arg10[%c3_597, %c0_598, %c0_599] : memref<8x1x64xf32, #tpu.memory_space<vmem>>, vector<1x1x64xf32>
    %507 = vector.shape_cast %506 : vector<1x1x64xf32> to vector<1x64xf32>
    %c1_600 = arith.constant 1 : index
    %c0_601 = arith.constant 0 : index
    %508 = vector.load %arg49[%c1_600, %c0_601] : memref<6x64xf32, #tpu.memory_space<vmem>>, vector<4x64xf32>
    tpu.vector_store %arg49[%c1_600, %c0_601], %497 {strides = array<i32>} : memref<6x64xf32, #tpu.memory_space<vmem>>, vector<4x64xf32>,
    %c0_602 = arith.constant 0 : index
    %c0_603 = arith.constant 0 : index
    %509 = vector.load %arg49[%c0_602, %c0_603] : memref<6x64xf32, #tpu.memory_space<vmem>>, vector<4x64xf32>
    %cst_604 = arith.constant dense<0.000000e+00> : vector<4x64xf32>
    %510 = tpu.matmul %509, %499, %cst_604 {dimension_numbers = #tpu.dot_dimension_numbers<[1], [0], [0], [1], [0, 0, 1, 1], [], []>} : vector<4x64xf32>, vector<64x64xf32>, vector<4x64xf32> -> vector<4x64xf32>
    %c1_605 = arith.constant 1 : index
    %c0_606 = arith.constant 0 : index
    %511 = vector.load %arg49[%c1_605, %c0_606] : memref<6x64xf32, #tpu.memory_space<vmem>>, vector<4x64xf32>
    %cst_607 = arith.constant dense<0.000000e+00> : vector<4x64xf32>
    %512 = tpu.matmul %511, %501, %cst_607 {dimension_numbers = #tpu.dot_dimension_numbers<[1], [0], [0], [1], [0, 0, 1, 1], [], []>} : vector<4x64xf32>, vector<64x64xf32>, vector<4x64xf32> -> vector<4x64xf32>
    %513 = arith.addf %510, %512 : vector<4x64xf32>
    %c2_608 = arith.constant 2 : index
    %c0_609 = arith.constant 0 : index
    %514 = vector.load %arg49[%c2_608, %c0_609] : memref<6x64xf32, #tpu.memory_space<vmem>>, vector<4x64xf32>
    %cst_610 = arith.constant dense<0.000000e+00> : vector<4x64xf32>
    %515 = tpu.matmul %514, %503, %cst_610 {dimension_numbers = #tpu.dot_dimension_numbers<[1], [0], [0], [1], [0, 0, 1, 1], [], []>} : vector<4x64xf32>, vector<64x64xf32>, vector<4x64xf32> -> vector<4x64xf32>
    %516 = arith.addf %513, %515 : vector<4x64xf32>
    %517 = vector.broadcast %505 : vector<1x64xf32> to vector<4x64xf32>
    %518 = arith.mulf %516, %517 : vector<4x64xf32>
    %519 = vector.broadcast %507 : vector<1x64xf32> to vector<4x64xf32>
    %520 = arith.addf %518, %519 : vector<4x64xf32>
    %521 = arith.addf %520, %472 : vector<4x64xf32>
    %cst_611 = arith.constant 0.000000e+00 : f32
    %522 = vector.broadcast %cst_611 : f32 to vector<4x64xf32>
    %523 = arith.maximumf %521, %522 : vector<4x64xf32>
    %c4_612 = arith.constant 4 : index
    %c0_613 = arith.constant 0 : index
    %c0_614 = arith.constant 0 : index
    %c0_615 = arith.constant 0 : index
    %524 = vector.load %arg11[%c4_612, %c0_613, %c0_614, %c0_615] : memref<8x3x64x64xf32, #tpu.memory_space<vmem>>, vector<1x1x64x64xf32>
    %525 = vector.shape_cast %524 : vector<1x1x64x64xf32> to vector<64x64xf32>
    %c4_616 = arith.constant 4 : index
    %c1_617 = arith.constant 1 : index
    %c0_618 = arith.constant 0 : index
    %c0_619 = arith.constant 0 : index
    %526 = vector.load %arg11[%c4_616, %c1_617, %c0_618, %c0_619] : memref<8x3x64x64xf32, #tpu.memory_space<vmem>>, vector<1x1x64x64xf32>
    %527 = vector.shape_cast %526 : vector<1x1x64x64xf32> to vector<64x64xf32>
    %c4_620 = arith.constant 4 : index
    %c2_621 = arith.constant 2 : index
    %c0_622 = arith.constant 0 : index
    %c0_623 = arith.constant 0 : index
    %528 = vector.load %arg11[%c4_620, %c2_621, %c0_622, %c0_623] : memref<8x3x64x64xf32, #tpu.memory_space<vmem>>, vector<1x1x64x64xf32>
    %529 = vector.shape_cast %528 : vector<1x1x64x64xf32> to vector<64x64xf32>
    %c4_624 = arith.constant 4 : index
    %c0_625 = arith.constant 0 : index
    %c0_626 = arith.constant 0 : index
    %530 = vector.load %arg12[%c4_624, %c0_625, %c0_626] : memref<8x1x64xf32, #tpu.memory_space<vmem>>, vector<1x1x64xf32>
    %531 = vector.shape_cast %530 : vector<1x1x64xf32> to vector<1x64xf32>
    %c4_627 = arith.constant 4 : index
    %c0_628 = arith.constant 0 : index
    %c0_629 = arith.constant 0 : index
    %532 = vector.load %arg10[%c4_627, %c0_628, %c0_629] : memref<8x1x64xf32, #tpu.memory_space<vmem>>, vector<1x1x64xf32>
    %533 = vector.shape_cast %532 : vector<1x1x64xf32> to vector<1x64xf32>
    %c1_630 = arith.constant 1 : index
    %c0_631 = arith.constant 0 : index
    %534 = vector.load %arg49[%c1_630, %c0_631] : memref<6x64xf32, #tpu.memory_space<vmem>>, vector<4x64xf32>
    tpu.vector_store %arg49[%c1_630, %c0_631], %523 {strides = array<i32>} : memref<6x64xf32, #tpu.memory_space<vmem>>, vector<4x64xf32>,
    %c0_632 = arith.constant 0 : index
    %c0_633 = arith.constant 0 : index
    %535 = vector.load %arg49[%c0_632, %c0_633] : memref<6x64xf32, #tpu.memory_space<vmem>>, vector<4x64xf32>
    %cst_634 = arith.constant dense<0.000000e+00> : vector<4x64xf32>
    %536 = tpu.matmul %535, %525, %cst_634 {dimension_numbers = #tpu.dot_dimension_numbers<[1], [0], [0], [1], [0, 0, 1, 1], [], []>} : vector<4x64xf32>, vector<64x64xf32>, vector<4x64xf32> -> vector<4x64xf32>
    %c1_635 = arith.constant 1 : index
    %c0_636 = arith.constant 0 : index
    %537 = vector.load %arg49[%c1_635, %c0_636] : memref<6x64xf32, #tpu.memory_space<vmem>>, vector<4x64xf32>
    %cst_637 = arith.constant dense<0.000000e+00> : vector<4x64xf32>
    %538 = tpu.matmul %537, %527, %cst_637 {dimension_numbers = #tpu.dot_dimension_numbers<[1], [0], [0], [1], [0, 0, 1, 1], [], []>} : vector<4x64xf32>, vector<64x64xf32>, vector<4x64xf32> -> vector<4x64xf32>
    %539 = arith.addf %536, %538 : vector<4x64xf32>
    %c2_638 = arith.constant 2 : index
    %c0_639 = arith.constant 0 : index
    %540 = vector.load %arg49[%c2_638, %c0_639] : memref<6x64xf32, #tpu.memory_space<vmem>>, vector<4x64xf32>
    %cst_640 = arith.constant dense<0.000000e+00> : vector<4x64xf32>
    %541 = tpu.matmul %540, %529, %cst_640 {dimension_numbers = #tpu.dot_dimension_numbers<[1], [0], [0], [1], [0, 0, 1, 1], [], []>} : vector<4x64xf32>, vector<64x64xf32>, vector<4x64xf32> -> vector<4x64xf32>
    %542 = arith.addf %539, %541 : vector<4x64xf32>
    %543 = vector.broadcast %531 : vector<1x64xf32> to vector<4x64xf32>
    %544 = arith.mulf %542, %543 : vector<4x64xf32>
    %545 = vector.broadcast %533 : vector<1x64xf32> to vector<4x64xf32>
    %546 = arith.addf %544, %545 : vector<4x64xf32>
    %cst_641 = arith.constant 0.000000e+00 : f32
    %547 = vector.broadcast %cst_641 : f32 to vector<4x64xf32>
    %548 = arith.maximumf %546, %547 : vector<4x64xf32>
    %c5_642 = arith.constant 5 : index
    %c0_643 = arith.constant 0 : index
    %c0_644 = arith.constant 0 : index
    %c0_645 = arith.constant 0 : index
    %549 = vector.load %arg11[%c5_642, %c0_643, %c0_644, %c0_645] : memref<8x3x64x64xf32, #tpu.memory_space<vmem>>, vector<1x1x64x64xf32>
    %550 = vector.shape_cast %549 : vector<1x1x64x64xf32> to vector<64x64xf32>
    %c5_646 = arith.constant 5 : index
    %c1_647 = arith.constant 1 : index
    %c0_648 = arith.constant 0 : index
    %c0_649 = arith.constant 0 : index
    %551 = vector.load %arg11[%c5_646, %c1_647, %c0_648, %c0_649] : memref<8x3x64x64xf32, #tpu.memory_space<vmem>>, vector<1x1x64x64xf32>
    %552 = vector.shape_cast %551 : vector<1x1x64x64xf32> to vector<64x64xf32>
    %c5_650 = arith.constant 5 : index
    %c2_651 = arith.constant 2 : index
    %c0_652 = arith.constant 0 : index
    %c0_653 = arith.constant 0 : index
    %553 = vector.load %arg11[%c5_650, %c2_651, %c0_652, %c0_653] : memref<8x3x64x64xf32, #tpu.memory_space<vmem>>, vector<1x1x64x64xf32>
    %554 = vector.shape_cast %553 : vector<1x1x64x64xf32> to vector<64x64xf32>
    %c5_654 = arith.constant 5 : index
    %c0_655 = arith.constant 0 : index
    %c0_656 = arith.constant 0 : index
    %555 = vector.load %arg12[%c5_654, %c0_655, %c0_656] : memref<8x1x64xf32, #tpu.memory_space<vmem>>, vector<1x1x64xf32>
    %556 = vector.shape_cast %555 : vector<1x1x64xf32> to vector<1x64xf32>
    %c5_657 = arith.constant 5 : index
    %c0_658 = arith.constant 0 : index
    %c0_659 = arith.constant 0 : index
    %557 = vector.load %arg10[%c5_657, %c0_658, %c0_659] : memref<8x1x64xf32, #tpu.memory_space<vmem>>, vector<1x1x64xf32>
    %558 = vector.shape_cast %557 : vector<1x1x64xf32> to vector<1x64xf32>
    %c1_660 = arith.constant 1 : index
    %c0_661 = arith.constant 0 : index
    %559 = vector.load %arg49[%c1_660, %c0_661] : memref<6x64xf32, #tpu.memory_space<vmem>>, vector<4x64xf32>
    tpu.vector_store %arg49[%c1_660, %c0_661], %548 {strides = array<i32>} : memref<6x64xf32, #tpu.memory_space<vmem>>, vector<4x64xf32>,
    %c0_662 = arith.constant 0 : index
    %c0_663 = arith.constant 0 : index
    %560 = vector.load %arg49[%c0_662, %c0_663] : memref<6x64xf32, #tpu.memory_space<vmem>>, vector<4x64xf32>
    %cst_664 = arith.constant dense<0.000000e+00> : vector<4x64xf32>
    %561 = tpu.matmul %560, %550, %cst_664 {dimension_numbers = #tpu.dot_dimension_numbers<[1], [0], [0], [1], [0, 0, 1, 1], [], []>} : vector<4x64xf32>, vector<64x64xf32>, vector<4x64xf32> -> vector<4x64xf32>
    %c1_665 = arith.constant 1 : index
    %c0_666 = arith.constant 0 : index
    %562 = vector.load %arg49[%c1_665, %c0_666] : memref<6x64xf32, #tpu.memory_space<vmem>>, vector<4x64xf32>
    %cst_667 = arith.constant dense<0.000000e+00> : vector<4x64xf32>
    %563 = tpu.matmul %562, %552, %cst_667 {dimension_numbers = #tpu.dot_dimension_numbers<[1], [0], [0], [1], [0, 0, 1, 1], [], []>} : vector<4x64xf32>, vector<64x64xf32>, vector<4x64xf32> -> vector<4x64xf32>
    %564 = arith.addf %561, %563 : vector<4x64xf32>
    %c2_668 = arith.constant 2 : index
    %c0_669 = arith.constant 0 : index
    %565 = vector.load %arg49[%c2_668, %c0_669] : memref<6x64xf32, #tpu.memory_space<vmem>>, vector<4x64xf32>
    %cst_670 = arith.constant dense<0.000000e+00> : vector<4x64xf32>
    %566 = tpu.matmul %565, %554, %cst_670 {dimension_numbers = #tpu.dot_dimension_numbers<[1], [0], [0], [1], [0, 0, 1, 1], [], []>} : vector<4x64xf32>, vector<64x64xf32>, vector<4x64xf32> -> vector<4x64xf32>
    %567 = arith.addf %564, %566 : vector<4x64xf32>
    %568 = vector.broadcast %556 : vector<1x64xf32> to vector<4x64xf32>
    %569 = arith.mulf %567, %568 : vector<4x64xf32>
    %570 = vector.broadcast %558 : vector<1x64xf32> to vector<4x64xf32>
    %571 = arith.addf %569, %570 : vector<4x64xf32>
    %572 = arith.addf %571, %523 : vector<4x64xf32>
    %cst_671 = arith.constant 0.000000e+00 : f32
    %573 = vector.broadcast %cst_671 : f32 to vector<4x64xf32>
    %574 = arith.maximumf %572, %573 : vector<4x64xf32>
    %c6_672 = arith.constant 6 : index
    %c0_673 = arith.constant 0 : index
    %c0_674 = arith.constant 0 : index
    %c0_675 = arith.constant 0 : index
    %575 = vector.load %arg11[%c6_672, %c0_673, %c0_674, %c0_675] : memref<8x3x64x64xf32, #tpu.memory_space<vmem>>, vector<1x1x64x64xf32>
    %576 = vector.shape_cast %575 : vector<1x1x64x64xf32> to vector<64x64xf32>
    %c6_676 = arith.constant 6 : index
    %c1_677 = arith.constant 1 : index
    %c0_678 = arith.constant 0 : index
    %c0_679 = arith.constant 0 : index
    %577 = vector.load %arg11[%c6_676, %c1_677, %c0_678, %c0_679] : memref<8x3x64x64xf32, #tpu.memory_space<vmem>>, vector<1x1x64x64xf32>
    %578 = vector.shape_cast %577 : vector<1x1x64x64xf32> to vector<64x64xf32>
    %c6_680 = arith.constant 6 : index
    %c2_681 = arith.constant 2 : index
    %c0_682 = arith.constant 0 : index
    %c0_683 = arith.constant 0 : index
    %579 = vector.load %arg11[%c6_680, %c2_681, %c0_682, %c0_683] : memref<8x3x64x64xf32, #tpu.memory_space<vmem>>, vector<1x1x64x64xf32>
    %580 = vector.shape_cast %579 : vector<1x1x64x64xf32> to vector<64x64xf32>
    %c6_684 = arith.constant 6 : index
    %c0_685 = arith.constant 0 : index
    %c0_686 = arith.constant 0 : index
    %581 = vector.load %arg12[%c6_684, %c0_685, %c0_686] : memref<8x1x64xf32, #tpu.memory_space<vmem>>, vector<1x1x64xf32>
    %582 = vector.shape_cast %581 : vector<1x1x64xf32> to vector<1x64xf32>
    %c6_687 = arith.constant 6 : index
    %c0_688 = arith.constant 0 : index
    %c0_689 = arith.constant 0 : index
    %583 = vector.load %arg10[%c6_687, %c0_688, %c0_689] : memref<8x1x64xf32, #tpu.memory_space<vmem>>, vector<1x1x64xf32>
    %584 = vector.shape_cast %583 : vector<1x1x64xf32> to vector<1x64xf32>
    %c1_690 = arith.constant 1 : index
    %c0_691 = arith.constant 0 : index
    %585 = vector.load %arg49[%c1_690, %c0_691] : memref<6x64xf32, #tpu.memory_space<vmem>>, vector<4x64xf32>
    tpu.vector_store %arg49[%c1_690, %c0_691], %574 {strides = array<i32>} : memref<6x64xf32, #tpu.memory_space<vmem>>, vector<4x64xf32>,
    %c0_692 = arith.constant 0 : index
    %c0_693 = arith.constant 0 : index
    %586 = vector.load %arg49[%c0_692, %c0_693] : memref<6x64xf32, #tpu.memory_space<vmem>>, vector<4x64xf32>
    %cst_694 = arith.constant dense<0.000000e+00> : vector<4x64xf32>
    %587 = tpu.matmul %586, %576, %cst_694 {dimension_numbers = #tpu.dot_dimension_numbers<[1], [0], [0], [1], [0, 0, 1, 1], [], []>} : vector<4x64xf32>, vector<64x64xf32>, vector<4x64xf32> -> vector<4x64xf32>
    %c1_695 = arith.constant 1 : index
    %c0_696 = arith.constant 0 : index
    %588 = vector.load %arg49[%c1_695, %c0_696] : memref<6x64xf32, #tpu.memory_space<vmem>>, vector<4x64xf32>
    %cst_697 = arith.constant dense<0.000000e+00> : vector<4x64xf32>
    %589 = tpu.matmul %588, %578, %cst_697 {dimension_numbers = #tpu.dot_dimension_numbers<[1], [0], [0], [1], [0, 0, 1, 1], [], []>} : vector<4x64xf32>, vector<64x64xf32>, vector<4x64xf32> -> vector<4x64xf32>
    %590 = arith.addf %587, %589 : vector<4x64xf32>
    %c2_698 = arith.constant 2 : index
    %c0_699 = arith.constant 0 : index
    %591 = vector.load %arg49[%c2_698, %c0_699] : memref<6x64xf32, #tpu.memory_space<vmem>>, vector<4x64xf32>
    %cst_700 = arith.constant dense<0.000000e+00> : vector<4x64xf32>
    %592 = tpu.matmul %591, %580, %cst_700 {dimension_numbers = #tpu.dot_dimension_numbers<[1], [0], [0], [1], [0, 0, 1, 1], [], []>} : vector<4x64xf32>, vector<64x64xf32>, vector<4x64xf32> -> vector<4x64xf32>
    %593 = arith.addf %590, %592 : vector<4x64xf32>
    %594 = vector.broadcast %582 : vector<1x64xf32> to vector<4x64xf32>
    %595 = arith.mulf %593, %594 : vector<4x64xf32>
    %596 = vector.broadcast %584 : vector<1x64xf32> to vector<4x64xf32>
    %597 = arith.addf %595, %596 : vector<4x64xf32>
    %cst_701 = arith.constant 0.000000e+00 : f32
    %598 = vector.broadcast %cst_701 : f32 to vector<4x64xf32>
    %599 = arith.maximumf %597, %598 : vector<4x64xf32>
    %c7_702 = arith.constant 7 : index
    %c0_703 = arith.constant 0 : index
    %c0_704 = arith.constant 0 : index
    %c0_705 = arith.constant 0 : index
    %600 = vector.load %arg11[%c7_702, %c0_703, %c0_704, %c0_705] : memref<8x3x64x64xf32, #tpu.memory_space<vmem>>, vector<1x1x64x64xf32>
    %601 = vector.shape_cast %600 : vector<1x1x64x64xf32> to vector<64x64xf32>
    %c7_706 = arith.constant 7 : index
    %c1_707 = arith.constant 1 : index
    %c0_708 = arith.constant 0 : index
    %c0_709 = arith.constant 0 : index
    %602 = vector.load %arg11[%c7_706, %c1_707, %c0_708, %c0_709] : memref<8x3x64x64xf32, #tpu.memory_space<vmem>>, vector<1x1x64x64xf32>
    %603 = vector.shape_cast %602 : vector<1x1x64x64xf32> to vector<64x64xf32>
    %c7_710 = arith.constant 7 : index
    %c2_711 = arith.constant 2 : index
    %c0_712 = arith.constant 0 : index
    %c0_713 = arith.constant 0 : index
    %604 = vector.load %arg11[%c7_710, %c2_711, %c0_712, %c0_713] : memref<8x3x64x64xf32, #tpu.memory_space<vmem>>, vector<1x1x64x64xf32>
    %605 = vector.shape_cast %604 : vector<1x1x64x64xf32> to vector<64x64xf32>
    %c7_714 = arith.constant 7 : index
    %c0_715 = arith.constant 0 : index
    %c0_716 = arith.constant 0 : index
    %606 = vector.load %arg12[%c7_714, %c0_715, %c0_716] : memref<8x1x64xf32, #tpu.memory_space<vmem>>, vector<1x1x64xf32>
    %607 = vector.shape_cast %606 : vector<1x1x64xf32> to vector<1x64xf32>
    %c7_717 = arith.constant 7 : index
    %c0_718 = arith.constant 0 : index
    %c0_719 = arith.constant 0 : index
    %608 = vector.load %arg10[%c7_717, %c0_718, %c0_719] : memref<8x1x64xf32, #tpu.memory_space<vmem>>, vector<1x1x64xf32>
    %609 = vector.shape_cast %608 : vector<1x1x64xf32> to vector<1x64xf32>
    %c1_720 = arith.constant 1 : index
    %c0_721 = arith.constant 0 : index
    %610 = vector.load %arg49[%c1_720, %c0_721] : memref<6x64xf32, #tpu.memory_space<vmem>>, vector<4x64xf32>
    tpu.vector_store %arg49[%c1_720, %c0_721], %599 {strides = array<i32>} : memref<6x64xf32, #tpu.memory_space<vmem>>, vector<4x64xf32>,
    %c0_722 = arith.constant 0 : index
    %c0_723 = arith.constant 0 : index
    %611 = vector.load %arg49[%c0_722, %c0_723] : memref<6x64xf32, #tpu.memory_space<vmem>>, vector<4x64xf32>
    %cst_724 = arith.constant dense<0.000000e+00> : vector<4x64xf32>
    %612 = tpu.matmul %611, %601, %cst_724 {dimension_numbers = #tpu.dot_dimension_numbers<[1], [0], [0], [1], [0, 0, 1, 1], [], []>} : vector<4x64xf32>, vector<64x64xf32>, vector<4x64xf32> -> vector<4x64xf32>
    %c1_725 = arith.constant 1 : index
    %c0_726 = arith.constant 0 : index
    %613 = vector.load %arg49[%c1_725, %c0_726] : memref<6x64xf32, #tpu.memory_space<vmem>>, vector<4x64xf32>
    %cst_727 = arith.constant dense<0.000000e+00> : vector<4x64xf32>
    %614 = tpu.matmul %613, %603, %cst_727 {dimension_numbers = #tpu.dot_dimension_numbers<[1], [0], [0], [1], [0, 0, 1, 1], [], []>} : vector<4x64xf32>, vector<64x64xf32>, vector<4x64xf32> -> vector<4x64xf32>
    %615 = arith.addf %612, %614 : vector<4x64xf32>
    %c2_728 = arith.constant 2 : index
    %c0_729 = arith.constant 0 : index
    %616 = vector.load %arg49[%c2_728, %c0_729] : memref<6x64xf32, #tpu.memory_space<vmem>>, vector<4x64xf32>
    %cst_730 = arith.constant dense<0.000000e+00> : vector<4x64xf32>
    %617 = tpu.matmul %616, %605, %cst_730 {dimension_numbers = #tpu.dot_dimension_numbers<[1], [0], [0], [1], [0, 0, 1, 1], [], []>} : vector<4x64xf32>, vector<64x64xf32>, vector<4x64xf32> -> vector<4x64xf32>
    %618 = arith.addf %615, %617 : vector<4x64xf32>
    %619 = vector.broadcast %607 : vector<1x64xf32> to vector<4x64xf32>
    %620 = arith.mulf %618, %619 : vector<4x64xf32>
    %621 = vector.broadcast %609 : vector<1x64xf32> to vector<4x64xf32>
    %622 = arith.addf %620, %621 : vector<4x64xf32>
    %623 = arith.addf %622, %574 : vector<4x64xf32>
    %cst_731 = arith.constant 0.000000e+00 : f32
    %624 = vector.broadcast %cst_731 : f32 to vector<4x64xf32>
    %625 = arith.maximumf %623, %624 : vector<4x64xf32>
    %c0_732 = arith.constant 0 : index
    %c0_733 = arith.constant 0 : index
    %626 = vector.load %arg14[%c0_732, %c0_733] : memref<64x32xf32, #tpu.memory_space<vmem>>, vector<64x32xf32>
    %cst_734 = arith.constant dense<0.000000e+00> : vector<8x32xf32>
    %627 = tpu.matmul %419, %626, %cst_734 {dimension_numbers = #tpu.dot_dimension_numbers<[1], [0], [0], [1], [0, 0, 1, 1], [], []>} : vector<8x64xf32>, vector<64x32xf32>, vector<8x32xf32> -> vector<8x32xf32>
    %c0_735 = arith.constant 0 : index
    %c0_736 = arith.constant 0 : index
    %628 = vector.load %arg17[%c0_735, %c0_736] : memref<1x32xf32, #tpu.memory_space<vmem>>, vector<1x32xf32>
    %629 = vector.broadcast %628 : vector<1x32xf32> to vector<8x32xf32>
    %630 = arith.mulf %627, %629 : vector<8x32xf32>
    %c0_737 = arith.constant 0 : index
    %c0_738 = arith.constant 0 : index
    %631 = vector.load %arg13[%c0_737, %c0_738] : memref<1x32xf32, #tpu.memory_space<vmem>>, vector<1x32xf32>
    %632 = vector.broadcast %631 : vector<1x32xf32> to vector<8x32xf32>
    %633 = arith.addf %630, %632 : vector<8x32xf32>
    %c0_739 = arith.constant 0 : index
    %c0_740 = arith.constant 0 : index
    %634 = vector.load %arg15[%c0_739, %c0_740] : memref<32x64xf32, #tpu.memory_space<vmem>>, vector<32x64xf32>
    %cst_741 = arith.constant dense<0.000000e+00> : vector<8x64xf32>
    %635 = tpu.matmul %633, %634, %cst_741 {dimension_numbers = #tpu.dot_dimension_numbers<[1], [0], [0], [1], [0, 0, 1, 1], [], []>} : vector<8x32xf32>, vector<32x64xf32>, vector<8x64xf32> -> vector<8x64xf32>
    %c0_742 = arith.constant 0 : index
    %c0_743 = arith.constant 0 : index
    %636 = vector.load %arg16[%c0_742, %c0_743] : memref<16x8xf32, #tpu.memory_space<vmem>>, vector<16x8xf32>
    %cst_744 = arith.constant dense<0.000000e+00> : vector<16x64xf32>
    %637 = tpu.matmul %636, %635, %cst_744 {dimension_numbers = #tpu.dot_dimension_numbers<[1], [0], [0], [1], [0, 0, 1, 1], [], []>} : vector<16x8xf32>, vector<8x64xf32>, vector<16x64xf32> -> vector<16x64xf32>
    %638 = arith.addf %213, %637 : vector<16x64xf32>
    %c0_745 = arith.constant 0 : index
    %c0_746 = arith.constant 0 : index
    %639 = vector.load %arg19[%c0_745, %c0_746] : memref<64x16xf32, #tpu.memory_space<vmem>>, vector<64x16xf32>
    %cst_747 = arith.constant dense<0.000000e+00> : vector<4x16xf32>
    %640 = tpu.matmul %625, %639, %cst_747 {dimension_numbers = #tpu.dot_dimension_numbers<[1], [0], [0], [1], [0, 0, 1, 1], [], []>} : vector<4x64xf32>, vector<64x16xf32>, vector<4x16xf32> -> vector<4x16xf32>
    %c0_748 = arith.constant 0 : index
    %c0_749 = arith.constant 0 : index
    %641 = vector.load %arg22[%c0_748, %c0_749] : memref<1x16xf32, #tpu.memory_space<vmem>>, vector<1x16xf32>
    %642 = vector.broadcast %641 : vector<1x16xf32> to vector<4x16xf32>
    %643 = arith.mulf %640, %642 : vector<4x16xf32>
    %c0_750 = arith.constant 0 : index
    %c0_751 = arith.constant 0 : index
    %644 = vector.load %arg18[%c0_750, %c0_751] : memref<1x16xf32, #tpu.memory_space<vmem>>, vector<1x16xf32>
    %645 = vector.broadcast %644 : vector<1x16xf32> to vector<4x16xf32>
    %646 = arith.addf %643, %645 : vector<4x16xf32>
    %c0_752 = arith.constant 0 : index
    %c0_753 = arith.constant 0 : index
    %647 = vector.load %arg20[%c0_752, %c0_753] : memref<16x64xf32, #tpu.memory_space<vmem>>, vector<16x64xf32>
    %cst_754 = arith.constant dense<0.000000e+00> : vector<4x64xf32>
    %648 = tpu.matmul %646, %647, %cst_754 {dimension_numbers = #tpu.dot_dimension_numbers<[1], [0], [0], [1], [0, 0, 1, 1], [], []>} : vector<4x16xf32>, vector<16x64xf32>, vector<4x64xf32> -> vector<4x64xf32>
    %c0_755 = arith.constant 0 : index
    %c0_756 = arith.constant 0 : index
    %649 = vector.load %arg21[%c0_755, %c0_756] : memref<16x4xf32, #tpu.memory_space<vmem>>, vector<16x4xf32>
    %cst_757 = arith.constant dense<0.000000e+00> : vector<16x64xf32>
    %650 = tpu.matmul %649, %648, %cst_757 {dimension_numbers = #tpu.dot_dimension_numbers<[1], [0], [0], [1], [0, 0, 1, 1], [], []>} : vector<16x4xf32>, vector<4x64xf32>, vector<16x64xf32> -> vector<16x64xf32>
    %651 = arith.addf %638, %650 : vector<16x64xf32>
    %c0_758 = arith.constant 0 : index
    %c0_759 = arith.constant 0 : index
    %c0_760 = arith.constant 0 : index
    %652 = vector.load %arg44[%c0_758, %c0_759, %c0_760] : memref<1x16x64xf32, #tpu.memory_space<vmem>>, vector<1x16x64xf32>
    %653 = vector.shape_cast %652 : vector<1x16x64xf32> to vector<16x64xf32>
    %654 = vector.shape_cast %651 : vector<16x64xf32> to vector<1x16x64xf32>
    tpu.vector_store %arg44[%c0_758, %c0_759, %c0_760], %654 {strides = array<i32>} : memref<1x16x64xf32, #tpu.memory_space<vmem>>, vector<1x16x64xf32>,
    %c0_761 = arith.constant 0 : index
    %c0_762 = arith.constant 0 : index
    %c0_763 = arith.constant 0 : index
    %655 = vector.load %arg24[%c0_761, %c0_762, %c0_763] : memref<3x64x64xf32, #tpu.memory_space<vmem>>, vector<1x64x64xf32>
    %656 = vector.shape_cast %655 : vector<1x64x64xf32> to vector<64x64xf32>
    %c1_764 = arith.constant 1 : index
    %c0_765 = arith.constant 0 : index
    %c0_766 = arith.constant 0 : index
    %657 = vector.load %arg24[%c1_764, %c0_765, %c0_766] : memref<3x64x64xf32, #tpu.memory_space<vmem>>, vector<1x64x64xf32>
    %658 = vector.shape_cast %657 : vector<1x64x64xf32> to vector<64x64xf32>
    %c2_767 = arith.constant 2 : index
    %c0_768 = arith.constant 0 : index
    %c0_769 = arith.constant 0 : index
    %659 = vector.load %arg24[%c2_767, %c0_768, %c0_769] : memref<3x64x64xf32, #tpu.memory_space<vmem>>, vector<1x64x64xf32>
    %660 = vector.shape_cast %659 : vector<1x64x64xf32> to vector<64x64xf32>
    %c0_770 = arith.constant 0 : index
    %c0_771 = arith.constant 0 : index
    %661 = vector.load %arg25[%c0_770, %c0_771] : memref<1x64xf32, #tpu.memory_space<vmem>>, vector<1x64xf32>
    %c0_772 = arith.constant 0 : index
    %c0_773 = arith.constant 0 : index
    %662 = vector.load %arg23[%c0_772, %c0_773] : memref<1x64xf32, #tpu.memory_space<vmem>>, vector<1x64xf32>
    %c0_774 = arith.constant 0 : index
    %c0_775 = arith.constant 0 : index
    %663 = vector.load %arg26[%c0_774, %c0_775] : memref<8x16xf32, #tpu.memory_space<vmem>>, vector<8x16xf32>
    %c1_776 = arith.constant 1 : index
    %c0_777 = arith.constant 0 : index
    %664 = vector.load %arg47[%c1_776, %c0_777] : memref<18x64xf32, #tpu.memory_space<vmem>>, vector<16x64xf32>
    tpu.vector_store %arg47[%c1_776, %c0_777], %213 {strides = array<i32>} : memref<18x64xf32, #tpu.memory_space<vmem>>, vector<16x64xf32>,
    %c0_778 = arith.constant 0 : index
    %c0_779 = arith.constant 0 : index
    %665 = vector.load %arg47[%c0_778, %c0_779] : memref<18x64xf32, #tpu.memory_space<vmem>>, vector<16x64xf32>
    %cst_780 = arith.constant dense<0.000000e+00> : vector<16x64xf32>
    %666 = tpu.matmul %665, %656, %cst_780 {dimension_numbers = #tpu.dot_dimension_numbers<[1], [0], [0], [1], [0, 0, 1, 1], [], []>} : vector<16x64xf32>, vector<64x64xf32>, vector<16x64xf32> -> vector<16x64xf32>
    %c1_781 = arith.constant 1 : index
    %c0_782 = arith.constant 0 : index
    %667 = vector.load %arg47[%c1_781, %c0_782] : memref<18x64xf32, #tpu.memory_space<vmem>>, vector<16x64xf32>
    %cst_783 = arith.constant dense<0.000000e+00> : vector<16x64xf32>
    %668 = tpu.matmul %667, %658, %cst_783 {dimension_numbers = #tpu.dot_dimension_numbers<[1], [0], [0], [1], [0, 0, 1, 1], [], []>} : vector<16x64xf32>, vector<64x64xf32>, vector<16x64xf32> -> vector<16x64xf32>
    %669 = arith.addf %666, %668 : vector<16x64xf32>
    %c2_784 = arith.constant 2 : index
    %c0_785 = arith.constant 0 : index
    %670 = vector.load %arg47[%c2_784, %c0_785] : memref<18x64xf32, #tpu.memory_space<vmem>>, vector<16x64xf32>
    %cst_786 = arith.constant dense<0.000000e+00> : vector<16x64xf32>
    %671 = tpu.matmul %670, %660, %cst_786 {dimension_numbers = #tpu.dot_dimension_numbers<[1], [0], [0], [1], [0, 0, 1, 1], [], []>} : vector<16x64xf32>, vector<64x64xf32>, vector<16x64xf32> -> vector<16x64xf32>
    %672 = arith.addf %669, %671 : vector<16x64xf32>
    %cst_787 = arith.constant dense<0.000000e+00> : vector<8x64xf32>
    %673 = tpu.matmul %663, %672, %cst_787 {dimension_numbers = #tpu.dot_dimension_numbers<[1], [0], [0], [1], [0, 0, 1, 1], [], []>} : vector<8x16xf32>, vector<16x64xf32>, vector<8x64xf32> -> vector<8x64xf32>
    %674 = vector.broadcast %661 : vector<1x64xf32> to vector<8x64xf32>
    %675 = arith.mulf %673, %674 : vector<8x64xf32>
    %676 = vector.broadcast %662 : vector<1x64xf32> to vector<8x64xf32>
    %677 = arith.addf %675, %676 : vector<8x64xf32>
    %678 = arith.addf %419, %677 : vector<8x64xf32>
    %c0_788 = arith.constant 0 : index
    %c0_789 = arith.constant 0 : index
    %679 = vector.load %arg28[%c0_788, %c0_789] : memref<64x32xf32, #tpu.memory_space<vmem>>, vector<64x32xf32>
    %cst_790 = arith.constant dense<0.000000e+00> : vector<4x32xf32>
    %680 = tpu.matmul %625, %679, %cst_790 {dimension_numbers = #tpu.dot_dimension_numbers<[1], [0], [0], [1], [0, 0, 1, 1], [], []>} : vector<4x64xf32>, vector<64x32xf32>, vector<4x32xf32> -> vector<4x32xf32>
    %c0_791 = arith.constant 0 : index
    %c0_792 = arith.constant 0 : index
    %681 = vector.load %arg31[%c0_791, %c0_792] : memref<1x32xf32, #tpu.memory_space<vmem>>, vector<1x32xf32>
    %682 = vector.broadcast %681 : vector<1x32xf32> to vector<4x32xf32>
    %683 = arith.mulf %680, %682 : vector<4x32xf32>
    %c0_793 = arith.constant 0 : index
    %c0_794 = arith.constant 0 : index
    %684 = vector.load %arg27[%c0_793, %c0_794] : memref<1x32xf32, #tpu.memory_space<vmem>>, vector<1x32xf32>
    %685 = vector.broadcast %684 : vector<1x32xf32> to vector<4x32xf32>
    %686 = arith.addf %683, %685 : vector<4x32xf32>
    %c0_795 = arith.constant 0 : index
    %c0_796 = arith.constant 0 : index
    %687 = vector.load %arg29[%c0_795, %c0_796] : memref<32x64xf32, #tpu.memory_space<vmem>>, vector<32x64xf32>
    %cst_797 = arith.constant dense<0.000000e+00> : vector<4x64xf32>
    %688 = tpu.matmul %686, %687, %cst_797 {dimension_numbers = #tpu.dot_dimension_numbers<[1], [0], [0], [1], [0, 0, 1, 1], [], []>} : vector<4x32xf32>, vector<32x64xf32>, vector<4x64xf32> -> vector<4x64xf32>
    %c0_798 = arith.constant 0 : index
    %c0_799 = arith.constant 0 : index
    %689 = vector.load %arg30[%c0_798, %c0_799] : memref<8x4xf32, #tpu.memory_space<vmem>>, vector<8x4xf32>
    %cst_800 = arith.constant dense<0.000000e+00> : vector<8x64xf32>
    %690 = tpu.matmul %689, %688, %cst_800 {dimension_numbers = #tpu.dot_dimension_numbers<[1], [0], [0], [1], [0, 0, 1, 1], [], []>} : vector<8x4xf32>, vector<4x64xf32>, vector<8x64xf32> -> vector<8x64xf32>
    %691 = arith.addf %678, %690 : vector<8x64xf32>
    %c0_801 = arith.constant 0 : index
    %c0_802 = arith.constant 0 : index
    %c0_803 = arith.constant 0 : index
    %692 = vector.load %arg45[%c0_801, %c0_802, %c0_803] : memref<1x8x64xf32, #tpu.memory_space<vmem>>, vector<1x8x64xf32>
    %693 = vector.shape_cast %692 : vector<1x8x64xf32> to vector<8x64xf32>
    %694 = vector.shape_cast %691 : vector<8x64xf32> to vector<1x8x64xf32>
    tpu.vector_store %arg45[%c0_801, %c0_802, %c0_803], %694 {strides = array<i32>} : memref<1x8x64xf32, #tpu.memory_space<vmem>>, vector<1x8x64xf32>,
    %c0_804 = arith.constant 0 : index
    %c0_805 = arith.constant 0 : index
    %c0_806 = arith.constant 0 : index
    %695 = vector.load %arg33[%c0_804, %c0_805, %c0_806] : memref<3x64x32xf32, #tpu.memory_space<vmem>>, vector<1x64x32xf32>
    %696 = vector.shape_cast %695 : vector<1x64x32xf32> to vector<64x32xf32>
    %c1_807 = arith.constant 1 : index
    %c0_808 = arith.constant 0 : index
    %c0_809 = arith.constant 0 : index
    %697 = vector.load %arg33[%c1_807, %c0_808, %c0_809] : memref<3x64x32xf32, #tpu.memory_space<vmem>>, vector<1x64x32xf32>
    %698 = vector.shape_cast %697 : vector<1x64x32xf32> to vector<64x32xf32>
    %c2_810 = arith.constant 2 : index
    %c0_811 = arith.constant 0 : index
    %c0_812 = arith.constant 0 : index
    %699 = vector.load %arg33[%c2_810, %c0_811, %c0_812] : memref<3x64x32xf32, #tpu.memory_space<vmem>>, vector<1x64x32xf32>
    %700 = vector.shape_cast %699 : vector<1x64x32xf32> to vector<64x32xf32>
    %c0_813 = arith.constant 0 : index
    %c0_814 = arith.constant 0 : index
    %701 = vector.load %arg34[%c0_813, %c0_814] : memref<1x32xf32, #tpu.memory_space<vmem>>, vector<1x32xf32>
    %c0_815 = arith.constant 0 : index
    %c0_816 = arith.constant 0 : index
    %702 = vector.load %arg32[%c0_815, %c0_816] : memref<1x32xf32, #tpu.memory_space<vmem>>, vector<1x32xf32>
    %c0_817 = arith.constant 0 : index
    %c0_818 = arith.constant 0 : index
    %703 = vector.load %arg35[%c0_817, %c0_818] : memref<8x16xf32, #tpu.memory_space<vmem>>, vector<8x16xf32>
    %c1_819 = arith.constant 1 : index
    %c0_820 = arith.constant 0 : index
    %704 = vector.load %arg47[%c1_819, %c0_820] : memref<18x64xf32, #tpu.memory_space<vmem>>, vector<16x64xf32>
    tpu.vector_store %arg47[%c1_819, %c0_820], %213 {strides = array<i32>} : memref<18x64xf32, #tpu.memory_space<vmem>>, vector<16x64xf32>,
    %c0_821 = arith.constant 0 : index
    %c0_822 = arith.constant 0 : index
    %705 = vector.load %arg47[%c0_821, %c0_822] : memref<18x64xf32, #tpu.memory_space<vmem>>, vector<16x64xf32>
    %cst_823 = arith.constant dense<0.000000e+00> : vector<16x32xf32>
    %706 = tpu.matmul %705, %696, %cst_823 {dimension_numbers = #tpu.dot_dimension_numbers<[1], [0], [0], [1], [0, 0, 1, 1], [], []>} : vector<16x64xf32>, vector<64x32xf32>, vector<16x32xf32> -> vector<16x32xf32>
    %c1_824 = arith.constant 1 : index
    %c0_825 = arith.constant 0 : index
    %707 = vector.load %arg47[%c1_824, %c0_825] : memref<18x64xf32, #tpu.memory_space<vmem>>, vector<16x64xf32>
    %cst_826 = arith.constant dense<0.000000e+00> : vector<16x32xf32>
    %708 = tpu.matmul %707, %698, %cst_826 {dimension_numbers = #tpu.dot_dimension_numbers<[1], [0], [0], [1], [0, 0, 1, 1], [], []>} : vector<16x64xf32>, vector<64x32xf32>, vector<16x32xf32> -> vector<16x32xf32>
    %709 = arith.addf %706, %708 : vector<16x32xf32>
    %c2_827 = arith.constant 2 : index
    %c0_828 = arith.constant 0 : index
    %710 = vector.load %arg47[%c2_827, %c0_828] : memref<18x64xf32, #tpu.memory_space<vmem>>, vector<16x64xf32>
    %cst_829 = arith.constant dense<0.000000e+00> : vector<16x32xf32>
    %711 = tpu.matmul %710, %700, %cst_829 {dimension_numbers = #tpu.dot_dimension_numbers<[1], [0], [0], [1], [0, 0, 1, 1], [], []>} : vector<16x64xf32>, vector<64x32xf32>, vector<16x32xf32> -> vector<16x32xf32>
    %712 = arith.addf %709, %711 : vector<16x32xf32>
    %cst_830 = arith.constant dense<0.000000e+00> : vector<8x32xf32>
    %713 = tpu.matmul %703, %712, %cst_830 {dimension_numbers = #tpu.dot_dimension_numbers<[1], [0], [0], [1], [0, 0, 1, 1], [], []>} : vector<8x16xf32>, vector<16x32xf32>, vector<8x32xf32> -> vector<8x32xf32>
    %714 = vector.broadcast %701 : vector<1x32xf32> to vector<8x32xf32>
    %715 = arith.mulf %713, %714 : vector<8x32xf32>
    %716 = vector.broadcast %702 : vector<1x32xf32> to vector<8x32xf32>
    %717 = arith.addf %715, %716 : vector<8x32xf32>
    %cst_831 = arith.constant 0.000000e+00 : f32
    %718 = vector.broadcast %cst_831 : f32 to vector<8x32xf32>
    %719 = arith.maximumf %717, %718 : vector<8x32xf32>
    %c0_832 = arith.constant 0 : index
    %c0_833 = arith.constant 0 : index
    %c0_834 = arith.constant 0 : index
    %720 = vector.load %arg37[%c0_832, %c0_833, %c0_834] : memref<3x32x64xf32, #tpu.memory_space<vmem>>, vector<1x32x64xf32>
    %721 = vector.shape_cast %720 : vector<1x32x64xf32> to vector<32x64xf32>
    %c1_835 = arith.constant 1 : index
    %c0_836 = arith.constant 0 : index
    %c0_837 = arith.constant 0 : index
    %722 = vector.load %arg37[%c1_835, %c0_836, %c0_837] : memref<3x32x64xf32, #tpu.memory_space<vmem>>, vector<1x32x64xf32>
    %723 = vector.shape_cast %722 : vector<1x32x64xf32> to vector<32x64xf32>
    %c2_838 = arith.constant 2 : index
    %c0_839 = arith.constant 0 : index
    %c0_840 = arith.constant 0 : index
    %724 = vector.load %arg37[%c2_838, %c0_839, %c0_840] : memref<3x32x64xf32, #tpu.memory_space<vmem>>, vector<1x32x64xf32>
    %725 = vector.shape_cast %724 : vector<1x32x64xf32> to vector<32x64xf32>
    %c0_841 = arith.constant 0 : index
    %c0_842 = arith.constant 0 : index
    %726 = vector.load %arg38[%c0_841, %c0_842] : memref<1x64xf32, #tpu.memory_space<vmem>>, vector<1x64xf32>
    %c0_843 = arith.constant 0 : index
    %c0_844 = arith.constant 0 : index
    %727 = vector.load %arg36[%c0_843, %c0_844] : memref<1x64xf32, #tpu.memory_space<vmem>>, vector<1x64xf32>
    %c0_845 = arith.constant 0 : index
    %c0_846 = arith.constant 0 : index
    %728 = vector.load %arg39[%c0_845, %c0_846] : memref<4x8xf32, #tpu.memory_space<vmem>>, vector<4x8xf32>
    %c1_847 = arith.constant 1 : index
    %c0_848 = arith.constant 0 : index
    %729 = vector.load %arg50[%c1_847, %c0_848] : memref<10x32xf32, #tpu.memory_space<vmem>>, vector<8x32xf32>
    tpu.vector_store %arg50[%c1_847, %c0_848], %719 {strides = array<i32>} : memref<10x32xf32, #tpu.memory_space<vmem>>, vector<8x32xf32>,
    %c0_849 = arith.constant 0 : index
    %c0_850 = arith.constant 0 : index
    %730 = vector.load %arg50[%c0_849, %c0_850] : memref<10x32xf32, #tpu.memory_space<vmem>>, vector<8x32xf32>
    %cst_851 = arith.constant dense<0.000000e+00> : vector<8x64xf32>
    %731 = tpu.matmul %730, %721, %cst_851 {dimension_numbers = #tpu.dot_dimension_numbers<[1], [0], [0], [1], [0, 0, 1, 1], [], []>} : vector<8x32xf32>, vector<32x64xf32>, vector<8x64xf32> -> vector<8x64xf32>
    %c1_852 = arith.constant 1 : index
    %c0_853 = arith.constant 0 : index
    %732 = vector.load %arg50[%c1_852, %c0_853] : memref<10x32xf32, #tpu.memory_space<vmem>>, vector<8x32xf32>
    %cst_854 = arith.constant dense<0.000000e+00> : vector<8x64xf32>
    %733 = tpu.matmul %732, %723, %cst_854 {dimension_numbers = #tpu.dot_dimension_numbers<[1], [0], [0], [1], [0, 0, 1, 1], [], []>} : vector<8x32xf32>, vector<32x64xf32>, vector<8x64xf32> -> vector<8x64xf32>
    %734 = arith.addf %731, %733 : vector<8x64xf32>
    %c2_855 = arith.constant 2 : index
    %c0_856 = arith.constant 0 : index
    %735 = vector.load %arg50[%c2_855, %c0_856] : memref<10x32xf32, #tpu.memory_space<vmem>>, vector<8x32xf32>
    %cst_857 = arith.constant dense<0.000000e+00> : vector<8x64xf32>
    %736 = tpu.matmul %735, %725, %cst_857 {dimension_numbers = #tpu.dot_dimension_numbers<[1], [0], [0], [1], [0, 0, 1, 1], [], []>} : vector<8x32xf32>, vector<32x64xf32>, vector<8x64xf32> -> vector<8x64xf32>
    %737 = arith.addf %734, %736 : vector<8x64xf32>
    %cst_858 = arith.constant dense<0.000000e+00> : vector<4x64xf32>
    %738 = tpu.matmul %728, %737, %cst_858 {dimension_numbers = #tpu.dot_dimension_numbers<[1], [0], [0], [1], [0, 0, 1, 1], [], []>} : vector<4x8xf32>, vector<8x64xf32>, vector<4x64xf32> -> vector<4x64xf32>
    %739 = vector.broadcast %726 : vector<1x64xf32> to vector<4x64xf32>
    %740 = arith.mulf %738, %739 : vector<4x64xf32>
    %741 = vector.broadcast %727 : vector<1x64xf32> to vector<4x64xf32>
    %742 = arith.addf %740, %741 : vector<4x64xf32>
    %743 = arith.addf %625, %742 : vector<4x64xf32>
    %c0_859 = arith.constant 0 : index
    %c0_860 = arith.constant 0 : index
    %c0_861 = arith.constant 0 : index
    %744 = vector.load %arg41[%c0_859, %c0_860, %c0_861] : memref<3x64x64xf32, #tpu.memory_space<vmem>>, vector<1x64x64xf32>
    %745 = vector.shape_cast %744 : vector<1x64x64xf32> to vector<64x64xf32>
    %c1_862 = arith.constant 1 : index
    %c0_863 = arith.constant 0 : index
    %c0_864 = arith.constant 0 : index
    %746 = vector.load %arg41[%c1_862, %c0_863, %c0_864] : memref<3x64x64xf32, #tpu.memory_space<vmem>>, vector<1x64x64xf32>
    %747 = vector.shape_cast %746 : vector<1x64x64xf32> to vector<64x64xf32>
    %c2_865 = arith.constant 2 : index
    %c0_866 = arith.constant 0 : index
    %c0_867 = arith.constant 0 : index
    %748 = vector.load %arg41[%c2_865, %c0_866, %c0_867] : memref<3x64x64xf32, #tpu.memory_space<vmem>>, vector<1x64x64xf32>
    %749 = vector.shape_cast %748 : vector<1x64x64xf32> to vector<64x64xf32>
    %c0_868 = arith.constant 0 : index
    %c0_869 = arith.constant 0 : index
    %750 = vector.load %arg42[%c0_868, %c0_869] : memref<1x64xf32, #tpu.memory_space<vmem>>, vector<1x64xf32>
    %c0_870 = arith.constant 0 : index
    %c0_871 = arith.constant 0 : index
    %751 = vector.load %arg40[%c0_870, %c0_871] : memref<1x64xf32, #tpu.memory_space<vmem>>, vector<1x64xf32>
    %c0_872 = arith.constant 0 : index
    %c0_873 = arith.constant 0 : index
    %752 = vector.load %arg43[%c0_872, %c0_873] : memref<4x8xf32, #tpu.memory_space<vmem>>, vector<4x8xf32>
    %c1_874 = arith.constant 1 : index
    %c0_875 = arith.constant 0 : index
    %753 = vector.load %arg48[%c1_874, %c0_875] : memref<10x64xf32, #tpu.memory_space<vmem>>, vector<8x64xf32>
    tpu.vector_store %arg48[%c1_874, %c0_875], %419 {strides = array<i32>} : memref<10x64xf32, #tpu.memory_space<vmem>>, vector<8x64xf32>,
    %c0_876 = arith.constant 0 : index
    %c0_877 = arith.constant 0 : index
    %754 = vector.load %arg48[%c0_876, %c0_877] : memref<10x64xf32, #tpu.memory_space<vmem>>, vector<8x64xf32>
    %cst_878 = arith.constant dense<0.000000e+00> : vector<8x64xf32>
    %755 = tpu.matmul %754, %745, %cst_878 {dimension_numbers = #tpu.dot_dimension_numbers<[1], [0], [0], [1], [0, 0, 1, 1], [], []>} : vector<8x64xf32>, vector<64x64xf32>, vector<8x64xf32> -> vector<8x64xf32>
    %c1_879 = arith.constant 1 : index
    %c0_880 = arith.constant 0 : index
    %756 = vector.load %arg48[%c1_879, %c0_880] : memref<10x64xf32, #tpu.memory_space<vmem>>, vector<8x64xf32>
    %cst_881 = arith.constant dense<0.000000e+00> : vector<8x64xf32>
    %757 = tpu.matmul %756, %747, %cst_881 {dimension_numbers = #tpu.dot_dimension_numbers<[1], [0], [0], [1], [0, 0, 1, 1], [], []>} : vector<8x64xf32>, vector<64x64xf32>, vector<8x64xf32> -> vector<8x64xf32>
    %758 = arith.addf %755, %757 : vector<8x64xf32>
    %c2_882 = arith.constant 2 : index
    %c0_883 = arith.constant 0 : index
    %759 = vector.load %arg48[%c2_882, %c0_883] : memref<10x64xf32, #tpu.memory_space<vmem>>, vector<8x64xf32>
    %cst_884 = arith.constant dense<0.000000e+00> : vector<8x64xf32>
    %760 = tpu.matmul %759, %749, %cst_884 {dimension_numbers = #tpu.dot_dimension_numbers<[1], [0], [0], [1], [0, 0, 1, 1], [], []>} : vector<8x64xf32>, vector<64x64xf32>, vector<8x64xf32> -> vector<8x64xf32>
    %761 = arith.addf %758, %760 : vector<8x64xf32>
    %cst_885 = arith.constant dense<0.000000e+00> : vector<4x64xf32>
    %762 = tpu.matmul %752, %761, %cst_885 {dimension_numbers = #tpu.dot_dimension_numbers<[1], [0], [0], [1], [0, 0, 1, 1], [], []>} : vector<4x8xf32>, vector<8x64xf32>, vector<4x64xf32> -> vector<4x64xf32>
    %763 = vector.broadcast %750 : vector<1x64xf32> to vector<4x64xf32>
    %764 = arith.mulf %762, %763 : vector<4x64xf32>
    %765 = vector.broadcast %751 : vector<1x64xf32> to vector<4x64xf32>
    %766 = arith.addf %764, %765 : vector<4x64xf32>
    %767 = arith.addf %743, %766 : vector<4x64xf32>
    %c0_886 = arith.constant 0 : index
    %c0_887 = arith.constant 0 : index
    %c0_888 = arith.constant 0 : index
    %768 = vector.load %arg46[%c0_886, %c0_887, %c0_888] : memref<1x4x64xf32, #tpu.memory_space<vmem>>, vector<1x4x64xf32>
    %769 = vector.shape_cast %768 : vector<1x4x64xf32> to vector<4x64xf32>
    %770 = vector.shape_cast %767 : vector<4x64xf32> to vector<1x4x64xf32>
    tpu.vector_store %arg46[%c0_886, %c0_887, %c0_888], %770 {strides = array<i32>} : memref<1x4x64xf32, #tpu.memory_space<vmem>>, vector<1x4x64xf32>,
    return
  }
  func.func @transform_0(%arg0: i32) -> (i32, i32, i32) {
    %c0_i32 = arith.constant 0 : i32
    %c0_i32_0 = arith.constant 0 : i32
    %c0_i32_1 = arith.constant 0 : i32
    return %arg0, %c0_i32, %c0_i32_0 : i32, i32, i32
  }
  func.func @transform_1(%arg0: i32) -> (i32, i32, i32) {
    %c0_i32 = arith.constant 0 : i32
    %c0_i32_0 = arith.constant 0 : i32
    %c0_i32_1 = arith.constant 0 : i32
    return %arg0, %c0_i32, %c0_i32_0 : i32, i32, i32
  }
  func.func @transform_2(%arg0: i32) -> (i32, i32, i32) {
    %c0_i32 = arith.constant 0 : i32
    %c0_i32_0 = arith.constant 0 : i32
    %c0_i32_1 = arith.constant 0 : i32
    return %arg0, %c0_i32, %c0_i32_0 : i32, i32, i32
  }
  func.func @transform_3(%arg0: i32) -> (i32, i32, i32) {
    %c0_i32 = arith.constant 0 : i32
    %c0_i32_0 = arith.constant 0 : i32
    %c0_i32_1 = arith.constant 0 : i32
    %c0_i32_2 = arith.constant 0 : i32
    return %c0_i32, %c0_i32_0, %c0_i32_1 : i32, i32, i32
  }
  func.func @transform_4(%arg0: i32) -> (i32, i32, i32, i32) {
    %c0_i32 = arith.constant 0 : i32
    %c0_i32_0 = arith.constant 0 : i32
    %c0_i32_1 = arith.constant 0 : i32
    %c0_i32_2 = arith.constant 0 : i32
    %c0_i32_3 = arith.constant 0 : i32
    return %c0_i32, %c0_i32_0, %c0_i32_1, %c0_i32_2 : i32, i32, i32, i32
  }
  func.func @transform_5(%arg0: i32) -> (i32, i32, i32) {
    %c0_i32 = arith.constant 0 : i32
    %c0_i32_0 = arith.constant 0 : i32
    %c0_i32_1 = arith.constant 0 : i32
    %c0_i32_2 = arith.constant 0 : i32
    return %c0_i32, %c0_i32_0, %c0_i32_1 : i32, i32, i32
  }
  func.func @transform_6(%arg0: i32) -> (i32, i32, i32) {
    %c0_i32 = arith.constant 0 : i32
    %c0_i32_0 = arith.constant 0 : i32
    %c0_i32_1 = arith.constant 0 : i32
    %c0_i32_2 = arith.constant 0 : i32
    return %c0_i32, %c0_i32_0, %c0_i32_1 : i32, i32, i32
  }
  func.func @transform_7(%arg0: i32) -> (i32, i32, i32, i32) {
    %c0_i32 = arith.constant 0 : i32
    %c0_i32_0 = arith.constant 0 : i32
    %c0_i32_1 = arith.constant 0 : i32
    %c0_i32_2 = arith.constant 0 : i32
    %c0_i32_3 = arith.constant 0 : i32
    return %c0_i32, %c0_i32_0, %c0_i32_1, %c0_i32_2 : i32, i32, i32, i32
  }
  func.func @transform_8(%arg0: i32) -> (i32, i32, i32) {
    %c0_i32 = arith.constant 0 : i32
    %c0_i32_0 = arith.constant 0 : i32
    %c0_i32_1 = arith.constant 0 : i32
    %c0_i32_2 = arith.constant 0 : i32
    return %c0_i32, %c0_i32_0, %c0_i32_1 : i32, i32, i32
  }
  func.func @transform_9(%arg0: i32) -> (i32, i32, i32) {
    %c0_i32 = arith.constant 0 : i32
    %c0_i32_0 = arith.constant 0 : i32
    %c0_i32_1 = arith.constant 0 : i32
    %c0_i32_2 = arith.constant 0 : i32
    return %c0_i32, %c0_i32_0, %c0_i32_1 : i32, i32, i32
  }
  func.func @transform_10(%arg0: i32) -> (i32, i32, i32, i32) {
    %c0_i32 = arith.constant 0 : i32
    %c0_i32_0 = arith.constant 0 : i32
    %c0_i32_1 = arith.constant 0 : i32
    %c0_i32_2 = arith.constant 0 : i32
    %c0_i32_3 = arith.constant 0 : i32
    return %c0_i32, %c0_i32_0, %c0_i32_1, %c0_i32_2 : i32, i32, i32, i32
  }
  func.func @transform_11(%arg0: i32) -> (i32, i32, i32) {
    %c0_i32 = arith.constant 0 : i32
    %c0_i32_0 = arith.constant 0 : i32
    %c0_i32_1 = arith.constant 0 : i32
    %c0_i32_2 = arith.constant 0 : i32
    return %c0_i32, %c0_i32_0, %c0_i32_1 : i32, i32, i32
  }
  func.func @transform_12(%arg0: i32) -> (i32, i32) {
    %c0_i32 = arith.constant 0 : i32
    %c0_i32_0 = arith.constant 0 : i32
    %c0_i32_1 = arith.constant 0 : i32
    return %c0_i32, %c0_i32_0 : i32, i32
  }
  func.func @transform_13(%arg0: i32) -> (i32, i32) {
    %c0_i32 = arith.constant 0 : i32
    %c0_i32_0 = arith.constant 0 : i32
    %c0_i32_1 = arith.constant 0 : i32
    return %c0_i32, %c0_i32_0 : i32, i32
  }
  func.func @transform_14(%arg0: i32) -> (i32, i32) {
    %c0_i32 = arith.constant 0 : i32
    %c0_i32_0 = arith.constant 0 : i32
    %c0_i32_1 = arith.constant 0 : i32
    return %c0_i32, %c0_i32_0 : i32, i32
  }
  func.func @transform_15(%arg0: i32) -> (i32, i32) {
    %c0_i32 = arith.constant 0 : i32
    %c0_i32_0 = arith.constant 0 : i32
    %c0_i32_1 = arith.constant 0 : i32
    return %c0_i32, %c0_i32_0 : i32, i32
  }
  func.func @transform_16(%arg0: i32) -> (i32, i32) {
    %c0_i32 = arith.constant 0 : i32
    %c0_i32_0 = arith.constant 0 : i32
    %c0_i32_1 = arith.constant 0 : i32
    return %c0_i32, %c0_i32_0 : i32, i32
  }
  func.func @transform_17(%arg0: i32) -> (i32, i32) {
    %c0_i32 = arith.constant 0 : i32
    %c0_i32_0 = arith.constant 0 : i32
    %c0_i32_1 = arith.constant 0 : i32
    return %c0_i32, %c0_i32_0 : i32, i32
  }
  func.func @transform_18(%arg0: i32) -> (i32, i32) {
    %c0_i32 = arith.constant 0 : i32
    %c0_i32_0 = arith.constant 0 : i32
    %c0_i32_1 = arith.constant 0 : i32
    return %c0_i32, %c0_i32_0 : i32, i32
  }
  func.func @transform_19(%arg0: i32) -> (i32, i32) {
    %c0_i32 = arith.constant 0 : i32
    %c0_i32_0 = arith.constant 0 : i32
    %c0_i32_1 = arith.constant 0 : i32
    return %c0_i32, %c0_i32_0 : i32, i32
  }
  func.func @transform_20(%arg0: i32) -> (i32, i32) {
    %c0_i32 = arith.constant 0 : i32
    %c0_i32_0 = arith.constant 0 : i32
    %c0_i32_1 = arith.constant 0 : i32
    return %c0_i32, %c0_i32_0 : i32, i32
  }
  func.func @transform_21(%arg0: i32) -> (i32, i32) {
    %c0_i32 = arith.constant 0 : i32
    %c0_i32_0 = arith.constant 0 : i32
    %c0_i32_1 = arith.constant 0 : i32
    return %c0_i32, %c0_i32_0 : i32, i32
  }
  func.func @transform_22(%arg0: i32) -> (i32, i32) {
    %c0_i32 = arith.constant 0 : i32
    %c0_i32_0 = arith.constant 0 : i32
    %c0_i32_1 = arith.constant 0 : i32
    return %c0_i32, %c0_i32_0 : i32, i32
  }
  func.func @transform_23(%arg0: i32) -> (i32, i32, i32) {
    %c0_i32 = arith.constant 0 : i32
    %c0_i32_0 = arith.constant 0 : i32
    %c0_i32_1 = arith.constant 0 : i32
    %c0_i32_2 = arith.constant 0 : i32
    return %c0_i32, %c0_i32_0, %c0_i32_1 : i32, i32, i32
  }
  func.func @transform_24(%arg0: i32) -> (i32, i32) {
    %c0_i32 = arith.constant 0 : i32
    %c0_i32_0 = arith.constant 0 : i32
    %c0_i32_1 = arith.constant 0 : i32
    return %c0_i32, %c0_i32_0 : i32, i32
  }
  func.func @transform_25(%arg0: i32) -> (i32, i32) {
    %c0_i32 = arith.constant 0 : i32
    %c0_i32_0 = arith.constant 0 : i32
    %c0_i32_1 = arith.constant 0 : i32
    return %c0_i32, %c0_i32_0 : i32, i32
  }
  func.func @transform_26(%arg0: i32) -> (i32, i32) {
    %c0_i32 = arith.constant 0 : i32
    %c0_i32_0 = arith.constant 0 : i32
    %c0_i32_1 = arith.constant 0 : i32
    return %c0_i32, %c0_i32_0 : i32, i32
  }
  func.func @transform_27(%arg0: i32) -> (i32, i32) {
    %c0_i32 = arith.constant 0 : i32
    %c0_i32_0 = arith.constant 0 : i32
    %c0_i32_1 = arith.constant 0 : i32
    return %c0_i32, %c0_i32_0 : i32, i32
  }
  func.func @transform_28(%arg0: i32) -> (i32, i32) {
    %c0_i32 = arith.constant 0 : i32
    %c0_i32_0 = arith.constant 0 : i32
    %c0_i32_1 = arith.constant 0 : i32
    return %c0_i32, %c0_i32_0 : i32, i32
  }
  func.func @transform_29(%arg0: i32) -> (i32, i32) {
    %c0_i32 = arith.constant 0 : i32
    %c0_i32_0 = arith.constant 0 : i32
    %c0_i32_1 = arith.constant 0 : i32
    return %c0_i32, %c0_i32_0 : i32, i32
  }
  func.func @transform_30(%arg0: i32) -> (i32, i32) {
    %c0_i32 = arith.constant 0 : i32
    %c0_i32_0 = arith.constant 0 : i32
    %c0_i32_1 = arith.constant 0 : i32
    return %c0_i32, %c0_i32_0 : i32, i32
  }
  func.func @transform_31(%arg0: i32) -> (i32, i32) {
    %c0_i32 = arith.constant 0 : i32
    %c0_i32_0 = arith.constant 0 : i32
    %c0_i32_1 = arith.constant 0 : i32
    return %c0_i32, %c0_i32_0 : i32, i32
  }
  func.func @transform_32(%arg0: i32) -> (i32, i32, i32) {
    %c0_i32 = arith.constant 0 : i32
    %c0_i32_0 = arith.constant 0 : i32
    %c0_i32_1 = arith.constant 0 : i32
    %c0_i32_2 = arith.constant 0 : i32
    return %c0_i32, %c0_i32_0, %c0_i32_1 : i32, i32, i32
  }
  func.func @transform_33(%arg0: i32) -> (i32, i32) {
    %c0_i32 = arith.constant 0 : i32
    %c0_i32_0 = arith.constant 0 : i32
    %c0_i32_1 = arith.constant 0 : i32
    return %c0_i32, %c0_i32_0 : i32, i32
  }
  func.func @transform_34(%arg0: i32) -> (i32, i32) {
    %c0_i32 = arith.constant 0 : i32
    %c0_i32_0 = arith.constant 0 : i32
    %c0_i32_1 = arith.constant 0 : i32
    return %c0_i32, %c0_i32_0 : i32, i32
  }
  func.func @transform_35(%arg0: i32) -> (i32, i32) {
    %c0_i32 = arith.constant 0 : i32
    %c0_i32_0 = arith.constant 0 : i32
    %c0_i32_1 = arith.constant 0 : i32
    return %c0_i32, %c0_i32_0 : i32, i32
  }
  func.func @transform_36(%arg0: i32) -> (i32, i32, i32) {
    %c0_i32 = arith.constant 0 : i32
    %c0_i32_0 = arith.constant 0 : i32
    %c0_i32_1 = arith.constant 0 : i32
    %c0_i32_2 = arith.constant 0 : i32
    return %c0_i32, %c0_i32_0, %c0_i32_1 : i32, i32, i32
  }
  func.func @transform_37(%arg0: i32) -> (i32, i32) {
    %c0_i32 = arith.constant 0 : i32
    %c0_i32_0 = arith.constant 0 : i32
    %c0_i32_1 = arith.constant 0 : i32
    return %c0_i32, %c0_i32_0 : i32, i32
  }
  func.func @transform_38(%arg0: i32) -> (i32, i32) {
    %c0_i32 = arith.constant 0 : i32
    %c0_i32_0 = arith.constant 0 : i32
    %c0_i32_1 = arith.constant 0 : i32
    return %c0_i32, %c0_i32_0 : i32, i32
  }
  func.func @transform_39(%arg0: i32) -> (i32, i32) {
    %c0_i32 = arith.constant 0 : i32
    %c0_i32_0 = arith.constant 0 : i32
    %c0_i32_1 = arith.constant 0 : i32
    return %c0_i32, %c0_i32_0 : i32, i32
  }
  func.func @transform_40(%arg0: i32) -> (i32, i32, i32) {
    %c0_i32 = arith.constant 0 : i32
    %c0_i32_0 = arith.constant 0 : i32
    %c0_i32_1 = arith.constant 0 : i32
    %c0_i32_2 = arith.constant 0 : i32
    return %c0_i32, %c0_i32_0, %c0_i32_1 : i32, i32, i32
  }
  func.func @transform_41(%arg0: i32) -> (i32, i32) {
    %c0_i32 = arith.constant 0 : i32
    %c0_i32_0 = arith.constant 0 : i32
    %c0_i32_1 = arith.constant 0 : i32
    return %c0_i32, %c0_i32_0 : i32, i32
  }
  func.func @transform_42(%arg0: i32) -> (i32, i32) {
    %c0_i32 = arith.constant 0 : i32
    %c0_i32_0 = arith.constant 0 : i32
    %c0_i32_1 = arith.constant 0 : i32
    return %c0_i32, %c0_i32_0 : i32, i32
  }
  func.func @transform_43(%arg0: i32) -> (i32, i32, i32) {
    %c0_i32 = arith.constant 0 : i32
    %c0_i32_0 = arith.constant 0 : i32
    %c0_i32_1 = arith.constant 0 : i32
    return %arg0, %c0_i32, %c0_i32_0 : i32, i32, i32
  }
  func.func @transform_44(%arg0: i32) -> (i32, i32, i32) {
    %c0_i32 = arith.constant 0 : i32
    %c0_i32_0 = arith.constant 0 : i32
    %c0_i32_1 = arith.constant 0 : i32
    return %arg0, %c0_i32, %c0_i32_0 : i32, i32, i32
  }
  func.func @transform_45(%arg0: i32) -> (i32, i32, i32) {
    %c0_i32 = arith.constant 0 : i32
    %c0_i32_0 = arith.constant 0 : i32
    %c0_i32_1 = arith.constant 0 : i32
    return %arg0, %c0_i32, %c0_i32_0 : i32, i32, i32
  }
}

</mosaic_0001>

<bundles_post_ra>
// kernel: tpu_custom_call.1
= control target key start
LH: loop header
LB: loop body
LE: loop exit
PB: predicated region body
PF: predicated region fallthrough
CT: control target
= control target key end

     0   :  { %s7234_s6 = smov 1   ;;  %s7235_s10 = smov 2   ;;  %s8389_s0 = inlined_call_operand.smem [shape: u32[46], index: -1, kind: input, shape index: {}] }
   0x1   :  { %s7312_s5 = sld [smem:[%s8389_s0]]   ;;  %s7236_s14 = smov 3  }
   0x2   :  { %s7317_s9 = sld [smem:[%s8389_s0 + %s7234_s6]]   ;;  %s7237_s18 = smov 4  }
   0x3   :  { %s7322_s13 = sld [smem:[%s8389_s0 + %s7235_s10]]   ;;  %s7238_s22 = smov 5  }
   0x4   :  { %s7327_s17 = sld [smem:[%s8389_s0 + %s7236_s14]]   ;;  %s7239_s26 = smov 6  }
   0x5   :  { %s7332_s21 = sld [smem:[%s8389_s0 + %s7237_s18]]   ;;  %s7240_s30 = smov 7  }
   0x6   :  { %s7337_s25 = sld [smem:[%s8389_s0 + %s7238_s22]]   ;;  %s7241_s4 = smov 8  }
   0x7   :  { %8448 = sst [smem:[#allocation51_spill]] %s7312_s5  ;;  %s7242_s10 = smov 9  }
   0x8   :  { %8449 = sst [smem:[#allocation52_spill]] %s7317_s9  ;;  %s7243_s15 = smov 10  }
   0x9   :  { %8450 = sst [smem:[#allocation53_spill]] %s7322_s13  ;;  %s7244_s20 = smov 11  }
   0xa   :  { %8451 = sst [smem:[#allocation54_spill]] %s7327_s17  ;;  %s7246_s1 = smov 13  }
   0xb   :  { %s7342_s29 = sld [smem:[%s8389_s0 + %s7239_s26]]   ;;  %s7245_s26 = smov 12  }
   0xc   :  { %8452 = sst [smem:[#allocation55_spill]] %s7337_s25  ;;  %s7247_s7 = smov 14  }
   0xd   :  { %s7347_s3 = sld [smem:[%s8389_s0 + %s7240_s30]]   ;;  %s7249_s22 = smov 16  }
   0xe   :  { %s7352_s8 = sld [smem:[%s8389_s0 + %s7241_s4]]   ;;  %s7250_s28 = smov 17  }
   0xf   :  { %s7357_s14 = sld [smem:[%s8389_s0 + %s7242_s10]]  }
  0x10   :  { %s7362_s19 = sld [smem:[%s8389_s0 + %s7243_s15]]   ;;  %s7248_s15 = smov 15  }
  0x11   :  { %s7367_s24 = sld [smem:[%s8389_s0 + %s7244_s20]]  }
  0x12   :  { %s7372_s30 = sld [smem:[%s8389_s0 + %s7245_s26]]  }
  0x13   :  { %8453 = sst [smem:[#allocation56_spill]] %s7347_s3 }
  0x14   :  { %8454 = sst [smem:[#allocation57_spill]] %s7352_s8 }
  0x15   :  { %8455 = sst [smem:[#allocation58_spill]] %s7357_s14 }
  0x16   :  { %8456 = sst [smem:[#allocation59_spill]] %s7362_s19 }
  0x17   :  { %s7377_s6 = sld [smem:[%s8389_s0 + %s7246_s1]]  }
  0x18   :  { %s7382_s12 = sld [smem:[%s8389_s0 + %s7247_s7]]   ;;  %s7251_s7 = smov 18  }
  0x19   :  { %s7387_s20 = sld [smem:[%s8389_s0 + %s7248_s15]]   ;;  %s7252_s15 = smov 19  }
  0x1a   :  { %s7392_s27 = sld [smem:[%s8389_s0 + %s7249_s22]]   ;;  %s7253_s22 = smov 20  }
  0x1b   :  { %s7397_s4 = sld [smem:[%s8389_s0 + %s7250_s28]]   ;;  %s7254_s28 = smov 21  }
  0x1c   :  { %s7417_s13 = sld [smem:[%s8389_s0 + %s7254_s28]]   ;;  %s7258_s28 = smov 25  }
  0x1d   :  { %8457 = sst [smem:[#allocation60_spill]] %s7377_s6 }
  0x1e   :  { %8458 = sst [smem:[#allocation61_spill]] %s7382_s12 }
  0x1f   :  { %8459 = sst [smem:[#allocation62_spill]] %s7387_s20 }
  0x20   :  { %s7402_s12 = sld [smem:[%s8389_s0 + %s7251_s7]]   ;;  %s7255_s7 = smov 22  }
  0x21   :  { %8460 = sst [smem:[#allocation63_spill]] %s7397_s4 }
  0x22   :  { %s7407_s20 = sld [smem:[%s8389_s0 + %s7252_s15]]   ;;  %s7256_s15 = smov 23  }
  0x23   :  { %s7412_s6 = sld [smem:[%s8389_s0 + %s7253_s22]]   ;;  %s7257_s22 = smov 24  }
  0x24   :  { %8464 = sst [smem:[#allocation67_spill]] %s7417_s13 }
  0x25   :  { %s7437_s9 = sld [smem:[%s8389_s0 + %s7258_s28]]   ;;  %s7262_s28 = smov 29  }
  0x26   :  { %8461 = sst [smem:[#allocation64_spill]] %s7402_s12 }
  0x27   :  { %s7422_s12 = sld [smem:[%s8389_s0 + %s7255_s7]]   ;;  %s7259_s7 = smov 26  }
  0x28   :  { %8462 = sst [smem:[#allocation65_spill]] %s7407_s20 }
  0x29   :  { %8463 = sst [smem:[#allocation66_spill]] %s7412_s6 }
  0x2a   :  { %s7427_s20 = sld [smem:[%s8389_s0 + %s7256_s15]]   ;;  %s7260_s15 = smov 27  }
  0x2b   :  { %s7432_s6 = sld [smem:[%s8389_s0 + %s7257_s22]]   ;;  %s7261_s22 = smov 28  }
  0x2c   :  { %8468 = sst [smem:[#allocation71_spill]] %s7437_s9 }
  0x2d   :  { %8465 = sst [smem:[#allocation68_spill]] %s7422_s12 }
  0x2e   :  { %s7442_s17 = sld [smem:[%s8389_s0 + %s7259_s7]]   ;;  %s7263_s7 = smov 30  }
  0x2f   :  { %s7452_s5 = sld [smem:[%s8389_s0 + %s7261_s22]]   ;;  %s7265_s22 = smov 32  }
  0x30   :  { %8466 = sst [smem:[#allocation69_spill]] %s7427_s20 }
  0x31   :  { %8467 = sst [smem:[#allocation70_spill]] %s7432_s6 }
  0x32   :  { %s7447_s20 = sld [smem:[%s8389_s0 + %s7260_s15]]   ;;  %s7264_s15 = smov 31  }
  0x33   :  { %s7457_s9 = sld [smem:[%s8389_s0 + %s7262_s28]]   ;;  %s7266_s28 = smov 33  }
  0x34   :  { %8469 = sst [smem:[#allocation72_spill]] %s7442_s17 }
  0x35   :  { %8471 = sst [smem:[#allocation74_spill]] %s7452_s5 }
  0x36   :  { %s7462_s17 = sld [smem:[%s8389_s0 + %s7263_s7]]   ;;  %s7267_s7 = smov 34  }
  0x37   :  { %s7472_s5 = sld [smem:[%s8389_s0 + %s7265_s22]]   ;;  %s7269_s22 = smov 36  }
  0x38   :  { %8470 = sst [smem:[#allocation73_spill]] %s7447_s20 }
  0x39   :  { %8472 = sst [smem:[#allocation75_spill]] %s7457_s9 }
  0x3a   :  { %s7467_s20 = sld [smem:[%s8389_s0 + %s7264_s15]]   ;;  %s7268_s15 = smov 35  }
  0x3b   :  { %s7477_s9 = sld [smem:[%s8389_s0 + %s7266_s28]]   ;;  %s7270_s28 = smov 37  }
  0x3c   :  { %8473 = sst [smem:[#allocation76_spill]] %s7462_s17 }
  0x3d   :  { %8475 = sst [smem:[#allocation78_spill]] %s7472_s5 }
  0x3e   :  { %s7482_s17 = sld [smem:[%s8389_s0 + %s7267_s7]]   ;;  %s7271_s7 = smov 38  }
  0x3f   :  { %s7492_s5 = sld [smem:[%s8389_s0 + %s7269_s22]]   ;;  %s7273_s22 = smov 40  }
  0x40   :  { %8474 = sst [smem:[#allocation77_spill]] %s7467_s20 }
  0x41   :  { %8476 = sst [smem:[#allocation79_spill]] %s7477_s9 }
  0x42   :  { %s7487_s20 = sld [smem:[%s8389_s0 + %s7268_s15]]   ;;  %s7272_s15 = smov 39  }
  0x43   :  { %s7497_s12 = sld [smem:[%s8389_s0 + %s7270_s28]]   ;;  %s7274_s28 = smov 41  }
  0x44   :  { %8477 = sst [smem:[#allocation80_spill]] %s7482_s17 }
  0x45   :  { %8479 = sst [smem:[#allocation82_spill]] %s7492_s5 }
  0x46   :  { %s7502_s17 = sld [smem:[%s8389_s0 + %s7271_s7]]   ;;  %s7275_s7 = smov 42  }
  0x47   :  { %s7512_s5 = sld [smem:[%s8389_s0 + %s7273_s22]]   ;;  %s7277_s22 = smov 44  }
  0x48   :  { %8478 = sst [smem:[#allocation81_spill]] %s7487_s20 }
  0x49   :  { %8480 = sst [smem:[#allocation83_spill]] %s7497_s12 }
  0x4a   :  { %s7507_s20 = sld [smem:[%s8389_s0 + %s7272_s15]]   ;;  %s7276_s15 = smov 43  }
  0x4b   :  { %s7517_s12 = sld [smem:[%s8389_s0 + %s7274_s28]]   ;;  %s7278_s28 = smov 45  }
  0x4c   :  { %8481 = sst [smem:[#allocation84_spill]] %s7502_s17 }
  0x4d   :  { %8483 = sst [smem:[#allocation86_spill]] %s7512_s5 }
  0x4e   :  { %s7522_s17 = sld [smem:[%s8389_s0 + %s7275_s7]]  }
  0x4f   :  { %s7532_s5 = sld [smem:[%s8389_s0 + %s7277_s22]]  }
  0x50   :  { %8482 = sst [smem:[#allocation85_spill]] %s7507_s20 }
  0x51   :  { %8484 = sst [smem:[#allocation87_spill]] %s7517_s12 }
  0x52   :  { %s7527_s20 = sld [smem:[%s8389_s0 + %s7276_s15]]  }
  0x53   :  { %s7537_s12 = sld [smem:[%s8389_s0 + %s7278_s28]]  }
  0x54   :  { %8485 = sst [smem:[#allocation88_spill]] %s7522_s17 }
  0x55   :  { %8487 = sst [smem:[#allocation90_spill]] %s7532_s5 }
  0x58   :  { %8486 = sst [smem:[#allocation89_spill]] %s7527_s20 }
  0x59   :  { %8488 = sst [smem:[#allocation91_spill]] %s7537_s12 }
  0x5a   :  { %97 = vsyncpa [#allocation7], 0 }
  0x5b   :  { %98 = vsyncpa [#allocation10], 0 }
  0x5c   :  { %99 = vsyncpa [#allocation13], 0 }
  0x5d   :  { %100 = vsyncpa [#allocation16], 0 }
  0x5e   :  { %101 = vsyncpa [#allocation19], 0 }
  0x5f   :  { %102 = vsyncpa [#allocation22], 0 }
  0x60   :  { %103 = vsyncpa [#allocation25], 0 }
  0x61   :  { %104 = vsyncpa [#allocation28], 0 }
  0x62   :  { %105 = vsyncpa [#allocation31], 0 }
  0x63   :  { %106 = vsyncpa [#allocation34], 0 }
  0x64   :  { %107 = vsyncpa [#allocation8], 0 }
  0x65   :  { %109 = vsyncpa [#allocation8 + $0x1], 0 }
  0x66   :  { %110 = vsyncpa [#allocation37], 0 }
  0x67   :  { %112 = vsyncpa [#allocation37 + $0x1], 0  ;;  %s7539_s7 = smov 0   ;;  %s7541_s10 = smov 0  }
  0x68   :  { %s7543_s0 = smov 0   ;;  %s7545_s11 = smov 0  }
  0x69 LB: > { %s8489_s19 = sld [smem:[#allocation59_spill]]  ;;  %s7560_s15 = sadd.s32 4294967295, %s7232_s11   ;;  %s7224_s10 = sphi %s7541_s10, %s8558_s10   ;;  %s7220_s7 = sphi %s7539_s7, %s8557_s7   ;;  %s7232_s11 = sphi %s7545_s11, %s8554_s11   ;;  %s7228_s0 = sphi %s7543_s0, %s8556_s0  }
  0x6a   : > { %s8490_s5 = sld [smem:[#allocation90_spill]]  ;;  %s8406_s16 = sadd.s32 4294967294, %s7232_s11  }
  0x6b   : > { %s8491_s14 = sld [smem:[#allocation58_spill]]  ;;  %s7564_s18 = sadd.s32 1, %s7232_s11  }
  0x6c   : > { %s8492_s13 = sld [smem:[#allocation67_spill]]  ;;  %s1043_s22 = sadd.s32 1, %s7228_s0 }
  0x6d   : > { %s8493_s9 = sld [smem:[#allocation79_spill]]  ;;  %s1040_s23 = ssub.s32 %s7232_s11, %s7564_s18 }
  0x6e   : > { %s8494_s8 = sld [smem:[#allocation57_spill]]  ;;  %p1053_p0 = scmp.ne.s32.totalorder %s7228_s0, %s7224_s10 }
  0x6f   : > { %s8495_s4 = sld [smem:[#allocation63_spill]]  ;;  %p1041_p1 = scmp.eq.s32.totalorder %s1040_s23, 0 }
  0x70   : > { %s8496_s6 = sld [smem:[#allocation70_spill]]  ;;  %p1054_p2 = scmp.eq.s32.totalorder %s7560_s15, 1 }
  0x71   : > { %s8497_s3 = sld [smem:[#allocation56_spill]]  ;;  %p1059_p3 = scmp.ne.s32.totalorder %s7224_s10, %s7220_s7 }
  0x72   : > { %s8498_s25 = sld [smem:[#allocation55_spill]]  ;;  %p1060_p4 = scmp.eq.s32.totalorder %s8406_s16, 1 }
  0x73   : > { %8499 = sst [smem:[#allocation92_spill]] %s7220_s7  ;;  %p7579_p5 = por %p1054_p2, %p1053_p0 }
  0x74   : > { %8500 = sst [smem:[#allocation93_spill]] %s7228_s0  ;;  %p7583_p6 = por %p1060_p4, %p1059_p3 }
  0x75   : > { %8501 = sst [smem:[#allocation94_spill]] %s7232_s11  ;;  %p5951_p7 = scmp.ge.s32.totalorder %s7232_s11, 1 }
  0x76   : > { %8502 = sst [smem:[#allocation95_spill]] %s7564_s18  ;;  %p1119_p8 = scmp.lt.s32.totalorder %s7232_s11, 3 }
  0x77   : > { %s7577_s26 = scalar_select %p1041_p1, %s7228_s0, %s1043_s22  }
  0x78   : > { %s8504_s28 = scalar_select %p7579_p5, 1, 0 }
  0x79   : > { %8503 = sst [smem:[#allocation96_spill]] %s7577_s26  ;;  %p6329_p9 = scmp.eq.s32.totalorder %s7560_s15, 0 }
  0x7a   : > { %8505 = sst [smem:[#allocation97_spill]] %s8504_s28  ;;  %p7590_p10 = pnand %p5951_p7, %p1119_p8 }
  0x7b   : > { %s8506_s1 = scalar_select %p7583_p6, 1, 0 }
  0x7c   : > { %s1147_s23 = sshll.u32 %s8498_s25, 4  ;;  %p6264_p11 = pneg %p7590_p10  ;;  %s1148_s23 = int_to_ptr.hbm [resolvable:$true] %s1147_s23 }
  0x7d   : > { %8507 = sst [smem:[#allocation98_spill]] %s8506_s1  ;;  %s7279_s22 = smov [#allocation9]  }
  0x7e   : > { %s1149_s16 = sshll.u32 %s7279_s22, 4  ;;  %p7599_p12 = pnand %p6329_p9, %p6264_p11  ;;  %s1150_s16 = int_to_ptr.vmem [resolvable:$true] %s1149_s16 }
  0x7f   : > { %s1175_s0 = sshll.u32 %s8497_s3, 4  ;;  %s6530_s18 = sshra.s32 %s1148_s23, 4  ;;  %s6531_s18 = int_to_ptr.hbm [resolvable:$true] %s6530_s18  ;;  %s1176_s0 = int_to_ptr.hbm [resolvable:$true] %s1175_s0 }
  0x80   : > { %s6532_s1 = scalar_lea.hbm %s6531_s18, 8  ;;  %p7606_p0 = pneg %p7599_p12 }
  0x81   : > { %p6533_p13 = scmp.ne.s32.totalorder %s6531_s18, %s6532_s1  ;;  %s6537_s22 = scalar_lea.hbm %s8498_s25, 8 }
  0x82   : > { %p6538_p3 = scmp.lt.s32.totalorder %s6531_s18, %s8498_s25  ;;  %p6539_p4 = scmp.lt.s32.totalorder %s6537_s22, %s6532_s1 }
  0x83   : > { %p6535_p1 = pnand %p7606_p0, %p6533_p13 }
  0x84   : > { %p6540_p7 = por %p6539_p4, %p6538_p3 }
  0x85   : > { %p6536_p2 = pneg %p6535_p1 }
  0x87   : > { %p6541_p8 = pnand %p6540_p7, %p6536_p2 }
  0x89   : > { %6544 = shalt.err (!%p6541_p8)
}
  0x8a   : > { %s8419_s11 = smov 16   ;;  %s8421_s12 = smov 1  }
  0x8b   : > { %6270 = dma.hbm_to_vmem [thread:$0]  (!%p7599_p12), %s1148_s23, 128, %s1150_s16, [#allocation10], %s8419_s11, %s8419_s11, %s8421_s12  }
  0x8c   : > { %s7282_s20 = smov [#allocation12]   ;;  %s1203_s18 = sshll.u32 %s8491_s14, 4  ;;  %s7620_s18 = int_to_ptr.hbm [resolvable:$true] %s1203_s18 }
  0x8d   : > { %s1177_s28 = sshll.u32 %s7282_s20, 4  ;;  %s6560_s1 = sshra.s32 %s1176_s0, 4  ;;  %s1178_s28 = int_to_ptr.vmem [resolvable:$true] %s1177_s28  ;;  %s6561_s1 = int_to_ptr.hbm [resolvable:$true] %s6560_s1 }
  0x8e   : > { %s6562_s22 = scalar_lea.hbm %s6561_s1, 1536  ;;  %s6567_s25 = scalar_lea.hbm %s8497_s3, 1536 }
  0x8f   : > { %p6563_p11 = scmp.ne.s32.totalorder %s6561_s1, %s6562_s22  ;;  %p6568_p2 = scmp.lt.s32.totalorder %s6561_s1, %s8497_s3 }
  0x90   : > { %p6569_p3 = scmp.lt.s32.totalorder %s6567_s25, %s6562_s22 }
  0x91   : > { %p6565_p13 = pnand %p6563_p11, %p7606_p0 }
  0x92   : > { %p6570_p4 = por %p6569_p3, %p6568_p2 }
  0x93   : > { %p6566_p1 = pneg %p6565_p13 }
  0x95   : > { %p6571_p7 = pnand %p6570_p4, %p6566_p1 }
  0x97   : > { %6574 = shalt.err (!%p6571_p7)
}
  0x98   : > { %s8423_s16 = smov 128   ;;  %s8425_s20 = smov 8  }
  0x99   : > { %6276 = dma.hbm_to_vmem [thread:$0]  (!%p7599_p12), %s1176_s0, 24576, %s1178_s28, [#allocation13], %s8423_s16, %s8423_s16, %s8425_s20  }
  0x9a   : > { %s1231_s23 = sshll.u32 %s7367_s24, 4  ;;  %s7285_s11 = smov [#allocation15]   ;;  %s7632_s23 = int_to_ptr.hbm [resolvable:$true] %s1231_s23 }
  0x9b   : > { %s1205_s1 = sshll.u32 %s7285_s11, 4  ;;  %s6590_s25 = sshra.s32 %s7620_s18, 4  ;;  %s1206_s1 = int_to_ptr.vmem [resolvable:$true] %s1205_s1  ;;  %s6591_s25 = int_to_ptr.hbm [resolvable:$true] %s6590_s25 }
  0x9c   : > { %s6592_s22 = scalar_lea.hbm %s6591_s25, 8  ;;  %s6597_s12 = scalar_lea.hbm %s8491_s14, 8 }
  0x9d   : > { %p6593_p8 = scmp.ne.s32.totalorder %s6591_s25, %s6592_s22  ;;  %p6598_p1 = scmp.lt.s32.totalorder %s6591_s25, %s8491_s14 }
  0x9e   : > { %p6599_p2 = scmp.lt.s32.totalorder %s6597_s12, %s6592_s22 }
  0x9f   : > { %p6595_p11 = pnand %p6593_p8, %p7606_p0 }
  0xa0   : > { %p6600_p3 = por %p6599_p2, %p6598_p1 }
  0xa1   : > { %p6596_p13 = pneg %p6595_p11 }
  0xa3   : > { %p6601_p4 = pnand %p6600_p3, %p6596_p13 }
  0xa5   : > { %6604 = shalt.err (!%p6601_p4)
}
  0xa6   : > { %s8511_s0 = smov 1   ;;  %s8512_s11 = smov 16  }
  0xa7   : > { %6282 = dma.hbm_to_vmem [thread:$0]  (!%p7599_p12), %s7620_s18, 128, %s1206_s1, [#allocation16], %s8512_s11, %s8512_s11, %s8511_s0  }
  0xa8   : > { %s7286_s28 = smov [#allocation18]   ;;  %s1267_s20 = sshll.u32 %s7392_s27, 4  ;;  %s7646_s20 = int_to_ptr.hbm [resolvable:$true] %s1267_s20 }
  0xa9   : > { %s1233_s16 = sshll.u32 %s7286_s28, 4  ;;  %s6620_s12 = sshra.s32 %s7632_s23, 4  ;;  %s1234_s16 = int_to_ptr.vmem [resolvable:$true] %s1233_s16  ;;  %s6621_s12 = int_to_ptr.hbm [resolvable:$true] %s6620_s12 }
  0xaa   : > { %s6622_s25 = scalar_lea.hbm %s6621_s12, 8  ;;  %s6627_s22 = scalar_lea.hbm %s7367_s24, 8 }
  0xab   : > { %p6623_p7 = scmp.ne.s32.totalorder %s6621_s12, %s6622_s25  ;;  %p6628_p13 = scmp.lt.s32.totalorder %s6621_s12, %s7367_s24 }
  0xac   : > { %p6629_p1 = scmp.lt.s32.totalorder %s6627_s22, %s6622_s25 }
  0xad   : > { %p6625_p8 = pnand %p6623_p7, %p7606_p0 }
  0xae   : > { %p6630_p2 = por %p6629_p1, %p6628_p13 }
  0xaf   : > { %p6626_p11 = pneg %p6625_p8 }
  0xb1   : > { %p6631_p3 = pnand %p6630_p2, %p6626_p11 }
  0xb3   : > { %6634 = shalt.err (!%p6631_p3)
}
  0xb4   : > { %6288 = dma.hbm_to_vmem [thread:$0]  (!%p7599_p12), %s7632_s23, 128, %s1234_s16, [#allocation19], %s8512_s11, %s8512_s11, %s8511_s0  }
  0xb5   : > { %s1300_s18 = sshll.u32 %s8492_s13, 4  ;;  %s7287_s1 = smov [#allocation21]   ;;  %s7660_s18 = int_to_ptr.hbm [resolvable:$true] %s1300_s18 }
  0xb6   : > { %s1269_s28 = sshll.u32 %s7287_s1, 4  ;;  %s6650_s12 = sshra.s32 %s7646_s20, 4  ;;  %s1270_s28 = int_to_ptr.vmem [resolvable:$true] %s1269_s28  ;;  %s6651_s12 = int_to_ptr.hbm [resolvable:$true] %s6650_s12 }
  0xb7   : > { %s6652_s25 = scalar_lea.hbm %s6651_s12, 1  ;;  %s6657_s22 = scalar_lea.hbm %s7392_s27, 1 }
  0xb8   : > { %p6653_p4 = scmp.ne.s32.totalorder %s6651_s12, %s6652_s25  ;;  %p6658_p11 = scmp.lt.s32.totalorder %s6651_s12, %s7392_s27 }
  0xb9   : > { %p6659_p13 = scmp.lt.s32.totalorder %s6657_s22, %s6652_s25 }
  0xba   : > { %p6655_p7 = pnand %p6653_p4, %p7606_p0 }
  0xbb   : > { %p6660_p1 = por %p6659_p13, %p6658_p11 }
  0xbc   : > { %p6656_p8 = pneg %p6655_p7 }
  0xbe   : > { %p6661_p2 = pnand %p6660_p1, %p6656_p8 }
  0xc0   : > { %6664 = shalt.err (!%p6661_p2)
}
  0xc1   : > { %6294 = dma.hbm_to_vmem [thread:$0]  (!%p7599_p12), %s7646_s20, 16, %s1270_s28, [#allocation22]  }
  0xc2   : > { %s7288_s16 = smov [#allocation24]   ;;  %s1327_s1 = sshll.u32 %s8496_s6, 4  ;;  %s7671_s1 = int_to_ptr.hbm [resolvable:$true] %s1327_s1 }
  0xc3   : > { %s1302_s23 = sshll.u32 %s7288_s16, 4  ;;  %s6680_s12 = sshra.s32 %s7660_s18, 4  ;;  %s1303_s23 = int_to_ptr.vmem [resolvable:$true] %s1302_s23  ;;  %s6681_s12 = int_to_ptr.hbm [resolvable:$true] %s6680_s12 }
  0xc4   : > { %s6682_s25 = scalar_lea.hbm %s6681_s12, 1  ;;  %s6687_s22 = scalar_lea.hbm %s8492_s13, 1 }
  0xc5   : > { %p6683_p3 = scmp.ne.s32.totalorder %s6681_s12, %s6682_s25  ;;  %p6688_p8 = scmp.lt.s32.totalorder %s6681_s12, %s8492_s13 }
  0xc6   : > { %p6689_p11 = scmp.lt.s32.totalorder %s6687_s22, %s6682_s25 }
  0xc7   : > { %p6685_p4 = pnand %p6683_p3, %p7606_p0 }
  0xc8   : > { %p6690_p13 = por %p6689_p11, %p6688_p8 }
  0xc9   : > { %p6686_p7 = pneg %p6685_p4 }
  0xcb   : > { %p6691_p1 = pnand %p6690_p13, %p6686_p7 }
  0xcd   : > { %6694 = shalt.err (!%p6691_p1)
}
  0xce   : > { %6300 = dma.hbm_to_vmem [thread:$0]  (!%p7599_p12), %s7660_s18, 16, %s1303_s23, [#allocation25]  }
  0xcf   : > { %s1372_s20 = sshll.u32 %s8493_s9, 4  ;;  %s7289_s28 = smov [#allocation27]   ;;  %s7682_s20 = int_to_ptr.hbm [resolvable:$true] %s1372_s20 }
  0xd0   : > { %s1329_s16 = sshll.u32 %s7289_s28, 4  ;;  %s6710_s12 = sshra.s32 %s7671_s1, 4  ;;  %s1330_s16 = int_to_ptr.vmem [resolvable:$true] %s1329_s16  ;;  %s6711_s12 = int_to_ptr.hbm [resolvable:$true] %s6710_s12 }
  0xd1   : > { %s6712_s25 = scalar_lea.hbm %s6711_s12, 1  ;;  %s6717_s22 = scalar_lea.hbm %s8496_s6, 1 }
  0xd2   : > { %p6713_p2 = scmp.ne.s32.totalorder %s6711_s12, %s6712_s25  ;;  %p6718_p7 = scmp.lt.s32.totalorder %s6711_s12, %s8496_s6 }
  0xd3   : > { %p6719_p8 = scmp.lt.s32.totalorder %s6717_s22, %s6712_s25 }
  0xd4   : > { %p6715_p3 = pnand %p6713_p2, %p7606_p0 }
  0xd5   : > { %p6720_p11 = por %p6719_p8, %p6718_p7 }
  0xd6   : > { %p6716_p4 = pneg %p6715_p3 }
  0xd8   : > { %p6721_p13 = pnand %p6720_p11, %p6716_p4 }
  0xda   : > { %6724 = shalt.err (!%p6721_p13)
}
  0xdb   : > { %6306 = dma.hbm_to_vmem [thread:$0]  (!%p7599_p12), %s7671_s1, 16, %s1330_s16, [#allocation28]  }
  0xdc   : > { %s7290_s18 = smov [#allocation30]   ;;  %s1133_s28 = sshll.u32 %s7332_s21, 4  ;;  %s7693_s28 = int_to_ptr.hbm [resolvable:$true] %s1133_s28 }
  0xdd   : > { %s1374_s23 = sshll.u32 %s7290_s18, 4  ;;  %s6740_s12 = sshra.s32 %s7682_s20, 4  ;;  %s1375_s23 = int_to_ptr.vmem [resolvable:$true] %s1374_s23  ;;  %s6741_s12 = int_to_ptr.hbm [resolvable:$true] %s6740_s12 }
  0xde   : > { %s6742_s25 = scalar_lea.hbm %s6741_s12, 1  ;;  %s6747_s22 = scalar_lea.hbm %s8493_s9, 1 }
  0xdf   : > { %p6743_p1 = scmp.ne.s32.totalorder %s6741_s12, %s6742_s25  ;;  %p6748_p4 = scmp.lt.s32.totalorder %s6741_s12, %s8493_s9 }
  0xe0   : > { %p6749_p7 = scmp.lt.s32.totalorder %s6747_s22, %s6742_s25 }
  0xe1   : > { %p6745_p2 = pnand %p6743_p1, %p7606_p0 }
  0xe2   : > { %p6750_p8 = por %p6749_p7, %p6748_p4 }
  0xe3   : > { %p6746_p3 = pneg %p6745_p2 }
  0xe5   : > { %p6751_p11 = pnand %p6750_p8, %p6746_p3 }
  0xe7   : > { %6754 = shalt.err (!%p6751_p11)
}
  0xe8   : > { %6312 = dma.hbm_to_vmem [thread:$0]  (!%p7599_p12), %s7682_s20, 16, %s1375_s23, [#allocation31]  }
  0xe9   : > { %s1161_s1 = sshll.u32 %s7342_s29, 4  ;;  %s7291_s16 = smov [#allocation6]   ;;  %s7704_s1 = int_to_ptr.hbm [resolvable:$true] %s1161_s1 }
  0xea   : > { %s1135_s18 = sshll.u32 %s7291_s16, 4  ;;  %s6770_s12 = sshra.s32 %s7693_s28, 4  ;;  %s1136_s18 = int_to_ptr.vmem [resolvable:$true] %s1135_s18  ;;  %s6771_s12 = int_to_ptr.hbm [resolvable:$true] %s6770_s12 }
  0xeb   : > { %s6772_s25 = scalar_lea.hbm %s6771_s12, 1536  ;;  %s6777_s22 = scalar_lea.hbm %s7332_s21, 1536 }
  0xec   : > { %p6773_p13 = scmp.ne.s32.totalorder %s6771_s12, %s6772_s25  ;;  %p6778_p3 = scmp.lt.s32.totalorder %s6771_s12, %s7332_s21 }
  0xed   : > { %p6779_p4 = scmp.lt.s32.totalorder %s6777_s22, %s6772_s25 }
  0xee   : > { %p6775_p1 = pnand %p6773_p13, %p7606_p0 }
  0xef   : > { %p6780_p7 = por %p6779_p4, %p6778_p3 }
  0xf0   : > { %p6776_p2 = pneg %p6775_p1 }
  0xf2   : > { %p6781_p8 = pnand %p6780_p7, %p6776_p2 }
  0xf4   : > { %6784 = shalt.err (!%p6781_p8)
}
  0xf5   : > { %s8513_s20 = smov 8   ;;  %s8514_s23 = smov 128  }
  0xf6   : > { %6267 = dma.hbm_to_vmem [thread:$0]  (!%p7599_p12), %s7693_s28, 24576, %s1136_s18, [#allocation7], %s8514_s23, %s8514_s23, %s8513_s20  }
  0xf7   : > { %s7292_s16 = smov [#allocation11]   ;;  %s1189_s6 = sshll.u32 %s8494_s8, 4  ;;  %s7718_s6 = int_to_ptr.hbm [resolvable:$true] %s1189_s6 }
  0xf8   : > { %s1163_s3 = sshll.u32 %s7292_s16, 4  ;;  %s6800_s12 = sshra.s32 %s7704_s1, 4  ;;  %s1164_s3 = int_to_ptr.vmem [resolvable:$true] %s1163_s3  ;;  %s6801_s12 = int_to_ptr.hbm [resolvable:$true] %s6800_s12 }
  0xf9   : > { %s6802_s25 = scalar_lea.hbm %s6801_s12, 8  ;;  %s6807_s22 = scalar_lea.hbm %s7342_s29, 8 }
  0xfa   : > { %p6803_p11 = scmp.ne.s32.totalorder %s6801_s12, %s6802_s25  ;;  %p6808_p2 = scmp.lt.s32.totalorder %s6801_s12, %s7342_s29 }
  0xfb   : > { %p6809_p3 = scmp.lt.s32.totalorder %s6807_s22, %s6802_s25 }
  0xfc   : > { %p6805_p13 = pnand %p6803_p11, %p7606_p0 }
  0xfd   : > { %p6810_p4 = por %p6809_p3, %p6808_p2 }
  0xfe   : > { %p6806_p1 = pneg %p6805_p13 }
 0x100   : > { %p6811_p7 = pnand %p6810_p4, %p6806_p1 }
 0x102   : > { %6814 = shalt.err (!%p6811_p7)
}
 0x103   : > { %6273 = dma.hbm_to_vmem [thread:$0]  (!%p7599_p12), %s7704_s1, 128, %s1164_s3, [#allocation10], %s8512_s11, %s8512_s11, %s8511_s0  }
 0x104   : > { %s1217_s28 = sshll.u32 %s8489_s19, 4  ;;  %s7293_s18 = smov [#allocation14]   ;;  %s7732_s28 = int_to_ptr.hbm [resolvable:$true] %s1217_s28 }
 0x105   : > { %s1191_s16 = sshll.u32 %s7293_s18, 4  ;;  %s6830_s12 = sshra.s32 %s7718_s6, 4  ;;  %s1192_s16 = int_to_ptr.vmem [resolvable:$true] %s1191_s16  ;;  %s6831_s12 = int_to_ptr.hbm [resolvable:$true] %s6830_s12 }
 0x106   : > { %s6832_s25 = scalar_lea.hbm %s6831_s12, 8  ;;  %s6837_s22 = scalar_lea.hbm %s8494_s8, 8 }
 0x107   : > { %p6833_p8 = scmp.ne.s32.totalorder %s6831_s12, %s6832_s25  ;;  %p6838_p1 = scmp.lt.s32.totalorder %s6831_s12, %s8494_s8 }
 0x108   : > { %p6839_p2 = scmp.lt.s32.totalorder %s6837_s22, %s6832_s25 }
 0x109   : > { %p6835_p11 = pnand %p6833_p8, %p7606_p0 }
 0x10a   : > { %p6840_p3 = por %p6839_p2, %p6838_p1 }
 0x10b   : > { %p6836_p13 = pneg %p6835_p11 }
 0x10d   : > { %p6841_p4 = pnand %p6840_p3, %p6836_p13 }
 0x10f   : > { %6844 = shalt.err (!%p6841_p4)
}
 0x110   : > { %6279 = dma.hbm_to_vmem [thread:$0]  (!%p7599_p12), %s7718_s6, 128, %s1192_s16, [#allocation13], %s8512_s11, %s8512_s11, %s8511_s0  }
 0x111   : > { %s7294_s3 = smov [#allocation17]   ;;  %s1246_s18 = sshll.u32 %s7372_s30, 4  ;;  %s7746_s18 = int_to_ptr.hbm [resolvable:$true] %s1246_s18 }
 0x112   : > { %s1219_s1 = sshll.u32 %s7294_s3, 4  ;;  %s6860_s12 = sshra.s32 %s7732_s28, 4  ;;  %s1220_s1 = int_to_ptr.vmem [resolvable:$true] %s1219_s1  ;;  %s6861_s12 = int_to_ptr.hbm [resolvable:$true] %s6860_s12 }
 0x113   : > { %s6862_s25 = scalar_lea.hbm %s6861_s12, 1536  ;;  %s6867_s22 = scalar_lea.hbm %s8489_s19, 1536 }
 0x114   : > { %p6863_p7 = scmp.ne.s32.totalorder %s6861_s12, %s6862_s25  ;;  %p6868_p13 = scmp.lt.s32.totalorder %s6861_s12, %s8489_s19 }
 0x115   : > { %p6869_p1 = scmp.lt.s32.totalorder %s6867_s22, %s6862_s25 }
 0x116   : > { %p6865_p8 = pnand %p6863_p7, %p7606_p0 }
 0x117   : > { %p6870_p2 = por %p6869_p1, %p6868_p13 }
 0x118   : > { %p6866_p11 = pneg %p6865_p8 }
 0x11a   : > { %p6871_p3 = pnand %p6870_p2, %p6866_p11 }
 0x11c   : > { %6874 = shalt.err (!%p6871_p3)
}
 0x11d   : > { %6285 = dma.hbm_to_vmem [thread:$0]  (!%p7599_p12), %s7732_s28, 24576, %s1220_s1, [#allocation16], %s8514_s23, %s8514_s23, %s8513_s20  }
 0x11e   : > { %s1279_s6 = sshll.u32 %s8495_s4, 4  ;;  %s7295_s0 = smov [#allocation20]   ;;  %s7760_s6 = int_to_ptr.hbm [resolvable:$true] %s1279_s6 }
 0x11f   : > { %s1248_s11 = sshll.u32 %s7295_s0, 4  ;;  %s6890_s16 = sshra.s32 %s7746_s18, 4  ;;  %s1249_s11 = int_to_ptr.vmem [resolvable:$true] %s1248_s11  ;;  %s6891_s16 = int_to_ptr.hbm [resolvable:$true] %s6890_s16 }
 0x120   : > { %s6892_s3 = scalar_lea.hbm %s6891_s16, 1  ;;  %s6897_s12 = scalar_lea.hbm %s7372_s30, 1 }
 0x121   : > { %p6893_p4 = scmp.ne.s32.totalorder %s6891_s16, %s6892_s3  ;;  %p6898_p11 = scmp.lt.s32.totalorder %s6891_s16, %s7372_s30 }
 0x122   : > { %p6899_p13 = scmp.lt.s32.totalorder %s6897_s12, %s6892_s3 }
 0x123   : > { %p6895_p7 = pnand %p6893_p4, %p7606_p0 }
 0x124   : > { %p6900_p1 = por %p6899_p13, %p6898_p11 }
 0x125   : > { %p6896_p8 = pneg %p6895_p7 }
 0x127   : > { %p6901_p2 = pnand %p6900_p1, %p6896_p8 }
 0x129   : > { %6904 = shalt.err (!%p6901_p2)
}
 0x12a   : > { %s8515_s28 = sld [smem:[#allocation68_spill]]  ;;  %s7296_s1 = smov [#allocation23]  }
 0x12b   : > { %6291 = dma.hbm_to_vmem [thread:$0]  (!%p7599_p12), %s7746_s18, 16, %s1249_s11, [#allocation19]  }
 0x12c   : > { %s1281_s25 = sshll.u32 %s7296_s1, 4  ;;  %s6920_s0 = sshra.s32 %s7760_s6, 4  ;;  %s1282_s25 = int_to_ptr.vmem [resolvable:$true] %s1281_s25  ;;  %s6921_s0 = int_to_ptr.hbm [resolvable:$true] %s6920_s0 }
 0x12d   : > { %s6922_s16 = scalar_lea.hbm %s6921_s0, 1  ;;  %s6927_s3 = scalar_lea.hbm %s8495_s4, 1 }
 0x12e   : > { %p6923_p3 = scmp.ne.s32.totalorder %s6921_s0, %s6922_s16  ;;  %p6928_p8 = scmp.lt.s32.totalorder %s6921_s0, %s8495_s4 }
 0x12f   : > { %p6929_p11 = scmp.lt.s32.totalorder %s6927_s3, %s6922_s16 }
 0x130   : > { %s1312_s22 = sshll.u32 %s8515_s28, 4  ;;  %p6925_p4 = pnand %p6923_p3, %p7606_p0  ;;  %s7771_s22 = int_to_ptr.hbm [resolvable:$true] %s1312_s22 }
 0x131   : > { %p6930_p13 = por %p6929_p11, %p6928_p8 }
 0x132   : > { %p6926_p7 = pneg %p6925_p4 }
 0x134   : > { %p6931_p1 = pnand %p6930_p13, %p6926_p7 }
 0x136   : > { %6934 = shalt.err (!%p6931_p1)
}
 0x137   : > { %s8516_s18 = sld [smem:[#allocation72_spill]]  ;;  %s7297_s12 = smov [#allocation26]  }
 0x138   : > { %6297 = dma.hbm_to_vmem [thread:$0]  (!%p7599_p12), %s7760_s6, 16, %s1282_s25, [#allocation22]  }
 0x139   : > { %s1314_s1 = sshll.u32 %s7297_s12, 4  ;;  %s6950_s0 = sshra.s32 %s7771_s22, 4  ;;  %s1315_s1 = int_to_ptr.vmem [resolvable:$true] %s1314_s1  ;;  %s6951_s0 = int_to_ptr.hbm [resolvable:$true] %s6950_s0 }
 0x13a   : > { %s6952_s16 = scalar_lea.hbm %s6951_s0, 1  ;;  %s6957_s3 = scalar_lea.hbm %s8515_s28, 1 }
 0x13b   : > { %p6953_p2 = scmp.ne.s32.totalorder %s6951_s0, %s6952_s16  ;;  %p6958_p7 = scmp.lt.s32.totalorder %s6951_s0, %s8515_s28 }
 0x13c   : > { %p6959_p8 = scmp.lt.s32.totalorder %s6957_s3, %s6952_s16 }
 0x13d   : > { %s1342_s11 = sshll.u32 %s8516_s18, 4  ;;  %p6955_p3 = pnand %p6953_p2, %p7606_p0  ;;  %s7782_s11 = int_to_ptr.hbm [resolvable:$true] %s1342_s11 }
 0x13e   : > { %p6960_p11 = por %p6959_p8, %p6958_p7 }
 0x13f   : > { %p6956_p4 = pneg %p6955_p3 }
 0x141   : > { %p6961_p13 = pnand %p6960_p11, %p6956_p4 }
 0x143   : > { %6964 = shalt.err (!%p6961_p13)
}
 0x144   : > { %s8517_s6 = sld [smem:[#allocation80_spill]]  ;;  %s7298_s25 = smov [#allocation29]  }
 0x145   : > { %6303 = dma.hbm_to_vmem [thread:$0]  (!%p7599_p12), %s7771_s22, 16, %s1315_s1, [#allocation25]  }
 0x146   : > { %s1344_s12 = sshll.u32 %s7298_s25, 4  ;;  %s6980_s0 = sshra.s32 %s7782_s11, 4  ;;  %s1345_s12 = int_to_ptr.vmem [resolvable:$true] %s1344_s12  ;;  %s6981_s0 = int_to_ptr.hbm [resolvable:$true] %s6980_s0 }
 0x147   : > { %s6982_s16 = scalar_lea.hbm %s6981_s0, 1  ;;  %s6987_s3 = scalar_lea.hbm %s8516_s18, 1 }
 0x148   : > { %p6983_p1 = scmp.ne.s32.totalorder %s6981_s0, %s6982_s16  ;;  %p6988_p4 = scmp.lt.s32.totalorder %s6981_s0, %s8516_s18 }
 0x149   : > { %p6989_p7 = scmp.lt.s32.totalorder %s6987_s3, %s6982_s16 }
 0x14a   : > { %s1384_s4 = sshll.u32 %s8517_s6, 4  ;;  %p6985_p2 = pnand %p6983_p1, %p7606_p0  ;;  %s7793_s4 = int_to_ptr.hbm [resolvable:$true] %s1384_s4 }
 0x14b   : > { %p6990_p8 = por %p6989_p7, %p6988_p4 }
 0x14c   : > { %p6986_p3 = pneg %p6985_p2 }
 0x14e   : > { %p6991_p11 = pnand %p6990_p8, %p6986_p3 }
 0x150   : > { %6994 = shalt.err (!%p6991_p11)
}
 0x151   : > { %s8518_s22 = sld [smem:[#allocation86_spill]]  ;;  %s7299_s25 = smov [#allocation32]  }
 0x152   : > { %6309 = dma.hbm_to_vmem [thread:$0]  (!%p7599_p12), %s7782_s11, 16, %s1345_s12, [#allocation28]  }
 0x153   : > { %s1386_s8 = sshll.u32 %s7299_s25, 4  ;;  %s7010_s0 = sshra.s32 %s7793_s4, 4  ;;  %s1387_s8 = int_to_ptr.vmem [resolvable:$true] %s1386_s8  ;;  %s7011_s0 = int_to_ptr.hbm [resolvable:$true] %s7010_s0 }
 0x154   : > { %s7012_s16 = scalar_lea.hbm %s7011_s0, 8  ;;  %s7017_s3 = scalar_lea.hbm %s8517_s6, 8 }
 0x155   : > { %p7013_p13 = scmp.ne.s32.totalorder %s7011_s0, %s7012_s16  ;;  %p7018_p3 = scmp.lt.s32.totalorder %s7011_s0, %s8517_s6 }
 0x156   : > { %p7019_p4 = scmp.lt.s32.totalorder %s7017_s3, %s7012_s16 }
 0x157   : > { %s1410_s1 = sshll.u32 %s8518_s22, 4  ;;  %p7015_p1 = pnand %p7013_p13, %p7606_p0  ;;  %s7804_s1 = int_to_ptr.hbm [resolvable:$true] %s1410_s1 }
 0x158   : > { %p7020_p7 = por %p7019_p4, %p7018_p3 }
 0x159   : > { %p7016_p2 = pneg %p7015_p1 }
 0x15b   : > { %p7021_p8 = pnand %p7020_p7, %p7016_p2 }
 0x15d   : > { %7024 = shalt.err (!%p7021_p8)
}
 0x15e   : > { %6315 = dma.hbm_to_vmem [thread:$0]  (!%p7599_p12), %s7793_s4, 128, %s1387_s8, [#allocation31]  }
 0x15f   : > { %s7300_s11 = smov [#allocation33]   ;;  %s7040_s25 = sshra.s32 %s7804_s1, 4  ;;  %s7041_s25 = int_to_ptr.hbm [resolvable:$true] %s7040_s25 }
 0x160   : > { %s1412_s12 = sshll.u32 %s7300_s11, 4  ;;  %s7042_s9 = scalar_lea.hbm %s7041_s25, 192  ;;  %s1413_s12 = int_to_ptr.vmem [resolvable:$true] %s1412_s12 }
 0x161   : > { %p7043_p11 = scmp.ne.s32.totalorder %s7041_s25, %s7042_s9  ;;  %s7047_s0 = scalar_lea.hbm %s8518_s22, 192 }
 0x162   : > { %p7048_p2 = scmp.lt.s32.totalorder %s7041_s25, %s8518_s22  ;;  %p7049_p3 = scmp.lt.s32.totalorder %s7047_s0, %s7042_s9 }
 0x163   : > { %p7045_p13 = pnand %p7043_p11, %p7606_p0 }
 0x164   : > { %p7050_p4 = por %p7049_p3, %p7048_p2 }
 0x165   : > { %p7046_p1 = pneg %p7045_p13 }
 0x167   : > { %p7051_p7 = pnand %p7050_p4, %p7046_p1 }
 0x169   : > { %7054 = shalt.err (!%p7051_p7)
}
 0x16a   : > { %6318 = dma.hbm_to_vmem [thread:$0]  (!%p7599_p12), %s7804_s1, 3072, %s1413_s12, [#allocation34], %s8514_s23, %s8514_s23, %s8513_s20  }
 0x16b   : > { %1456 = sbr.rel (%p7590_p10) target bundleno = 4644 (0x1224), region = 192 }
 0x170   : > { %7171 = dma.done.wait (%p6329_p9), [#allocation7], 24576  }
 0x171   : > { %7173 = vsyncadd (%p6329_p9), [#allocation7], 4294942720 }
 0x172   : > { %7175 = dma.done.wait (%p6329_p9), [#allocation10], 256  }
 0x173   : > { %7177 = vsyncadd (%p6329_p9), [#allocation10], 4294967040 }
 0x174   : > { %7179 = dma.done.wait (%p6329_p9), [#allocation13], 24704  }
 0x175   : > { %7181 = vsyncadd (%p6329_p9), [#allocation13], 4294942592 }
 0x176   : > { %7183 = dma.done.wait (%p6329_p9), [#allocation16], 24704  }
 0x177   : > { %7185 = vsyncadd (%p6329_p9), [#allocation16], 4294942592 }
 0x178   : > { %7187 = dma.done.wait (%p6329_p9), [#allocation19], 144  }
 0x179   : > { %7189 = vsyncadd (%p6329_p9), [#allocation19], 4294967152 }
 0x17a   : > { %7191 = dma.done.wait (%p6329_p9), [#allocation22], 32  }
 0x17b   : > { %7193 = vsyncadd (%p6329_p9), [#allocation22], 4294967264 }
 0x17c   : > { %7195 = dma.done.wait (%p6329_p9), [#allocation25], 32  }
 0x17d   : > { %7197 = vsyncadd (%p6329_p9), [#allocation25], 4294967264 }
 0x17e   : > { %7199 = dma.done.wait (%p6329_p9), [#allocation28], 32  }
 0x17f   : > { %7201 = vsyncadd (%p6329_p9), [#allocation28], 4294967264 }
 0x180   : > { %7203 = dma.done.wait (%p6329_p9), [#allocation31], 144  }
 0x181   : > { %7205 = vsyncadd (%p6329_p9), [#allocation31], 4294967152 }
 0x182   : > { %7207 = dma.done.wait (%p6329_p9), [#allocation34], 3072  }
 0x183   : > { %7209 = vsyncadd (%p6329_p9), [#allocation34], 4294964224  ;;  %p1668_p10 = scmp.lt.s32.totalorder %s7560_s15, 1  ;;  %vm1681_vm0 = vcmask 523264   ;;  %vm1684_vm1 = vcmask 517120   ;;  %v7301_v0 = vmov 0.0  }
 0x184   : > { %1682 = vst.msk [vmem:[#allocation2] sm:$0xff] %vm1681_vm0, %v7301_v0  ;;  %s8519_s8 = sld [smem:[#allocation51_spill]]  ;;  %v1721_v1 = vld [vmem:[#allocation6 + $0xb8] sm:$0xff]  ;;  %v1720_v2 = vld [vmem:[#allocation6 + $0xb0] sm:$0xff]  ;;  %v1719_v6 = vld [vmem:[#allocation6 + $0xa8] sm:$0xff]  ;;  %vm1688_vm2 = vcmask 521216  }
 0x185   : > { %1683 = vst.msk [vmem:[#allocation2 + $0x8] sm:$0xff] %vm1681_vm0, %v7301_v0  ;;  %s7873_s9 = scalar_select %p1668_p10, %s7560_s15, 1  ;;  %v1712_v3 = vld [vmem:[#allocation6 + $0x78] sm:$0xff]  ;;  %1804 = vmatpush.msra.mxu2 %v1721_v1  ;;  %v1711_v5 = vld [vmem:[#allocation6 + $0x70] sm:$0xff]  ;;  %v1710_v8 = vld [vmem:[#allocation6 + $0x68] sm:$0xff]  ;;  %vm3764_vm3 = vcmask 519168  }
 0x186   : > { %1685 = vst.msk [vmem:[#allocation2 + $0x10] sm:$0x3] %vm1684_vm1, %v7301_v0  ;;  %1744 = vmatpush.msra.mxu0 %v1712_v3  ;;  %v1703_v4 = vld [vmem:[#allocation6 + $0x38] sm:$0xff]  ;;  %v1702_v7 = vld [vmem:[#allocation6 + $0x30] sm:$0xff]  ;;  %v1701_v9 = vld [vmem:[#allocation6 + $0x28] sm:$0xff]  ;;  %s8520_s26 = sld [smem:[#allocation54_spill]] }
 0x187   : > { %1686 = vst.msk [vmem:[#allocation3] sm:$0xff] %vm1681_vm0, %v7301_v0  ;;  %s6184_s4 = sshll.u32 %s7873_s9, 4  ;;  %1773 = vmatpush.msra.mxu1 %v1703_v4  ;;  %1805 = vmatpush.msra.mxu2 %v1720_v2  ;;  %v1718_v10 = vld [vmem:[#allocation6 + $0xa0] sm:$0xff]  ;;  %v1717_v12 = vld [vmem:[#allocation6 + $0x98] sm:$0xff]  ;;  %v1716_v14 = vld [vmem:[#allocation6 + $0x90] sm:$0xff]  ;;  %s8521_s2 = sld [smem:[#allocation52_spill]] }
 0x188   : > { %1687 = vst.msk [vmem:[#allocation3 + $0x8] sm:$0x3] %vm1684_vm1, %v7301_v0  ;;  %1745 = vmatpush.msra.mxu0 %v1711_v5  ;;  %v1709_v11 = vld [vmem:[#allocation6 + $0x60] sm:$0xff]  ;;  %v1708_v15 = vld [vmem:[#allocation6 + $0x58] sm:$0xff]  ;;  %v1707_v18 = vld [vmem:[#allocation6 + $0x50] sm:$0xff]  ;;  %s5995_s20 = sshll.u32 %s7873_s9, 3 }
 0x189   : > { %1774 = vmatpush.msra.mxu1 %v1702_v7  ;;  %1806 = vmatpush.msra.mxu2 %v1719_v6  ;;  %v1700_v13 = vld [vmem:[#allocation6 + $0x20] sm:$0xff]  ;;  %v1699_v17 = vld [vmem:[#allocation6 + $0x18] sm:$0xff]  ;;  %v1715_v20 = vld [vmem:[#allocation6 + $0x88] sm:$0xff]  ;;  %s8522_s1 = sld [smem:[#allocation53_spill]]  ;;  %s5996_s16 = sshll.u32 %s7873_s9, 2  ;;  %vm1690_vm4 = vcmask 261120  }
 0x18a   : > { %s1672_s7 = scalar_lea.vmem %s8519_s8, %s6184_s4  ;;  %1746 = vmatpush.msra.mxu0 %v1710_v8  ;;  %v1698_v21 = vld [vmem:[#allocation6 + $0x10] sm:$0xff]  ;;  %v1706_v22 = vld [vmem:[#allocation6 + $0x48] sm:$0xff]  ;;  %v1714_v24 = vld [vmem:[#allocation6 + $0x80] sm:$0xff]  ;;  %1689 = vst.msk [vmem:[#allocation4] sm:$0x3f] %vm1688_vm2, %v7301_v0  ;;  %s8523_s11 = sld [smem:[#allocation60_spill]] }
 0x18b   : > { %1775 = vmatpush.msra.mxu1 %v1701_v9  ;;  %v7881_v16 = vld [vmem:[%s1672_s7] sm:$0xff]  ;;  %1807 = vmatpush.msra.mxu2 %v1718_v10  ;;  %v7883_v19 = vld [vmem:[%s1672_s7 + $0x8] sm:$0xff]  ;;  %v1850_v33 = vld [vmem:[#allocation6 + $0x138] sm:$0xff]  ;;  %s8525_s25 = sld [smem:[#allocation61_spill]]  ;;  %1691 = vst.msk [vmem:[#allocation5] sm:$0xff] %vm1690_vm4, %v7301_v0  ;;  %vm4720_vm5 = vcmask 64512  }
 0x18c   : > { %1747 = vmatpush.msra.mxu0 %v1709_v11  ;;  %1724 = vst.msk [vmem:[#allocation2 + $0x1] sm:$0xff] %vm1681_vm0, %v7881_v16  ;;  %v1697_v23 = vld [vmem:[#allocation6 + $0x8] sm:$0xff]  ;;  %v1705_v25 = vld [vmem:[#allocation6 + $0x40] sm:$0xff]  ;;  %v1841_v34 = vld [vmem:[#allocation6 + $0xf8] sm:$0xff]  ;;  %1884 = vmatpush.msra.mxu3 %v1850_v33  ;;  %s8526_s0 = sld [smem:[#allocation64_spill]]  ;;  %vm4795_vm6 = vcmask 130048  }
 0x18d   : > { %1776 = vmatpush.msra.mxu1 %v1700_v13  ;;  %1725 = vst.msk [vmem:[#allocation2 + $0x9] sm:$0xff] %vm1681_vm0, %v7883_v19  ;;  %1808 = vmatpush.msra.mxu2 %v1717_v12  ;;  %v1696_v26 = vld [vmem:[#allocation6] sm:$0xff]  ;;  %v1849_v35 = vld [vmem:[#allocation6 + $0x130] sm:$0xff]  ;;  %v1848_v37 = vld [vmem:[#allocation6 + $0x128] sm:$0xff]  ;;  %s1676_s23 = scalar_lea.vmem %s8521_s2, %s5995_s20  ;;  %s8528_s8 = sld [smem:[#allocation69_spill]]  ;;  %vm4828_vm7 = vcmask 1043456  }
 0x18e   : > { %1748 = vmatpush.msra.mxu0 %v1708_v15  ;;  %v1840_v36 = vld [vmem:[#allocation6 + $0xf0] sm:$0xff]  ;;  %1885 = vmatpush.msra.mxu3 %v1849_v35  ;;  %v1839_v38 = vld [vmem:[#allocation6 + $0xe8] sm:$0xff]  ;;  %v1847_v39 = vld [vmem:[#allocation6 + $0x120] sm:$0xff]  ;;  %s8529_s4 = sld [smem:[#allocation62_spill]]  ;;  %vm4821_vm8 = vcmask 31744   ;;  %vm1692_vm9 = vcmask 254976  }
 0x18f   : > { %1777 = vmatpush.msra.mxu1 %v1699_v17  ;;  %1809 = vmatpush.msra.mxu2 %v1716_v14  ;;  %v1838_v40 = vld [vmem:[#allocation6 + $0xe0] sm:$0xff]  ;;  %v1846_v41 = vld [vmem:[#allocation6 + $0x118] sm:$0xff]  ;;  %v1845_v44 = vld [vmem:[#allocation6 + $0x110] sm:$0xff]  ;;  %s1680_s3 = scalar_lea.vmem %s8522_s1, %s5996_s16  ;;  %s8530_s7 = sld [smem:[#allocation78_spill]]  ;;  %1693 = vst.msk [vmem:[#allocation5 + $0x8] sm:$0x3] %vm1692_vm9, %v7301_v0 }
 0x190   : > { %1749 = vmatpush.msra.mxu0 %v1707_v18  ;;  %1886 = vmatpush.msra.mxu3 %v1848_v37  ;;  %v1837_v42 = vld [vmem:[#allocation6 + $0xd8] sm:$0xff]  ;;  %v1836_v45 = vld [vmem:[#allocation6 + $0xd0] sm:$0xff]  ;;  %v1844_v47 = vld [vmem:[#allocation6 + $0x108] sm:$0xff]  ;;  %s8524_s12 = smov %s8523_s11  ;;  %s8532_s20 = sld [smem:[#allocation73_spill]] }
 0x191   : > { %1778 = vmatpush.msra.mxu1 %v1698_v21  ;;  %1810 = vmatpush.msra.mxu2 %v1715_v20  ;;  %v1859_v43 = vld [vmem:[#allocation6 + $0x178] sm:$0xff]  ;;  %v1858_v46 = vld [vmem:[#allocation6 + $0x170] sm:$0xff]  ;;  %v1835_v48 = vld [vmem:[#allocation6 + $0xc8] sm:$0xff]  ;;  %s8534_s1 = sld [smem:[#allocation66_spill]] }
 0x192   : > { %1750 = vmatpush.msra.mxu0 %v1706_v22  ;;  %1887 = vmatpush.msra.mxu3 %v1847_v39  ;;  %v1857_v49 = vld [vmem:[#allocation6 + $0x168] sm:$0xff]  ;;  %v1843_v50 = vld [vmem:[#allocation6 + $0x100] sm:$0xff]  ;;  %v1855_v53 = vld [vmem:[#allocation6 + $0x158] sm:$0xff]  ;;  %s8527_s9 = smov %s8526_s0  ;;  %s8535_s16 = sld [smem:[#allocation71_spill]] }
 0x193   : > { %1779 = vmatpush.msra.mxu1 %v1697_v23  ;;  %v1728_v27 = vld [vmem:[#allocation2 + $0x1] sm:$0xff]  ;;  %1811 = vmatpush.msra.mxu2 %v1714_v24  ;;  %v1854_v54 = vld [vmem:[#allocation6 + $0x150] sm:$0xff]  ;;  %v6468_v60 = vld [vmem:[#allocation9] ss:$0 sm:$0xff]  ;;  %s8542_s17 = sld [smem:[#allocation88_spill]] }
 0x194   : > { %v1726_v28 = vld [vmem:[#allocation2] sm:$0xff]  ;;  %1751 = vmatpush.msra.mxu0 %v1705_v25  ;;  %v1789_v30 = vld [vmem:[#allocation2 + $0xa] sm:$0xff]  ;;  %1888 = vmatpush.msra.mxu3 %v1846_v41  ;;  %v1992_v20 = vld [vmem:[#allocation6 + $0x1f8] sm:$0xff] }
 0x195   : > { %v1788_v29 = vld [vmem:[#allocation2 + $0x2] sm:$0xff]  ;;  %1780 = vmatpush.msra.mxu1 %v1696_v26  ;;  %5997 = vmatmul.msk.f32.vlgmr.msra.gmra.mxu0 %vm1681_vm0, %v1728_v27  ;;  %v6469_v63 = vld [vmem:[%s8520_s26] ss:$0 sm:$0xff]  ;;  %v1983_v21 = vld [vmem:[#allocation6 + $0x1b8] sm:$0xff]  ;;  %s8531_s2 = smov %s8530_s7 }
 0x196   : > { %6001 = vmatmul.msk.f32.vlgmr.msra.gmra.mxu2 %vm1681_vm0, %v1788_v29  ;;  %5999 = vmatmul.msk.f32.vlgmr.msra.gmra.mxu1 %vm1681_vm0, %v1726_v28  ;;  %v1729_v31 = vld [vmem:[#allocation2 + $0x9] sm:$0xff]  ;;  %v1834_v51 = vld [vmem:[#allocation6 + $0xc0] sm:$0xff]  ;;  %v1988_v28 = vld [vmem:[#allocation6 + $0x1d8] sm:$0xff] }
 0x197   : > { %v1727_v32 = vld [vmem:[#allocation2 + $0x8] sm:$0xff]  ;;  %1913 = vmatpush.msrb.mxu0 %v1841_v34  ;;  %1944 = vmatpush.msrb.mxu1 %v1859_v43  ;;  %v1856_v52 = vld [vmem:[#allocation6 + $0x160] sm:$0xff]  ;;  %v1991_v22 = vld [vmem:[#allocation6 + $0x1f0] sm:$0xff] }
 0x198   : > { %1889 = vmatpush.msra.mxu3 %v1845_v44  ;;  %v1853_v55 = vld [vmem:[#allocation6 + $0x148] sm:$0xff]  ;;  %v1852_v56 = vld [vmem:[#allocation6 + $0x140] sm:$0xff]  ;;  %2026 = vmatpush.msrb.mxu2 %v1992_v20  ;;  %v1982_v23 = vld [vmem:[#allocation6 + $0x1b0] sm:$0xff] }
 0x199   : > { %1914 = vmatpush.msrb.mxu0 %v1840_v36  ;;  %1945 = vmatpush.msrb.mxu1 %v1858_v46  ;;  %v1990_v24 = vld [vmem:[#allocation6 + $0x1e8] sm:$0xff]  ;;  %v1989_v26 = vld [vmem:[#allocation6 + $0x1e0] sm:$0xff]  ;;  %v1979_v29 = vld [vmem:[#allocation6 + $0x198] sm:$0xff] }
 0x19a   : > { %1890 = vmatpush.msra.mxu3 %v1844_v47  ;;  %2027 = vmatpush.msrb.mxu2 %v1991_v22  ;;  %v1981_v25 = vld [vmem:[#allocation6 + $0x1a8] sm:$0xff]  ;;  %v1980_v27 = vld [vmem:[#allocation6 + $0x1a0] sm:$0xff]  ;;  %v2000_v33 = vld [vmem:[#allocation6 + $0x230] sm:$0xff] }
 0x19b   : > { %1915 = vmatpush.msrb.mxu0 %v1839_v38  ;;  %1946 = vmatpush.msrb.mxu1 %v1857_v49  ;;  %v1986_v34 = vld [vmem:[#allocation6 + $0x1c8] sm:$0xff]  ;;  %v1985_v37 = vld [vmem:[#allocation6 + $0x1c0] sm:$0xff]  ;;  %v1996_v41 = vld [vmem:[#allocation6 + $0x210] sm:$0xff] }
 0x19c   : > { %1891 = vmatpush.msra.mxu3 %v1843_v50  ;;  %2028 = vmatpush.msrb.mxu2 %v1990_v24  ;;  %v1977_v35 = vld [vmem:[#allocation6 + $0x188] sm:$0xff]  ;;  %v1976_v38 = vld [vmem:[#allocation6 + $0x180] sm:$0xff]  ;;  %v2140_v20 = vld [vmem:[#allocation6 + $0x2f0] sm:$0xff] }
 0x19d   : > { %5998 = vmatmul.msk.f32.gmra.mxu0 %vm1681_vm0, %v1729_v31  ;;  %1947 = vmatpush.msrb.mxu1 %v1856_v52  ;;  %v1987_v31 = vld [vmem:[#allocation6 + $0x1d0] sm:$0xff]  ;;  %v1999_v36 = vld [vmem:[#allocation6 + $0x228] sm:$0xff]  ;;  %v1998_v39 = vld [vmem:[#allocation6 + $0x220] sm:$0xff] }
 0x19e   : > { %6002 = vmatmul.msk.f32.gmra.mxu2 %vm1681_vm0, %v1789_v30  ;;  %6000 = vmatmul.msk.f32.gmra.mxu1 %vm1681_vm0, %v1727_v32  ;;  %v2001_v30 = vld [vmem:[#allocation6 + $0x238] sm:$0xff]  ;;  %v1978_v32 = vld [vmem:[#allocation6 + $0x190] sm:$0xff]  ;;  %v1994_v43 = vld [vmem:[#allocation6 + $0x200] sm:$0xff] }
 0x19f   : > { %1916 = vmatpush.msrb.mxu0 %v1838_v40  ;;  %1948 = vmatpush.msrb.mxu1 %v1855_v53  ;;  %v1997_v40 = vld [vmem:[#allocation6 + $0x218] sm:$0xff]  ;;  %v6470_v47 = vld [vmem:[#allocation9 + $0x1] ss:$0 sm:$0xff]  ;;  %v2117_v22 = vld [vmem:[#allocation6 + $0x248] sm:$0xff] }
 0x1a0   : > { %2055 = vmatpush.msrb.mxu3 %v1983_v21  ;;  %2029 = vmatpush.msrb.mxu2 %v1989_v26  ;;  %v6471_v50 = vld [vmem:[%s8520_s26 + $0x1] ss:$0 sm:$0xff]  ;;  %v2126_v21 = vld [vmem:[#allocation6 + $0x288] sm:$0xff] }
 0x1a1   : > { %1917 = vmatpush.msrb.mxu0 %v1837_v42  ;;  %1949 = vmatpush.msrb.mxu1 %v1854_v54  ;;  %v1995_v42 = vld [vmem:[#allocation6 + $0x208] sm:$0xff]  ;;  %v2125_v24 = vld [vmem:[#allocation6 + $0x280] sm:$0xff] }
 0x1a2   : > { %2056 = vmatpush.msrb.mxu3 %v1982_v23  ;;  %2030 = vmatpush.msrb.mxu2 %v1988_v28  ;;  %v2139_v23 = vld [vmem:[#allocation6 + $0x2e8] sm:$0xff]  ;;  %v2138_v26 = vld [vmem:[#allocation6 + $0x2e0] sm:$0xff]  ;;  %v2136_v28 = vld [vmem:[#allocation6 + $0x2d0] sm:$0xff] }
 0x1a3   : > { %1918 = vmatpush.msrb.mxu0 %v1836_v45  ;;  %1950 = vmatpush.msrb.mxu1 %v1853_v55 }
 0x1a4   : > { %2057 = vmatpush.msrb.mxu3 %v1981_v25  ;;  %2031 = vmatpush.msrb.mxu2 %v1987_v31  ;;  %v2116_v25 = vld [vmem:[#allocation6 + $0x240] sm:$0xff] }
 0x1a5   : > { %1919 = vmatpush.msrb.mxu0 %v1835_v48  ;;  %1951 = vmatpush.msrb.mxu1 %v1852_v56 }
 0x1a6   : > { %2058 = vmatpush.msrb.mxu3 %v1980_v27  ;;  %2032 = vmatpush.msrb.mxu2 %v1986_v34  ;;  %v2137_v27 = vld [vmem:[#allocation6 + $0x2d8] sm:$0xff]  ;;  %v6472_v34 = vld [vmem:[#allocation9 + $0x2] ss:$0 sm:$0xff] }
 0x1a7   : > { %1920 = vmatpush.msrb.mxu0 %v1834_v51 }
 0x1a8   : > { %2059 = vmatpush.msrb.mxu3 %v1979_v29  ;;  %2033 = vmatpush.msrb.mxu2 %v1985_v37  ;;  %v2135_v29 = vld [vmem:[#allocation6 + $0x2c8] sm:$0xff]  ;;  %v6473_v37 = vld [vmem:[%s8520_s26 + $0x2] ss:$0 sm:$0xff] }
 0x1a9   : > { %2086 = vmatpush.msra.mxu0 %v2001_v30  ;;  %v2134_v30 = vld [vmem:[#allocation6 + $0x2c0] sm:$0xff] }
 0x1aa   : > { %2060 = vmatpush.msrb.mxu3 %v1978_v32 }
 0x1ab   : > { %2087 = vmatpush.msra.mxu0 %v2000_v33 }
 0x1ac   : > { %2061 = vmatpush.msrb.mxu3 %v1977_v35 }
 0x1ad   : > { %2088 = vmatpush.msra.mxu0 %v1999_v36 }
 0x1ae   : > { %2062 = vmatpush.msrb.mxu3 %v1976_v38 }
 0x1af   : > { %2089 = vmatpush.msra.mxu0 %v1998_v39 }
 0x1b1   : > { %2090 = vmatpush.msra.mxu0 %v1997_v40 }
 0x1b3   : > { %2091 = vmatpush.msra.mxu0 %v1996_v41 }
 0x1b5   : > { %2092 = vmatpush.msra.mxu0 %v1995_v42 }
 0x1b7   : > { %2093 = vmatpush.msra.mxu0 %v1994_v43 }
 0x212   : > { %v1753_v57 = vpop.f32.mrf.mxu0 }
 0x213   : > { %v1782_v58 = vpop.f32.mrf.mxu1 }
 0x214   : > { %v1783_v59 = vadd.f32 %v1782_v58, %v1753_v57 }
 0x219   : > { %v1813_v61 = vpop.f32.mrf.mxu2 }
 0x21a   : > { %v1819_v62 = vadd.f32 %v1813_v61, %v1783_v59  ;;  %v1756_v2 = vpop.f32.mrf.mxu0 }
 0x21b   : > { %v1785_v3 = vpop.f32.mrf.mxu1 }
 0x21c   : > { %v1824_v1 = vmul.f32 %v6468_v60, %v1819_v62  ;;  %v1786_v5 = vadd.f32 %v1785_v3, %v1756_v2 }
 0x21e   : > { %v1829_v4 = vadd.f32 %v6469_v63, %v1824_v1 }
 0x220   : > { %v1831_v6 = vmax.f32 %v1829_v4, 0.0 }
 0x221   : > { %v1816_v7 = vpop.f32.mrf.mxu2 }
 0x222   : > { %1864 = vst.msk [vmem:[#allocation2 + $0x1] sm:$0xff] %vm1681_vm0, %v1831_v6  ;;  %v1820_v8 = vadd.f32 %v1816_v7, %v1786_v5  ;;  %v2132_v5 = vld [vmem:[#allocation6 + $0x2b8] sm:$0xff]  ;;  %v2131_v7 = vld [vmem:[#allocation6 + $0x2b0] sm:$0xff] }
 0x223   : > { %v2123_v6 = vld [vmem:[#allocation6 + $0x278] sm:$0xff]  ;;  %2166 = vmatpush.msra.mxu1 %v2132_v5  ;;  %v2269_v5 = vld [vmem:[#allocation6 + $0x350] sm:$0xff] }
 0x224   : > { %v1825_v9 = vmul.f32 %v6468_v60, %v1820_v8  ;;  %2195 = vmatpush.msra.mxu2 %v2123_v6  ;;  %v2122_v8 = vld [vmem:[#allocation6 + $0x270] sm:$0xff] }
 0x225   : > { %2167 = vmatpush.msra.mxu1 %v2131_v7  ;;  %v2260_v6 = vld [vmem:[#allocation6 + $0x310] sm:$0xff] }
 0x226   : > { %v1830_v10 = vadd.f32 %v6469_v63, %v1825_v9  ;;  %2196 = vmatpush.msra.mxu2 %v2122_v8  ;;  %v2130_v9 = vld [vmem:[#allocation6 + $0x2a8] sm:$0xff]  ;;  %v2282_v7 = vld [vmem:[#allocation6 + $0x3b0] sm:$0xff] }
 0x227   : > { %2168 = vmatpush.msra.mxu1 %v2130_v9  ;;  %v2268_v8 = vld [vmem:[#allocation6 + $0x348] sm:$0xff] }
 0x228   : > { %v1832_v11 = vmax.f32 %v1830_v10, 0.0  ;;  %v2121_v10 = vld [vmem:[#allocation6 + $0x268] sm:$0xff] }
 0x229   : > { %v1868_v12 = vld [vmem:[#allocation2 + $0x1] sm:$0xff]  ;;  %2197 = vmatpush.msra.mxu2 %v2121_v10 }
 0x22a   : > { %v1866_v13 = vld [vmem:[#allocation2] sm:$0xff]  ;;  %1865 = vst.msk [vmem:[#allocation2 + $0x9] sm:$0xff] %vm1681_vm0, %v1832_v11  ;;  %6004 = vmatmul.msk.f32.vlgmr.msra.gmra.mxu3 %vm1681_vm0, %v1868_v12  ;;  %v2259_v9 = vld [vmem:[#allocation6 + $0x308] sm:$0xff] }
 0x22b   : > { %6006 = vmatmul.msk.f32.vlgmr.msrb.gmra.mxu0 %vm1681_vm0, %v1866_v13  ;;  %v2129_v11 = vld [vmem:[#allocation6 + $0x2a0] sm:$0xff]  ;;  %v2128_v13 = vld [vmem:[#allocation6 + $0x298] sm:$0xff]  ;;  %v2281_v10 = vld [vmem:[#allocation6 + $0x3a8] sm:$0xff] }
 0x22c   : > { %v2120_v12 = vld [vmem:[#allocation6 + $0x260] sm:$0xff]  ;;  %2169 = vmatpush.msra.mxu1 %v2129_v11 }
 0x22d   : > { %2198 = vmatpush.msra.mxu2 %v2120_v12  ;;  %v2267_v11 = vld [vmem:[#allocation6 + $0x340] sm:$0xff] }
 0x22e   : > { %2170 = vmatpush.msra.mxu1 %v2128_v13  ;;  %v2258_v12 = vld [vmem:[#allocation6 + $0x300] sm:$0xff] }
 0x22f   : > { %v2280_v13 = vld [vmem:[#allocation6 + $0x3a0] sm:$0xff] }
 0x231   : > { %v1867_v14 = vld [vmem:[#allocation2 + $0x8] sm:$0xff] }
 0x232   : > { %v1869_v15 = vld [vmem:[#allocation2 + $0x9] sm:$0xff] }
 0x233   : > { %v1928_v17 = vld [vmem:[#allocation2 + $0x2] sm:$0xff]  ;;  %6005 = vmatmul.msk.f32.gmra.mxu3 %vm1681_vm0, %v1869_v15  ;;  %6007 = vmatmul.msk.f32.gmra.mxu0 %vm1681_vm0, %v1867_v14  ;;  %v1929_v18 = vld [vmem:[#allocation2 + $0xa] sm:$0xff]  ;;  %v2119_v14 = vld [vmem:[#allocation6 + $0x258] sm:$0xff] }
 0x234   : > { %6008 = vmatmul.msk.f32.vlgmr.msrb.gmra.mxu1 %vm1681_vm0, %v1928_v17  ;;  %v2141_v15 = vld [vmem:[#allocation6 + $0x2f8] sm:$0xff]  ;;  %2199 = vmatpush.msra.mxu2 %v2119_v14  ;;  %v2127_v17 = vld [vmem:[#allocation6 + $0x290] sm:$0xff] }
 0x235   : > { %2226 = vmatpush.msra.mxu3 %v2141_v15  ;;  %2171 = vmatpush.msra.mxu1 %v2127_v17  ;;  %v2279_v14 = vld [vmem:[#allocation6 + $0x398] sm:$0xff]  ;;  %v2278_v15 = vld [vmem:[#allocation6 + $0x390] sm:$0xff]  ;;  %v2277_v17 = vld [vmem:[#allocation6 + $0x388] sm:$0xff] }
 0x237   : > { %2227 = vmatpush.msra.mxu3 %v2140_v20  ;;  %2172 = vmatpush.msra.mxu1 %v2126_v21 }
 0x239   : > { %2228 = vmatpush.msra.mxu3 %v2139_v23  ;;  %2173 = vmatpush.msra.mxu1 %v2125_v24  ;;  %v6474_v23 = vld [vmem:[#allocation9 + $0x3] ss:$0 sm:$0xff] }
 0x23b   : > { %2229 = vmatpush.msra.mxu3 %v2138_v26  ;;  %v6475_v26 = vld [vmem:[%s8520_s26 + $0x3] ss:$0 sm:$0xff] }
 0x23c   : > { %6009 = vmatmul.msk.f32.gmra.mxu1 %vm1681_vm0, %v1929_v18  ;;  %v2118_v18 = vld [vmem:[#allocation6 + $0x250] sm:$0xff] }
 0x23d   : > { %2200 = vmatpush.msra.mxu2 %v2118_v18  ;;  %2230 = vmatpush.msra.mxu3 %v2137_v27  ;;  %v2276_v18 = vld [vmem:[#allocation6 + $0x380] sm:$0xff] }
 0x23f   : > { %2201 = vmatpush.msra.mxu2 %v2117_v22  ;;  %2231 = vmatpush.msra.mxu3 %v2136_v28 }
 0x241   : > { %2202 = vmatpush.msra.mxu2 %v2116_v25  ;;  %2232 = vmatpush.msra.mxu3 %v2135_v29 }
 0x243   : > { %2233 = vmatpush.msra.mxu3 %v2134_v30 }
 0x2a8   : > { %v1922_v44 = vpop.f32.mrf.mxu0 }
 0x2ad   : > { %v1893_v45 = vpop.f32.mrf.mxu3 }
 0x2ae   : > { %v1923_v46 = vadd.f32 %v1922_v44, %v1893_v45 }
 0x2b0   : > { %v1925_v52 = vpop.f32.mrf.mxu0 }
 0x2b1   : > { %v1953_v48 = vpop.f32.mrf.mxu1 }
 0x2b2   : > { %v1959_v49 = vadd.f32 %v1953_v48, %v1923_v46 }
 0x2b4   : > { %v1964_v51 = vmul.f32 %v6470_v47, %v1959_v49 }
 0x2b6   : > { %v1969_v53 = vadd.f32 %v6471_v50, %v1964_v51  ;;  %v1896_v54 = vpop.f32.mrf.mxu3 }
 0x2b7   : > { %v1926_v55 = vadd.f32 %v1925_v52, %v1896_v54 }
 0x2b8   : > { %v7906_v56 = vadd.f32 %v1969_v53, %v7881_v16 }
 0x2b9   : > { %v1956_v57 = vpop.f32.mrf.mxu1 }
 0x2ba   : > { %v1973_v58 = vmax.f32 %v7906_v56, 0.0  ;;  %v1960_v59 = vadd.f32 %v1956_v57, %v1926_v55  ;;  %v2274_v55 = vld [vmem:[#allocation6 + $0x378] sm:$0xff] }
 0x2bb   : > { %v2265_v57 = vld [vmem:[#allocation6 + $0x338] sm:$0xff]  ;;  %2308 = vmatpush.msrb.mxu0 %v2274_v55  ;;  %v2422_v55 = vld [vmem:[#allocation6 + $0x470] sm:$0xff] }
 0x2bc   : > { %2006 = vst.msk [vmem:[#allocation2 + $0x1] sm:$0xff] %vm1681_vm0, %v1973_v58  ;;  %v1965_v60 = vmul.f32 %v6470_v47, %v1960_v59  ;;  %2337 = vmatpush.msrb.mxu1 %v2265_v57  ;;  %v2273_v59 = vld [vmem:[#allocation6 + $0x370] sm:$0xff]  ;;  %v2408_v57 = vld [vmem:[#allocation6 + $0x408] sm:$0xff] }
 0x2bd   : > { %2309 = vmatpush.msrb.mxu0 %v2273_v59  ;;  %v2399_v59 = vld [vmem:[#allocation6 + $0x3c8] sm:$0xff] }
 0x2be   : > { %v1970_v61 = vadd.f32 %v6471_v50, %v1965_v60  ;;  %v2264_v60 = vld [vmem:[#allocation6 + $0x330] sm:$0xff] }
 0x2bf   : > { %2338 = vmatpush.msrb.mxu1 %v2264_v60  ;;  %v2421_v60 = vld [vmem:[#allocation6 + $0x468] sm:$0xff] }
 0x2c0   : > { %v7913_v62 = vadd.f32 %v1970_v61, %v7883_v19  ;;  %v2272_v61 = vld [vmem:[#allocation6 + $0x368] sm:$0xff] }
 0x2c1   : > { %2310 = vmatpush.msrb.mxu0 %v2272_v61  ;;  %v2407_v61 = vld [vmem:[#allocation6 + $0x400] sm:$0xff] }
 0x2c2   : > { %v1974_v63 = vmax.f32 %v7913_v62, 0.0 }
 0x2c3   : > { %v2010_v1 = vld [vmem:[#allocation2 + $0x1] sm:$0xff] }
 0x2c4   : > { %v2008_v2 = vld [vmem:[#allocation2] sm:$0xff]  ;;  %2007 = vst.msk [vmem:[#allocation2 + $0x9] sm:$0xff] %vm1681_vm0, %v1974_v63  ;;  %6011 = vmatmul.msk.f32.vlgmr.msrb.gmra.mxu2 %vm1681_vm0, %v2010_v1  ;;  %v2263_v1 = vld [vmem:[#allocation6 + $0x328] sm:$0xff] }
 0x2c5   : > { %6013 = vmatmul.msk.f32.vlgmr.msrb.gmra.mxu3 %vm1681_vm0, %v2008_v2  ;;  %2339 = vmatpush.msrb.mxu1 %v2263_v1  ;;  %v2271_v2 = vld [vmem:[#allocation6 + $0x360] sm:$0xff] }
 0x2c6   : > { %2311 = vmatpush.msrb.mxu0 %v2271_v2  ;;  %v2398_v1 = vld [vmem:[#allocation6 + $0x3c0] sm:$0xff] }
 0x2c7   : > { %v2420_v2 = vld [vmem:[#allocation6 + $0x460] sm:$0xff] }
 0x2cb   : > { %v2011_v16 = vld [vmem:[#allocation2 + $0x9] sm:$0xff] }
 0x2cc   : > { %v2009_v3 = vld [vmem:[#allocation2 + $0x8] sm:$0xff]  ;;  %6012 = vmatmul.msk.f32.gmra.mxu2 %vm1681_vm0, %v2011_v16  ;;  %v2262_v16 = vld [vmem:[#allocation6 + $0x320] sm:$0xff] }
 0x2cd   : > { %v2070_v4 = vld [vmem:[#allocation2 + $0x2] sm:$0xff]  ;;  %6014 = vmatmul.msk.f32.gmra.mxu3 %vm1681_vm0, %v2009_v3  ;;  %v2071_v19 = vld [vmem:[#allocation2 + $0xa] sm:$0xff]  ;;  %2340 = vmatpush.msrb.mxu1 %v2262_v16  ;;  %v2270_v3 = vld [vmem:[#allocation6 + $0x358] sm:$0xff] }
 0x2ce   : > { %6015 = vmatmul.msk.f32.vlgmr.msra.gmra.mxu0 %vm1681_vm0, %v2070_v4  ;;  %v2261_v4 = vld [vmem:[#allocation6 + $0x318] sm:$0xff] }
 0x2cf   : > { %2312 = vmatpush.msrb.mxu0 %v2270_v3  ;;  %2341 = vmatpush.msrb.mxu1 %v2261_v4  ;;  %v2419_v16 = vld [vmem:[#allocation6 + $0x458] sm:$0xff]  ;;  %v2418_v3 = vld [vmem:[#allocation6 + $0x450] sm:$0xff]  ;;  %v2417_v4 = vld [vmem:[#allocation6 + $0x448] sm:$0xff] }
 0x2d1   : > { %2313 = vmatpush.msrb.mxu0 %v2269_v5  ;;  %2342 = vmatpush.msrb.mxu1 %v2260_v6 }
 0x2d3   : > { %2314 = vmatpush.msrb.mxu0 %v2268_v8  ;;  %2343 = vmatpush.msrb.mxu1 %v2259_v9  ;;  %v6476_v8 = vld [vmem:[#allocation9 + $0x4] ss:$0 sm:$0xff] }
 0x2d5   : > { %2315 = vmatpush.msrb.mxu0 %v2267_v11  ;;  %2344 = vmatpush.msrb.mxu1 %v2258_v12  ;;  %v6477_v11 = vld [vmem:[%s8520_s26 + $0x4] ss:$0 sm:$0xff] }
 0x2d6   : > { %6016 = vmatmul.msk.f32.gmra.mxu0 %vm1681_vm0, %v2071_v19  ;;  %v2283_v19 = vld [vmem:[#allocation6 + $0x3b8] sm:$0xff] }
 0x2d7   : > { %2368 = vmatpush.msrb.mxu2 %v2283_v19  ;;  %v2416_v19 = vld [vmem:[#allocation6 + $0x440] sm:$0xff] }
 0x2d9   : > { %2369 = vmatpush.msrb.mxu2 %v2282_v7 }
 0x2db   : > { %2370 = vmatpush.msrb.mxu2 %v2281_v10 }
 0x2dd   : > { %2371 = vmatpush.msrb.mxu2 %v2280_v13 }
 0x2df   : > { %2372 = vmatpush.msrb.mxu2 %v2279_v14 }
 0x2e1   : > { %2373 = vmatpush.msrb.mxu2 %v2278_v15 }
 0x2e3   : > { %2374 = vmatpush.msrb.mxu2 %v2277_v17 }
 0x2e5   : > { %2375 = vmatpush.msrb.mxu2 %v2276_v18 }
 0x347   : > { %v2035_v31 = vpop.f32.mrf.mxu2 }
 0x348   : > { %v2064_v32 = vpop.f32.mrf.mxu3 }
 0x349   : > { %v2065_v33 = vadd.f32 %v2064_v32, %v2035_v31 }
 0x34b   : > { %v2095_v35 = vpop.f32.mrf.mxu0 }
 0x34c   : > { %v2101_v36 = vadd.f32 %v2095_v35, %v2065_v33 }
 0x34e   : > { %v2106_v38 = vmul.f32 %v6472_v34, %v2101_v36 }
 0x34f   : > { %v2038_v40 = vpop.f32.mrf.mxu2 }
 0x350   : > { %v2111_v39 = vadd.f32 %v6473_v37, %v2106_v38  ;;  %v2067_v41 = vpop.f32.mrf.mxu3 }
 0x351   : > { %v2068_v42 = vadd.f32 %v2067_v41, %v2038_v40 }
 0x352   : > { %v2113_v43 = vmax.f32 %v2111_v39, 0.0 }
 0x353   : > { %v2098_v44 = vpop.f32.mrf.mxu0 }
 0x354   : > { %2146 = vst.msk [vmem:[#allocation2 + $0x1] sm:$0xff] %vm1681_vm0, %v2113_v43  ;;  %v2102_v45 = vadd.f32 %v2098_v44, %v2068_v42  ;;  %v2405_v43 = vld [vmem:[#allocation6 + $0x3f8] sm:$0xff]  ;;  %v2413_v44 = vld [vmem:[#allocation6 + $0x430] sm:$0xff] }
 0x355   : > { %2477 = vmatpush.msra.mxu0 %v2405_v43  ;;  %v2542_v43 = vld [vmem:[#allocation6 + $0x490] sm:$0xff] }
 0x356   : > { %v2107_v46 = vmul.f32 %v6472_v34, %v2102_v45  ;;  %v2404_v45 = vld [vmem:[#allocation6 + $0x3f0] sm:$0xff] }
 0x357   : > { %2478 = vmatpush.msra.mxu0 %v2404_v45  ;;  %v2550_v45 = vld [vmem:[#allocation6 + $0x4c8] sm:$0xff] }
 0x358   : > { %v2112_v47 = vadd.f32 %v6473_v37, %v2107_v46  ;;  %v2412_v46 = vld [vmem:[#allocation6 + $0x428] sm:$0xff] }
 0x35a   : > { %v2114_v48 = vmax.f32 %v2112_v47, 0.0  ;;  %v2403_v47 = vld [vmem:[#allocation6 + $0x3e8] sm:$0xff] }
 0x35b   : > { %v2150_v49 = vld [vmem:[#allocation2 + $0x1] sm:$0xff]  ;;  %2479 = vmatpush.msra.mxu0 %v2403_v47 }
 0x35c   : > { %v2148_v50 = vld [vmem:[#allocation2] sm:$0xff]  ;;  %2147 = vst.msk [vmem:[#allocation2 + $0x9] sm:$0xff] %vm1681_vm0, %v2114_v48  ;;  %6018 = vmatmul.msk.f32.vlgmr.msra.gmra.mxu1 %vm1681_vm0, %v2150_v49  ;;  %v2563_v47 = vld [vmem:[#allocation6 + $0x528] sm:$0xff] }
 0x35d   : > { %6020 = vmatmul.msk.f32.vlgmr.msra.gmra.mxu2 %vm1681_vm0, %v2148_v50  ;;  %v2411_v48 = vld [vmem:[#allocation6 + $0x420] sm:$0xff]  ;;  %v2410_v50 = vld [vmem:[#allocation6 + $0x418] sm:$0xff] }
 0x35e   : > { %v2402_v49 = vld [vmem:[#allocation6 + $0x3e0] sm:$0xff] }
 0x35f   : > { %2480 = vmatpush.msra.mxu0 %v2402_v49  ;;  %v2540_v49 = vld [vmem:[#allocation6 + $0x480] sm:$0xff] }
 0x363   : > { %v2151_v51 = vld [vmem:[#allocation2 + $0x9] sm:$0xff] }
 0x364   : > { %v2149_v52 = vld [vmem:[#allocation2 + $0x8] sm:$0xff]  ;;  %6019 = vmatmul.msk.f32.gmra.mxu1 %vm1681_vm0, %v2151_v51  ;;  %v2401_v51 = vld [vmem:[#allocation6 + $0x3d8] sm:$0xff] }
 0x365   : > { %v2210_v53 = vld [vmem:[#allocation2 + $0x2] sm:$0xff]  ;;  %6021 = vmatmul.msk.f32.gmra.mxu2 %vm1681_vm0, %v2149_v52  ;;  %v2211_v54 = vld [vmem:[#allocation2 + $0xa] sm:$0xff]  ;;  %v2423_v52 = vld [vmem:[#allocation6 + $0x478] sm:$0xff]  ;;  %2481 = vmatpush.msra.mxu0 %v2401_v51 }
 0x366   : > { %6022 = vmatmul.msk.f32.vlgmr.msra.gmra.mxu3 %vm1681_vm0, %v2210_v53  ;;  %2508 = vmatpush.msra.mxu1 %v2423_v52  ;;  %v2409_v53 = vld [vmem:[#allocation6 + $0x410] sm:$0xff]  ;;  %v2561_v51 = vld [vmem:[#allocation6 + $0x518] sm:$0xff] }
 0x367   : > { %v2560_v52 = vld [vmem:[#allocation6 + $0x510] sm:$0xff] }
 0x368   : > { %2509 = vmatpush.msra.mxu1 %v2422_v55 }
 0x36a   : > { %2510 = vmatpush.msra.mxu1 %v2421_v60  ;;  %v6478_v60 = vld [vmem:[#allocation9 + $0x5] ss:$0 sm:$0xff] }
 0x36c   : > { %2511 = vmatpush.msra.mxu1 %v2420_v2  ;;  %v6479_v2 = vld [vmem:[%s8520_s26 + $0x5] ss:$0 sm:$0xff] }
 0x36e   : > { %6023 = vmatmul.msk.f32.gmra.mxu3 %vm1681_vm0, %v2211_v54  ;;  %v2400_v54 = vld [vmem:[#allocation6 + $0x3d0] sm:$0xff]  ;;  %2512 = vmatpush.msra.mxu1 %v2419_v16 }
 0x36f   : > { %2482 = vmatpush.msra.mxu0 %v2400_v54  ;;  %v2558_v54 = vld [vmem:[#allocation6 + $0x500] sm:$0xff] }
 0x370   : > { %2513 = vmatpush.msra.mxu1 %v2418_v3 }
 0x371   : > { %2483 = vmatpush.msra.mxu0 %v2399_v59 }
 0x372   : > { %2514 = vmatpush.msra.mxu1 %v2417_v4 }
 0x373   : > { %2484 = vmatpush.msra.mxu0 %v2398_v1 }
 0x374   : > { %2515 = vmatpush.msra.mxu1 %v2416_v19 }
 0x3d9   : > { %v2175_v21 = vpop.f32.mrf.mxu1 }
 0x3e0   : > { %v2204_v20 = vpop.f32.mrf.mxu2 }
 0x3e1   : > { %v2205_v22 = vadd.f32 %v2204_v20, %v2175_v21  ;;  %v2178_v30 = vpop.f32.mrf.mxu1 }
 0x3e8   : > { %v2207_v28 = vpop.f32.mrf.mxu2 }
 0x3e9   : > { %v2235_v24 = vpop.f32.mrf.mxu3  ;;  %v2208_v31 = vadd.f32 %v2207_v28, %v2178_v30 }
 0x3ea   : > { %v2241_v25 = vadd.f32 %v2235_v24, %v2205_v22 }
 0x3ec   : > { %v2246_v27 = vmul.f32 %v6474_v23, %v2241_v25 }
 0x3ee   : > { %v2251_v29 = vadd.f32 %v6475_v26, %v2246_v27 }
 0x3f0   : > { %v7937_v32 = vadd.f32 %v2251_v29, %v1973_v58 }
 0x3f1   : > { %v2238_v33 = vpop.f32.mrf.mxu3 }
 0x3f2   : > { %v2255_v34 = vmax.f32 %v7937_v32, 0.0  ;;  %v2242_v35 = vadd.f32 %v2238_v33, %v2208_v31  ;;  %v2556_v31 = vld [vmem:[#allocation6 + $0x4f8] sm:$0xff] }
 0x3f3   : > { %v2547_v33 = vld [vmem:[#allocation6 + $0x4b8] sm:$0xff]  ;;  %2590 = vmatpush.msra.mxu2 %v2556_v31  ;;  %v2704_v31 = vld [vmem:[#allocation6 + $0x5f0] sm:$0xff] }
 0x3f4   : > { %2288 = vst.msk [vmem:[#allocation2 + $0x1] sm:$0xff] %vm1681_vm0, %v2255_v34  ;;  %v2247_v36 = vmul.f32 %v6474_v23, %v2242_v35  ;;  %v2555_v35 = vld [vmem:[#allocation6 + $0x4f0] sm:$0xff] }
 0x3f5   : > { %2591 = vmatpush.msra.mxu2 %v2555_v35  ;;  %v2681_v35 = vld [vmem:[#allocation6 + $0x548] sm:$0xff] }
 0x3f6   : > { %v2252_v37 = vadd.f32 %v6475_v26, %v2247_v36  ;;  %v2546_v36 = vld [vmem:[#allocation6 + $0x4b0] sm:$0xff] }
 0x3f8   : > { %v7945_v38 = vadd.f32 %v2252_v37, %v1974_v63  ;;  %v2414_v63 = vld [vmem:[#allocation6 + $0x438] sm:$0xff]  ;;  %v2554_v37 = vld [vmem:[#allocation6 + $0x4e8] sm:$0xff] }
 0x3f9   : > { %2448 = vmatpush.msrb.mxu3 %v2414_v63  ;;  %2592 = vmatpush.msra.mxu2 %v2554_v37  ;;  %v2551_v63 = vld [vmem:[#allocation6 + $0x4d0] sm:$0xff]  ;;  %v2689_v37 = vld [vmem:[#allocation6 + $0x580] sm:$0xff] }
 0x3fa   : > { %v2256_v39 = vmax.f32 %v7945_v38, 0.0 }
 0x3fb   : > { %v2292_v40 = vld [vmem:[#allocation2 + $0x1] sm:$0xff]  ;;  %2449 = vmatpush.msrb.mxu3 %v2413_v44  ;;  %v2564_v44 = vld [vmem:[#allocation6 + $0x530] sm:$0xff] }
 0x3fc   : > { %v2290_v56 = vld [vmem:[#allocation2] sm:$0xff]  ;;  %2289 = vst.msk [vmem:[#allocation2 + $0x9] sm:$0xff] %vm1681_vm0, %v2256_v39  ;;  %6025 = vmatmul.msk.f32.vlgmr.msrb.gmra.mxu0 %vm1681_vm0, %v2292_v40  ;;  %v2545_v40 = vld [vmem:[#allocation6 + $0x4a8] sm:$0xff] }
 0x3fd   : > { %6027 = vmatmul.msk.f32.vlgmr.msrb.gmra.mxu1 %vm1681_vm0, %v2290_v56  ;;  %2450 = vmatpush.msrb.mxu3 %v2412_v46  ;;  %v2553_v56 = vld [vmem:[#allocation6 + $0x4e0] sm:$0xff]  ;;  %v2541_v46 = vld [vmem:[#allocation6 + $0x488] sm:$0xff] }
 0x3fe   : > { %2593 = vmatpush.msra.mxu2 %v2553_v56  ;;  %v2702_v56 = vld [vmem:[#allocation6 + $0x5e0] sm:$0xff] }
 0x3ff   : > { %2451 = vmatpush.msrb.mxu3 %v2411_v48  ;;  %v2549_v48 = vld [vmem:[#allocation6 + $0x4c0] sm:$0xff] }
 0x401   : > { %2452 = vmatpush.msrb.mxu3 %v2410_v50  ;;  %v2562_v50 = vld [vmem:[#allocation6 + $0x520] sm:$0xff] }
 0x403   : > { %v2293_v58 = vld [vmem:[#allocation2 + $0x9] sm:$0xff]  ;;  %2453 = vmatpush.msrb.mxu3 %v2409_v53 }
 0x404   : > { %v2291_v41 = vld [vmem:[#allocation2 + $0x8] sm:$0xff]  ;;  %6026 = vmatmul.msk.f32.gmra.mxu0 %vm1681_vm0, %v2293_v58  ;;  %v2544_v58 = vld [vmem:[#allocation6 + $0x4a0] sm:$0xff] }
 0x405   : > { %v2352_v42 = vld [vmem:[#allocation2 + $0x2] sm:$0xff]  ;;  %6028 = vmatmul.msk.f32.gmra.mxu1 %vm1681_vm0, %v2291_v41  ;;  %v2353_v62 = vld [vmem:[#allocation2 + $0xa] sm:$0xff]  ;;  %2454 = vmatpush.msrb.mxu3 %v2408_v57  ;;  %v2552_v41 = vld [vmem:[#allocation6 + $0x4d8] sm:$0xff] }
 0x406   : > { %6029 = vmatmul.msk.f32.vlgmr.msrb.gmra.mxu2 %vm1681_vm0, %v2352_v42  ;;  %v2543_v42 = vld [vmem:[#allocation6 + $0x498] sm:$0xff]  ;;  %v2559_v53 = vld [vmem:[#allocation6 + $0x508] sm:$0xff] }
 0x407   : > { %2455 = vmatpush.msrb.mxu3 %v2407_v61  ;;  %2594 = vmatpush.msra.mxu2 %v2552_v41  ;;  %v2847_v41 = vld [vmem:[#allocation12 + $0xb8] sm:$0xff] }
 0x409   : > { %2619 = vmatpush.msra.mxu3 %v2547_v33  ;;  %2595 = vmatpush.msra.mxu2 %v2551_v63  ;;  %v2690_v33 = vld [vmem:[#allocation6 + $0x588] sm:$0xff] }
 0x40a   : > { %v2838_v63 = vld [vmem:[#allocation12 + $0x78] sm:$0xff] }
 0x40b   : > { %2620 = vmatpush.msra.mxu3 %v2546_v36  ;;  %2596 = vmatpush.msra.mxu2 %v2550_v45  ;;  %v2703_v36 = vld [vmem:[#allocation6 + $0x5e8] sm:$0xff] }
 0x40c   : > { %v2699_v45 = vld [vmem:[#allocation6 + $0x5c8] sm:$0xff] }
 0x40d   : > { %2621 = vmatpush.msra.mxu3 %v2545_v40  ;;  %2597 = vmatpush.msra.mxu2 %v2549_v48  ;;  %v2680_v40 = vld [vmem:[#allocation6 + $0x540] sm:$0xff]  ;;  %v2844_v48 = vld [vmem:[#allocation12 + $0xa0] sm:$0xff] }
 0x40e   : > { %6030 = vmatmul.msk.f32.gmra.mxu2 %vm1681_vm0, %v2353_v62  ;;  %v2565_v62 = vld [vmem:[#allocation6 + $0x538] sm:$0xff] }
 0x40f   : > { %2622 = vmatpush.msra.mxu3 %v2544_v58  ;;  %2650 = vmatpush.msrb.mxu0 %v2565_v62  ;;  %v2701_v58 = vld [vmem:[#allocation6 + $0x5d8] sm:$0xff]  ;;  %v2846_v62 = vld [vmem:[#allocation12 + $0xb0] sm:$0xff] }
 0x411   : > { %2623 = vmatpush.msra.mxu3 %v2543_v42  ;;  %2651 = vmatpush.msrb.mxu0 %v2564_v44  ;;  %v2700_v42 = vld [vmem:[#allocation6 + $0x5d0] sm:$0xff]  ;;  %v2845_v44 = vld [vmem:[#allocation12 + $0xa8] sm:$0xff] }
 0x413   : > { %2624 = vmatpush.msra.mxu3 %v2542_v43  ;;  %2652 = vmatpush.msrb.mxu0 %v2563_v47  ;;  %v2829_v43 = vld [vmem:[#allocation12 + $0x38] sm:$0xff]  ;;  %v2828_v47 = vld [vmem:[#allocation12 + $0x30] sm:$0xff] }
 0x415   : > { %2625 = vmatpush.msra.mxu3 %v2541_v46  ;;  %2653 = vmatpush.msrb.mxu0 %v2562_v50  ;;  %v2837_v46 = vld [vmem:[#allocation12 + $0x70] sm:$0xff] }
 0x416   : > { %v7991_v50 = vld [vmem:[%s1676_s23] sm:$0xff]  ;;  %s8533_s23 = sld [smem:[#allocation65_spill]] }
 0x417   : > { %2626 = vmatpush.msra.mxu3 %v2540_v49  ;;  %2654 = vmatpush.msrb.mxu0 %v2561_v51  ;;  %v2698_v49 = vld [vmem:[#allocation6 + $0x5c0] sm:$0xff]  ;;  %v2836_v51 = vld [vmem:[#allocation12 + $0x68] sm:$0xff]  ;;  %2850 = vst.msk [vmem:[#allocation3 + $0x1] sm:$0xff] %vm1681_vm0, %v7991_v50 }
 0x419   : > { %2655 = vmatpush.msrb.mxu0 %v2560_v52  ;;  %v2827_v52 = vld [vmem:[#allocation12 + $0x28] sm:$0xff] }
 0x41b   : > { %2656 = vmatpush.msrb.mxu0 %v2559_v53  ;;  %v2843_v53 = vld [vmem:[#allocation12 + $0x98] sm:$0xff] }
 0x41d   : > { %2657 = vmatpush.msrb.mxu0 %v2558_v54  ;;  %v2835_v54 = vld [vmem:[#allocation12 + $0x60] sm:$0xff] }
 0x479   : > { %v2317_v5 = vpop.f32.mrf.mxu0 }
 0x47a   : > { %v2346_v6 = vpop.f32.mrf.mxu1 }
 0x47b   : > { %v2347_v7 = vadd.f32 %v2346_v6, %v2317_v5 }
 0x481   : > { %v2320_v13 = vpop.f32.mrf.mxu0 }
 0x482   : > { %v2349_v14 = vpop.f32.mrf.mxu1 }
 0x483   : > { %v2350_v17 = vadd.f32 %v2349_v14, %v2320_v13 }
 0x489   : > { %v2377_v9 = vpop.f32.mrf.mxu2 }
 0x48a   : > { %v2383_v10 = vadd.f32 %v2377_v9, %v2347_v7 }
 0x48c   : > { %v2388_v12 = vmul.f32 %v6476_v8, %v2383_v10 }
 0x48e   : > { %v2393_v15 = vadd.f32 %v6477_v11, %v2388_v12 }
 0x490   : > { %v2395_v18 = vmax.f32 %v2393_v15, 0.0 }
 0x491   : > { %v2380_v20 = vpop.f32.mrf.mxu2 }
 0x492   : > { %2428 = vst.msk [vmem:[#allocation2 + $0x1] sm:$0xff] %vm1681_vm0, %v2395_v18  ;;  %v2384_v21 = vadd.f32 %v2380_v20, %v2350_v17  ;;  %v2687_v18 = vld [vmem:[#allocation6 + $0x578] sm:$0xff]  ;;  %v2695_v20 = vld [vmem:[#allocation6 + $0x5b0] sm:$0xff] }
 0x493   : > { %2759 = vmatpush.msrb.mxu2 %v2687_v18 }
 0x494   : > { %v2389_v22 = vmul.f32 %v6476_v8, %v2384_v21  ;;  %v2686_v21 = vld [vmem:[#allocation6 + $0x570] sm:$0xff] }
 0x495   : > { %2760 = vmatpush.msrb.mxu2 %v2686_v21 }
 0x496   : > { %v2394_v23 = vadd.f32 %v6477_v11, %v2389_v22  ;;  %v2694_v22 = vld [vmem:[#allocation6 + $0x5a8] sm:$0xff] }
 0x498   : > { %v2396_v24 = vmax.f32 %v2394_v23, 0.0  ;;  %v2685_v23 = vld [vmem:[#allocation6 + $0x568] sm:$0xff] }
 0x499   : > { %v2432_v25 = vld [vmem:[#allocation2 + $0x1] sm:$0xff]  ;;  %2761 = vmatpush.msrb.mxu2 %v2685_v23 }
 0x49a   : > { %v2430_v26 = vld [vmem:[#allocation2] sm:$0xff]  ;;  %2429 = vst.msk [vmem:[#allocation2 + $0x9] sm:$0xff] %vm1681_vm0, %v2396_v24  ;;  %6032 = vmatmul.msk.f32.vlgmr.msrb.gmra.mxu3 %vm1681_vm0, %v2432_v25 }
 0x49b   : > { %6034 = vmatmul.msk.f32.vlgmr.msra.gmra.mxu0 %vm1681_vm0, %v2430_v26  ;;  %v2693_v24 = vld [vmem:[#allocation6 + $0x5a0] sm:$0xff]  ;;  %v2692_v26 = vld [vmem:[#allocation6 + $0x598] sm:$0xff] }
 0x49c   : > { %v2684_v25 = vld [vmem:[#allocation6 + $0x560] sm:$0xff]  ;;  %2864 = vmatpush.msra.mxu0 %v2838_v63  ;;  %v2939_v63 = vld [vmem:[#allocation12 + $0xe8] sm:$0xff] }
 0x49d   : > { %2762 = vmatpush.msrb.mxu2 %v2684_v25 }
 0x49e   : > { %2865 = vmatpush.msra.mxu0 %v2837_v46  ;;  %v2956_v46 = vld [vmem:[#allocation12 + $0x160] sm:$0xff] }
 0x4a0   : > { %2866 = vmatpush.msra.mxu0 %v2836_v51  ;;  %v2955_v51 = vld [vmem:[#allocation12 + $0x158] sm:$0xff] }
 0x4a1   : > { %v2433_v27 = vld [vmem:[#allocation2 + $0x9] sm:$0xff] }
 0x4a2   : > { %v2431_v28 = vld [vmem:[#allocation2 + $0x8] sm:$0xff]  ;;  %6033 = vmatmul.msk.f32.gmra.mxu3 %vm1681_vm0, %v2433_v27  ;;  %v2683_v27 = vld [vmem:[#allocation6 + $0x558] sm:$0xff]  ;;  %2867 = vmatpush.msra.mxu0 %v2835_v54  ;;  %v2954_v54 = vld [vmem:[#allocation12 + $0x150] sm:$0xff] }
 0x4a3   : > { %v2492_v29 = vld [vmem:[#allocation2 + $0x2] sm:$0xff]  ;;  %6035 = vmatmul.msk.f32.gmra.mxu0 %vm1681_vm0, %v2431_v28  ;;  %v2493_v30 = vld [vmem:[#allocation2 + $0xa] sm:$0xff]  ;;  %v2705_v28 = vld [vmem:[#allocation6 + $0x5f8] sm:$0xff]  ;;  %2763 = vmatpush.msrb.mxu2 %v2683_v27 }
 0x4a4   : > { %6036 = vmatmul.msk.f32.vlgmr.msra.gmra.mxu1 %vm1681_vm0, %v2492_v29  ;;  %2790 = vmatpush.msrb.mxu3 %v2705_v28  ;;  %v2691_v29 = vld [vmem:[#allocation6 + $0x590] sm:$0xff] }
 0x4a6   : > { %2791 = vmatpush.msrb.mxu3 %v2704_v31 }
 0x4a8   : > { %2792 = vmatpush.msrb.mxu3 %v2703_v36 }
 0x4aa   : > { %2793 = vmatpush.msrb.mxu3 %v2702_v56  ;;  %v2959_v56 = vld [vmem:[#allocation12 + $0x178] sm:$0xff] }
 0x4ac   : > { %6037 = vmatmul.msk.f32.gmra.mxu1 %vm1681_vm0, %v2493_v30  ;;  %v2682_v30 = vld [vmem:[#allocation6 + $0x550] sm:$0xff]  ;;  %2794 = vmatpush.msrb.mxu3 %v2701_v58  ;;  %v2949_v58 = vld [vmem:[#allocation12 + $0x130] sm:$0xff] }
 0x4ad   : > { %2764 = vmatpush.msrb.mxu2 %v2682_v30 }
 0x4ae   : > { %2795 = vmatpush.msrb.mxu3 %v2700_v42  ;;  %v2958_v42 = vld [vmem:[#allocation12 + $0x170] sm:$0xff] }
 0x4af   : > { %2765 = vmatpush.msrb.mxu2 %v2681_v35  ;;  %v2851_v35 = vld [vmem:[#allocation3] sm:$0xff] }
 0x4b0   : > { %2796 = vmatpush.msrb.mxu3 %v2699_v45  ;;  %v2938_v45 = vld [vmem:[#allocation12 + $0xe0] sm:$0xff] }
 0x4b1   : > { %2766 = vmatpush.msrb.mxu2 %v2680_v40  ;;  %v2941_v40 = vld [vmem:[#allocation12 + $0xf8] sm:$0xff] }
 0x4b2   : > { %2797 = vmatpush.msrb.mxu3 %v2698_v49  ;;  %v2937_v49 = vld [vmem:[#allocation12 + $0xd8] sm:$0xff] }
 0x518   : > { %v2486_v55 = vpop.f32.mrf.mxu0 }
 0x51d   : > { %v2457_v57 = vpop.f32.mrf.mxu3 }
 0x51e   : > { %v2487_v59 = vadd.f32 %v2486_v55, %v2457_v57  ;;  %v2826_v55 = vld [vmem:[#allocation12 + $0x20] sm:$0xff]  ;;  %v2842_v57 = vld [vmem:[#allocation12 + $0x90] sm:$0xff] }
 0x520   : > { %v2489_v3 = vpop.f32.mrf.mxu0 }
 0x521   : > { %v2517_v61 = vpop.f32.mrf.mxu1 }
 0x522   : > { %v2523_v1 = vadd.f32 %v2517_v61, %v2487_v59  ;;  %v2834_v59 = vld [vmem:[#allocation12 + $0x58] sm:$0xff] }
 0x523   : > { %2868 = vmatpush.msra.mxu0 %v2834_v59  ;;  %v2953_v59 = vld [vmem:[#allocation12 + $0x148] sm:$0xff] }
 0x524   : > { %v2528_v16 = vmul.f32 %v6478_v60, %v2523_v1 }
 0x525   : > { %v2460_v19 = vpop.f32.mrf.mxu3 }
 0x526   : > { %v2533_v4 = vadd.f32 %v6479_v2, %v2528_v16  ;;  %v2490_v5 = vadd.f32 %v2489_v3, %v2460_v19  ;;  %v2833_v3 = vld [vmem:[#allocation12 + $0x50] sm:$0xff] }
 0x527   : > { %v6480_v19 = vld [vmem:[#allocation9 + $0x6] ss:$0 sm:$0xff]  ;;  %2869 = vmatpush.msra.mxu0 %v2833_v3 }
 0x528   : > { %v7969_v6 = vadd.f32 %v2533_v4, %v2255_v34  ;;  %v2824_v4 = vld [vmem:[#allocation12 + $0x10] sm:$0xff] }
 0x529   : > { %v2520_v7 = vpop.f32.mrf.mxu1 }
 0x52a   : > { %v2537_v8 = vmax.f32 %v7969_v6, 0.0  ;;  %v2524_v9 = vadd.f32 %v2520_v7, %v2490_v5  ;;  %v2840_v5 = vld [vmem:[#allocation12 + $0x80] sm:$0xff] }
 0x52c   : > { %2570 = vst.msk [vmem:[#allocation2 + $0x1] sm:$0xff] %vm1681_vm0, %v2537_v8  ;;  %v2529_v10 = vmul.f32 %v6478_v60, %v2524_v9  ;;  %v2825_v60 = vld [vmem:[#allocation12 + $0x18] sm:$0xff] }
 0x52e   : > { %v2534_v11 = vadd.f32 %v6479_v2, %v2529_v10  ;;  %v2841_v2 = vld [vmem:[#allocation12 + $0x88] sm:$0xff]  ;;  %v6481_v10 = vld [vmem:[%s8520_s26 + $0x6] ss:$0 sm:$0xff] }
 0x530   : > { %v7977_v12 = vadd.f32 %v2534_v11, %v2256_v39  ;;  %v2696_v39 = vld [vmem:[#allocation6 + $0x5b8] sm:$0xff] }
 0x531   : > { %2730 = vmatpush.msrb.mxu1 %v2696_v39  ;;  %v2832_v11 = vld [vmem:[#allocation12 + $0x48] sm:$0xff] }
 0x532   : > { %v2538_v13 = vmax.f32 %v7977_v12, 0.0  ;;  %2870 = vmatpush.msra.mxu0 %v2832_v11 }
 0x533   : > { %v2574_v14 = vld [vmem:[#allocation2 + $0x1] sm:$0xff]  ;;  %2731 = vmatpush.msrb.mxu1 %v2695_v20 }
 0x534   : > { %v2572_v32 = vld [vmem:[#allocation2] sm:$0xff]  ;;  %2571 = vst.msk [vmem:[#allocation2 + $0x9] sm:$0xff] %vm1681_vm0, %v2538_v13  ;;  %6039 = vmatmul.msk.f32.vlgmr.msra.gmra.mxu2 %vm1681_vm0, %v2574_v14  ;;  %v2823_v14 = vld [vmem:[#allocation12 + $0x8] sm:$0xff] }
 0x535   : > { %6041 = vmatmul.msk.f32.vlgmr.msra.gmra.mxu3 %vm1681_vm0, %v2572_v32  ;;  %2732 = vmatpush.msrb.mxu1 %v2694_v22  ;;  %v2831_v32 = vld [vmem:[#allocation12 + $0x40] sm:$0xff] }
 0x536   : > { %2911 = vmatpush.msra.mxu2 %v2847_v41  ;;  %2871 = vmatpush.msra.mxu0 %v2831_v32  ;;  %v2940_v41 = vld [vmem:[#allocation12 + $0xf0] sm:$0xff] }
 0x537   : > { %2733 = vmatpush.msrb.mxu1 %v2693_v24 }
 0x538   : > { %2912 = vmatpush.msra.mxu2 %v2846_v62  ;;  %v2948_v62 = vld [vmem:[#allocation12 + $0x128] sm:$0xff] }
 0x539   : > { %2734 = vmatpush.msrb.mxu1 %v2692_v26 }
 0x53a   : > { %2913 = vmatpush.msra.mxu2 %v2845_v44  ;;  %v2947_v44 = vld [vmem:[#allocation12 + $0x120] sm:$0xff] }
 0x53b   : > { %v2575_v34 = vld [vmem:[#allocation2 + $0x9] sm:$0xff]  ;;  %2735 = vmatpush.msrb.mxu1 %v2691_v29 }
 0x53c   : > { %v2573_v15 = vld [vmem:[#allocation2 + $0x8] sm:$0xff]  ;;  %6040 = vmatmul.msk.f32.gmra.mxu2 %vm1681_vm0, %v2575_v34 }
 0x53d   : > { %v2634_v17 = vld [vmem:[#allocation2 + $0x2] sm:$0xff]  ;;  %6042 = vmatmul.msk.f32.gmra.mxu3 %vm1681_vm0, %v2573_v15  ;;  %v2635_v38 = vld [vmem:[#allocation2 + $0xa] sm:$0xff]  ;;  %2736 = vmatpush.msrb.mxu1 %v2690_v33  ;;  %v2899_v33 = vld [vmem:[#allocation3 + $0x2] sm:$0xff] }
 0x53e   : > { %6043 = vmatmul.msk.f32.vlgmr.msrb.gmra.mxu0 %vm1681_vm0, %v2634_v17  ;;  %2914 = vmatpush.msra.mxu2 %v2844_v48  ;;  %v2822_v15 = vld [vmem:[#allocation12] sm:$0xff]  ;;  %v2852_v17 = vld [vmem:[#allocation3 + $0x1] sm:$0xff]  ;;  %v2946_v48 = vld [vmem:[#allocation12 + $0x118] sm:$0xff] }
 0x53f   : > { %2737 = vmatpush.msrb.mxu1 %v2689_v37  ;;  %v2950_v37 = vld [vmem:[#allocation12 + $0x138] sm:$0xff]  ;;  %3001 = vmatpush.msrb.mxu0 %v2941_v40 }
 0x540   : > { %2915 = vmatpush.msra.mxu2 %v2843_v53  ;;  %2978 = vmatpush.msra.mxu3 %v2950_v37  ;;  %v2936_v53 = vld [vmem:[#allocation12 + $0xd0] sm:$0xff]  ;;  %v3065_v40 = vld [vmem:[#allocation12 + $0x1f8] sm:$0xff] }
 0x541   : > { %2887 = vmatpush.msra.mxu1 %v2829_v43  ;;  %3002 = vmatpush.msrb.mxu0 %v2940_v41  ;;  %v2957_v43 = vld [vmem:[#allocation12 + $0x168] sm:$0xff]  ;;  %v3064_v41 = vld [vmem:[#allocation12 + $0x1f0] sm:$0xff] }
 0x542   : > { %2916 = vmatpush.msra.mxu2 %v2842_v57  ;;  %2979 = vmatpush.msra.mxu3 %v2949_v58  ;;  %v2935_v57 = vld [vmem:[#allocation12 + $0xc8] sm:$0xff]  ;;  %v3074_v58 = vld [vmem:[#allocation12 + $0x238] sm:$0xff] }
 0x543   : > { %2888 = vmatpush.msra.mxu1 %v2828_v47  ;;  %3003 = vmatpush.msrb.mxu0 %v2939_v63  ;;  %v3063_v63 = vld [vmem:[#allocation12 + $0x1e8] sm:$0xff] }
 0x544   : > { %2917 = vmatpush.msra.mxu2 %v2841_v2  ;;  %2980 = vmatpush.msra.mxu3 %v2948_v62  ;;  %v3073_v62 = vld [vmem:[#allocation12 + $0x230] sm:$0xff] }
 0x545   : > { %2889 = vmatpush.msra.mxu1 %v2827_v52  ;;  %3004 = vmatpush.msrb.mxu0 %v2938_v45  ;;  %v2945_v52 = vld [vmem:[#allocation12 + $0x110] sm:$0xff]  ;;  %v3062_v45 = vld [vmem:[#allocation12 + $0x1e0] sm:$0xff] }
 0x546   : > { %6044 = vmatmul.msk.f32.gmra.mxu0 %vm1681_vm0, %v2635_v38  ;;  %2918 = vmatpush.msra.mxu2 %v2840_v5 }
 0x547   : > { %2890 = vmatpush.msra.mxu1 %v2826_v55  ;;  %2981 = vmatpush.msra.mxu3 %v2947_v44  ;;  %v2944_v55 = vld [vmem:[#allocation12 + $0x108] sm:$0xff] }
 0x548   : > { %3005 = vmatpush.msrb.mxu0 %v2937_v49  ;;  %v3072_v44 = vld [vmem:[#allocation12 + $0x228] sm:$0xff]  ;;  %v3052_v49 = vld [vmem:[#allocation12 + $0x198] sm:$0xff] }
 0x549   : > { %2891 = vmatpush.msra.mxu1 %v2825_v60  ;;  %2982 = vmatpush.msra.mxu3 %v2946_v48  ;;  %v2943_v60 = vld [vmem:[#allocation12 + $0x100] sm:$0xff]  ;;  %v3061_v48 = vld [vmem:[#allocation12 + $0x1d8] sm:$0xff] }
 0x54a   : > { %3006 = vmatpush.msrb.mxu0 %v2936_v53  ;;  %v3051_v53 = vld [vmem:[#allocation12 + $0x190] sm:$0xff] }
 0x54b   : > { %2892 = vmatpush.msra.mxu1 %v2824_v4  ;;  %2983 = vmatpush.msra.mxu3 %v2945_v52  ;;  %v3060_v52 = vld [vmem:[#allocation12 + $0x1d0] sm:$0xff] }
 0x54c   : > { %3007 = vmatpush.msrb.mxu0 %v2935_v57  ;;  %v3050_v57 = vld [vmem:[#allocation12 + $0x188] sm:$0xff] }
 0x54d   : > { %2893 = vmatpush.msra.mxu1 %v2823_v14  ;;  %2984 = vmatpush.msra.mxu3 %v2944_v55  ;;  %v3059_v55 = vld [vmem:[#allocation12 + $0x1c8] sm:$0xff] }
 0x54e   : > { %6052 = vmatmul.msk.f32.vlgmr.msra.gmra.mxu0 %vm1681_vm0, %v2852_v17 }
 0x54f   : > { %2894 = vmatpush.msra.mxu1 %v2822_v15  ;;  %2985 = vmatpush.msra.mxu3 %v2943_v60  ;;  %v6484_v15 = vld [vmem:[#allocation14] ss:$0 sm:$0xff] }
 0x550   : > { %v3058_v60 = vld [vmem:[#allocation12 + $0x1c0] sm:$0xff] }
 0x5b7   : > { %v2599_v61 = vpop.f32.mrf.mxu2 }
 0x5b8   : > { %v2628_v1 = vpop.f32.mrf.mxu3 }
 0x5b9   : > { %v2629_v16 = vadd.f32 %v2628_v1, %v2599_v61  ;;  %v2934_v61 = vld [vmem:[#allocation12 + $0xc0] sm:$0xff] }
 0x5ba   : > { %v2952_v1 = vld [vmem:[#allocation12 + $0x140] sm:$0xff]  ;;  %3008 = vmatpush.msrb.mxu0 %v2934_v61 }
 0x5bb   : > { %v2659_v7 = vpop.f32.mrf.mxu0  ;;  %v3049_v61 = vld [vmem:[#allocation12 + $0x180] sm:$0xff] }
 0x5bc   : > { %v2665_v9 = vadd.f32 %v2659_v7, %v2629_v16  ;;  %3140 = vmatpush.msra.mxu0 %v3074_v58  ;;  %v3164_v58 = vld [vmem:[#allocation12 + $0x248] sm:$0xff] }
 0x5be   : > { %v2670_v34 = vmul.f32 %v6480_v19, %v2665_v9  ;;  %v6483_v9 = vld [vmem:[%s8520_s26 + $0x7] ss:$0 sm:$0xff]  ;;  %3141 = vmatpush.msra.mxu0 %v3073_v62  ;;  %v3163_v62 = vld [vmem:[#allocation12 + $0x240] sm:$0xff] }
 0x5bf   : > { %v2602_v39 = vpop.f32.mrf.mxu2 }
 0x5c0   : > { %v2675_v38 = vadd.f32 %v6481_v10, %v2670_v34  ;;  %v2631_v18 = vpop.f32.mrf.mxu3  ;;  %3142 = vmatpush.msra.mxu0 %v3072_v44 }
 0x5c1   : > { %v2632_v20 = vadd.f32 %v2631_v18, %v2602_v39 }
 0x5c2   : > { %v2677_v21 = vmax.f32 %v2675_v38, 0.0 }
 0x5c3   : > { %v2662_v22 = vpop.f32.mrf.mxu0 }
 0x5c4   : > { %2710 = vst.msk [vmem:[#allocation2 + $0x1] sm:$0xff] %vm1681_vm0, %v2677_v21  ;;  %v2666_v23 = vadd.f32 %v2662_v22, %v2632_v20  ;;  %v6485_v21 = vld [vmem:[#allocation11] ss:$0 sm:$0xff] }
 0x5c6   : > { %v2671_v24 = vmul.f32 %v6480_v19, %v2666_v23  ;;  %v6482_v19 = vld [vmem:[#allocation9 + $0x7] ss:$0 sm:$0xff] }
 0x5c8   : > { %v2676_v25 = vadd.f32 %v6481_v10, %v2671_v24 }
 0x5ca   : > { %v2678_v26 = vmax.f32 %v2676_v25, 0.0 }
 0x5cb   : > { %v2714_v27 = vld [vmem:[#allocation2 + $0x1] sm:$0xff]  ;;  %v2873_v10 = vpop.f32.mrf.mxu0 }
 0x5cc   : > { %v2712_v28 = vld [vmem:[#allocation2] sm:$0xff]  ;;  %2711 = vst.msk [vmem:[#allocation2 + $0x9] sm:$0xff] %vm1681_vm0, %v2678_v26  ;;  %6046 = vmatmul.msk.f32.vlgmr.msrb.gmra.mxu1 %vm1681_vm0, %v2714_v27 }
 0x5cd   : > { %6048 = vmatmul.msk.f32.vlgmr.msrb.gmra.mxu2 %vm1681_vm0, %v2712_v28  ;;  %3025 = vmatpush.msrb.mxu1 %v2959_v56  ;;  %v3056_v56 = vld [vmem:[#allocation12 + $0x1b8] sm:$0xff] }
 0x5ce   : > { %3093 = vmatpush.msrb.mxu2 %v3065_v40  ;;  %v3183_v40 = vld [vmem:[#allocation12 + $0x2d0] sm:$0xff] }
 0x5cf   : > { %3026 = vmatpush.msrb.mxu1 %v2958_v42  ;;  %v3055_v42 = vld [vmem:[#allocation12 + $0x1b0] sm:$0xff] }
 0x5d0   : > { %3094 = vmatpush.msrb.mxu2 %v3064_v41  ;;  %v3182_v41 = vld [vmem:[#allocation12 + $0x2c8] sm:$0xff] }
 0x5d1   : > { %3027 = vmatpush.msrb.mxu1 %v2957_v43  ;;  %v3054_v43 = vld [vmem:[#allocation12 + $0x1a8] sm:$0xff] }
 0x5d2   : > { %3095 = vmatpush.msrb.mxu2 %v3063_v63  ;;  %v3181_v63 = vld [vmem:[#allocation12 + $0x2c0] sm:$0xff] }
 0x5d3   : > { %v2715_v29 = vld [vmem:[#allocation2 + $0x9] sm:$0xff]  ;;  %3028 = vmatpush.msrb.mxu1 %v2956_v46 }
 0x5d4   : > { %v2713_v30 = vld [vmem:[#allocation2 + $0x8] sm:$0xff]  ;;  %6047 = vmatmul.msk.f32.gmra.mxu1 %vm1681_vm0, %v2715_v29  ;;  %v3053_v46 = vld [vmem:[#allocation12 + $0x1a0] sm:$0xff]  ;;  %3096 = vmatpush.msrb.mxu2 %v3062_v45 }
 0x5d5   : > { %v2774_v31 = vld [vmem:[#allocation2 + $0x2] sm:$0xff]  ;;  %6049 = vmatmul.msk.f32.gmra.mxu2 %vm1681_vm0, %v2713_v30  ;;  %v2775_v36 = vld [vmem:[#allocation2 + $0xa] sm:$0xff]  ;;  %3029 = vmatpush.msrb.mxu1 %v2955_v51 }
 0x5d6   : > { %6050 = vmatmul.msk.f32.vlgmr.msrb.gmra.mxu3 %vm1681_vm0, %v2774_v31  ;;  %v3070_v51 = vld [vmem:[#allocation12 + $0x218] sm:$0xff]  ;;  %3097 = vmatpush.msrb.mxu2 %v3061_v48 }
 0x5d7   : > { %3030 = vmatpush.msrb.mxu1 %v2954_v54  ;;  %3116 = vmatpush.msrb.mxu3 %v3056_v56  ;;  %v3069_v54 = vld [vmem:[#allocation12 + $0x210] sm:$0xff]  ;;  %v3173_v56 = vld [vmem:[#allocation12 + $0x288] sm:$0xff] }
 0x5d8   : > { %3098 = vmatpush.msrb.mxu2 %v3060_v52 }
 0x5d9   : > { %3031 = vmatpush.msrb.mxu1 %v2953_v59  ;;  %3117 = vmatpush.msrb.mxu3 %v3055_v42  ;;  %v3068_v59 = vld [vmem:[#allocation12 + $0x208] sm:$0xff]  ;;  %v3172_v42 = vld [vmem:[#allocation12 + $0x280] sm:$0xff] }
 0x5da   : > { %3099 = vmatpush.msrb.mxu2 %v3059_v55 }
 0x5db   : > { %3032 = vmatpush.msrb.mxu1 %v2952_v1  ;;  %3118 = vmatpush.msrb.mxu3 %v3054_v43  ;;  %v3067_v1 = vld [vmem:[#allocation12 + $0x200] sm:$0xff] }
 0x5dc   : > { %6053 = vmatmul.msk.f32.vlgmr.msra.gmra.mxu1 %vm1681_vm0, %v2851_v35  ;;  %3100 = vmatpush.msrb.mxu2 %v3058_v60  ;;  %v3285_v60 = vld [vmem:[#allocation12 + $0x338] sm:$0xff] }
 0x5dd   : > { %6054 = vmatmul.msk.f32.vlgmr.msra.gmra.mxu2 %vm1681_vm0, %v2899_v33  ;;  %3119 = vmatpush.msrb.mxu3 %v3053_v46  ;;  %v6488_v46 = vld [vmem:[#allocation14 + $0x2] ss:$0 sm:$0xff] }
 0x5de   : > { %6051 = vmatmul.msk.f32.gmra.mxu3 %vm1681_vm0, %v2775_v36 }
 0x5df   : > { %3120 = vmatpush.msrb.mxu3 %v3052_v49  ;;  %v6489_v49 = vld [vmem:[#allocation11 + $0x2] ss:$0 sm:$0xff] }
 0x5e1   : > { %3121 = vmatpush.msrb.mxu3 %v3051_v53 }
 0x5e3   : > { %3122 = vmatpush.msrb.mxu3 %v3050_v57 }
 0x5e5   : > { %3123 = vmatpush.msrb.mxu3 %v3049_v61  ;;  %v3303_v61 = vld [vmem:[#allocation12 + $0x3b8] sm:$0xff] }
 0x649   : > { %v2739_v47 = vpop.f32.mrf.mxu1 }
 0x650   : > { %v2768_v2 = vpop.f32.mrf.mxu2 }
 0x651   : > { %v2742_v16 = vpop.f32.mrf.mxu1  ;;  %v2769_v3 = vadd.f32 %v2768_v2, %v2739_v47  ;;  %v3071_v47 = vld [vmem:[#allocation12 + $0x220] sm:$0xff] }
 0x652   : > { %3143 = vmatpush.msra.mxu0 %v3071_v47 }
 0x654   : > { %3144 = vmatpush.msra.mxu0 %v3070_v51 }
 0x656   : > { %3145 = vmatpush.msra.mxu0 %v3069_v54 }
 0x658   : > { %v2771_v4 = vpop.f32.mrf.mxu2  ;;  %3146 = vmatpush.msra.mxu0 %v3068_v59  ;;  %v3294_v59 = vld [vmem:[#allocation12 + $0x378] sm:$0xff] }
 0x659   : > { %v2799_v5 = vpop.f32.mrf.mxu3  ;;  %v2896_v11 = vpop.f32.mrf.mxu1  ;;  %v2772_v17 = vadd.f32 %v2771_v4, %v2742_v16  ;;  %v6486_v4 = vld [vmem:[#allocation14 + $0x1] ss:$0 sm:$0xff] }
 0x65a   : > { %v2805_v7 = vadd.f32 %v2799_v5, %v2769_v3  ;;  %v2897_v32 = vadd.f32 %v2896_v11, %v2873_v10  ;;  %3147 = vmatpush.msra.mxu0 %v3067_v1  ;;  %v3293_v1 = vld [vmem:[#allocation12 + $0x370] sm:$0xff] }
 0x65c   : > { %v2810_v14 = vmul.f32 %v6482_v19, %v2805_v7  ;;  %v6487_v7 = vld [vmem:[#allocation11 + $0x1] ss:$0 sm:$0xff] }
 0x65e   : > { %v2815_v34 = vadd.f32 %v6483_v9, %v2810_v14 }
 0x660   : > { %v2817_v38 = vadd.f32 %v2815_v34, %v2537_v8  ;;  %v2920_v39 = vpop.f32.mrf.mxu2 }
 0x661   : > { %v2802_v18 = vpop.f32.mrf.mxu3  ;;  %v2923_v20 = vadd.f32 %v2920_v39, %v2897_v32  ;;  %v3188_v39 = vld [vmem:[#allocation12 + $0x2f8] sm:$0xff] }
 0x662   : > { %v8010_v22 = vmax.f32 %v2817_v38, 0.0  ;;  %v2806_v23 = vadd.f32 %v2802_v18, %v2772_v17  ;;  %v3179_v17 = vld [vmem:[#allocation12 + $0x2b8] sm:$0xff]  ;;  %v3169_v18 = vld [vmem:[#allocation12 + $0x270] sm:$0xff] }
 0x663   : > { %v2927_v24 = vmul.f32 %v6484_v15, %v2923_v20  ;;  %v3170_v38 = vld [vmem:[#allocation12 + $0x278] sm:$0xff]  ;;  %3207 = vmatpush.msra.mxu1 %v3179_v17  ;;  %v3187_v20 = vld [vmem:[#allocation12 + $0x2f0] sm:$0xff] }
 0x664   : > { %4888 = vst.msk [vmem:[#allocation2 + $0x1] sm:$0xff] %vm1681_vm0, %v8010_v22  ;;  %v2811_v25 = vmul.f32 %v6482_v19, %v2806_v23  ;;  %3230 = vmatpush.msra.mxu2 %v3170_v38  ;;  %v3168_v23 = vld [vmem:[#allocation12 + $0x268] sm:$0xff]  ;;  %v3280_v17 = vld [vmem:[#allocation12 + $0x310] sm:$0xff] }
 0x665   : > { %v2931_v26 = vadd.f32 %v6485_v21, %v2927_v24  ;;  %v3177_v21 = vld [vmem:[#allocation12 + $0x2a8] sm:$0xff]  ;;  %v3298_v38 = vld [vmem:[#allocation12 + $0x390] sm:$0xff] }
 0x666   : > { %v2816_v27 = vadd.f32 %v6483_v9, %v2811_v25  ;;  %3231 = vmatpush.msra.mxu2 %v3169_v18  ;;  %v3186_v24 = vld [vmem:[#allocation12 + $0x2e8] sm:$0xff]  ;;  %v3176_v25 = vld [vmem:[#allocation12 + $0x2a0] sm:$0xff] }
 0x667   : > { %v2932_v28 = vmax.f32 %v2931_v26, 0.0  ;;  %v3167_v26 = vld [vmem:[#allocation12 + $0x260] sm:$0xff]  ;;  %v3297_v18 = vld [vmem:[#allocation12 + $0x388] sm:$0xff] }
 0x668   : > { %v2818_v29 = vadd.f32 %v2816_v27, %v2538_v13  ;;  %3232 = vmatpush.msra.mxu2 %v3168_v23  ;;  %v3185_v27 = vld [vmem:[#allocation12 + $0x2e0] sm:$0xff] }
 0x669   : > { %2964 = vst.msk [vmem:[#allocation3 + $0x1] sm:$0xff] %vm1681_vm0, %v2932_v28  ;;  %v3175_v28 = vld [vmem:[#allocation12 + $0x298] sm:$0xff]  ;;  %v3296_v23 = vld [vmem:[#allocation12 + $0x380] sm:$0xff] }
 0x66a   : > { %v8017_v6 = vmax.f32 %v2818_v29, 0.0  ;;  %3233 = vmatpush.msra.mxu2 %v3167_v26  ;;  %v3166_v29 = vld [vmem:[#allocation12 + $0x258] sm:$0xff] }
 0x66b   : > { %v8030_v35 = vld [vmem:[#allocation2 + $0x1] sm:$0xff] }
 0x66c   : > { %4889 = vst.msk [vmem:[#allocation2 + $0x9] sm:$0xff] %vm1681_vm0, %v8017_v6  ;;  %v8032_v36 = vld [vmem:[#allocation2] sm:$0xff]  ;;  %3234 = vmatpush.msra.mxu2 %v3166_v29 }
 0x670   : > { %v2966_v8 = vld [vmem:[#allocation3 + $0x1] sm:$0xff] }
 0x671   : > { %v2965_v30 = vld [vmem:[#allocation3] sm:$0xff]  ;;  %6055 = vmatmul.msk.f32.vlgmr.msra.gmra.mxu3 %vm1681_vm0, %v2966_v8  ;;  %v3184_v8 = vld [vmem:[#allocation12 + $0x2d8] sm:$0xff] }
 0x672   : > { %v3013_v31 = vld [vmem:[#allocation3 + $0x2] sm:$0xff]  ;;  %6056 = vmatmul.msk.f32.vlgmr.msrb.gmra.mxu0 %vm1681_vm0, %v2965_v30  ;;  %3254 = vmatpush.msra.mxu3 %v3188_v39 }
 0x673   : > { %6057 = vmatmul.msk.f32.vlgmr.msrb.gmra.mxu1 %vm1681_vm0, %v3013_v31  ;;  %v8024_v33 = vld [vmem:[#allocation2 + $0x2] sm:$0xff]  ;;  %v8028_v13 = vld [vmem:[#allocation2 + $0xa] sm:$0xff]  ;;  %3322 = vmatpush.msrb.mxu0 %v3294_v59  ;;  %v3288_v39 = vld [vmem:[#allocation12 + $0x348] sm:$0xff] }
 0x674   : > { %v8026_v12 = vld [vmem:[#allocation2 + $0x9] sm:$0xff]  ;;  %3255 = vmatpush.msra.mxu3 %v3187_v20  ;;  %v3174_v30 = vld [vmem:[#allocation12 + $0x290] sm:$0xff] }
 0x675   : > { %v8034_v37 = vld [vmem:[#allocation2 + $0x8] sm:$0xff]  ;;  %v3165_v31 = vld [vmem:[#allocation12 + $0x250] sm:$0xff]  ;;  %3323 = vmatpush.msrb.mxu0 %v3293_v1  ;;  %v3287_v20 = vld [vmem:[#allocation12 + $0x340] sm:$0xff] }
 0x676   : > { %5140 = vst.msk [vmem:[#allocation2 + $0x1] sm:$0xff] %vm1681_vm0, %v8010_v22  ;;  %3256 = vmatpush.msra.mxu3 %v3186_v24  ;;  %3235 = vmatpush.msra.mxu2 %v3165_v31  ;;  %v3412_v59 = vld [vmem:[#allocation12 + $0x450] sm:$0xff]  ;;  %v3411_v1 = vld [vmem:[#allocation12 + $0x448] sm:$0xff] }
 0x677   : > { %5141 = vst.msk [vmem:[#allocation2 + $0x9] sm:$0xff] %vm1681_vm0, %v8017_v6 }
 0x678   : > { %3257 = vmatpush.msra.mxu3 %v3185_v27  ;;  %3236 = vmatpush.msra.mxu2 %v3164_v58  ;;  %v6490_v27 = vld [vmem:[#allocation14 + $0x3] ss:$0 sm:$0xff] }
 0x67a   : > { %3258 = vmatpush.msra.mxu3 %v3184_v8  ;;  %3237 = vmatpush.msra.mxu2 %v3163_v62  ;;  %v6491_v8 = vld [vmem:[#allocation11 + $0x3] ss:$0 sm:$0xff] }
 0x67b   : > { %v3408_v62 = vld [vmem:[#allocation12 + $0x438] sm:$0xff] }
 0x67c   : > { %3259 = vmatpush.msra.mxu3 %v3183_v40 }
 0x67e   : > { %3260 = vmatpush.msra.mxu3 %v3182_v41 }
 0x680   : > { %3261 = vmatpush.msra.mxu3 %v3181_v63  ;;  %v3399_v63 = vld [vmem:[#allocation12 + $0x3f8] sm:$0xff] }
 0x6ef   : > { %v3010_v2 = vpop.f32.mrf.mxu0 }
 0x6f0   : > { %v3034_v19 = vpop.f32.mrf.mxu1 }
 0x6f4   : > { %v2987_v16 = vpop.f32.mrf.mxu3 }
 0x6f5   : > { %v3011_v3 = vadd.f32 %v3010_v2, %v2987_v16  ;;  %v3284_v2 = vld [vmem:[#allocation12 + $0x330] sm:$0xff] }
 0x6f6   : > { %v3302_v16 = vld [vmem:[#allocation12 + $0x3b0] sm:$0xff] }
 0x6f7   : > { %v3037_v5 = vadd.f32 %v3034_v19, %v3011_v3  ;;  %v3292_v3 = vld [vmem:[#allocation12 + $0x368] sm:$0xff] }
 0x6f8   : > { %v3301_v19 = vld [vmem:[#allocation12 + $0x3a8] sm:$0xff]  ;;  %3324 = vmatpush.msrb.mxu0 %v3292_v3  ;;  %v3410_v3 = vld [vmem:[#allocation12 + $0x440] sm:$0xff] }
 0x6f9   : > { %v3041_v9 = vmul.f32 %v6486_v4, %v3037_v5  ;;  %v3283_v4 = vld [vmem:[#allocation12 + $0x328] sm:$0xff]  ;;  %v3291_v5 = vld [vmem:[#allocation12 + $0x360] sm:$0xff] }
 0x6fa   : > { %3325 = vmatpush.msrb.mxu0 %v3291_v5 }
 0x6fb   : > { %v3045_v10 = vadd.f32 %v6487_v7, %v3041_v9  ;;  %v3282_v7 = vld [vmem:[#allocation12 + $0x320] sm:$0xff] }
 0x6fc   : > { %v3300_v9 = vld [vmem:[#allocation12 + $0x3a0] sm:$0xff] }
 0x6fd   : > { %v8041_v11 = vadd.f32 %v3045_v10, %v7991_v50  ;;  %v3178_v50 = vld [vmem:[#allocation12 + $0x2b0] sm:$0xff]  ;;  %v3290_v10 = vld [vmem:[#allocation12 + $0x358] sm:$0xff] }
 0x6fe   : > { %3208 = vmatpush.msra.mxu1 %v3178_v50  ;;  %3326 = vmatpush.msrb.mxu0 %v3290_v10  ;;  %v3279_v50 = vld [vmem:[#allocation12 + $0x308] sm:$0xff] }
 0x6ff   : > { %v3047_v14 = vmax.f32 %v8041_v11, 0.0  ;;  %v3417_v11 = vld [vmem:[#allocation12 + $0x478] sm:$0xff] }
 0x700   : > { %3209 = vmatpush.msra.mxu1 %v3177_v21  ;;  %v3278_v21 = vld [vmem:[#allocation12 + $0x300] sm:$0xff] }
 0x701   : > { %3079 = vst.msk [vmem:[#allocation3 + $0x1] sm:$0xff] %vm1681_vm0, %v3047_v14 }
 0x702   : > { %3210 = vmatpush.msra.mxu1 %v3176_v25 }
 0x704   : > { %3211 = vmatpush.msra.mxu1 %v3175_v28 }
 0x706   : > { %3212 = vmatpush.msra.mxu1 %v3174_v30 }
 0x708   : > { %v3081_v32 = vld [vmem:[#allocation3 + $0x1] sm:$0xff]  ;;  %3213 = vmatpush.msra.mxu1 %v3173_v56 }
 0x709   : > { %v3080_v34 = vld [vmem:[#allocation3] sm:$0xff]  ;;  %6058 = vmatmul.msk.f32.vlgmr.msrb.gmra.mxu2 %vm1681_vm0, %v3081_v32  ;;  %v3281_v32 = vld [vmem:[#allocation12 + $0x318] sm:$0xff] }
 0x70a   : > { %v3128_v15 = vld [vmem:[#allocation3 + $0x2] sm:$0xff]  ;;  %6059 = vmatmul.msk.f32.vlgmr.msrb.gmra.mxu3 %vm1681_vm0, %v3080_v34  ;;  %3214 = vmatpush.msra.mxu1 %v3172_v42  ;;  %v3299_v34 = vld [vmem:[#allocation12 + $0x398] sm:$0xff] }
 0x70b   : > { %6060 = vmatmul.msk.f32.vlgmr.msra.gmra.mxu0 %vm1681_vm0, %v3128_v15  ;;  %3369 = vmatpush.msrb.mxu2 %v3303_v61  ;;  %v3289_v15 = vld [vmem:[#allocation12 + $0x350] sm:$0xff]  ;;  %v3393_v61 = vld [vmem:[#allocation12 + $0x3c8] sm:$0xff] }
 0x70c   : > { %3345 = vmatpush.msrb.mxu1 %v3285_v60  ;;  %3327 = vmatpush.msrb.mxu0 %v3289_v15  ;;  %v3402_v60 = vld [vmem:[#allocation12 + $0x408] sm:$0xff] }
 0x70d   : > { %3370 = vmatpush.msrb.mxu2 %v3302_v16  ;;  %3436 = vmatpush.msrb.mxu3 %v3408_v62  ;;  %v3392_v16 = vld [vmem:[#allocation12 + $0x3c0] sm:$0xff]  ;;  %v3509_v62 = vld [vmem:[#allocation12 + $0x490] sm:$0xff] }
 0x70e   : > { %3346 = vmatpush.msrb.mxu1 %v3284_v2  ;;  %3328 = vmatpush.msrb.mxu0 %v3288_v39  ;;  %v3401_v2 = vld [vmem:[#allocation12 + $0x400] sm:$0xff] }
 0x70f   : > { %3371 = vmatpush.msrb.mxu2 %v3301_v19 }
 0x710   : > { %3347 = vmatpush.msrb.mxu1 %v3283_v4  ;;  %3329 = vmatpush.msrb.mxu0 %v3287_v20  ;;  %v3514_v20 = vld [vmem:[#allocation12 + $0x4b8] sm:$0xff] }
 0x711   : > { %3372 = vmatpush.msrb.mxu2 %v3300_v9 }
 0x712   : > { %3348 = vmatpush.msrb.mxu1 %v3282_v7  ;;  %3459 = vmatpush.msra.mxu0 %v3399_v63  ;;  %v6492_v7 = vld [vmem:[#allocation14 + $0x4] ss:$0 sm:$0xff]  ;;  %v3527_v63 = vld [vmem:[#allocation12 + $0x510] sm:$0xff] }
 0x713   : > { %3373 = vmatpush.msrb.mxu2 %v3299_v34 }
 0x714   : > { %3349 = vmatpush.msrb.mxu1 %v3281_v32  ;;  %v6493_v32 = vld [vmem:[#allocation11 + $0x4] ss:$0 sm:$0xff] }
 0x715   : > { %3374 = vmatpush.msrb.mxu2 %v3298_v38 }
 0x716   : > { %3350 = vmatpush.msrb.mxu1 %v3280_v17 }
 0x717   : > { %3375 = vmatpush.msrb.mxu2 %v3297_v18  ;;  %v3523_v18 = vld [vmem:[#allocation12 + $0x4f8] sm:$0xff] }
 0x718   : > { %3351 = vmatpush.msrb.mxu1 %v3279_v50 }
 0x719   : > { %3376 = vmatpush.msrb.mxu2 %v3296_v23  ;;  %v3522_v23 = vld [vmem:[#allocation12 + $0x4f0] sm:$0xff] }
 0x71a   : > { %3352 = vmatpush.msrb.mxu1 %v3278_v21  ;;  %v3532_v21 = vld [vmem:[#allocation12 + $0x538] sm:$0xff] }
 0x788   : > { %v3149_v47 = vpop.f32.mrf.mxu0 }
 0x78c   : > { %v3102_v43 = vpop.f32.mrf.mxu2 }
 0x78d   : > { %v3125_v44 = vpop.f32.mrf.mxu3 }
 0x78e   : > { %v3126_v45 = vadd.f32 %v3125_v44, %v3102_v43  ;;  %v3398_v43 = vld [vmem:[#allocation12 + $0x3f0] sm:$0xff] }
 0x78f   : > { %3460 = vmatpush.msra.mxu0 %v3398_v43  ;;  %v3416_v44 = vld [vmem:[#allocation12 + $0x470] sm:$0xff]  ;;  %v3526_v43 = vld [vmem:[#allocation12 + $0x508] sm:$0xff] }
 0x790   : > { %v3152_v48 = vadd.f32 %v3149_v47, %v3126_v45  ;;  %v3406_v45 = vld [vmem:[#allocation12 + $0x428] sm:$0xff] }
 0x791   : > { %v3415_v47 = vld [vmem:[#allocation12 + $0x468] sm:$0xff] }
 0x792   : > { %v3156_v51 = vmul.f32 %v6488_v46, %v3152_v48  ;;  %v3397_v46 = vld [vmem:[#allocation12 + $0x3e8] sm:$0xff]  ;;  %v3405_v48 = vld [vmem:[#allocation12 + $0x420] sm:$0xff] }
 0x793   : > { %3461 = vmatpush.msra.mxu0 %v3397_v46  ;;  %v3525_v46 = vld [vmem:[#allocation12 + $0x500] sm:$0xff] }
 0x794   : > { %v3160_v52 = vadd.f32 %v6489_v49, %v3156_v51  ;;  %v3396_v49 = vld [vmem:[#allocation12 + $0x3e0] sm:$0xff] }
 0x795   : > { %v3414_v51 = vld [vmem:[#allocation12 + $0x460] sm:$0xff]  ;;  %3462 = vmatpush.msra.mxu0 %v3396_v49 }
 0x796   : > { %v3161_v53 = vmax.f32 %v3160_v52, 0.0  ;;  %v3404_v52 = vld [vmem:[#allocation12 + $0x418] sm:$0xff] }
 0x798   : > { %3193 = vst.msk [vmem:[#allocation3 + $0x1] sm:$0xff] %vm1681_vm0, %v3161_v53  ;;  %v3395_v53 = vld [vmem:[#allocation12 + $0x3d8] sm:$0xff] }
 0x799   : > { %3463 = vmatpush.msra.mxu0 %v3395_v53 }
 0x79f   : > { %v3195_v54 = vld [vmem:[#allocation3 + $0x1] sm:$0xff] }
 0x7a0   : > { %v3194_v55 = vld [vmem:[#allocation3] sm:$0xff]  ;;  %6061 = vmatmul.msk.f32.vlgmr.msra.gmra.mxu1 %vm1681_vm0, %v3195_v54  ;;  %v3413_v54 = vld [vmem:[#allocation12 + $0x458] sm:$0xff] }
 0x7a1   : > { %v3242_v57 = vld [vmem:[#allocation3 + $0x2] sm:$0xff]  ;;  %6062 = vmatmul.msk.f32.vlgmr.msra.gmra.mxu2 %vm1681_vm0, %v3194_v55  ;;  %3483 = vmatpush.msra.mxu1 %v3417_v11 }
 0x7a2   : > { %6063 = vmatmul.msk.f32.vlgmr.msra.gmra.mxu3 %vm1681_vm0, %v3242_v57  ;;  %v3403_v55 = vld [vmem:[#allocation12 + $0x410] sm:$0xff]  ;;  %3551 = vmatpush.msra.mxu2 %v3523_v18  ;;  %v3517_v11 = vld [vmem:[#allocation12 + $0x4c8] sm:$0xff]  ;;  %v3621_v18 = vld [vmem:[#allocation12 + $0x540] sm:$0xff] }
 0x7a3   : > { %3484 = vmatpush.msra.mxu1 %v3416_v44  ;;  %v3394_v57 = vld [vmem:[#allocation12 + $0x3d0] sm:$0xff]  ;;  %v3516_v44 = vld [vmem:[#allocation12 + $0x4c0] sm:$0xff] }
 0x7a4   : > { %3464 = vmatpush.msra.mxu0 %v3394_v57  ;;  %3552 = vmatpush.msra.mxu2 %v3522_v23  ;;  %v3631_v23 = vld [vmem:[#allocation12 + $0x588] sm:$0xff] }
 0x7a5   : > { %3485 = vmatpush.msra.mxu1 %v3415_v47 }
 0x7a6   : > { %3465 = vmatpush.msra.mxu0 %v3393_v61 }
 0x7a7   : > { %3486 = vmatpush.msra.mxu1 %v3414_v51  ;;  %v6494_v51 = vld [vmem:[#allocation14 + $0x5] ss:$0 sm:$0xff] }
 0x7a8   : > { %3466 = vmatpush.msra.mxu0 %v3392_v16  ;;  %v3628_v16 = vld [vmem:[#allocation12 + $0x578] sm:$0xff] }
 0x7a9   : > { %3487 = vmatpush.msra.mxu1 %v3413_v54  ;;  %v6495_v54 = vld [vmem:[#allocation11 + $0x5] ss:$0 sm:$0xff] }
 0x7ab   : > { %3488 = vmatpush.msra.mxu1 %v3412_v59 }
 0x7ad   : > { %3489 = vmatpush.msra.mxu1 %v3411_v1 }
 0x7af   : > { %3490 = vmatpush.msra.mxu1 %v3410_v3  ;;  %v3627_v3 = vld [vmem:[#allocation12 + $0x570] sm:$0xff] }
 0x81d   : > { %v3216_v24 = vpop.f32.mrf.mxu1 }
 0x824   : > { %v3239_v25 = vpop.f32.mrf.mxu2 }
 0x825   : > { %v3240_v26 = vadd.f32 %v3239_v25, %v3216_v24  ;;  %v3263_v28 = vpop.f32.mrf.mxu3  ;;  %v3513_v24 = vld [vmem:[#allocation12 + $0x4b0] sm:$0xff] }
 0x826   : > { %v3531_v25 = vld [vmem:[#allocation12 + $0x530] sm:$0xff] }
 0x827   : > { %v3266_v29 = vadd.f32 %v3263_v28, %v3240_v26  ;;  %v3521_v26 = vld [vmem:[#allocation12 + $0x4e8] sm:$0xff] }
 0x828   : > { %v3530_v28 = vld [vmem:[#allocation12 + $0x528] sm:$0xff]  ;;  %3553 = vmatpush.msra.mxu2 %v3521_v26  ;;  %v3630_v26 = vld [vmem:[#allocation12 + $0x580] sm:$0xff] }
 0x829   : > { %v3270_v30 = vmul.f32 %v6490_v27, %v3266_v29  ;;  %v3512_v27 = vld [vmem:[#allocation12 + $0x4a8] sm:$0xff]  ;;  %v3520_v29 = vld [vmem:[#allocation12 + $0x4e0] sm:$0xff] }
 0x82a   : > { %3554 = vmatpush.msra.mxu2 %v3520_v29  ;;  %v3743_v29 = vld [vmem:[#allocation17 + $0x38] sm:$0xff] }
 0x82b   : > { %v3274_v31 = vadd.f32 %v6491_v8, %v3270_v30  ;;  %v3511_v8 = vld [vmem:[#allocation12 + $0x4a0] sm:$0xff] }
 0x82c   : > { %v3529_v30 = vld [vmem:[#allocation12 + $0x520] sm:$0xff] }
 0x82d   : > { %v8056_v40 = vadd.f32 %v3274_v31, %v3047_v14  ;;  %v3407_v14 = vld [vmem:[#allocation12 + $0x430] sm:$0xff]  ;;  %v3519_v31 = vld [vmem:[#allocation12 + $0x4d8] sm:$0xff] }
 0x82e   : > { %3437 = vmatpush.msrb.mxu3 %v3407_v14  ;;  %3555 = vmatpush.msra.mxu2 %v3519_v31  ;;  %v3508_v14 = vld [vmem:[#allocation12 + $0x488] sm:$0xff]  ;;  %v3639_v31 = vld [vmem:[#allocation12 + $0x5c0] sm:$0xff] }
 0x82f   : > { %v3276_v56 = vmax.f32 %v8056_v40, 0.0  ;;  %v3637_v40 = vld [vmem:[#allocation12 + $0x5b8] sm:$0xff] }
 0x830   : > { %3438 = vmatpush.msrb.mxu3 %v3406_v45  ;;  %v3507_v45 = vld [vmem:[#allocation12 + $0x480] sm:$0xff] }
 0x831   : > { %3308 = vst.msk [vmem:[#allocation3 + $0x1] sm:$0xff] %vm1681_vm0, %v3276_v56 }
 0x832   : > { %3439 = vmatpush.msrb.mxu3 %v3405_v48 }
 0x834   : > { %3440 = vmatpush.msrb.mxu3 %v3404_v52 }
 0x836   : > { %3441 = vmatpush.msrb.mxu3 %v3403_v55 }
 0x838   : > { %v3310_v58 = vld [vmem:[#allocation3 + $0x1] sm:$0xff]  ;;  %3442 = vmatpush.msrb.mxu3 %v3402_v60 }
 0x839   : > { %v3309_v41 = vld [vmem:[#allocation3] sm:$0xff]  ;;  %6064 = vmatmul.msk.f32.vlgmr.msrb.gmra.mxu0 %vm1681_vm0, %v3310_v58  ;;  %v3510_v58 = vld [vmem:[#allocation12 + $0x498] sm:$0xff] }
 0x83a   : > { %v3357_v42 = vld [vmem:[#allocation3 + $0x2] sm:$0xff]  ;;  %6065 = vmatmul.msk.f32.vlgmr.msrb.gmra.mxu1 %vm1681_vm0, %v3309_v41  ;;  %3443 = vmatpush.msrb.mxu3 %v3401_v2  ;;  %v3528_v41 = vld [vmem:[#allocation12 + $0x518] sm:$0xff] }
 0x83b   : > { %6066 = vmatmul.msk.f32.vlgmr.msrb.gmra.mxu2 %vm1681_vm0, %v3357_v42  ;;  %3598 = vmatpush.msrb.mxu0 %v3532_v21  ;;  %v3518_v42 = vld [vmem:[#allocation12 + $0x4d0] sm:$0xff]  ;;  %v3761_v21 = vld [vmem:[#allocation17 + $0xb8] sm:$0xff] }
 0x83c   : > { %3574 = vmatpush.msra.mxu3 %v3514_v20  ;;  %3556 = vmatpush.msra.mxu2 %v3518_v42  ;;  %v3642_v20 = vld [vmem:[#allocation12 + $0x5d8] sm:$0xff]  ;;  %v8083_v42 = vld [vmem:[%s1680_s3] sm:$0xf]  ;;  %s8536_s3 = sld [smem:[#allocation74_spill]] }
 0x83d   : > { %3599 = vmatpush.msrb.mxu0 %v3531_v25  ;;  %3665 = vmatpush.msrb.mxu1 %v3637_v40  ;;  %v3760_v25 = vld [vmem:[#allocation17 + $0xb0] sm:$0xff]  ;;  %3765 = vst.msk [vmem:[#allocation4 + $0x1] sm:$0xf] %vm3764_vm3, %v8083_v42 }
 0x83e   : > { %3575 = vmatpush.msra.mxu3 %v3513_v24  ;;  %3557 = vmatpush.msra.mxu2 %v3517_v11  ;;  %v3641_v24 = vld [vmem:[#allocation12 + $0x5d0] sm:$0xff]  ;;  %v3757_v11 = vld [vmem:[#allocation17 + $0x98] sm:$0xff] }
 0x83f   : > { %3600 = vmatpush.msrb.mxu0 %v3530_v28  ;;  %v3752_v28 = vld [vmem:[#allocation17 + $0x78] sm:$0xff] }
 0x840   : > { %3576 = vmatpush.msra.mxu3 %v3512_v27  ;;  %3558 = vmatpush.msra.mxu2 %v3516_v44  ;;  %v3640_v27 = vld [vmem:[#allocation12 + $0x5c8] sm:$0xff]  ;;  %v3756_v44 = vld [vmem:[#allocation17 + $0x90] sm:$0xff] }
 0x841   : > { %3601 = vmatpush.msrb.mxu0 %v3529_v30  ;;  %v3751_v30 = vld [vmem:[#allocation17 + $0x70] sm:$0xff] }
 0x842   : > { %3577 = vmatpush.msra.mxu3 %v3511_v8  ;;  %3688 = vmatpush.msrb.mxu2 %v3628_v16  ;;  %v3759_v8 = vld [vmem:[#allocation17 + $0xa8] sm:$0xff]  ;;  %v6496_v16 = vld [vmem:[#allocation14 + $0x6] ss:$0 sm:$0xff] }
 0x843   : > { %3602 = vmatpush.msrb.mxu0 %v3528_v41  ;;  %v3758_v41 = vld [vmem:[#allocation17 + $0xa0] sm:$0xff] }
 0x844   : > { %3578 = vmatpush.msra.mxu3 %v3510_v58  ;;  %3689 = vmatpush.msrb.mxu2 %v3627_v3  ;;  %v3742_v58 = vld [vmem:[#allocation17 + $0x30] sm:$0xff] }
 0x845   : > { %3603 = vmatpush.msrb.mxu0 %v3527_v63  ;;  %v3741_v63 = vld [vmem:[#allocation17 + $0x28] sm:$0xff] }
 0x846   : > { %3579 = vmatpush.msra.mxu3 %v3509_v62  ;;  %v3750_v62 = vld [vmem:[#allocation17 + $0x68] sm:$0xff] }
 0x847   : > { %3604 = vmatpush.msrb.mxu0 %v3526_v43  ;;  %v3740_v43 = vld [vmem:[#allocation17 + $0x20] sm:$0xff] }
 0x848   : > { %3580 = vmatpush.msra.mxu3 %v3508_v14  ;;  %v3749_v14 = vld [vmem:[#allocation17 + $0x60] sm:$0xff] }
 0x849   : > { %3605 = vmatpush.msrb.mxu0 %v3525_v46  ;;  %v3739_v46 = vld [vmem:[#allocation17 + $0x18] sm:$0xff] }
 0x84a   : > { %3581 = vmatpush.msra.mxu3 %v3507_v45  ;;  %v3748_v45 = vld [vmem:[#allocation17 + $0x58] sm:$0xff] }
 0x8b6   : > { %v3331_v4 = vpop.f32.mrf.mxu0 }
 0x8b7   : > { %v3354_v19 = vpop.f32.mrf.mxu1 }
 0x8b8   : > { %v3355_v5 = vadd.f32 %v3354_v19, %v3331_v4  ;;  %v3636_v4 = vld [vmem:[#allocation12 + $0x5b0] sm:$0xff]  ;;  %v3625_v19 = vld [vmem:[#allocation12 + $0x560] sm:$0xff] }
 0x8b9   : > { %3666 = vmatpush.msrb.mxu1 %v3636_v4 }
 0x8be   : > { %v3378_v9 = vpop.f32.mrf.mxu2 }
 0x8bf   : > { %v3381_v10 = vadd.f32 %v3378_v9, %v3355_v5  ;;  %v3646_v5 = vld [vmem:[#allocation12 + $0x5f8] sm:$0xff] }
 0x8c0   : > { %v3624_v9 = vld [vmem:[#allocation12 + $0x558] sm:$0xff] }
 0x8c1   : > { %v3385_v34 = vmul.f32 %v6492_v7, %v3381_v10  ;;  %v3635_v7 = vld [vmem:[#allocation12 + $0x5a8] sm:$0xff]  ;;  %v3645_v10 = vld [vmem:[#allocation12 + $0x5f0] sm:$0xff] }
 0x8c2   : > { %3667 = vmatpush.msrb.mxu1 %v3635_v7 }
 0x8c3   : > { %v3389_v15 = vadd.f32 %v6493_v32, %v3385_v34  ;;  %v3634_v32 = vld [vmem:[#allocation12 + $0x5a0] sm:$0xff]  ;;  %v3623_v34 = vld [vmem:[#allocation12 + $0x550] sm:$0xff] }
 0x8c4   : > { %3668 = vmatpush.msrb.mxu1 %v3634_v32  ;;  %v3814_v32 = vld [vmem:[#allocation4 + $0x2] sm:$0xf] }
 0x8c5   : > { %v3390_v17 = vmax.f32 %v3389_v15, 0.0  ;;  %v3644_v15 = vld [vmem:[#allocation12 + $0x5e8] sm:$0xff] }
 0x8c7   : > { %3422 = vst.msk [vmem:[#allocation3 + $0x1] sm:$0xff] %vm1681_vm0, %v3390_v17  ;;  %v3633_v17 = vld [vmem:[#allocation12 + $0x598] sm:$0xff] }
 0x8c8   : > { %3669 = vmatpush.msrb.mxu1 %v3633_v17  ;;  %v3856_v17 = vld [vmem:[#allocation17 + $0xf8] sm:$0xff] }
 0x8ce   : > { %v3424_v38 = vld [vmem:[#allocation3 + $0x1] sm:$0xff] }
 0x8cf   : > { %v3423_v39 = vld [vmem:[#allocation3] sm:$0xff]  ;;  %6067 = vmatmul.msk.f32.vlgmr.msrb.gmra.mxu3 %vm1681_vm0, %v3424_v38 }
 0x8d0   : > { %v3471_v50 = vld [vmem:[#allocation3 + $0x2] sm:$0xff]  ;;  %6068 = vmatmul.msk.f32.vlgmr.msra.gmra.mxu0 %vm1681_vm0, %v3423_v39  ;;  %3712 = vmatpush.msrb.mxu3 %v3646_v5  ;;  %v3643_v39 = vld [vmem:[#allocation12 + $0x5e0] sm:$0xff] }
 0x8d1   : > { %6069 = vmatmul.msk.f32.vlgmr.msra.gmra.mxu1 %vm1681_vm0, %v3471_v50  ;;  %v3622_v38 = vld [vmem:[#allocation12 + $0x548] sm:$0xff]  ;;  %v3632_v50 = vld [vmem:[#allocation12 + $0x590] sm:$0xff]  ;;  %3779 = vmatpush.msra.mxu0 %v3752_v28 }
 0x8d2   : > { %3713 = vmatpush.msrb.mxu3 %v3645_v10  ;;  %3670 = vmatpush.msrb.mxu1 %v3632_v50  ;;  %v3855_v50 = vld [vmem:[#allocation17 + $0xf0] sm:$0xff]  ;;  %v3852_v28 = vld [vmem:[#allocation17 + $0xd8] sm:$0xff] }
 0x8d3   : > { %3780 = vmatpush.msra.mxu0 %v3751_v30  ;;  %v3851_v30 = vld [vmem:[#allocation17 + $0xd0] sm:$0xff] }
 0x8d4   : > { %3714 = vmatpush.msrb.mxu3 %v3644_v15  ;;  %3671 = vmatpush.msrb.mxu1 %v3631_v23  ;;  %v3865_v15 = vld [vmem:[#allocation17 + $0x138] sm:$0xff]  ;;  %v3872_v23 = vld [vmem:[#allocation17 + $0x168] sm:$0xff] }
 0x8d5   : > { %3781 = vmatpush.msra.mxu0 %v3750_v62  ;;  %v3868_v62 = vld [vmem:[#allocation17 + $0x148] sm:$0xff] }
 0x8d6   : > { %3715 = vmatpush.msrb.mxu3 %v3643_v39  ;;  %3672 = vmatpush.msrb.mxu1 %v3630_v26  ;;  %v3864_v39 = vld [vmem:[#allocation17 + $0x130] sm:$0xff]  ;;  %v3871_v26 = vld [vmem:[#allocation17 + $0x160] sm:$0xff] }
 0x8d7   : > { %3782 = vmatpush.msra.mxu0 %v3749_v14  ;;  %v3867_v14 = vld [vmem:[#allocation17 + $0x140] sm:$0xff] }
 0x8d8   : > { %3716 = vmatpush.msrb.mxu3 %v3642_v20  ;;  %3802 = vmatpush.msra.mxu1 %v3743_v29  ;;  %v3863_v20 = vld [vmem:[#allocation17 + $0x128] sm:$0xff]  ;;  %v3870_v29 = vld [vmem:[#allocation17 + $0x158] sm:$0xff] }
 0x8d9   : > { %3783 = vmatpush.msra.mxu0 %v3748_v45 }
 0x8da   : > { %3717 = vmatpush.msrb.mxu3 %v3641_v24  ;;  %3803 = vmatpush.msra.mxu1 %v3742_v58  ;;  %v3862_v24 = vld [vmem:[#allocation17 + $0x120] sm:$0xff]  ;;  %v3859_v58 = vld [vmem:[#allocation17 + $0x108] sm:$0xff] }
 0x8dc   : > { %3718 = vmatpush.msrb.mxu3 %v3640_v27  ;;  %3804 = vmatpush.msra.mxu1 %v3741_v63  ;;  %v3861_v27 = vld [vmem:[#allocation17 + $0x118] sm:$0xff]  ;;  %v3858_v63 = vld [vmem:[#allocation17 + $0x100] sm:$0xff] }
 0x8de   : > { %3719 = vmatpush.msrb.mxu3 %v3639_v31  ;;  %3805 = vmatpush.msra.mxu1 %v3740_v43  ;;  %v3869_v31 = vld [vmem:[#allocation17 + $0x150] sm:$0xff] }
 0x8e0   : > { %3806 = vmatpush.msra.mxu1 %v3739_v46  ;;  %v6498_v46 = vld [vmem:[#allocation14 + $0x7] ss:$0 sm:$0xff] }
 0x94d   : > { %v3468_v47 = vpop.f32.mrf.mxu0 }
 0x94e   : > { %v3492_v52 = vpop.f32.mrf.mxu1 }
 0x952   : > { %v3445_v48 = vpop.f32.mrf.mxu3 }
 0x953   : > { %v3469_v49 = vadd.f32 %v3468_v47, %v3445_v48  ;;  %v3755_v47 = vld [vmem:[#allocation17 + $0x88] sm:$0xff]  ;;  %v3747_v48 = vld [vmem:[#allocation17 + $0x50] sm:$0xff] }
 0x954   : > { %3784 = vmatpush.msra.mxu0 %v3747_v48 }
 0x955   : > { %v3495_v53 = vadd.f32 %v3492_v52, %v3469_v49  ;;  %v3738_v49 = vld [vmem:[#allocation17 + $0x10] sm:$0xff]  ;;  %v3746_v52 = vld [vmem:[#allocation17 + $0x48] sm:$0xff] }
 0x956   : > { %3807 = vmatpush.msra.mxu1 %v3738_v49  ;;  %3785 = vmatpush.msra.mxu0 %v3746_v52  ;;  %v6499_v52 = vld [vmem:[#allocation11 + $0x7] ss:$0 sm:$0xff] }
 0x957   : > { %v3499_v55 = vmul.f32 %v6494_v51, %v3495_v53  ;;  %v3754_v51 = vld [vmem:[#allocation17 + $0x80] sm:$0xff]  ;;  %v3737_v53 = vld [vmem:[#allocation17 + $0x8] sm:$0xff] }
 0x958   : > { %3808 = vmatpush.msra.mxu1 %v3737_v53 }
 0x959   : > { %v3503_v57 = vadd.f32 %v6495_v54, %v3499_v55  ;;  %v3745_v54 = vld [vmem:[#allocation17 + $0x40] sm:$0xff] }
 0x95a   : > { %v3736_v55 = vld [vmem:[#allocation17] sm:$0xff]  ;;  %3786 = vmatpush.msra.mxu0 %v3745_v54 }
 0x95b   : > { %v8071_v59 = vadd.f32 %v3503_v57, %v3276_v56  ;;  %v3626_v56 = vld [vmem:[#allocation12 + $0x568] sm:$0xff]  ;;  %v3767_v57 = vld [vmem:[#allocation4 + $0x1] sm:$0xf]  ;;  %3809 = vmatpush.msra.mxu1 %v3736_v55 }
 0x95c   : > { %3690 = vmatpush.msrb.mxu2 %v3626_v56  ;;  %v6497_v56 = vld [vmem:[#allocation11 + $0x6] ss:$0 sm:$0xff] }
 0x95d   : > { %v3505_v60 = vmax.f32 %v8071_v59, 0.0  ;;  %v3980_v59 = vld [vmem:[#allocation17 + $0x1f8] sm:$0xff] }
 0x95e   : > { %3691 = vmatpush.msrb.mxu2 %v3625_v19 }
 0x95f   : > { %3537 = vst.msk [vmem:[#allocation3 + $0x1] sm:$0xff] %vm1681_vm0, %v3505_v60 }
 0x960   : > { %3692 = vmatpush.msrb.mxu2 %v3624_v9 }
 0x962   : > { %3693 = vmatpush.msrb.mxu2 %v3623_v34  ;;  %v3766_v34 = vld [vmem:[#allocation4] sm:$0xf] }
 0x964   : > { %3694 = vmatpush.msrb.mxu2 %v3622_v38  ;;  %v3874_v38 = vld [vmem:[#allocation17 + $0x178] sm:$0xff] }
 0x966   : > { %v3539_v61 = vld [vmem:[#allocation3 + $0x1] sm:$0xff]  ;;  %3695 = vmatpush.msrb.mxu2 %v3621_v18  ;;  %v3873_v18 = vld [vmem:[#allocation17 + $0x170] sm:$0xff] }
 0x967   : > { %v3538_v1 = vld [vmem:[#allocation3] sm:$0xff]  ;;  %6070 = vmatmul.msk.f32.vlgmr.msra.gmra.mxu2 %vm1681_vm0, %v3539_v61 }
 0x968   : > { %v3586_v2 = vld [vmem:[#allocation3 + $0x2] sm:$0xff]  ;;  %6071 = vmatmul.msk.f32.vlgmr.msra.gmra.mxu3 %vm1681_vm0, %v3538_v1  ;;  %3826 = vmatpush.msra.mxu2 %v3761_v21  ;;  %v3854_v21 = vld [vmem:[#allocation17 + $0xe8] sm:$0xff] }
 0x969   : > { %6072 = vmatmul.msk.f32.vlgmr.msrb.gmra.mxu0 %vm1681_vm0, %v3586_v2  ;;  %3893 = vmatpush.msra.mxu3 %v3865_v15  ;;  %v3978_v15 = vld [vmem:[#allocation17 + $0x1e8] sm:$0xff] }
 0x96a   : > { %3827 = vmatpush.msra.mxu2 %v3760_v25  ;;  %3916 = vmatpush.msrb.mxu0 %v3856_v17  ;;  %v3853_v25 = vld [vmem:[#allocation17 + $0xe0] sm:$0xff]  ;;  %v3969_v17 = vld [vmem:[#allocation17 + $0x1a8] sm:$0xff] }
 0x96b   : > { %3894 = vmatpush.msra.mxu3 %v3864_v39  ;;  %v3977_v39 = vld [vmem:[#allocation17 + $0x1e0] sm:$0xff] }
 0x96c   : > { %3828 = vmatpush.msra.mxu2 %v3759_v8  ;;  %3917 = vmatpush.msrb.mxu0 %v3855_v50  ;;  %v3860_v8 = vld [vmem:[#allocation17 + $0x110] sm:$0xff]  ;;  %v3968_v50 = vld [vmem:[#allocation17 + $0x1a0] sm:$0xff] }
 0x96d   : > { %3895 = vmatpush.msra.mxu3 %v3863_v20  ;;  %v3976_v20 = vld [vmem:[#allocation17 + $0x1d8] sm:$0xff] }
 0x96e   : > { %3829 = vmatpush.msra.mxu2 %v3758_v41  ;;  %3918 = vmatpush.msrb.mxu0 %v3854_v21  ;;  %v3850_v41 = vld [vmem:[#allocation17 + $0xc8] sm:$0xff]  ;;  %v3967_v21 = vld [vmem:[#allocation17 + $0x198] sm:$0xff] }
 0x96f   : > { %3896 = vmatpush.msra.mxu3 %v3862_v24  ;;  %v3975_v24 = vld [vmem:[#allocation17 + $0x1d0] sm:$0xff] }
 0x970   : > { %3830 = vmatpush.msra.mxu2 %v3757_v11  ;;  %3919 = vmatpush.msrb.mxu0 %v3853_v25  ;;  %v3849_v11 = vld [vmem:[#allocation17 + $0xc0] sm:$0xff]  ;;  %v3966_v25 = vld [vmem:[#allocation17 + $0x190] sm:$0xff] }
 0x971   : > { %6076 = vmatmul.msk.f32.vlgmr.msra.gmra.mxu0 %vm1681_vm0, %v3767_v57  ;;  %3897 = vmatpush.msra.mxu3 %v3861_v27  ;;  %v6500_v57 = vld [vmem:[#allocation18] ss:$0 sm:$0xff]  ;;  %v3974_v27 = vld [vmem:[#allocation17 + $0x1c8] sm:$0xff] }
 0x972   : > { %3831 = vmatpush.msra.mxu2 %v3756_v44  ;;  %3920 = vmatpush.msrb.mxu0 %v3852_v28  ;;  %v3965_v28 = vld [vmem:[#allocation17 + $0x188] sm:$0xff] }
 0x973   : > { %3898 = vmatpush.msra.mxu3 %v3860_v8  ;;  %v3973_v8 = vld [vmem:[#allocation17 + $0x1c0] sm:$0xff] }
 0x974   : > { %3832 = vmatpush.msra.mxu2 %v3755_v47  ;;  %3921 = vmatpush.msrb.mxu0 %v3851_v30  ;;  %v3964_v30 = vld [vmem:[#allocation17 + $0x180] sm:$0xff] }
 0x975   : > { %3899 = vmatpush.msra.mxu3 %v3859_v58 }
 0x976   : > { %3833 = vmatpush.msra.mxu2 %v3754_v51  ;;  %3922 = vmatpush.msrb.mxu0 %v3850_v41 }
 0x977   : > { %3900 = vmatpush.msra.mxu3 %v3858_v63  ;;  %v6502_v63 = vld [vmem:[#allocation18 + $0x1] ss:$0 sm:$0xff] }
 0x978   : > { %3923 = vmatpush.msrb.mxu0 %v3849_v11 }
 0x9e6   : > { %v3607_v3 = vpop.f32.mrf.mxu0 }
 0x9ea   : > { %v3560_v61 = vpop.f32.mrf.mxu2 }
 0x9eb   : > { %v3583_v1 = vpop.f32.mrf.mxu3 }
 0x9ec   : > { %v3584_v2 = vadd.f32 %v3583_v1, %v3560_v61 }
 0x9ee   : > { %v3610_v40 = vadd.f32 %v3607_v3, %v3584_v2  ;;  %v3788_v47 = vpop.f32.mrf.mxu0 }
 0x9f0   : > { %v3614_v4 = vmul.f32 %v6496_v16, %v3610_v40  ;;  %v6501_v16 = vld [vmem:[#allocation15] ss:$0 sm:$0xff] }
 0x9f2   : > { %v3618_v19 = vadd.f32 %v6497_v56, %v3614_v4 }
 0x9f4   : > { %v3619_v5 = vmax.f32 %v3618_v19, 0.0 }
 0x9f6   : > { %3651 = vst.msk [vmem:[#allocation3 + $0x1] sm:$0xff] %vm1681_vm0, %v3619_v5 }
 0x9fd   : > { %v3653_v7 = vld [vmem:[#allocation3 + $0x1] sm:$0xff] }
 0x9fe   : > { %v3652_v9 = vld [vmem:[#allocation3] sm:$0xff]  ;;  %6073 = vmatmul.msk.f32.vlgmr.msrb.gmra.mxu1 %vm1681_vm0, %v3653_v7 }
 0x9ff   : > { %v3700_v10 = vld [vmem:[#allocation3 + $0x2] sm:$0xff]  ;;  %6074 = vmatmul.msk.f32.vlgmr.msrb.gmra.mxu2 %vm1681_vm0, %v3652_v9  ;;  %3940 = vmatpush.msrb.mxu1 %v3874_v38  ;;  %v3987_v38 = vld [vmem:[#allocation17 + $0x228] sm:$0xff] }
 0xa00   : > { %6075 = vmatmul.msk.f32.vlgmr.msrb.gmra.mxu3 %vm1681_vm0, %v3700_v10  ;;  %v3989_v9 = vld [vmem:[#allocation17 + $0x238] sm:$0xff]  ;;  %4008 = vmatpush.msrb.mxu2 %v3980_v59  ;;  %v3979_v10 = vld [vmem:[#allocation17 + $0x1f0] sm:$0xff] }
 0xa01   : > { %3941 = vmatpush.msrb.mxu1 %v3873_v18  ;;  %4055 = vmatpush.msra.mxu0 %v3989_v9  ;;  %v3986_v18 = vld [vmem:[#allocation17 + $0x220] sm:$0xff]  ;;  %v4080_v59 = vld [vmem:[#allocation17 + $0x250] sm:$0xff]  ;;  %v4088_v9 = vld [vmem:[#allocation17 + $0x288] sm:$0xff] }
 0xa02   : > { %4009 = vmatpush.msrb.mxu2 %v3979_v10  ;;  %v4079_v10 = vld [vmem:[#allocation17 + $0x248] sm:$0xff] }
 0xa03   : > { %3942 = vmatpush.msrb.mxu1 %v3872_v23  ;;  %v3985_v23 = vld [vmem:[#allocation17 + $0x218] sm:$0xff] }
 0xa04   : > { %4010 = vmatpush.msrb.mxu2 %v3978_v15  ;;  %v4078_v15 = vld [vmem:[#allocation17 + $0x240] sm:$0xff] }
 0xa05   : > { %3943 = vmatpush.msrb.mxu1 %v3871_v26  ;;  %v3984_v26 = vld [vmem:[#allocation17 + $0x210] sm:$0xff] }
 0xa06   : > { %6077 = vmatmul.msk.f32.vlgmr.msra.gmra.mxu1 %vm1681_vm0, %v3766_v34  ;;  %v3988_v34 = vld [vmem:[#allocation17 + $0x230] sm:$0xff]  ;;  %4011 = vmatpush.msrb.mxu2 %v3977_v39 }
 0xa07   : > { %6078 = vmatmul.msk.f32.vlgmr.msra.gmra.mxu2 %vm1681_vm0, %v3814_v32  ;;  %3944 = vmatpush.msrb.mxu1 %v3870_v29  ;;  %v3970_v32 = vld [vmem:[#allocation17 + $0x1b0] sm:$0xff]  ;;  %v3983_v29 = vld [vmem:[#allocation17 + $0x208] sm:$0xff] }
 0xa08   : > { %4056 = vmatpush.msra.mxu0 %v3988_v34  ;;  %4012 = vmatpush.msrb.mxu2 %v3976_v20  ;;  %v4087_v34 = vld [vmem:[#allocation17 + $0x280] sm:$0xff] }
 0xa09   : > { %3945 = vmatpush.msrb.mxu1 %v3869_v31  ;;  %v3982_v31 = vld [vmem:[#allocation17 + $0x200] sm:$0xff] }
 0xa0a   : > { %4057 = vmatpush.msra.mxu0 %v3987_v38  ;;  %4013 = vmatpush.msrb.mxu2 %v3975_v24 }
 0xa0b   : > { %3946 = vmatpush.msrb.mxu1 %v3868_v62 }
 0xa0c   : > { %4058 = vmatpush.msra.mxu0 %v3986_v18  ;;  %4014 = vmatpush.msrb.mxu2 %v3974_v27  ;;  %v6504_v18 = vld [vmem:[#allocation18 + $0x2] ss:$0 sm:$0xff] }
 0xa0d   : > { %3947 = vmatpush.msrb.mxu1 %v3867_v14 }
 0xa0e   : > { %4059 = vmatpush.msra.mxu0 %v3985_v23  ;;  %4015 = vmatpush.msrb.mxu2 %v3973_v8  ;;  %v6505_v23 = vld [vmem:[#allocation15 + $0x2] ss:$0 sm:$0xff] }
 0xa0f   : > { %v4209_v8 = vld [vmem:[#allocation17 + $0x378] sm:$0xff] }
 0xa10   : > { %4060 = vmatpush.msra.mxu0 %v3984_v26 }
 0xa12   : > { %4061 = vmatpush.msra.mxu0 %v3983_v29 }
 0xa14   : > { %4062 = vmatpush.msra.mxu0 %v3982_v31  ;;  %v4218_v31 = vld [vmem:[#allocation17 + $0x3b8] sm:$0xff] }
 0xa7b   : > { %v3674_v43 = vpop.f32.mrf.mxu1 }
 0xa82   : > { %v3697_v44 = vpop.f32.mrf.mxu2 }
 0xa83   : > { %v3698_v45 = vadd.f32 %v3697_v44, %v3674_v43  ;;  %v3721_v48 = vpop.f32.mrf.mxu3  ;;  %v3811_v49 = vpop.f32.mrf.mxu1  ;;  %v6503_v43 = vld [vmem:[#allocation15 + $0x1] ss:$0 sm:$0xff] }
 0xa84   : > { %v3812_v54 = vadd.f32 %v3811_v49, %v3788_v47 }
 0xa85   : > { %v3724_v51 = vadd.f32 %v3721_v48, %v3698_v45 }
 0xa87   : > { %v3728_v53 = vmul.f32 %v6498_v46, %v3724_v51 }
 0xa89   : > { %v3732_v55 = vadd.f32 %v6499_v52, %v3728_v53  ;;  %v4094_v52 = vld [vmem:[#allocation17 + $0x2b8] sm:$0xff] }
 0xa8a   : > { %v3835_v61 = vpop.f32.mrf.mxu2  ;;  %v4085_v53 = vld [vmem:[#allocation17 + $0x278] sm:$0xff]  ;;  %4122 = vmatpush.msra.mxu1 %v4094_v52  ;;  %v4204_v52 = vld [vmem:[#allocation17 + $0x350] sm:$0xff] }
 0xa8b   : > { %v3733_v1 = vadd.f32 %v3732_v55, %v3505_v60  ;;  %v3838_v2 = vadd.f32 %v3835_v61, %v3812_v54  ;;  %v3971_v60 = vld [vmem:[#allocation17 + $0x1b8] sm:$0xff]  ;;  %4145 = vmatpush.msra.mxu2 %v4085_v53  ;;  %v4084_v55 = vld [vmem:[#allocation17 + $0x270] sm:$0xff]  ;;  %v4092_v61 = vld [vmem:[#allocation17 + $0x2a8] sm:$0xff] }
 0xa8c   : > { %4031 = vmatpush.msrb.mxu3 %v3971_v60  ;;  %v4103_v54 = vld [vmem:[#allocation17 + $0x2f8] sm:$0xff]  ;;  %v4098_v60 = vld [vmem:[#allocation17 + $0x2d0] sm:$0xff] }
 0xa8d   : > { %v8096_v3 = vmax.f32 %v3733_v1, 0.0  ;;  %v3842_v40 = vmul.f32 %v6500_v57, %v3838_v2  ;;  %v4102_v57 = vld [vmem:[#allocation17 + $0x2f0] sm:$0xff]  ;;  %4146 = vmatpush.msra.mxu2 %v4084_v55  ;;  %v4083_v1 = vld [vmem:[#allocation17 + $0x268] sm:$0xff] }
 0xa8e   : > { %4032 = vmatpush.msrb.mxu3 %v3970_v32  ;;  %v4101_v2 = vld [vmem:[#allocation17 + $0x2e8] sm:$0xff]  ;;  %v4195_v53 = vld [vmem:[#allocation17 + $0x310] sm:$0xff] }
 0xa8f   : > { %5421 = vst.msk [vmem:[#allocation3 + $0x1] sm:$0xff] %vm1681_vm0, %v8096_v3  ;;  %v3846_v56 = vadd.f32 %v6501_v16, %v3842_v40  ;;  %4147 = vmatpush.msra.mxu2 %v4083_v1  ;;  %v4091_v16 = vld [vmem:[#allocation17 + $0x2a0] sm:$0xff]  ;;  %v4097_v32 = vld [vmem:[#allocation17 + $0x2c8] sm:$0xff] }
 0xa90   : > { %4033 = vmatpush.msrb.mxu3 %v3969_v17  ;;  %v4082_v40 = vld [vmem:[#allocation17 + $0x260] sm:$0xff]  ;;  %v4194_v55 = vld [vmem:[#allocation17 + $0x308] sm:$0xff] }
 0xa91   : > { %v3847_v4 = vmax.f32 %v3846_v56, 0.0  ;;  %v4100_v56 = vld [vmem:[#allocation17 + $0x2e0] sm:$0xff]  ;;  %4148 = vmatpush.msra.mxu2 %v4082_v40 }
 0xa92   : > { %4034 = vmatpush.msrb.mxu3 %v3968_v50  ;;  %v4096_v17 = vld [vmem:[#allocation17 + $0x2c0] sm:$0xff] }
 0xa93   : > { %3879 = vst.msk [vmem:[#allocation4 + $0x1] sm:$0xf] %vm3764_vm3, %v3847_v4  ;;  %v4090_v4 = vld [vmem:[#allocation17 + $0x298] sm:$0xff]  ;;  %v4193_v1 = vld [vmem:[#allocation17 + $0x300] sm:$0xff] }
 0xa94   : > { %4035 = vmatpush.msrb.mxu3 %v3967_v21 }
 0xa96   : > { %4036 = vmatpush.msrb.mxu3 %v3966_v25 }
 0xa98   : > { %4037 = vmatpush.msrb.mxu3 %v3965_v28 }
 0xa9a   : > { %v3881_v19 = vld [vmem:[#allocation4 + $0x1] sm:$0xf]  ;;  %4038 = vmatpush.msrb.mxu3 %v3964_v30  ;;  %v4200_v30 = vld [vmem:[#allocation17 + $0x338] sm:$0xff] }
 0xa9b   : > { %v3880_v5 = vld [vmem:[#allocation4] sm:$0xf]  ;;  %6079 = vmatmul.msk.f32.vlgmr.msra.gmra.mxu3 %vm1681_vm0, %v3881_v19  ;;  %v4081_v19 = vld [vmem:[#allocation17 + $0x258] sm:$0xff] }
 0xa9c   : > { %v3928_v7 = vld [vmem:[#allocation4 + $0x2] sm:$0xf]  ;;  %6080 = vmatmul.msk.f32.vlgmr.msrb.gmra.mxu0 %vm1681_vm0, %v3880_v5  ;;  %4169 = vmatpush.msra.mxu3 %v4103_v54  ;;  %v4099_v5 = vld [vmem:[#allocation17 + $0x2d8] sm:$0xff]  ;;  %v4213_v54 = vld [vmem:[#allocation17 + $0x390] sm:$0xff] }
 0xa9d   : > { %6081 = vmatmul.msk.f32.vlgmr.msrb.gmra.mxu1 %vm1681_vm0, %v3928_v7  ;;  %v4089_v7 = vld [vmem:[#allocation17 + $0x290] sm:$0xff]  ;;  %4149 = vmatpush.msra.mxu2 %v4081_v19 }
 0xa9e   : > { %4170 = vmatpush.msra.mxu3 %v4102_v57  ;;  %4237 = vmatpush.msrb.mxu0 %v4209_v8  ;;  %v4212_v57 = vld [vmem:[#allocation17 + $0x388] sm:$0xff]  ;;  %v4309_v8 = vld [vmem:[#allocation17 + $0x3d0] sm:$0xff] }
 0xa9f   : > { %4150 = vmatpush.msra.mxu2 %v4080_v59 }
 0xaa0   : > { %4171 = vmatpush.msra.mxu3 %v4101_v2  ;;  %v4211_v2 = vld [vmem:[#allocation17 + $0x380] sm:$0xff] }
 0xaa1   : > { %4151 = vmatpush.msra.mxu2 %v4079_v10 }
 0xaa2   : > { %4172 = vmatpush.msra.mxu3 %v4100_v56 }
 0xaa3   : > { %4152 = vmatpush.msra.mxu2 %v4078_v15 }
 0xaa4   : > { %4173 = vmatpush.msra.mxu3 %v4099_v5 }
 0xaa6   : > { %4174 = vmatpush.msra.mxu3 %v4098_v60 }
 0xaa8   : > { %4175 = vmatpush.msra.mxu3 %v4097_v32 }
 0xaaa   : > { %4176 = vmatpush.msra.mxu3 %v4096_v17  ;;  %v4323_v17 = vld [vmem:[#allocation17 + $0x438] sm:$0xff] }
 0xb19   : > { %v3925_v58 = vpop.f32.mrf.mxu0 }
 0xb1a   : > { %v3949_v11 = vpop.f32.mrf.mxu1 }
 0xb1e   : > { %v3902_v41 = vpop.f32.mrf.mxu3 }
 0xb1f   : > { %v3926_v62 = vadd.f32 %v3925_v58, %v3902_v41  ;;  %v4208_v58 = vld [vmem:[#allocation17 + $0x370] sm:$0xff] }
 0xb20   : > { %v4199_v41 = vld [vmem:[#allocation17 + $0x330] sm:$0xff]  ;;  %4238 = vmatpush.msrb.mxu0 %v4208_v58  ;;  %v4308_v58 = vld [vmem:[#allocation17 + $0x3c8] sm:$0xff] }
 0xb21   : > { %v3952_v14 = vadd.f32 %v3949_v11, %v3926_v62  ;;  %v4217_v62 = vld [vmem:[#allocation17 + $0x3b0] sm:$0xff]  ;;  %v4198_v11 = vld [vmem:[#allocation17 + $0x328] sm:$0xff] }
 0xb23   : > { %v3956_v44 = vmul.f32 %v6502_v63, %v3952_v14  ;;  %v4207_v63 = vld [vmem:[#allocation17 + $0x368] sm:$0xff] }
 0xb24   : > { %v4216_v14 = vld [vmem:[#allocation17 + $0x3a8] sm:$0xff]  ;;  %4239 = vmatpush.msrb.mxu0 %v4207_v63  ;;  %v4307_v63 = vld [vmem:[#allocation17 + $0x3c0] sm:$0xff] }
 0xb25   : > { %v3960_v45 = vadd.f32 %v6503_v43, %v3956_v44  ;;  %v4206_v43 = vld [vmem:[#allocation17 + $0x360] sm:$0xff] }
 0xb26   : > { %v4197_v44 = vld [vmem:[#allocation17 + $0x320] sm:$0xff]  ;;  %4240 = vmatpush.msrb.mxu0 %v4206_v43 }
 0xb27   : > { %v8105_v46 = vadd.f32 %v3960_v45, %v8083_v42  ;;  %v4093_v42 = vld [vmem:[#allocation17 + $0x2b0] sm:$0xff]  ;;  %v4215_v45 = vld [vmem:[#allocation17 + $0x3a0] sm:$0xff] }
 0xb28   : > { %4123 = vmatpush.msra.mxu1 %v4093_v42  ;;  %v4203_v42 = vld [vmem:[#allocation17 + $0x348] sm:$0xff] }
 0xb29   : > { %v3962_v47 = vmax.f32 %v8105_v46, 0.0  ;;  %v4332_v46 = vld [vmem:[#allocation17 + $0x478] sm:$0xff] }
 0xb2a   : > { %4124 = vmatpush.msra.mxu1 %v4092_v61  ;;  %v4202_v61 = vld [vmem:[#allocation17 + $0x340] sm:$0xff] }
 0xb2b   : > { %3994 = vst.msk [vmem:[#allocation4 + $0x1] sm:$0xf] %vm3764_vm3, %v3962_v47 }
 0xb2c   : > { %4125 = vmatpush.msra.mxu1 %v4091_v16 }
 0xb2e   : > { %4126 = vmatpush.msra.mxu1 %v4090_v4  ;;  %v6506_v4 = vld [vmem:[#allocation18 + $0x3] ss:$0 sm:$0xff] }
 0xb30   : > { %4127 = vmatpush.msra.mxu1 %v4089_v7  ;;  %v6507_v7 = vld [vmem:[#allocation15 + $0x3] ss:$0 sm:$0xff] }
 0xb32   : > { %v3996_v48 = vld [vmem:[#allocation4 + $0x1] sm:$0xf]  ;;  %4128 = vmatpush.msra.mxu1 %v4088_v9 }
 0xb33   : > { %v3995_v49 = vld [vmem:[#allocation4] sm:$0xf]  ;;  %6082 = vmatmul.msk.f32.vlgmr.msrb.gmra.mxu2 %vm1681_vm0, %v3996_v48  ;;  %v4205_v48 = vld [vmem:[#allocation17 + $0x358] sm:$0xff] }
 0xb34   : > { %v4043_v51 = vld [vmem:[#allocation4 + $0x2] sm:$0xf]  ;;  %6083 = vmatmul.msk.f32.vlgmr.msrb.gmra.mxu3 %vm1681_vm0, %v3995_v49  ;;  %4129 = vmatpush.msra.mxu1 %v4087_v34  ;;  %v4196_v49 = vld [vmem:[#allocation17 + $0x318] sm:$0xff] }
 0xb35   : > { %6084 = vmatmul.msk.f32.vlgmr.msra.gmra.mxu0 %vm1681_vm0, %v4043_v51  ;;  %4284 = vmatpush.msrb.mxu2 %v4218_v31  ;;  %v4214_v51 = vld [vmem:[#allocation17 + $0x398] sm:$0xff]  ;;  %v4317_v31 = vld [vmem:[#allocation17 + $0x408] sm:$0xff] }
 0xb36   : > { %4260 = vmatpush.msrb.mxu1 %v4200_v30  ;;  %4241 = vmatpush.msrb.mxu0 %v4205_v48  ;;  %v4327_v30 = vld [vmem:[#allocation17 + $0x450] sm:$0xff] }
 0xb37   : > { %4285 = vmatpush.msrb.mxu2 %v4217_v62  ;;  %4351 = vmatpush.msrb.mxu3 %v4323_v17  ;;  %v4316_v62 = vld [vmem:[#allocation17 + $0x400] sm:$0xff] }
 0xb38   : > { %4261 = vmatpush.msrb.mxu1 %v4199_v41  ;;  %4242 = vmatpush.msrb.mxu0 %v4204_v52  ;;  %v4326_v41 = vld [vmem:[#allocation17 + $0x448] sm:$0xff]  ;;  %v4440_v17 = vld [vmem:[#allocation17 + $0x500] sm:$0xff] }
 0xb39   : > { %4286 = vmatpush.msrb.mxu2 %v4216_v14 }
 0xb3a   : > { %4262 = vmatpush.msrb.mxu1 %v4198_v11  ;;  %4243 = vmatpush.msrb.mxu0 %v4203_v42  ;;  %v4325_v11 = vld [vmem:[#allocation17 + $0x440] sm:$0xff] }
 0xb3b   : > { %4287 = vmatpush.msrb.mxu2 %v4215_v45  ;;  %v6508_v45 = vld [vmem:[#allocation18 + $0x4] ss:$0 sm:$0xff] }
 0xb3c   : > { %4263 = vmatpush.msrb.mxu1 %v4197_v44  ;;  %4244 = vmatpush.msrb.mxu0 %v4202_v61  ;;  %v4447_v61 = vld [vmem:[#allocation17 + $0x538] sm:$0xff] }
 0xb3d   : > { %4288 = vmatpush.msrb.mxu2 %v4214_v51  ;;  %v6509_v51 = vld [vmem:[#allocation15 + $0x4] ss:$0 sm:$0xff] }
 0xb3e   : > { %4264 = vmatpush.msrb.mxu1 %v4196_v49 }
 0xb3f   : > { %4289 = vmatpush.msrb.mxu2 %v4213_v54 }
 0xb40   : > { %4265 = vmatpush.msrb.mxu1 %v4195_v53 }
 0xb41   : > { %4290 = vmatpush.msrb.mxu2 %v4212_v57 }
 0xb42   : > { %4266 = vmatpush.msrb.mxu1 %v4194_v55 }
 0xb43   : > { %4291 = vmatpush.msrb.mxu2 %v4211_v2  ;;  %v4445_v2 = vld [vmem:[#allocation17 + $0x528] sm:$0xff] }
 0xb44   : > { %4267 = vmatpush.msrb.mxu1 %v4193_v1  ;;  %v4446_v1 = vld [vmem:[#allocation17 + $0x530] sm:$0xff] }
 0xbb2   : > { %v4064_v20 = vpop.f32.mrf.mxu0 }
 0xbb6   : > { %v4017_v38 = vpop.f32.mrf.mxu2 }
 0xbb7   : > { %v4040_v39 = vpop.f32.mrf.mxu3 }
 0xbb8   : > { %v4041_v50 = vadd.f32 %v4040_v39, %v4017_v38  ;;  %v4314_v38 = vld [vmem:[#allocation17 + $0x3f8] sm:$0xff]  ;;  %v4313_v39 = vld [vmem:[#allocation17 + $0x3f0] sm:$0xff] }
 0xbb9   : > { %4374 = vmatpush.msra.mxu0 %v4314_v38  ;;  %v4434_v38 = vld [vmem:[#allocation17 + $0x4d8] sm:$0xff] }
 0xbba   : > { %v4067_v21 = vadd.f32 %v4064_v20, %v4041_v50  ;;  %v4331_v50 = vld [vmem:[#allocation17 + $0x470] sm:$0xff]  ;;  %v4312_v20 = vld [vmem:[#allocation17 + $0x3e8] sm:$0xff] }
 0xbbb   : > { %4375 = vmatpush.msra.mxu0 %v4313_v39  ;;  %v4433_v39 = vld [vmem:[#allocation17 + $0x4d0] sm:$0xff] }
 0xbbc   : > { %v4071_v24 = vmul.f32 %v6504_v18, %v4067_v21  ;;  %v4321_v18 = vld [vmem:[#allocation17 + $0x428] sm:$0xff] }
 0xbbd   : > { %v4330_v21 = vld [vmem:[#allocation17 + $0x468] sm:$0xff]  ;;  %4376 = vmatpush.msra.mxu0 %v4312_v20 }
 0xbbe   : > { %v4075_v25 = vadd.f32 %v6505_v23, %v4071_v24  ;;  %v4320_v23 = vld [vmem:[#allocation17 + $0x420] sm:$0xff]  ;;  %v4432_v20 = vld [vmem:[#allocation17 + $0x4c8] sm:$0xff] }
 0xbbf   : > { %v4311_v24 = vld [vmem:[#allocation17 + $0x3e0] sm:$0xff] }
 0xbc0   : > { %v4076_v26 = vmax.f32 %v4075_v25, 0.0  ;;  %v4329_v25 = vld [vmem:[#allocation17 + $0x460] sm:$0xff]  ;;  %4377 = vmatpush.msra.mxu0 %v4311_v24 }
 0xbc1   : > { %v4431_v24 = vld [vmem:[#allocation17 + $0x4c0] sm:$0xff] }
 0xbc2   : > { %4108 = vst.msk [vmem:[#allocation4 + $0x1] sm:$0xf] %vm3764_vm3, %v4076_v26  ;;  %v4319_v26 = vld [vmem:[#allocation17 + $0x418] sm:$0xff] }
 0xbc9   : > { %v4110_v27 = vld [vmem:[#allocation4 + $0x1] sm:$0xf] }
 0xbca   : > { %v4109_v28 = vld [vmem:[#allocation4] sm:$0xf]  ;;  %6085 = vmatmul.msk.f32.vlgmr.msra.gmra.mxu1 %vm1681_vm0, %v4110_v27  ;;  %v4310_v27 = vld [vmem:[#allocation17 + $0x3d8] sm:$0xff] }
 0xbcb   : > { %v4157_v29 = vld [vmem:[#allocation4 + $0x2] sm:$0xf]  ;;  %6086 = vmatmul.msk.f32.vlgmr.msra.gmra.mxu2 %vm1681_vm0, %v4109_v28  ;;  %4398 = vmatpush.msra.mxu1 %v4332_v46  ;;  %v4328_v28 = vld [vmem:[#allocation17 + $0x458] sm:$0xff] }
 0xbcc   : > { %6087 = vmatmul.msk.f32.vlgmr.msra.gmra.mxu3 %vm1681_vm0, %v4157_v29  ;;  %4378 = vmatpush.msra.mxu0 %v4310_v27  ;;  %v4318_v29 = vld [vmem:[#allocation17 + $0x410] sm:$0xff]  ;;  %v4425_v46 = vld [vmem:[#allocation17 + $0x498] sm:$0xff] }
 0xbcd   : > { %4399 = vmatpush.msra.mxu1 %v4331_v50  ;;  %v4424_v50 = vld [vmem:[#allocation17 + $0x490] sm:$0xff]  ;;  %v4653_v27 = vld [vmem:[%s8524_s12 + $0x18] sm:$0xff] }
 0xbce   : > { %4379 = vmatpush.msra.mxu0 %v4309_v8  ;;  %v4650_v8 = vld [vmem:[%s8524_s12] sm:$0xff] }
 0xbcf   : > { %4400 = vmatpush.msra.mxu1 %v4330_v21  ;;  %v4423_v21 = vld [vmem:[#allocation17 + $0x488] sm:$0xff] }
 0xbd0   : > { %4380 = vmatpush.msra.mxu0 %v4308_v58 }
 0xbd1   : > { %4401 = vmatpush.msra.mxu1 %v4329_v25  ;;  %v4422_v25 = vld [vmem:[#allocation17 + $0x480] sm:$0xff] }
 0xbd2   : > { %4381 = vmatpush.msra.mxu0 %v4307_v63 }
 0xbd3   : > { %4402 = vmatpush.msra.mxu1 %v4328_v28  ;;  %v4652_v28 = vld [vmem:[%s8524_s12 + $0x10] sm:$0xff] }
 0xbd5   : > { %4403 = vmatpush.msra.mxu1 %v4327_v30 }
 0xbd7   : > { %4404 = vmatpush.msra.mxu1 %v4326_v41  ;;  %v6510_v41 = vld [vmem:[#allocation18 + $0x5] ss:$0 sm:$0xff] }
 0xbd9   : > { %4405 = vmatpush.msra.mxu1 %v4325_v11  ;;  %v6511_v11 = vld [vmem:[#allocation15 + $0x5] ss:$0 sm:$0xff] }
 0xc47   : > { %v4131_v16 = vpop.f32.mrf.mxu1 }
 0xc4e   : > { %v4154_v40 = vpop.f32.mrf.mxu2 }
 0xc4f   : > { %v4155_v56 = vadd.f32 %v4154_v40, %v4131_v16  ;;  %v4178_v19 = vpop.f32.mrf.mxu3  ;;  %v4444_v16 = vld [vmem:[#allocation17 + $0x520] sm:$0xff]  ;;  %v4438_v40 = vld [vmem:[#allocation17 + $0x4f8] sm:$0xff] }
 0xc50   : > { %4466 = vmatpush.msra.mxu2 %v4438_v40  ;;  %v4548_v40 = vld [vmem:[#allocation17 + $0x598] sm:$0xff] }
 0xc51   : > { %v4181_v5 = vadd.f32 %v4178_v19, %v4155_v56  ;;  %v4429_v56 = vld [vmem:[#allocation17 + $0x4b8] sm:$0xff]  ;;  %v4437_v19 = vld [vmem:[#allocation17 + $0x4f0] sm:$0xff] }
 0xc52   : > { %4467 = vmatpush.msra.mxu2 %v4437_v19  ;;  %v4547_v19 = vld [vmem:[#allocation17 + $0x590] sm:$0xff] }
 0xc53   : > { %v4185_v59 = vmul.f32 %v6506_v4, %v4181_v5  ;;  %v4443_v4 = vld [vmem:[#allocation17 + $0x518] sm:$0xff]  ;;  %v4428_v5 = vld [vmem:[#allocation17 + $0x4b0] sm:$0xff] }
 0xc55   : > { %v4189_v60 = vadd.f32 %v6507_v7, %v4185_v59  ;;  %v4442_v7 = vld [vmem:[#allocation17 + $0x510] sm:$0xff]  ;;  %v4436_v59 = vld [vmem:[#allocation17 + $0x4e8] sm:$0xff] }
 0xc56   : > { %4468 = vmatpush.msra.mxu2 %v4436_v59  ;;  %v4546_v59 = vld [vmem:[#allocation17 + $0x588] sm:$0xff] }
 0xc57   : > { %v8120_v9 = vadd.f32 %v4189_v60, %v3962_v47  ;;  %v4322_v47 = vld [vmem:[#allocation17 + $0x430] sm:$0xff]  ;;  %v4427_v60 = vld [vmem:[#allocation17 + $0x4a8] sm:$0xff] }
 0xc58   : > { %4352 = vmatpush.msrb.mxu3 %v4322_v47  ;;  %v4657_v47 = vld [vmem:[%s8523_s11 + $0x38] sm:$0xff]  ;;  %s8537_s11 = sld [smem:[#allocation76_spill]] }
 0xc59   : > { %v4191_v10 = vmax.f32 %v8120_v9, 0.0  ;;  %v4552_v9 = vld [vmem:[#allocation17 + $0x5b8] sm:$0xff] }
 0xc5a   : > { %4353 = vmatpush.msrb.mxu3 %v4321_v18  ;;  %v4656_v18 = vld [vmem:[%s8524_s12 + $0x30] sm:$0xff] }
 0xc5b   : > { %4223 = vst.msk [vmem:[#allocation4 + $0x1] sm:$0xf] %vm3764_vm3, %v4191_v10 }
 0xc5c   : > { %4354 = vmatpush.msrb.mxu3 %v4320_v23  ;;  %v4655_v23 = vld [vmem:[%s8524_s12 + $0x28] sm:$0xff] }
 0xc5e   : > { %4355 = vmatpush.msrb.mxu3 %v4319_v26  ;;  %v4654_v26 = vld [vmem:[%s8524_s12 + $0x20] sm:$0xff] }
 0xc60   : > { %4356 = vmatpush.msrb.mxu3 %v4318_v29  ;;  %v4651_v29 = vld [vmem:[%s8524_s12 + $0x8] sm:$0xff] }
 0xc62   : > { %v4225_v32 = vld [vmem:[#allocation4 + $0x1] sm:$0xf]  ;;  %4357 = vmatpush.msrb.mxu3 %v4317_v31 }
 0xc63   : > { %v4224_v34 = vld [vmem:[#allocation4] sm:$0xf]  ;;  %6088 = vmatmul.msk.f32.vlgmr.msrb.gmra.mxu0 %vm1681_vm0, %v4225_v32 }
 0xc64   : > { %v4272_v15 = vld [vmem:[#allocation4 + $0x2] sm:$0xf]  ;;  %6089 = vmatmul.msk.f32.vlgmr.msrb.gmra.mxu1 %vm1681_vm0, %v4224_v34  ;;  %4358 = vmatpush.msrb.mxu3 %v4316_v62  ;;  %v4435_v34 = vld [vmem:[#allocation17 + $0x4e0] sm:$0xff] }
 0xc65   : > { %6090 = vmatmul.msk.f32.vlgmr.msrb.gmra.mxu2 %vm1681_vm0, %v4272_v15  ;;  %4513 = vmatpush.msrb.mxu0 %v4447_v61  ;;  %v4441_v32 = vld [vmem:[#allocation17 + $0x508] sm:$0xff]  ;;  %v4426_v15 = vld [vmem:[#allocation17 + $0x4a0] sm:$0xff] }
 0xc66   : > { %4489 = vmatpush.msra.mxu3 %v4429_v56  ;;  %4469 = vmatpush.msra.mxu2 %v4435_v34  ;;  %v4559_v61 = vld [vmem:[#allocation17 + $0x5e8] sm:$0xff]  ;;  %v4539_v56 = vld [vmem:[#allocation17 + $0x558] sm:$0xff]  ;;  %v4545_v34 = vld [vmem:[#allocation17 + $0x580] sm:$0xff] }
 0xc67   : > { %4514 = vmatpush.msrb.mxu0 %v4446_v1  ;;  %4580 = vmatpush.msrb.mxu1 %v4552_v9  ;;  %v4549_v1 = vld [vmem:[#allocation17 + $0x5a0] sm:$0xff]  ;;  %v4753_v9 = vld [vmem:[%s8527_s9 + $0x8] sm:$0xff] }
 0xc68   : > { %4490 = vmatpush.msra.mxu3 %v4428_v5  ;;  %4470 = vmatpush.msra.mxu2 %v4434_v38  ;;  %v4538_v5 = vld [vmem:[#allocation17 + $0x550] sm:$0xff]  ;;  %v4694_v38 = vld [vmem:[%s8525_s25 + $0x18] sm:$0xff] }
 0xc69   : > { %4515 = vmatpush.msrb.mxu0 %v4445_v2  ;;  %v4540_v2 = vld [vmem:[#allocation17 + $0x560] sm:$0xff] }
 0xc6a   : > { %4491 = vmatpush.msra.mxu3 %v4427_v60  ;;  %4471 = vmatpush.msra.mxu2 %v4433_v39  ;;  %v4537_v60 = vld [vmem:[#allocation17 + $0x548] sm:$0xff]  ;;  %v4691_v39 = vld [vmem:[%s8525_s25] sm:$0xff] }
 0xc6b   : > { %4516 = vmatpush.msrb.mxu0 %v4444_v16  ;;  %v4558_v16 = vld [vmem:[#allocation17 + $0x5e0] sm:$0xff] }
 0xc6c   : > { %4492 = vmatpush.msra.mxu3 %v4426_v15  ;;  %4472 = vmatpush.msra.mxu2 %v4432_v20  ;;  %v4536_v15 = vld [vmem:[#allocation17 + $0x540] sm:$0xff] }
 0xc6d   : > { %4517 = vmatpush.msrb.mxu0 %v4443_v4  ;;  %v4557_v4 = vld [vmem:[#allocation17 + $0x5d8] sm:$0xff] }
 0xc6e   : > { %4493 = vmatpush.msra.mxu3 %v4425_v46  ;;  %4473 = vmatpush.msra.mxu2 %v4431_v24  ;;  %v4693_v46 = vld [vmem:[%s8525_s25 + $0x10] sm:$0xff]  ;;  %v6512_v24 = vld [vmem:[#allocation18 + $0x6] ss:$0 sm:$0xff] }
 0xc6f   : > { %4518 = vmatpush.msrb.mxu0 %v4442_v7  ;;  %v4556_v7 = vld [vmem:[#allocation17 + $0x5d0] sm:$0xff] }
 0xc70   : > { %4494 = vmatpush.msra.mxu3 %v4424_v50  ;;  %v4759_v50 = vld [vmem:[%s8526_s0 + $0x38] sm:$0xff]  ;;  %s8538_s0 = sld [smem:[#allocation75_spill]] }
 0xc71   : > { %4519 = vmatpush.msrb.mxu0 %v4441_v32  ;;  %v4555_v32 = vld [vmem:[#allocation17 + $0x5c8] sm:$0xff] }
 0xc72   : > { %4495 = vmatpush.msra.mxu3 %v4423_v21 }
 0xc73   : > { %4520 = vmatpush.msrb.mxu0 %v4440_v17  ;;  %v4554_v17 = vld [vmem:[#allocation17 + $0x5c0] sm:$0xff] }
 0xc74   : > { %4496 = vmatpush.msra.mxu3 %v4422_v25 }
 0xce0   : > { %v4246_v14 = vpop.f32.mrf.mxu0 }
 0xce1   : > { %v4269_v43 = vpop.f32.mrf.mxu1 }
 0xce2   : > { %v4270_v44 = vadd.f32 %v4269_v43, %v4246_v14 }
 0xce8   : > { %v4293_v48 = vpop.f32.mrf.mxu2 }
 0xce9   : > { %v4296_v49 = vadd.f32 %v4293_v48, %v4270_v44 }
 0xceb   : > { %v4300_v52 = vmul.f32 %v6508_v45, %v4296_v49 }
 0xced   : > { %v4304_v53 = vadd.f32 %v6509_v51, %v4300_v52  ;;  %v4561_v52 = vld [vmem:[#allocation17 + $0x5f8] sm:$0xff] }
 0xcef   : > { %v4305_v54 = vmax.f32 %v4304_v53, 0.0  ;;  %v4551_v53 = vld [vmem:[#allocation17 + $0x5b0] sm:$0xff] }
 0xcf0   : > { %4581 = vmatpush.msrb.mxu1 %v4551_v53  ;;  %v6123_v53 = vld [vmem:[%s8528_s8 + $0xb0] sm:$0xff] }
 0xcf1   : > { %4337 = vst.msk [vmem:[#allocation4 + $0x1] sm:$0xf] %vm3764_vm3, %v4305_v54  ;;  %v4542_v54 = vld [vmem:[#allocation17 + $0x570] sm:$0xff] }
 0xcf8   : > { %v4339_v42 = vld [vmem:[#allocation4 + $0x1] sm:$0xf] }
 0xcf9   : > { %v4338_v55 = vld [vmem:[#allocation4] sm:$0xf]  ;;  %6091 = vmatmul.msk.f32.vlgmr.msrb.gmra.mxu3 %vm1681_vm0, %v4339_v42  ;;  %v4560_v42 = vld [vmem:[#allocation17 + $0x5f0] sm:$0xff] }
 0xcfa   : > { %v4386_v57 = vld [vmem:[#allocation4 + $0x2] sm:$0xf]  ;;  %6092 = vmatmul.msk.f32.vlgmr.msra.gmra.mxu0 %vm1681_vm0, %v4338_v55  ;;  %4627 = vmatpush.msrb.mxu3 %v4561_v52  ;;  %v6124_v52 = vld [vmem:[%s8528_s8 + $0xb8] sm:$0xff] }
 0xcfb   : > { %6093 = vmatmul.msk.f32.vlgmr.msra.gmra.mxu1 %vm1681_vm0, %v4386_v57  ;;  %4669 = vmatpush.msra.mxu0 %v4657_v47  ;;  %v4550_v55 = vld [vmem:[#allocation17 + $0x5a8] sm:$0xff] }
 0xcfc   : > { %4628 = vmatpush.msrb.mxu3 %v4560_v42  ;;  %v4541_v57 = vld [vmem:[#allocation17 + $0x568] sm:$0xff]  ;;  %4582 = vmatpush.msrb.mxu1 %v4550_v55  ;;  %v6121_v42 = vld [vmem:[%s8528_s8 + $0xa0] sm:$0xff]  ;;  %v6120_v55 = vld [vmem:[%s8528_s8 + $0x98] sm:$0xff] }
 0xcfd   : > { %4670 = vmatpush.msra.mxu0 %v4656_v18  ;;  %v4692_v47 = vld [vmem:[%s8525_s25 + $0x8] sm:$0xff]  ;;  %v4758_v18 = vld [vmem:[%s8527_s9 + $0x30] sm:$0xff] }
 0xcfe   : > { %4629 = vmatpush.msrb.mxu3 %v4559_v61  ;;  %4583 = vmatpush.msrb.mxu1 %v4549_v1  ;;  %v6118_v61 = vld [vmem:[%s8528_s8 + $0x88] sm:$0xff]  ;;  %v6117_v1 = vld [vmem:[%s8528_s8 + $0x80] sm:$0xff] }
 0xcff   : > { %4671 = vmatpush.msra.mxu0 %v4655_v23 }
 0xd00   : > { %4630 = vmatpush.msrb.mxu3 %v4558_v16  ;;  %4584 = vmatpush.msrb.mxu1 %v4548_v40 }
 0xd01   : > { %4672 = vmatpush.msra.mxu0 %v4654_v26 }
 0xd02   : > { %4631 = vmatpush.msrb.mxu3 %v4557_v4  ;;  %4585 = vmatpush.msrb.mxu1 %v4547_v19  ;;  %v4718_v4 = vld [vmem:[%s8529_s4] sm:$0xff] }
 0xd03   : > { %4673 = vmatpush.msra.mxu0 %v4653_v27  ;;  %v6513_v27 = vld [vmem:[#allocation15 + $0x6] ss:$0 sm:$0xff] }
 0xd04   : > { %4632 = vmatpush.msrb.mxu3 %v4556_v7  ;;  %4586 = vmatpush.msrb.mxu1 %v4546_v59  ;;  %v6116_v7 = vld [vmem:[%s8528_s8 + $0x78] sm:$0xff] }
 0xd05   : > { %4674 = vmatpush.msra.mxu0 %v4652_v28 }
 0xd06   : > { %4633 = vmatpush.msrb.mxu3 %v4555_v32  ;;  %4587 = vmatpush.msrb.mxu1 %v4545_v34  ;;  %v6115_v32 = vld [vmem:[%s8528_s8 + $0x70] sm:$0xff] }
 0xd07   : > { %4675 = vmatpush.msra.mxu0 %v4651_v29 }
 0xd08   : > { %4634 = vmatpush.msrb.mxu3 %v4554_v17  ;;  %4710 = vmatpush.msra.mxu1 %v4694_v38  ;;  %v6113_v38 = vld [vmem:[%s8528_s8 + $0x60] sm:$0xff] }
 0xd09   : > { %4676 = vmatpush.msra.mxu0 %v4650_v8 }
 0xd0a   : > { %4711 = vmatpush.msra.mxu1 %v4693_v46 }
 0xd0c   : > { %4712 = vmatpush.msra.mxu1 %v4692_v47  ;;  %v4719_v47 = vld [vmem:[%s8529_s4 + $0x8] sm:$0xff]  ;;  %s5533_s4 = sand.u32 1, %s7560_s15  }
 0xd0d   : > { %s8335_s12 = scalar_lea.sflag [#allocation37], %s5533_s4 }
 0xd0e   : > { %4713 = vmatpush.msra.mxu1 %v4691_v39  ;;  %v6112_v39 = vld [vmem:[%s8528_s8 + $0x58] sm:$0xff] }
 0xd77   : > { %v4383_v30 = vpop.f32.mrf.mxu0 }
 0xd78   : > { %v4407_v62 = vpop.f32.mrf.mxu1 }
 0xd7c   : > { %v4360_v31 = vpop.f32.mrf.mxu3 }
 0xd7d   : > { %v4384_v58 = vadd.f32 %v4383_v30, %v4360_v31  ;;  %v6514_v30 = vld [vmem:[#allocation21] ss:$0 sm:$0xff] }
 0xd7f   : > { %v4410_v63 = vadd.f32 %v4407_v62, %v4384_v58 }
 0xd81   : > { %v4414_v14 = vmul.f32 %v6510_v41, %v4410_v63 }
 0xd83   : > { %v4418_v43 = vadd.f32 %v6511_v11, %v4414_v14  ;;  %v6515_v11 = vld [vmem:[#allocation20] ss:$0 sm:$0xff] }
 0xd85   : > { %v8143_v44 = vadd.f32 %v4418_v43, %v4191_v10  ;;  %v4543_v10 = vld [vmem:[#allocation17 + $0x578] sm:$0xff]  ;;  %v4757_v43 = vld [vmem:[%s8527_s9 + $0x28] sm:$0xff] }
 0xd86   : > { %4603 = vmatpush.msrb.mxu2 %v4543_v10  ;;  %v4752_v10 = vld [vmem:[%s8527_s9] sm:$0xff] }
 0xd87   : > { %v4420_v45 = vmax.f32 %v8143_v44, 0.0  ;;  %v6142_v44 = vld [vmem:[%s8531_s2 + $0x70] sm:$0xff] }
 0xd88   : > { %4604 = vmatpush.msrb.mxu2 %v4542_v54  ;;  %v6122_v54 = vld [vmem:[%s8528_s8 + $0xa8] sm:$0xff] }
 0xd89   : > { %4452 = vst.msk [vmem:[#allocation4 + $0x1] sm:$0xf] %vm3764_vm3, %v4420_v45 }
 0xd8a   : > { %4605 = vmatpush.msrb.mxu2 %v4541_v57  ;;  %v6119_v57 = vld [vmem:[%s8528_s8 + $0x90] sm:$0xff] }
 0xd8c   : > { %4606 = vmatpush.msrb.mxu2 %v4540_v2 }
 0xd8e   : > { %4607 = vmatpush.msrb.mxu2 %v4539_v56  ;;  %v6516_v56 = vld [vmem:[#allocation18 + $0x7] ss:$0 sm:$0xff] }
 0xd90   : > { %v4454_v48 = vld [vmem:[#allocation4 + $0x1] sm:$0xf]  ;;  %4608 = vmatpush.msrb.mxu2 %v4538_v5 }
 0xd91   : > { %v4453_v49 = vld [vmem:[#allocation4] sm:$0xf]  ;;  %6094 = vmatmul.msk.f32.vlgmr.msra.gmra.mxu2 %vm1681_vm0, %v4454_v48  ;;  %v4756_v48 = vld [vmem:[%s8527_s9 + $0x20] sm:$0xff] }
 0xd92   : > { %v4501_v51 = vld [vmem:[#allocation4 + $0x2] sm:$0xf]  ;;  %6095 = vmatmul.msk.f32.vlgmr.msra.gmra.mxu3 %vm1681_vm0, %v4453_v49  ;;  %4609 = vmatpush.msrb.mxu2 %v4537_v60  ;;  %v4755_v49 = vld [vmem:[%s8527_s9 + $0x18] sm:$0xff] }
 0xd93   : > { %6096 = vmatmul.msk.f32.vlgmr.msrb.gmra.mxu0 %vm1681_vm0, %v4501_v51  ;;  %4771 = vmatpush.msra.mxu3 %v4759_v50  ;;  %v4754_v51 = vld [vmem:[%s8527_s9 + $0x10] sm:$0xff]  ;;  %v6517_v60 = vld [vmem:[#allocation15 + $0x7] ss:$0 sm:$0xff] }
 0xd94   : > { %4610 = vmatpush.msrb.mxu2 %v4536_v15  ;;  %v6114_v15 = vld [vmem:[%s8528_s8 + $0x68] sm:$0xff] }
 0xd95   : > { %4772 = vmatpush.msra.mxu3 %v4758_v18  ;;  %v6143_v18 = vld [vmem:[%s8530_s7 + $0x78] sm:$0xff]  ;;  %s8281_s7 = sand.u32 1, %s7224_s10  }
 0xd97   : > { %4773 = vmatpush.msra.mxu3 %v4757_v43  ;;  %v5113_v43 = vld [vmem:[%s8531_s2 + $0x10] sm:$0xff] }
 0xd99   : > { %4774 = vmatpush.msra.mxu3 %v4756_v48  ;;  %v5145_v48 = vld [vmem:[#allocation2 + $0x9] sm:$0xff] }
 0xd9b   : > { %6100 = vmatmul.msk.f32.vlgmr.msra.gmra.mxu0 %vm1681_vm0, %v8096_v3  ;;  %4775 = vmatpush.msra.mxu3 %v4755_v49  ;;  %v5112_v49 = vld [vmem:[%s8531_s2 + $0x8] sm:$0xff] }
 0xd9d   : > { %4776 = vmatpush.msra.mxu3 %v4754_v51  ;;  %v5111_v51 = vld [vmem:[%s8531_s2] sm:$0xff] }
 0xd9f   : > { %4777 = vmatpush.msra.mxu3 %v4753_v9  ;;  %v5142_v9 = vld [vmem:[#allocation2] sm:$0xff] }
 0xda1   : > { %4778 = vmatpush.msra.mxu3 %v4752_v10  ;;  %v5143_v10 = vld [vmem:[#allocation2 + $0x8] sm:$0xff] }
 0xe10   : > { %v4522_v25 = vpop.f32.mrf.mxu0 }
 0xe14   : > { %v4475_v20 = vpop.f32.mrf.mxu2 }
 0xe15   : > { %v4498_v21 = vpop.f32.mrf.mxu3 }
 0xe16   : > { %v4499_v23 = vadd.f32 %v4498_v21, %v4475_v20  ;;  %v6111_v20 = vld [vmem:[%s8528_s8 + $0x50] sm:$0xff]  ;;  %v6141_v21 = vld [vmem:[%s8531_s2 + $0x68] sm:$0xff] }
 0xe18   : > { %v4525_v26 = vadd.f32 %v4522_v25, %v4499_v23  ;;  %v4678_v31 = vpop.f32.mrf.mxu0  ;;  %v6109_v23 = vld [vmem:[%s8528_s8 + $0x40] sm:$0xff] }
 0xe19   : > { %v4685_v63 = vmul.f32 %v6514_v30, %v4678_v31  ;;  %v6140_v25 = vld [vmem:[%s8531_s2 + $0x60] sm:$0xff]  ;;  %v6137_v30 = vld [vmem:[%s8531_s2 + $0x48] sm:$0xff]  ;;  %v5020_v31 = vld [vmem:[%s8532_s20 + $0x18] sm:$0xff] }
 0xe1a   : > { %v4529_v28 = vmul.f32 %v6512_v24, %v4525_v26  ;;  %v5024_v24 = vld [vmem:[%s8532_s20 + $0x38] sm:$0xff]  ;;  %v5023_v26 = vld [vmem:[%s8532_s20 + $0x30] sm:$0xff] }
 0xe1b   : > { %v4690_v14 = vadd.f32 %v6515_v11, %v4685_v63  ;;  %v5117_v63 = vld [vmem:[%s8531_s2 + $0x30] sm:$0xff]  ;;  %v5144_v11 = vld [vmem:[#allocation2 + $0x1] sm:$0xff] }
 0xe1c   : > { %v4533_v29 = vadd.f32 %v6513_v27, %v4529_v28  ;;  %v6139_v27 = vld [vmem:[%s8531_s2 + $0x58] sm:$0xff]  ;;  %v5022_v28 = vld [vmem:[%s8532_s20 + $0x28] sm:$0xff] }
 0xe1e   : > { %v4534_v8 = vmax.f32 %v4533_v29, 0.0  ;;  %v6138_v29 = vld [vmem:[%s8531_s2 + $0x50] sm:$0xff] }
 0xe20   : > { %4566 = vst.msk [vmem:[#allocation4 + $0x1] sm:$0xf] %vm3764_vm3, %v4534_v8  ;;  %v5021_v8 = vld [vmem:[%s8532_s20 + $0x20] sm:$0xff] }
 0xe27   : > { %v4568_v58 = vld [vmem:[#allocation4 + $0x1] sm:$0xf] }
 0xe28   : > { %v4567_v41 = vld [vmem:[#allocation4] sm:$0xf]  ;;  %6097 = vmatmul.msk.f32.vlgmr.msrb.gmra.mxu1 %vm1681_vm0, %v4568_v58  ;;  %v6136_v58 = vld [vmem:[%s8531_s2 + $0x40] sm:$0xff] }
 0xe29   : > { %v4615_v62 = vld [vmem:[#allocation4 + $0x2] sm:$0xf]  ;;  %6098 = vmatmul.msk.f32.vlgmr.msrb.gmra.mxu2 %vm1681_vm0, %v4567_v41  ;;  %v5017_v41 = vld [vmem:[%s8532_s20] sm:$0xff] }
 0xe2a   : > { %6099 = vmatmul.msk.f32.vlgmr.msrb.gmra.mxu3 %vm1681_vm0, %v4615_v62  ;;  %v5118_v62 = vld [vmem:[%s8531_s2 + $0x38] sm:$0xff] }
 0xe2b   : > { %4968 = vmatpush.msrb.mxu3 %v6124_v52  ;;  %v4794_v52 = vld [vmem:[%s8533_s23 + $0x8] sm:$0xff] }
 0xe2c   : > { %4813 = vmatpush.msrb.mxu1 %v4794_v52 }
 0xe2d   : > { %4969 = vmatpush.msrb.mxu3 %v6123_v53  ;;  %v4793_v53 = vld [vmem:[%s8533_s23] sm:$0xff] }
 0xe2e   : > { %4814 = vmatpush.msrb.mxu1 %v4793_v53 }
 0xe2f   : > { %4970 = vmatpush.msrb.mxu3 %v6122_v54  ;;  %v4866_v54 = vld [vmem:[%s8528_s8 + $0x38] sm:$0xff] }
 0xe30   : > { %6101 = vmatmul.msk.f32.vlgmr.msra.gmra.mxu1 %vm1690_vm4, %v4690_v14  ;;  %v5114_v14 = vld [vmem:[%s8531_s2 + $0x18] sm:$0xff] }
 0xe31   : > { %4971 = vmatpush.msrb.mxu3 %v6121_v42  ;;  %4937 = vmatpush.msra.mxu1 %v4866_v54  ;;  %v4865_v42 = vld [vmem:[%s8528_s8 + $0x30] sm:$0xff] }
 0xe33   : > { %4972 = vmatpush.msrb.mxu3 %v6120_v55  ;;  %4938 = vmatpush.msra.mxu1 %v4865_v42  ;;  %v4864_v55 = vld [vmem:[%s8528_s8 + $0x28] sm:$0xff] }
 0xe35   : > { %4973 = vmatpush.msrb.mxu3 %v6119_v57  ;;  %v4863_v57 = vld [vmem:[%s8528_s8 + $0x20] sm:$0xff]  ;;  %4939 = vmatpush.msra.mxu1 %v4864_v55 }
 0xe37   : > { %4974 = vmatpush.msrb.mxu3 %v6118_v61  ;;  %v4862_v61 = vld [vmem:[%s8528_s8 + $0x18] sm:$0xff]  ;;  %4940 = vmatpush.msra.mxu1 %v4863_v57 }
 0xe39   : > { %4975 = vmatpush.msrb.mxu3 %v6117_v1  ;;  %4941 = vmatpush.msra.mxu1 %v4862_v61  ;;  %v4861_v1 = vld [vmem:[%s8528_s8 + $0x10] sm:$0xff] }
 0xe3b   : > { %4942 = vmatpush.msra.mxu1 %v4861_v1  ;;  %v5082_v1 = vld [vmem:[%s8538_s0] sm:$0xff]  ;;  %s5991_s0 = sshll.u32 %s8281_s7, 3 }
 0xea5   : > { %v4589_v2 = vpop.f32.mrf.mxu1 }
 0xeac   : > { %v4612_v16 = vpop.f32.mrf.mxu2 }
 0xead   : > { %v4613_v40 = vadd.f32 %v4612_v16, %v4589_v2  ;;  %v4636_v19 = vpop.f32.mrf.mxu3  ;;  %v4715_v5 = vpop.f32.mrf.mxu1  ;;  %v4860_v2 = vld [vmem:[%s8528_s8 + $0x8] sm:$0xff]  ;;  %v4859_v16 = vld [vmem:[%s8528_s8] sm:$0xff] }
 0xeae   : > { %4742 = vmatpush.msra.mxu2 %v4715_v5  ;;  %4943 = vmatpush.msra.mxu1 %v4860_v2 }
 0xeaf   : > { %v4639_v59 = vadd.f32 %v4636_v19, %v4613_v40  ;;  %6102 = vmatmul.msk.f32.vlgmr.msra.gmra.mxu2 %vm4720_vm5, %v4718_v4  ;;  %v6518_v40 = vld [vmem:[#allocation24] ss:$0 sm:$0xff] }
 0xeb0   : > { %4908 = vmatpush.msrb.mxu2 %v6116_v7  ;;  %4944 = vmatpush.msra.mxu1 %v4859_v16 }
 0xeb1   : > { %v4643_v34 = vmul.f32 %v6516_v56, %v4639_v59  ;;  %v6519_v56 = vld [vmem:[#allocation23] ss:$0 sm:$0xff] }
 0xeb2   : > { %4909 = vmatpush.msrb.mxu2 %v6115_v32 }
 0xeb3   : > { %v4647_v17 = vadd.f32 %v6517_v60, %v4643_v34  ;;  %v4819_v60 = vld [vmem:[%s8534_s1] sm:$0xff] }
 0xeb4   : > { %4910 = vmatpush.msrb.mxu2 %v6114_v15 }
 0xeb5   : > { %v4648_v46 = vadd.f32 %v4647_v17, %v4420_v45  ;;  %v6110_v45 = vld [vmem:[%s8528_s8 + $0x48] sm:$0xff] }
 0xeb6   : > { %4911 = vmatpush.msrb.mxu2 %v6113_v38 }
 0xeb7   : > { %v8191_v50 = vmax.f32 %v4648_v46, 0.0  ;;  %6103 = vmatmul.msk.f32.gmra.mxu2 %vm4720_vm5, %v4719_v47 }
 0xeb8   : > { %4912 = vmatpush.msrb.mxu2 %v6112_v39 }
 0xeb9   : > { %6104 = vmatmul.msk.f32.vlgmr.msra.gmra.mxu3 %vm1681_vm0, %v8191_v50 }
 0xeba   : > { %5160 = vmatpush.msra.mxu3 %v6143_v18  ;;  %4913 = vmatpush.msrb.mxu2 %v6111_v20 }
 0xebc   : > { %5161 = vmatpush.msra.mxu3 %v6142_v44  ;;  %4914 = vmatpush.msrb.mxu2 %v6110_v45  ;;  %v4887_v44 = vld [vmem:[%s8535_s16] sm:$0xff]  ;;  %v5058_v45 = vld [vmem:[%s8536_s3 + $0x18] sm:$0xff]  ;;  %s5990_s16 = sshll.u32 %s8281_s7, 4 }
 0xebe   : > { %5162 = vmatpush.msra.mxu3 %v6141_v21  ;;  %4915 = vmatpush.msrb.mxu2 %v6109_v23  ;;  %v6520_v21 = vld [vmem:[%s8537_s11] ss:$0 sm:$0xff]  ;;  %s8286_s11 = scalar_lea.vmem [#allocation35], %s5990_s16  ;;  %s8539_s16 = sld [smem:[#allocation82_spill]] }
 0xebf   : > { %6125 = vmatmul.msk.f32.vlgmr.msrb.gmra.mxu2 %vm1681_vm0, %v8030_v35  ;;  %v5019_v35 = vld [vmem:[%s8532_s20 + $0x10] sm:$0xff] }
 0xec0   : > { %5033 = vmatpush.msra.mxu2 %v5024_v24  ;;  %5163 = vmatpush.msra.mxu3 %v6140_v25  ;;  %v5057_v24 = vld [vmem:[%s8536_s3 + $0x10] sm:$0xff]  ;;  %v5056_v25 = vld [vmem:[%s8536_s3 + $0x8] sm:$0xff] }
 0xec1   : > { %6129 = vmatmul.msk.f32.vlgmr.msrb.gmra.mxu3 %vm1681_vm0, %v8024_v33  ;;  %v5018_v33 = vld [vmem:[%s8532_s20 + $0x8] sm:$0xff] }
 0xec2   : > { %5034 = vmatpush.msra.mxu2 %v5023_v26  ;;  %5164 = vmatpush.msra.mxu3 %v6139_v27  ;;  %v6521_v27 = vld [vmem:[#allocation29] ss:$0 sm:$0xff] }
 0xec4   : > { %5035 = vmatpush.msra.mxu2 %v5022_v28  ;;  %5165 = vmatpush.msra.mxu3 %v6138_v29  ;;  %v5055_v28 = vld [vmem:[%s8536_s3] sm:$0xff]  ;;  %v6151_v29 = vld [vmem:[%s8531_s2 + $0xb8] sm:$0xff]  ;;  %v5270_v0 = vld [vmem:[%s8539_s16 + $0x8] sm:$0xff]  ;;  %s5551_s3 = sshll.u32 %s8286_s11, 4  ;;  %s8329_s3 = int_to_ptr.vmem [resolvable:$true] %s5551_s3 }
 0xec6   : > { %5036 = vmatpush.msra.mxu2 %v5021_v8  ;;  %5166 = vmatpush.msra.mxu3 %v6137_v30  ;;  %v6150_v30 = vld [vmem:[%s8531_s2 + $0xb0] sm:$0xff] }
 0xec7   : > { %6126 = vmatmul.msk.f32.gmra.mxu2 %vm1681_vm0, %v8026_v12  ;;  %v5116_v12 = vld [vmem:[%s8531_s2 + $0x28] sm:$0xff] }
 0xec8   : > { %5037 = vmatpush.msra.mxu2 %v5020_v31  ;;  %5167 = vmatpush.msra.mxu3 %v6136_v58  ;;  %v6149_v31 = vld [vmem:[%s8531_s2 + $0xa8] sm:$0xff]  ;;  %v6148_v58 = vld [vmem:[%s8531_s2 + $0xa0] sm:$0xff] }
 0xec9   : > { %6130 = vmatmul.msk.f32.gmra.mxu3 %vm1681_vm0, %v8028_v13  ;;  %v5115_v13 = vld [vmem:[%s8531_s2 + $0x20] sm:$0xff] }
 0xeca   : > { %5038 = vmatpush.msra.mxu2 %v5019_v35  ;;  %v6147_v35 = vld [vmem:[%s8531_s2 + $0x98] sm:$0xff] }
 0xecc   : > { %5039 = vmatpush.msra.mxu2 %v5018_v33  ;;  %v6146_v33 = vld [vmem:[%s8531_s2 + $0x90] sm:$0xff] }
 0xece   : > { %5040 = vmatpush.msra.mxu2 %v5017_v41  ;;  %v6145_v41 = vld [vmem:[%s8531_s2 + $0x88] sm:$0xff] }
 0xecf   : > { %6132 = vmatmul.msk.f32.vlgmr.msra.gmra.mxu2 %vm1681_vm0, %v8191_v50 }
 0xed0   : > { %5189 = vmatpush.msrb.mxu2 %v5118_v62  ;;  %v6144_v62 = vld [vmem:[%s8531_s2 + $0x80] sm:$0xff]  ;;  %s8540_s2 = sld [smem:[#allocation77_spill]] }
 0xed1   : > { %6152 = vmatmul.msk.f32.vlgmr.msra.gmra.mxu3 %vm1681_vm0, %v5144_v11  ;;  %v5204_v11 = vld [vmem:[#allocation2 + $0x2] sm:$0xff] }
 0xed2   : > { %5190 = vmatpush.msrb.mxu2 %v5117_v63  ;;  %v5408_v63 = vld [vmem:[#allocation33 + $0x78] sm:$0xff] }
 0xed4   : > { %5191 = vmatpush.msrb.mxu2 %v5116_v12  ;;  %v5407_v12 = vld [vmem:[#allocation33 + $0x70] sm:$0xff] }
 0xed6   : > { %5192 = vmatpush.msrb.mxu2 %v5115_v13  ;;  %v5406_v13 = vld [vmem:[#allocation33 + $0x68] sm:$0xff] }
 0xed8   : > { %5193 = vmatpush.msrb.mxu2 %v5114_v14  ;;  %v5405_v14 = vld [vmem:[#allocation33 + $0x60] sm:$0xff] }
 0xed9   : > { %6153 = vmatmul.msk.f32.gmra.mxu3 %vm1681_vm0, %v5145_v48  ;;  %v5205_v48 = vld [vmem:[#allocation2 + $0xa] sm:$0xff] }
 0xeda   : > { %5194 = vmatpush.msrb.mxu2 %v5113_v43  ;;  %v5404_v43 = vld [vmem:[#allocation33 + $0x58] sm:$0xff] }
 0xedc   : > { %5195 = vmatpush.msrb.mxu2 %v5112_v49  ;;  %v5403_v49 = vld [vmem:[#allocation33 + $0x50] sm:$0xff] }
 0xede   : > { %5196 = vmatpush.msrb.mxu2 %v5111_v51  ;;  %v5402_v51 = vld [vmem:[#allocation33 + $0x48] sm:$0xff] }
 0xedf   : > { %6154 = vmatmul.msk.f32.vlgmr.msrb.gmra.mxu2 %vm1681_vm0, %v5142_v9  ;;  %v5401_v9 = vld [vmem:[#allocation33 + $0x40] sm:$0xff] }
 0xee7   : > { %6155 = vmatmul.msk.f32.gmra.mxu2 %vm1681_vm0, %v5143_v10  ;;  %v5423_v10 = vld [vmem:[#allocation3 + $0x1] sm:$0xff] }
 0xf32   : > { %v8252_v7 = vpop.f32.mrf.mxu2 }
 0xf33   : > { %v4750_v52 = vadd.f32 %v8252_v7, %v8010_v22 }
 0xf3a   : > { %v8254_v59 = vpop.f32.mrf.mxu2 }
 0xf3b   : > { %v4751_v42 = vadd.f32 %v8254_v59, %v8017_v6 }
 0xf3c   : > { %v4780_v4 = vpop.f32.mrf.mxu3 }
 0xf3d   : > { %v4787_v19 = vmul.f32 %v6518_v40, %v4780_v4 }
 0xf3f   : > { %v4792_v5 = vadd.f32 %v6519_v56, %v4787_v19 }
 0xf41   : > { %6105 = vmatmul.msk.f32.vlgmr.msrb.gmra.mxu1 %vm4795_vm6, %v4792_v5 }
 0xf42   : > { %v4917_v34 = vpop.f32.mrf.mxu2 }
 0xf44   : > { %v4977_v15 = vpop.f32.mrf.mxu3 }
 0xf49   : > { %6127 = vmatmul.msk.f32.vlgmr.msra.gmra.mxu1 %vm1681_vm0, %v8032_v36  ;;  %v4820_v36 = vld [vmem:[%s8534_s1 + $0x8] sm:$0xff]  ;;  %s8311_s1 = scalar_lea.vmem [#allocation36], %s5991_s0 }
 0xf4a   : > { %s5568_s8 = sshll.u32 %s8311_s1, 4  ;;  %s5569_s8 = int_to_ptr.vmem [resolvable:$true] %s5568_s8 }
 0xf4c   : > { %v4980_v39 = vpop.f32.mrf.mxu3 }
 0xf51   : > { %6128 = vmatmul.msk.f32.gmra.mxu1 %vm1681_vm0, %v8034_v37  ;;  %v4920_v37 = vpop.f32.mrf.mxu2 }
 0xf54   : > { %v5169_v16 = vpop.f32.mrf.mxu3 }
 0xf59   : > { %v5042_v23 = vpop.f32.mrf.mxu2 }
 0xf5a   : > { %v5049_v26 = vmul.f32 %v6520_v21, %v5042_v23  ;;  %v5399_v21 = vld [vmem:[#allocation33 + $0x38] sm:$0xff] }
 0xf5b   : > { %v6166_v23 = vld [vmem:[%s8539_s16 + $0x58] sm:$0xff] }
 0xf5c   : > { %v5054_v8 = vadd.f32 %v6521_v27, %v5049_v26  ;;  %v5172_v4 = vpop.f32.mrf.mxu3  ;;  %v6164_v26 = vld [vmem:[%s8539_s16 + $0x48] sm:$0xff]  ;;  %v5396_v27 = vld [vmem:[#allocation33 + $0x20] sm:$0xff] }
 0xf62   : > { %v5198_v22 = vpop.f32.mrf.mxu2 }
 0xf63   : > { %v5199_v6 = vadd.f32 %v5198_v22, %v5169_v16 }
 0xf6a   : > { %v5201_v56 = vpop.f32.mrf.mxu2 }
 0xf6b   : > { %v5202_v19 = vadd.f32 %v5201_v56, %v5172_v4 }
 0xfbe   : > { %v4816_v32 = vpop.f32.mrf.mxu1 }
 0xfbf   : > { %6106 = vmatpush.msk.msrb.mxu0 %vm4828_vm7, %v4816_v32  ;;  %v6522_v32 = vld [vmem:[#allocation27] ss:$0 sm:$0xff] }
 0xfc0   : > { %6107 = vmatmul.msk.f32.vlgmr.msrb.gmra.mxu0 %vm4821_vm8, %v4819_v60  ;;  %v5139_v60 = vld [vmem:[#allocation32] sm:$0xff] }
 0xfc6   : > { %v4946_v17 = vpop.f32.mrf.mxu1 }
 0xfc7   : > { %v4947_v46 = vadd.f32 %v4946_v17, %v4917_v34  ;;  %v5272_v17 = vld [vmem:[%s8539_s16 + $0x18] sm:$0xff] }
 0xfc8   : > { %6108 = vmatmul.msk.f32.gmra.mxu0 %vm4821_vm8, %v4820_v36  ;;  %v6523_v36 = vld [vmem:[#allocation26] ss:$0 sm:$0xff]  ;;  %5327 = vmatpush.msrb.mxu3 %v5272_v17 }
 0xfc9   : > { %v4983_v20 = vadd.f32 %v4977_v15, %v4947_v46  ;;  %v6161_v46 = vld [vmem:[%s8539_s16 + $0x30] sm:$0xff] }
 0xfce   : > { %v4949_v38 = vpop.f32.mrf.mxu1 }
 0xfcf   : > { %v4950_v47 = vadd.f32 %v4949_v38, %v4920_v37  ;;  %v6162_v37 = vld [vmem:[%s8539_s16 + $0x38] sm:$0xff]  ;;  %v5271_v38 = vld [vmem:[%s8539_s16 + $0x10] sm:$0xff] }
 0xfd0   : > { %5328 = vmatpush.msrb.mxu3 %v5271_v38 }
 0xfd1   : > { %v4984_v18 = vadd.f32 %v4980_v39, %v4950_v47 }
 0xfd2   : > { %5329 = vmatpush.msrb.mxu3 %v5270_v0 }
 0xfd3   : > { %5002 = vmatpush.msra.mxu0 %v4984_v18  ;;  %v6160_v18 = vld [vmem:[%s8539_s16 + $0x28] sm:$0xff] }
 0xfd5   : > { %5003 = vmatpush.msra.mxu0 %v4983_v20 }
 0xfd6   : > { %6131 = vmatmul.msk.f32.vlgmr.msra.gmra.mxu0 %vm4795_vm6, %v4887_v44  ;;  %v5269_v44 = vld [vmem:[%s8539_s16] sm:$0xff] }
 0xfd7   : > { %5074 = vmatpush.msrb.mxu0 %v5058_v45  ;;  %v6159_v45 = vld [vmem:[%s8539_s16 + $0x20] sm:$0xff]  ;;  %5330 = vmatpush.msrb.mxu3 %v5269_v44 }
 0xfd9   : > { %5075 = vmatpush.msrb.mxu0 %v5057_v24  ;;  %v5398_v24 = vld [vmem:[#allocation33 + $0x30] sm:$0xff]  ;;  %5458 = vmatpush.msra.mxu3 %v5399_v21 }
 0xfdb   : > { %5076 = vmatpush.msrb.mxu0 %v5056_v25  ;;  %v6165_v25 = vld [vmem:[%s8539_s16 + $0x50] sm:$0xff]  ;;  %5459 = vmatpush.msra.mxu3 %v5398_v24 }
 0xfdd   : > { %5077 = vmatpush.msrb.mxu0 %v5055_v28  ;;  %v6163_v28 = vld [vmem:[%s8539_s16 + $0x40] sm:$0xff] }
 0xfde   : > { %6133 = vmatmul.msk.f32.vlgmr.msrb.gmra.mxu0 %vm1690_vm4, %v5054_v8  ;;  %v5394_v8 = vld [vmem:[#allocation33 + $0x10] sm:$0xff] }
 0xfdf   : > { %5220 = vmatpush.msra.mxu0 %v6151_v29  ;;  %v5395_v29 = vld [vmem:[#allocation33 + $0x18] sm:$0xff] }
 0xfe1   : > { %5221 = vmatpush.msra.mxu0 %v6150_v30  ;;  %v5393_v30 = vld [vmem:[#allocation33 + $0x8] sm:$0xff] }
 0xfe3   : > { %5222 = vmatpush.msra.mxu0 %v6149_v31  ;;  %v5392_v31 = vld [vmem:[#allocation33] sm:$0xff] }
 0xfe5   : > { %5223 = vmatpush.msra.mxu0 %v6148_v58  ;;  %v6524_v58 = vld [vmem:[#allocation30] ss:$0 sm:$0xff] }
 0xfe7   : > { %5224 = vmatpush.msra.mxu0 %v6147_v35  ;;  %v6525_v35 = vld [vmem:[%s8540_s2] ss:$0 sm:$0xff]  ;;  %s8541_s2 = sld [smem:[#allocation84_spill]] }
 0xfe9   : > { %5225 = vmatpush.msra.mxu0 %v6146_v33 }
 0xfeb   : > { %5226 = vmatpush.msra.mxu0 %v6145_v41 }
 0xfed   : > { %5227 = vmatpush.msra.mxu0 %v6144_v62 }
 0xfee   : > { %6156 = vmatmul.msk.f32.vlgmr.msra.gmra.mxu0 %vm1681_vm0, %v5204_v11  ;;  %v5417_v11 = vld [vmem:[#allocation33 + $0xb8] sm:$0xff] }
 0xfef   : > { %5435 = vmatpush.msrb.mxu0 %v5408_v63 }
 0xff1   : > { %5436 = vmatpush.msrb.mxu0 %v5407_v12 }
 0xff3   : > { %5437 = vmatpush.msrb.mxu0 %v5406_v13 }
 0xff5   : > { %5438 = vmatpush.msrb.mxu0 %v5405_v14  ;;  %v5416_v14 = vld [vmem:[#allocation33 + $0xb0] sm:$0xff] }
 0xff6   : > { %6157 = vmatmul.msk.f32.gmra.mxu0 %vm1681_vm0, %v5205_v48  ;;  %v5414_v48 = vld [vmem:[#allocation33 + $0xa0] sm:$0xff] }
 0xff7   : > { %5439 = vmatpush.msrb.mxu0 %v5404_v43  ;;  %v5415_v43 = vld [vmem:[#allocation33 + $0xa8] sm:$0xff] }
 0xff9   : > { %5440 = vmatpush.msrb.mxu0 %v5403_v49  ;;  %v5413_v49 = vld [vmem:[#allocation33 + $0x98] sm:$0xff] }
 0xffb   : > { %5441 = vmatpush.msrb.mxu0 %v5402_v51 }
 0xffd   : > { %5442 = vmatpush.msrb.mxu0 %v5401_v9  ;;  %v5422_v9 = vld [vmem:[#allocation3] sm:$0xff] }
 0xffe   : > { %6171 = vmatmul.msk.f32.vlgmr.msrb.gmra.mxu0 %vm1681_vm0, %v5423_v10  ;;  %v5412_v10 = vld [vmem:[#allocation33 + $0x90] sm:$0xff] }
0x103d   : > { %v4849_v53 = vpop.f32.mrf.mxu0 }
0x103e   : > { %v4855_v54 = vadd.f32 %v4849_v53, %v4750_v52  ;;  %v5411_v52 = vld [vmem:[#allocation33 + $0x88] sm:$0xff]  ;;  %v5410_v53 = vld [vmem:[#allocation33 + $0x80] sm:$0xff] }
0x1040   : > { %4857 = vst.msk [vmem:[%s8286_s11] sm:$0xff] %vm1681_vm0, %v4855_v54  ;;  %v5470_v54 = vld [vmem:[#allocation3 + $0x2] sm:$0xff] }
0x1045   : > { %v4852_v55 = vpop.f32.mrf.mxu0 }
0x1046   : > { %v4856_v57 = vadd.f32 %v4852_v55, %v4751_v42 }
0x1048   : > { %4858 = vst.msk [vmem:[%s8286_s11 + $0x8] sm:$0xff] %vm1681_vm0, %v4856_v57  ;;  %s7090_s11 = scalar_lea.hbm %s8490_s5, 16 }
0x1053   : > { %v5005_v61 = vpop.f32.mrf.mxu0 }
0x1054   : > { %v5011_v34 = vmul.f32 %v6522_v32, %v5005_v61 }
0x1056   : > { %v5015_v15 = vadd.f32 %v6523_v36, %v5011_v34 }
0x1058   : > { %v5016_v47 = vadd.f32 %v5015_v15, %v8096_v3  ;;  %v5397_v3 = vld [vmem:[#allocation33 + $0x28] sm:$0xff] }
0x1059   : > { %5460 = vmatpush.msra.mxu3 %v5397_v3 }
0x105b   : > { %v5079_v2 = vpop.f32.mrf.mxu0  ;;  %5461 = vmatpush.msra.mxu3 %v5396_v27 }
0x105c   : > { %6134 = vmatpush.msk.msrb.mxu1 %vm4828_vm7, %v5079_v2  ;;  %v5285_v2 = vld [vmem:[%s8541_s2] sm:$0xf]  ;;  %s6180_s2 = sshll.u32 %s7560_s15, 3 }
0x105d   : > { %6135 = vmatmul.msk.f32.vlgmr.msrb.gmra.mxu1 %vm4821_vm8, %v5082_v1  ;;  %5462 = vmatpush.msra.mxu3 %v5395_v29  ;;  %s5566_s6 = scalar_lea.hbm %s8490_s5, %s6180_s2 }
0x105e   : > { %s5570_s9 = sshll.u32 %s5566_s6, 4  ;;  %s5571_s9 = int_to_ptr.hbm [resolvable:$true] %s5570_s9 }
0x105f   : > { %5463 = vmatpush.msra.mxu3 %v5394_v8  ;;  %s7084_s13 = sshra.s32 %s5571_s9, 4  ;;  %s7085_s13 = int_to_ptr.hbm [resolvable:$true] %s7084_s13 }
0x1060   : > { %s7086_s14 = scalar_lea.hbm %s7085_s13, 8  ;;  %p7091_p8 = scmp.lt.s32.totalorder %s7085_s13, %s8490_s5 }
0x1061   : > { %5464 = vmatpush.msra.mxu3 %v5393_v30  ;;  %p7087_p9 = scmp.ne.s32.totalorder %s7085_s13, %s7086_s14  ;;  %p7092_p11 = scmp.lt.s32.totalorder %s7090_s11, %s7086_s14 }
0x1063   : > { %5465 = vmatpush.msra.mxu3 %v5392_v31  ;;  %p7088_p12 = pnand %p7087_p9, %p7579_p5  ;;  %p7093_p13 = por %p7092_p11, %p7091_p8 }
0x1065   : > { %p7089_p0 = pneg %p7088_p12 }
0x1067   : > { %p7094_p1 = pnand %p7093_p13, %p7089_p0 }
0x106b   : > { %v5229_v40 = vpop.f32.mrf.mxu0 }
0x106c   : > { %v5235_v59 = vadd.f32 %v5229_v40, %v5199_v6 }
0x1073   : > { %v5232_v5 = vpop.f32.mrf.mxu0 }
0x1074   : > { %v5236_v7 = vadd.f32 %v5232_v5, %v5202_v19  ;;  %v5420_v19 = vld [vmem:[%s8542_s17] sm:$0xf] }
0x1076   : > { %5254 = vmatpush.msra.mxu1 %v5236_v7 }
0x1078   : > { %5255 = vmatpush.msra.mxu1 %v5235_v59 }
0x1079   : > { %6158 = vmatmul.msk.f32.vlgmr.msra.gmra.mxu1 %vm4795_vm6, %v5139_v60 }
0x107a   : > { %5304 = vmatpush.msrb.mxu1 %v6162_v37 }
0x107b   : > { %v5444_v22 = vpop.f32.mrf.mxu0 }
0x107c   : > { %5305 = vmatpush.msrb.mxu1 %v6161_v46 }
0x107e   : > { %5306 = vmatpush.msrb.mxu1 %v6160_v18 }
0x1080   : > { %5307 = vmatpush.msrb.mxu1 %v6159_v45 }
0x1082   : > { %5351 = vmatpush.msra.mxu1 %v6166_v23 }
0x1084   : > { %5352 = vmatpush.msra.mxu1 %v6165_v25 }
0x1086   : > { %5353 = vmatpush.msra.mxu1 %v6164_v26 }
0x1088   : > { %5354 = vmatpush.msra.mxu1 %v6163_v28 }
0x10da   : > { %v5106_v39 = vpop.f32.mrf.mxu1 }
0x10db   : > { %v5109_v20 = vadd.f32 %v5106_v39, %v5016_v47 }
0x10dd   : > { %5110 = vst.msk [vmem:[%s8311_s1] sm:$0xff] %vm1681_vm0, %v5109_v20 }
0x10f6   : > { %v5257_v33 = vpop.f32.mrf.mxu1 }
0x10f7   : > { %v5263_v41 = vmul.f32 %v6524_v58, %v5257_v33 }
0x10f9   : > { %v5267_v62 = vadd.f32 %v6525_v35, %v5263_v41 }
0x10fb   : > { %v5268_v63 = vmax.f32 %v5267_v62, 0.0 }
0x10fd   : > { %5286 = vst.msk [vmem:[#allocation5 + $0x1] sm:$0xff] %vm1690_vm4, %v5268_v63 }
0x1104   : > { %v5288_v12 = vld [vmem:[#allocation5 + $0x1] sm:$0xff] }
0x1105   : > { %v5287_v13 = vld [vmem:[#allocation5] sm:$0xff]  ;;  %6167 = vmatmul.msk.f32.vlgmr.msrb.gmra.mxu1 %vm1690_vm4, %v5288_v12 }
0x1106   : > { %6168 = vmatmul.msk.f32.vlgmr.msrb.gmra.mxu3 %vm1690_vm4, %v5287_v13  ;;  %5482 = vmatpush.msrb.mxu1 %v5417_v11  ;;  %v5335_v51 = vld [vmem:[#allocation5 + $0x2] sm:$0xff] }
0x1108   : > { %5483 = vmatpush.msrb.mxu1 %v5416_v14 }
0x110a   : > { %5484 = vmatpush.msrb.mxu1 %v5415_v43 }
0x110c   : > { %5485 = vmatpush.msrb.mxu1 %v5414_v48 }
0x110d   : > { %6169 = vmatmul.msk.f32.vlgmr.msra.gmra.mxu1 %vm1690_vm4, %v5335_v51 }
0x110e   : > { %6172 = vmatmul.msk.f32.vlgmr.msra.gmra.mxu3 %vm1681_vm0, %v5422_v9  ;;  %5486 = vmatpush.msrb.mxu1 %v5413_v49 }
0x1110   : > { %5487 = vmatpush.msrb.mxu1 %v5412_v10 }
0x1112   : > { %5488 = vmatpush.msrb.mxu1 %v5411_v52 }
0x1114   : > { %5489 = vmatpush.msrb.mxu1 %v5410_v53 }
0x1115   : > { %6173 = vmatmul.msk.f32.vlgmr.msrb.gmra.mxu1 %vm1681_vm0, %v5470_v54 }
0x1182   : > { %v5309_v42 = vpop.f32.mrf.mxu1 }
0x1189   : > { %v5332_v55 = vpop.f32.mrf.mxu3 }
0x118a   : > { %v5333_v57 = vadd.f32 %v5332_v55, %v5309_v42  ;;  %v5356_v61 = vpop.f32.mrf.mxu1 }
0x118c   : > { %v5359_v1 = vadd.f32 %v5356_v61, %v5333_v57 }
0x118e   : > { %5378 = vmatpush.msra.mxu2 %v5359_v1 }
0x118f   : > { %6170 = vmatmul.msk.f32.vlgmr.msra.gmra.mxu2 %vm4720_vm5, %v5285_v2 }
0x1191   : > { %v5467_v16 = vpop.f32.mrf.mxu3 }
0x1192   : > { %v5468_v40 = vadd.f32 %v5467_v16, %v5444_v22  ;;  %v5491_v56 = vpop.f32.mrf.mxu1 }
0x1194   : > { %v5494_v4 = vadd.f32 %v5491_v56, %v5468_v40 }
0x1196   : > { %5513 = vmatpush.msrb.mxu2 %v5494_v4 }
0x1197   : > { %6174 = vmatmul.msk.f32.vlgmr.msrb.gmra.mxu2 %vm4720_vm5, %v5420_v19 }
0x1198   : > { %7097 = shalt.err (!%p7094_p1)
}
0x1199   : > { %s8544_s6 = sld [smem:[#allocation89_spill]]  ;;  %s6185_s4 = sshll.u32 %s7560_s15, 4 }
0x119a   : > { %6259 = dma.vmem_to_hbm [thread:$0]  (%p7579_p5), %s5569_s8, 128, %s5571_s9, %s8335_s12  }
0x119b   : > { %s5529_s16 = scalar_lea.sflag [#allocation8], %s8281_s7 }
0x119f   : > { %s5550_s1 = scalar_lea.hbm %s8544_s6, %s6185_s4  ;;  %s7118_s11 = scalar_lea.hbm %s8544_s6, 32 }
0x11a0   : > { %s5553_s2 = sshll.u32 %s5550_s1, 4  ;;  %s5554_s2 = int_to_ptr.hbm [resolvable:$true] %s5553_s2 }
0x11a1   : > { %s7112_s13 = sshra.s32 %s5554_s2, 4  ;;  %s7113_s13 = int_to_ptr.hbm [resolvable:$true] %s7112_s13 }
0x11a2   : > { %s7114_s14 = scalar_lea.hbm %s7113_s13, 16  ;;  %p7119_p7 = scmp.lt.s32.totalorder %s7113_s13, %s8544_s6 }
0x11a3   : > { %p7115_p2 = scmp.ne.s32.totalorder %s7113_s13, %s7114_s14  ;;  %p7120_p10 = scmp.lt.s32.totalorder %s7118_s11, %s7114_s14 }
0x11a5   : > { %p7116_p3 = pnand %p7115_p2, %p7579_p5  ;;  %p7121_p9 = por %p7120_p10, %p7119_p7 }
0x11a7   : > { %p7117_p4 = pneg %p7116_p3 }
0x11a9   : > { %p7122_p12 = pnand %p7121_p9, %p7117_p4 }
0x11ab   : > { %7125 = shalt.err (!%p7122_p12)
}
0x11ac   : > { %s7302_s5 = smov 128   ;;  %s8545_s9 = sld [smem:[#allocation83_spill]] }
0x11ad   : > { %s8546_s8 = sld [smem:[#allocation81_spill]]  ;;  %s7303_s18 = smov 8  }
0x11ae   : > { %s8547_s4 = sld [smem:[#allocation87_spill]]  ;;  %s5992_s13 = sshll.u32 %s8281_s7, 2 }
0x11af   : > { %s8548_s1 = sld [smem:[#allocation85_spill]]  ;;  %s6181_s14 = sshll.u32 %s7560_s15, 2 }
0x11b0   : > { %s8549_s17 = sld [smem:[#allocation91_spill]]  ;;  %s1667_s6 = scalar_lea.vmem [#allocation38], %s5992_s13 }
0x11b1   : > { %6258 = dma.vmem_to_hbm [thread:$0]  (%p7579_p5), %s8329_s3, 256, %s5554_s2, %s5529_s16, %s7302_s5, %s7302_s5, %s7303_s18  }
0x11b2   : > { %v6526_v5 = vld [vmem:[%s8545_s9] ss:$0 sm:$0xff]  ;;  %s5582_s19 = sshll.u32 %s1667_s6, 4  ;;  %s5583_s19 = int_to_ptr.vmem [resolvable:$true] %s5582_s19 }
0x11b3   : > { %v6527_v59 = vld [vmem:[%s8546_s8] ss:$0 sm:$0xff] }
0x11b4   : > { %v6528_v60 = vld [vmem:[%s8547_s4] ss:$0 sm:$0xff] }
0x11b5   : > { %v6529_v34 = vld [vmem:[%s8548_s1] ss:$0 sm:$0xff] }
0x11b6   : > { %s5580_s11 = scalar_lea.hbm %s8549_s17, %s6181_s14  ;;  %s7146_s18 = scalar_lea.hbm %s8549_s17, 8 }
0x11b7   : > { %s5584_s20 = sshll.u32 %s5580_s11, 4  ;;  %s5585_s20 = int_to_ptr.hbm [resolvable:$true] %s5584_s20 }
0x11b8   : > { %s7140_s5 = sshra.s32 %s5585_s20, 4  ;;  %s7141_s5 = int_to_ptr.hbm [resolvable:$true] %s7140_s5 }
0x11b9   : > { %s7142_s15 = scalar_lea.hbm %s7141_s5, 4  ;;  %p7147_p13 = scmp.lt.s32.totalorder %s7141_s5, %s8549_s17 }
0x11ba   : > { %p7143_p0 = scmp.ne.s32.totalorder %s7141_s5, %s7142_s15  ;;  %p7148_p1 = scmp.lt.s32.totalorder %s7146_s18, %s7142_s15 }
0x11bc   : > { %p7144_p8 = pnand %p7143_p0, %p7579_p5  ;;  %p7149_p2 = por %p7148_p1, %p7147_p13 }
0x11be   : > { %p7145_p11 = pneg %p7144_p8 }
0x11c0   : > { %p7150_p3 = pnand %p7149_p2, %p7145_p11 }
0x1212   : > { %v5380_v6 = vpop.f32.mrf.mxu2 }
0x1213   : > { %v5386_v7 = vmul.f32 %v6526_v5, %v5380_v6 }
0x1215   : > { %v5390_v32 = vadd.f32 %v6527_v59, %v5386_v7 }
0x1217   : > { %v5391_v17 = vadd.f32 %v5390_v32, %v8191_v50 }
0x121a   : > { %v5515_v36 = vpop.f32.mrf.mxu2 }
0x121b   : > { %v5521_v15 = vmul.f32 %v6528_v60, %v5515_v36 }
0x121d   : > { %v5525_v37 = vadd.f32 %v6529_v34, %v5521_v15 }
0x121f   : > { %v5526_v38 = vadd.f32 %v5525_v37, %v5391_v17 }
0x1221   : > { %5527 = vst.msk [vmem:[%s1667_s6] sm:$0xf] %vm3764_vm3, %v5526_v38 }
0x1222   : > { %7153 = shalt.err (!%p7150_p3)
}
0x1223   : > { %6260 = dma.vmem_to_hbm [thread:$0]  (%p7579_p5), %s5583_s19, 64, %s5585_s20, %s8335_s12  }
0x1224 PF: > { %s8550_s3 = sld [smem:[#allocation94_spill]] }
0x1225   : > { %s8551_s7 = sld [smem:[#allocation92_spill]] }
0x122a   : > { %p6365_p4 = scmp.ge.s32.totalorder %s8550_s3, 2 }
0x122b   : > { %s5596_s6 = sand.u32 1, %s8551_s7  }
0x122c   : > { %p6320_p7 = pnand %p6365_p4, %p7583_p6  ;;  %s5597_s2 = scalar_lea.sflag [#allocation8], %s5596_s6 }
0x122e   : > { %p6321_p10 = pneg %p6320_p7 }
0x1230   : > { %7211 = dma.done.wait (%p6321_p10), %s5597_s2, 256  }
0x1231   : > { %7213 = vsyncadd (%p6321_p10), %s5597_s2, 4294967040  ;;  %s8553_s9 = sadd.s32 4294967294, %s8550_s3  }
0x1232   : > { %s5606_s8 = sand.u32 1, %s8553_s9  }
0x1233   : > { %s5607_s4 = scalar_lea.sflag [#allocation37], %s5606_s8 }
0x1234   : > { %7215 = dma.done.wait (%p6321_p10), %s5607_s4, 192  }
0x1235   : > { %7217 = vsyncadd (%p6321_p10), %s5607_s4, 4294967104  ;;  %s8554_s11 = sld [smem:[#allocation95_spill]]  ;;  %s8557_s7 = smov %s7224_s10 }
0x1236   : > { %s8555_s19 = sld [smem:[#allocation93_spill]] }
0x1237   : > { %s8556_s0 = sld [smem:[#allocation96_spill]] }
0x123b   : > { %p115_p5 = scmp.ge.s32.totalorder %s8554_s11, 4  }
0x123c   : > { %s8558_s10 = smov %s8555_s19 }
0x123d   :  { %117 = sbr.rel (!%p115_p5) target bundleno = 105 (0x69), region = 502 }
0x1242   :  { %5623 = vsyncpa [#allocation7], 1 }
0x1243   :  { %5625 = vsyncpa [#allocation7 + $0x1], 1 }
0x1244   :  { %5626 = vsyncpa [#allocation10], 1 }
0x1245   :  { %5627 = vsyncpa [#allocation13], 1 }
0x1246   :  { %5628 = vsyncpa [#allocation16], 1 }
0x1247   :  { %5629 = vsyncpa [#allocation19], 1 }
0x1248   :  { %5630 = vsyncpa [#allocation22], 1 }
0x1249   :  { %5631 = vsyncpa [#allocation25], 1 }
0x124a   :  { %5632 = vsyncpa [#allocation28], 1 }
0x124b   :  { %5633 = vsyncpa [#allocation31], 1 }
0x124c   :  { %5634 = vsyncpa [#allocation34], 1 }
0x124d   :  { %5635 = vsyncpa [#allocation8], 1 }
0x124e   :  { %5637 = vsyncpa [#allocation8 + $0x1], 1 }
0x124f   :  { %5638 = vsyncpa [#allocation37], 1 }
0x1250   :  { %5640 = vsyncpa [#allocation37 + $0x1], 1 }

</bundles_post_ra>
